<compile_context>
chip_gen: v7x
topology: tpu7x:2x2x1
jax: 0.10.0
libtpu: 0.0.40
codegen_flags: <defaults>
</compile_context>

<pallas_src>
import math

import jax
import jax.numpy as jnp
import numpy as np
from jax.experimental import pallas as pl
from jax.experimental.pallas import tpu as pltpu

SUBLANE = 8
LANE = 128


def _round_up(n, m):
    return ((n + m - 1) // m) * m


# ----------------------------------------------------------------------------
# Fused encoder kernel.
#   x_ref:      (T*Bp, Ip)      time-major, batch-minor, zero-padded input
#   w*/b* refs: per direction (wih (in_pad, 3*Hp), whh (Hp, 3*Hp),
#               bih (1, 3*Hp), bhh (1, 3*Hp)), gate columns padded to Hp=128.
#   out_ref:    (Bp, 4*Hp)      [l0_fwd | l0_bwd | l1_fwd | l1_bwd] final hiddens
#   gi_f_scr / gi_b_scr: (T*Bp, 3*Hp) precomputed input projections (reused per layer)
#   seq_scr:    (T*Bp, 2*Hp)    layer-0 bidirectional outputs (layer-1 input)
#
# Padding invariant: padded weight rows/cols and padded bias entries are zero,
# so for padded lanes gi = gh = 0 -> r = z = 0.5, n = 0, h_new = 0.5*h; with
# h initialized to zero, padded lanes stay exactly zero for all time steps.
# ----------------------------------------------------------------------------
def encoder_kernel(x_ref,
                   wih0f_ref, whh0f_ref, bih0f_ref, bhh0f_ref,
                   wih0b_ref, whh0b_ref, bih0b_ref, bhh0b_ref,
                   wih1f_ref, whh1f_ref, bih1f_ref, bhh1f_ref,
                   wih1b_ref, whh1b_ref, bih1b_ref, bhh1b_ref,
                   out_ref,
                   gi_f_scr, gi_b_scr, seq_scr):
    Bp = out_ref.shape[0]
    Hp = out_ref.shape[1] // 4
    T = x_ref.shape[0] // Bp

    def gru_gates(gi, gh, h):
        # All lane slices are at multiples of 128 -> unmasked, vreg-aligned.
        r = jax.nn.sigmoid(gi[:, 0:Hp] + gh[:, 0:Hp])
        z = jax.nn.sigmoid(gi[:, Hp:2 * Hp] + gh[:, Hp:2 * Hp])
        n = jnp.tanh(gi[:, 2 * Hp:3 * Hp] + r * gh[:, 2 * Hp:3 * Hp])
        return (1.0 - z) * n + z * h

    # ---------------- Layer 0: hoisted input projection (both directions) ----
    x = x_ref[...]                                                  # (T*Bp, Ip)
    gi_f_scr[...] = jnp.dot(x, wih0f_ref[...],
                            preferred_element_type=jnp.float32) + bih0f_ref[...]
    gi_b_scr[...] = jnp.dot(x, wih0b_ref[...],
                            preferred_element_type=jnp.float32) + bih0b_ref[...]

    # Hoist bias broadcasts out of the (unrolled) time loop.
    bhh0f = jnp.broadcast_to(bhh0f_ref[...], (Bp, 3 * Hp))
    bhh0b = jnp.broadcast_to(bhh0b_ref[...], (Bp, 3 * Hp))

    hf = jnp.zeros((Bp, Hp), jnp.float32)
    hb = jnp.zeros((Bp, Hp), jnp.float32)
    # Static unroll (T is small & fixed); hidden state carried in registers.
    for t in range(T):
        rf = t * Bp                 # forward direction reads time t
        rb = (T - 1 - t) * Bp       # backward direction reads time T-1-t
        gif = gi_f_scr[pl.ds(rf, Bp), :]
        gib = gi_b_scr[pl.ds(rb, Bp), :]
        ghf = jnp.dot(hf, whh0f_ref[...],
                      preferred_element_type=jnp.float32) + bhh0f
        ghb = jnp.dot(hb, whh0b_ref[...],
                      preferred_element_type=jnp.float32) + bhh0b
        hf = gru_gates(gif, ghf, hf)
        hb = gru_gates(gib, ghb, hb)
        # Layer-0 outputs stay in VMEM; fwd in lanes [0:Hp], bwd in [Hp:2Hp].
        seq_scr[pl.ds(rf, Bp), pl.ds(0, Hp)] = hf
        seq_scr[pl.ds(rb, Bp), pl.ds(Hp, Hp)] = hb
    h0f_T, h0b_T = hf, hb

    # ---------------- Layer 1: hoisted input projection over layer-0 output --
    seq = seq_scr[...]                                              # (T*Bp, 2*Hp)
    gi_f_scr[...] = jnp.dot(seq, wih1f_ref[...],
                            preferred_element_type=jnp.float32) + bih1f_ref[...]
    gi_b_scr[...] = jnp.dot(seq, wih1b_ref[...],
                            preferred_element_type=jnp.float32) + bih1b_ref[...]

    bhh1f = jnp.broadcast_to(bhh1f_ref[...], (Bp, 3 * Hp))
    bhh1b = jnp.broadcast_to(bhh1b_ref[...], (Bp, 3 * Hp))

    hf = jnp.zeros((Bp, Hp), jnp.float32)
    hb = jnp.zeros((Bp, Hp), jnp.float32)
    for t in range(T):
        rf = t * Bp
        rb = (T - 1 - t) * Bp
        gif = gi_f_scr[pl.ds(rf, Bp), :]
        gib = gi_b_scr[pl.ds(rb, Bp), :]
        ghf = jnp.dot(hf, whh1f_ref[...],
                      preferred_element_type=jnp.float32) + bhh1f
        ghb = jnp.dot(hb, whh1b_ref[...],
                      preferred_element_type=jnp.float32) + bhh1b
        hf = gru_gates(gif, ghf, hf)
        hb = gru_gates(gib, ghb, hb)
        # Layer-1 per-step outputs are discarded by the module -> never stored.
    h1f_T, h1b_T = hf, hb

    # Lane-dense (8, 512) output, all writes 128-lane aligned.
    out_ref[:, pl.ds(0 * Hp, Hp)] = h0f_T
    out_ref[:, pl.ds(1 * Hp, Hp)] = h0b_T
    out_ref[:, pl.ds(2 * Hp, Hp)] = h1f_T
    out_ref[:, pl.ds(3 * Hp, Hp)] = h1b_T


# ----------------------------------------------------------------------------
# Host-side parameter padding (PyTorch layout -> lane-aligned kernel layout).
# ----------------------------------------------------------------------------
def pad_gru_dir_params(wih, whh, bih, bhh, H, Hp, in_pad, in_row_map):
    """wih (3H, in), whh (3H, H), biases (3H,)  ->  padded/transposed arrays."""
    wih = np.asarray(wih, np.float32)
    whh = np.asarray(whh, np.float32)
    bih = np.asarray(bih, np.float32)
    bhh = np.asarray(bhh, np.float32)
    wih_p = np.zeros((in_pad, 3 * Hp), np.float32)
    whh_p = np.zeros((Hp, 3 * Hp), np.float32)
    bih_p = np.zeros((1, 3 * Hp), np.float32)
    bhh_p = np.zeros((1, 3 * Hp), np.float32)
    for g in range(3):                      # gate order: r, z, n (PyTorch)
        c0 = g * Hp
        wih_p[in_row_map, c0:c0 + H] = wih[g * H:(g + 1) * H, :].T
        whh_p[:H, c0:c0 + H] = whh[g * H:(g + 1) * H, :].T
        bih_p[0, c0:c0 + H] = bih[g * H:(g + 1) * H]
        bhh_p[0, c0:c0 + H] = bhh[g * H:(g + 1) * H]
    return (jnp.asarray(wih_p), jnp.asarray(whh_p),
            jnp.asarray(bih_p), jnp.asarray(bhh_p))


def prepare_encoder_params(params, num_features, hidden):
    H = hidden
    Hp = _round_up(H, LANE)
    Ip = _round_up(num_features, LANE)
    l0_map = np.arange(num_features)
    # Layer-1 input columns: [0:H] = layer-0 fwd, [H:2H] = layer-0 bwd, and the
    # kernel's layer-0 output places fwd at padded lanes [0:H], bwd at [Hp:Hp+H].
    l1_map = np.concatenate([np.arange(H), Hp + np.arange(H)])
    flat = []
    flat += pad_gru_dir_params(*params["l0_f"], H, Hp, Ip, l0_map)
    flat += pad_gru_dir_params(*params["l0_b"], H, Hp, Ip, l0_map)
    flat += pad_gru_dir_params(*params["l1_f"], H, Hp, 2 * Hp, l1_map)
    flat += pad_gru_dir_params(*params["l1_b"], H, Hp, 2 * Hp, l1_map)
    return tuple(flat), H, Hp, Ip


# ----------------------------------------------------------------------------
# Encoder.forward wrapper.
# ----------------------------------------------------------------------------
def encoder_forward(x, padded_params, H, Hp, Ip):
    B, T, F = x.shape
    Bp = _round_up(B, SUBLANE)

    # batch_first (B,T,F) -> time-major, batch/feature padded, flattened 2D.
    x_tm = jnp.transpose(x.astype(jnp.float32), (1, 0, 2))          # (T, B, F)
    x_tm = jnp.pad(x_tm, ((0, 0), (0, Bp - B), (0, Ip - F)))
    x2d = x_tm.reshape(T * Bp, Ip)

    vmem = pl.BlockSpec(memory_space=pltpu.MemorySpace.VMEM)
    out = pl.pallas_call(
        encoder_kernel,
        out_shape=jax.ShapeDtypeStruct((Bp, 4 * Hp), jnp.float32),
        in_specs=[vmem] * (1 + len(padded_params)),
        out_specs=vmem,
        scratch_shapes=[pltpu.VMEM((T * Bp, 3 * Hp), jnp.float32),   # gi fwd
                        pltpu.VMEM((T * Bp, 3 * Hp), jnp.float32),   # gi bwd
                        pltpu.VMEM((T * Bp, 2 * Hp), jnp.float32)],  # layer-0 out
    )(x2d, *padded_params)

    # Strip the padding: torch.cat((hidden[0],hidden[1],hidden[2],hidden[3]), 1)
    return jnp.concatenate([out[:B, i * Hp:i * Hp + H] for i in range(4)],
                           axis=1)


# ----------------------------------------------------------------------------
# Pure-JAX reference (lax.scan, HIGHEST precision) for a sanity check.
# ----------------------------------------------------------------------------
def gru_direction_ref(x_tm, wih, whh, bih, bhh):
    H = whh.shape[1]

    def step(h, x_t):
        gi = jnp.dot(x_t, wih.T, precision=jax.lax.Precision.HIGHEST) + bih
        gh = jnp.dot(h, whh.T, precision=jax.lax.Precision.HIGHEST) + bhh
        r = jax.nn.sigmoid(gi[:, :H] + gh[:, :H])
        z = jax.nn.sigmoid(gi[:, H:2 * H] + gh[:, H:2 * H])
        n = jnp.tanh(gi[:, 2 * H:] + r * gh[:, 2 * H:])
        h_new = (1.0 - z) * n + z * h
        return h_new, h_new

    h0 = jnp.zeros((x_tm.shape[1], H), jnp.float32)
    hT, outs = jax.lax.scan(step, h0, x_tm)
    return outs, hT


def encoder_forward_ref(x, params):
    x_tm = jnp.transpose(x.astype(jnp.float32), (1, 0, 2))
    out0f, h0f = gru_direction_ref(x_tm, *params["l0_f"])
    out0b_rev, h0b = gru_direction_ref(jnp.flip(x_tm, axis=0), *params["l0_b"])
    out0 = jnp.concatenate([out0f, jnp.flip(out0b_rev, axis=0)], axis=-1)
    _, h1f = gru_direction_ref(out0, *params["l1_f"])
    _, h1b = gru_direction_ref(jnp.flip(out0, axis=0), *params["l1_b"])
    return jnp.concatenate([h0f, h0b, h1f, h1b], axis=1)


# ----------------------------------------------------------------------------
# Deterministic parameter init (PyTorch GRU default: U(-1/sqrt(H), 1/sqrt(H))).
# ----------------------------------------------------------------------------
def init_params(key, num_features, hidden):
    k = 1.0 / math.sqrt(hidden)
    params = {}
    specs = {
        "l0_f": num_features, "l0_b": num_features,   # layer 0: input = F
        "l1_f": 2 * hidden,   "l1_b": 2 * hidden,     # layer 1: input = 2H (bidir)
    }
    for name, in_size in specs.items():
        key, k1, k2, k3, k4 = jax.random.split(key, 5)
        wih = jax.random.uniform(k1, (3 * hidden, in_size), jnp.float32, -k, k)
        whh = jax.random.uniform(k2, (3 * hidden, hidden), jnp.float32, -k, k)
        bih = jax.random.uniform(k3, (3 * hidden,), jnp.float32, -k, k)
        bhh = jax.random.uniform(k4, (3 * hidden,), jnp.float32, -k, k)
        params[name] = (wih, whh, bih, bhh)
    return params


if __name__ == "__main__":
    # Small synthetic config.
    NUM_FEATURES = 16
    hidden_size_layer_1 = 32
    hidden_size_layer_2 = 64      # unused by Encoder.forward (kept for fidelity)
    dropout_encoder = 0.0
    B, T = 2, 8

    key = jax.random.PRNGKey(0)
    key, pkey, xkey = jax.random.split(key, 3)
    params = init_params(pkey, NUM_FEATURES, hidden_size_layer_1)
    x = jax.random.normal(xkey, (B, T, NUM_FEATURES), dtype=jnp.float32)

    padded_params, H, Hp, Ip = prepare_encoder_params(
        params, NUM_FEATURES, hidden_size_layer_1)

    hidden = jax.block_until_ready(encoder_forward(x, padded_params, H, Hp, Ip))
    assert hidden.shape == (B, 4 * hidden_size_layer_1), hidden.shape

    hidden_ref = jax.block_until_ready(encoder_forward_ref(x, params))
    # Kernel matmuls use default MXU precision (bf16 operands, f32 accumulate),
    # reference uses HIGHEST -> allow bf16-class tolerance.
    np.testing.assert_allclose(np.asarray(hidden), np.asarray(hidden_ref),
                               rtol=2e-2, atol=2e-2)

    print("KERNEL_OK")
</pallas_src>

<mosaic_0001>
module attributes {stable_mosaic.version = 11 : i64} {
  func.func @encoder_kernel(%arg0: memref<64x128xf32, #tpu.memory_space<vmem>>, %arg1: memref<128x384xf32, #tpu.memory_space<vmem>>, %arg2: memref<128x384xf32, #tpu.memory_space<vmem>>, %arg3: memref<1x384xf32, #tpu.memory_space<vmem>>, %arg4: memref<1x384xf32, #tpu.memory_space<vmem>>, %arg5: memref<128x384xf32, #tpu.memory_space<vmem>>, %arg6: memref<128x384xf32, #tpu.memory_space<vmem>>, %arg7: memref<1x384xf32, #tpu.memory_space<vmem>>, %arg8: memref<1x384xf32, #tpu.memory_space<vmem>>, %arg9: memref<256x384xf32, #tpu.memory_space<vmem>>, %arg10: memref<128x384xf32, #tpu.memory_space<vmem>>, %arg11: memref<1x384xf32, #tpu.memory_space<vmem>>, %arg12: memref<1x384xf32, #tpu.memory_space<vmem>>, %arg13: memref<256x384xf32, #tpu.memory_space<vmem>>, %arg14: memref<128x384xf32, #tpu.memory_space<vmem>>, %arg15: memref<1x384xf32, #tpu.memory_space<vmem>>, %arg16: memref<1x384xf32, #tpu.memory_space<vmem>>, %arg17: memref<8x512xf32, #tpu.memory_space<vmem>>, %arg18: memref<64x384xf32, #tpu.memory_space<vmem>>, %arg19: memref<64x384xf32, #tpu.memory_space<vmem>>, %arg20: memref<64x256xf32, #tpu.memory_space<vmem>>) attributes {dimension_semantics = [], scalar_prefetch = 0 : i64, scratch_operands = 3 : i64, tpu.core_type = #tpu.core_type<tc>} {
    %c0 = arith.constant 0 : index
    %c0_0 = arith.constant 0 : index
    %0 = vector.load %arg0[%c0, %c0_0] : memref<64x128xf32, #tpu.memory_space<vmem>>, vector<64x128xf32>
    %c0_1 = arith.constant 0 : index
    %c0_2 = arith.constant 0 : index
    %1 = vector.load %arg1[%c0_1, %c0_2] : memref<128x384xf32, #tpu.memory_space<vmem>>, vector<128x384xf32>
    %cst = arith.constant dense<0.000000e+00> : vector<64x384xf32>
    %2 = tpu.matmul %0, %1, %cst {dimension_numbers = #tpu.dot_dimension_numbers<[1], [0], [0], [1], [0, 0, 1, 1], [], []>} : vector<64x128xf32>, vector<128x384xf32>, vector<64x384xf32> -> vector<64x384xf32>
    %c0_3 = arith.constant 0 : index
    %c0_4 = arith.constant 0 : index
    %3 = vector.load %arg3[%c0_3, %c0_4] : memref<1x384xf32, #tpu.memory_space<vmem>>, vector<1x384xf32>
    %4 = vector.broadcast %3 : vector<1x384xf32> to vector<64x384xf32>
    %5 = arith.addf %2, %4 : vector<64x384xf32>
    %c0_5 = arith.constant 0 : index
    %c0_6 = arith.constant 0 : index
    %6 = vector.load %arg18[%c0_5, %c0_6] : memref<64x384xf32, #tpu.memory_space<vmem>>, vector<64x384xf32>
    tpu.vector_store %arg18[%c0_5, %c0_6], %5 {strides = array<i32>} : memref<64x384xf32, #tpu.memory_space<vmem>>, vector<64x384xf32>,
    %c0_7 = arith.constant 0 : index
    %c0_8 = arith.constant 0 : index
    %7 = vector.load %arg5[%c0_7, %c0_8] : memref<128x384xf32, #tpu.memory_space<vmem>>, vector<128x384xf32>
    %cst_9 = arith.constant dense<0.000000e+00> : vector<64x384xf32>
    %8 = tpu.matmul %0, %7, %cst_9 {dimension_numbers = #tpu.dot_dimension_numbers<[1], [0], [0], [1], [0, 0, 1, 1], [], []>} : vector<64x128xf32>, vector<128x384xf32>, vector<64x384xf32> -> vector<64x384xf32>
    %c0_10 = arith.constant 0 : index
    %c0_11 = arith.constant 0 : index
    %9 = vector.load %arg7[%c0_10, %c0_11] : memref<1x384xf32, #tpu.memory_space<vmem>>, vector<1x384xf32>
    %10 = vector.broadcast %9 : vector<1x384xf32> to vector<64x384xf32>
    %11 = arith.addf %8, %10 : vector<64x384xf32>
    %c0_12 = arith.constant 0 : index
    %c0_13 = arith.constant 0 : index
    %12 = vector.load %arg19[%c0_12, %c0_13] : memref<64x384xf32, #tpu.memory_space<vmem>>, vector<64x384xf32>
    tpu.vector_store %arg19[%c0_12, %c0_13], %11 {strides = array<i32>} : memref<64x384xf32, #tpu.memory_space<vmem>>, vector<64x384xf32>,
    %c0_14 = arith.constant 0 : index
    %c0_15 = arith.constant 0 : index
    %13 = vector.load %arg4[%c0_14, %c0_15] : memref<1x384xf32, #tpu.memory_space<vmem>>, vector<1x384xf32>
    %14 = vector.shape_cast %13 : vector<1x384xf32> to vector<1x384xf32>
    %15 = vector.broadcast %14 : vector<1x384xf32> to vector<8x384xf32>
    %c0_16 = arith.constant 0 : index
    %c0_17 = arith.constant 0 : index
    %16 = vector.load %arg8[%c0_16, %c0_17] : memref<1x384xf32, #tpu.memory_space<vmem>>, vector<1x384xf32>
    %17 = vector.shape_cast %16 : vector<1x384xf32> to vector<1x384xf32>
    %18 = vector.broadcast %17 : vector<1x384xf32> to vector<8x384xf32>
    %cst_18 = arith.constant 0.000000e+00 : f32
    %19 = vector.broadcast %cst_18 : f32 to vector<8x128xf32>
    %cst_19 = arith.constant 0.000000e+00 : f32
    %20 = vector.broadcast %cst_19 : f32 to vector<8x128xf32>
    %c0_20 = arith.constant 0 : index
    %c0_21 = arith.constant 0 : index
    %21 = vector.load %arg18[%c0_20, %c0_21] : memref<64x384xf32, #tpu.memory_space<vmem>>, vector<8x384xf32>
    %c56 = arith.constant 56 : index
    %c0_22 = arith.constant 0 : index
    %22 = vector.load %arg19[%c56, %c0_22] : memref<64x384xf32, #tpu.memory_space<vmem>>, vector<8x384xf32>
    %c0_23 = arith.constant 0 : index
    %c0_24 = arith.constant 0 : index
    %23 = vector.load %arg2[%c0_23, %c0_24] : memref<128x384xf32, #tpu.memory_space<vmem>>, vector<128x384xf32>
    %cst_25 = arith.constant dense<0.000000e+00> : vector<8x384xf32>
    %24 = tpu.matmul %19, %23, %cst_25 {dimension_numbers = #tpu.dot_dimension_numbers<[1], [0], [0], [1], [0, 0, 1, 1], [], []>} : vector<8x128xf32>, vector<128x384xf32>, vector<8x384xf32> -> vector<8x384xf32>
    %25 = arith.addf %24, %15 : vector<8x384xf32>
    %c0_26 = arith.constant 0 : index
    %c0_27 = arith.constant 0 : index
    %26 = vector.load %arg6[%c0_26, %c0_27] : memref<128x384xf32, #tpu.memory_space<vmem>>, vector<128x384xf32>
    %cst_28 = arith.constant dense<0.000000e+00> : vector<8x384xf32>
    %27 = tpu.matmul %20, %26, %cst_28 {dimension_numbers = #tpu.dot_dimension_numbers<[1], [0], [0], [1], [0, 0, 1, 1], [], []>} : vector<8x128xf32>, vector<128x384xf32>, vector<8x384xf32> -> vector<8x384xf32>
    %28 = arith.addf %27, %18 : vector<8x384xf32>
    %29 = vector.extract_strided_slice %21 {offsets = [0, 0], sizes = [8, 128], strides = [1, 1]} : vector<8x384xf32> to vector<8x128xf32>
    %30 = vector.extract_strided_slice %25 {offsets = [0, 0], sizes = [8, 128], strides = [1, 1]} : vector<8x384xf32> to vector<8x128xf32>
    %31 = arith.addf %29, %30 : vector<8x128xf32>
    %32 = arith.negf %31 : vector<8x128xf32>
    %33 = math.exp %32 : vector<8x128xf32>
    %cst_29 = arith.constant 1.000000e+00 : f32
    %34 = vector.broadcast %cst_29 : f32 to vector<8x128xf32>
    %35 = arith.addf %34, %33 : vector<8x128xf32>
    %36 = arith.divf %34, %35 : vector<8x128xf32>
    %37 = vector.extract_strided_slice %21 {offsets = [0, 128], sizes = [8, 128], strides = [1, 1]} : vector<8x384xf32> to vector<8x128xf32>
    %38 = vector.extract_strided_slice %25 {offsets = [0, 128], sizes = [8, 128], strides = [1, 1]} : vector<8x384xf32> to vector<8x128xf32>
    %39 = arith.addf %37, %38 : vector<8x128xf32>
    %40 = arith.negf %39 : vector<8x128xf32>
    %41 = math.exp %40 : vector<8x128xf32>
    %cst_30 = arith.constant 1.000000e+00 : f32
    %42 = vector.broadcast %cst_30 : f32 to vector<8x128xf32>
    %43 = arith.addf %42, %41 : vector<8x128xf32>
    %44 = arith.divf %42, %43 : vector<8x128xf32>
    %45 = vector.extract_strided_slice %21 {offsets = [0, 256], sizes = [8, 128], strides = [1, 1]} : vector<8x384xf32> to vector<8x128xf32>
    %46 = vector.extract_strided_slice %25 {offsets = [0, 256], sizes = [8, 128], strides = [1, 1]} : vector<8x384xf32> to vector<8x128xf32>
    %47 = arith.mulf %36, %46 : vector<8x128xf32>
    %48 = arith.addf %45, %47 : vector<8x128xf32>
    %49 = math.tanh %48 : vector<8x128xf32>
    %cst_31 = arith.constant 1.000000e+00 : f32
    %50 = vector.broadcast %cst_31 : f32 to vector<8x128xf32>
    %51 = arith.subf %50, %44 : vector<8x128xf32>
    %52 = arith.mulf %51, %49 : vector<8x128xf32>
    %53 = arith.mulf %44, %19 : vector<8x128xf32>
    %54 = arith.addf %52, %53 : vector<8x128xf32>
    %55 = vector.extract_strided_slice %22 {offsets = [0, 0], sizes = [8, 128], strides = [1, 1]} : vector<8x384xf32> to vector<8x128xf32>
    %56 = vector.extract_strided_slice %28 {offsets = [0, 0], sizes = [8, 128], strides = [1, 1]} : vector<8x384xf32> to vector<8x128xf32>
    %57 = arith.addf %55, %56 : vector<8x128xf32>
    %58 = arith.negf %57 : vector<8x128xf32>
    %59 = math.exp %58 : vector<8x128xf32>
    %cst_32 = arith.constant 1.000000e+00 : f32
    %60 = vector.broadcast %cst_32 : f32 to vector<8x128xf32>
    %61 = arith.addf %60, %59 : vector<8x128xf32>
    %62 = arith.divf %60, %61 : vector<8x128xf32>
    %63 = vector.extract_strided_slice %22 {offsets = [0, 128], sizes = [8, 128], strides = [1, 1]} : vector<8x384xf32> to vector<8x128xf32>
    %64 = vector.extract_strided_slice %28 {offsets = [0, 128], sizes = [8, 128], strides = [1, 1]} : vector<8x384xf32> to vector<8x128xf32>
    %65 = arith.addf %63, %64 : vector<8x128xf32>
    %66 = arith.negf %65 : vector<8x128xf32>
    %67 = math.exp %66 : vector<8x128xf32>
    %cst_33 = arith.constant 1.000000e+00 : f32
    %68 = vector.broadcast %cst_33 : f32 to vector<8x128xf32>
    %69 = arith.addf %68, %67 : vector<8x128xf32>
    %70 = arith.divf %68, %69 : vector<8x128xf32>
    %71 = vector.extract_strided_slice %22 {offsets = [0, 256], sizes = [8, 128], strides = [1, 1]} : vector<8x384xf32> to vector<8x128xf32>
    %72 = vector.extract_strided_slice %28 {offsets = [0, 256], sizes = [8, 128], strides = [1, 1]} : vector<8x384xf32> to vector<8x128xf32>
    %73 = arith.mulf %62, %72 : vector<8x128xf32>
    %74 = arith.addf %71, %73 : vector<8x128xf32>
    %75 = math.tanh %74 : vector<8x128xf32>
    %cst_34 = arith.constant 1.000000e+00 : f32
    %76 = vector.broadcast %cst_34 : f32 to vector<8x128xf32>
    %77 = arith.subf %76, %70 : vector<8x128xf32>
    %78 = arith.mulf %77, %75 : vector<8x128xf32>
    %79 = arith.mulf %70, %20 : vector<8x128xf32>
    %80 = arith.addf %78, %79 : vector<8x128xf32>
    %c0_35 = arith.constant 0 : index
    %c0_36 = arith.constant 0 : index
    %81 = vector.load %arg20[%c0_35, %c0_36] : memref<64x256xf32, #tpu.memory_space<vmem>>, vector<8x128xf32>
    tpu.vector_store %arg20[%c0_35, %c0_36], %54 {strides = array<i32>} : memref<64x256xf32, #tpu.memory_space<vmem>>, vector<8x128xf32>,
    %c56_37 = arith.constant 56 : index
    %c128 = arith.constant 128 : index
    %82 = vector.load %arg20[%c56_37, %c128] : memref<64x256xf32, #tpu.memory_space<vmem>>, vector<8x128xf32>
    tpu.vector_store %arg20[%c56_37, %c128], %80 {strides = array<i32>} : memref<64x256xf32, #tpu.memory_space<vmem>>, vector<8x128xf32>,
    %c8 = arith.constant 8 : index
    %c0_38 = arith.constant 0 : index
    %83 = vector.load %arg18[%c8, %c0_38] : memref<64x384xf32, #tpu.memory_space<vmem>>, vector<8x384xf32>
    %c48 = arith.constant 48 : index
    %c0_39 = arith.constant 0 : index
    %84 = vector.load %arg19[%c48, %c0_39] : memref<64x384xf32, #tpu.memory_space<vmem>>, vector<8x384xf32>
    %c0_40 = arith.constant 0 : index
    %c0_41 = arith.constant 0 : index
    %85 = vector.load %arg2[%c0_40, %c0_41] : memref<128x384xf32, #tpu.memory_space<vmem>>, vector<128x384xf32>
    %cst_42 = arith.constant dense<0.000000e+00> : vector<8x384xf32>
    %86 = tpu.matmul %54, %85, %cst_42 {dimension_numbers = #tpu.dot_dimension_numbers<[1], [0], [0], [1], [0, 0, 1, 1], [], []>} : vector<8x128xf32>, vector<128x384xf32>, vector<8x384xf32> -> vector<8x384xf32>
    %87 = arith.addf %86, %15 : vector<8x384xf32>
    %c0_43 = arith.constant 0 : index
    %c0_44 = arith.constant 0 : index
    %88 = vector.load %arg6[%c0_43, %c0_44] : memref<128x384xf32, #tpu.memory_space<vmem>>, vector<128x384xf32>
    %cst_45 = arith.constant dense<0.000000e+00> : vector<8x384xf32>
    %89 = tpu.matmul %80, %88, %cst_45 {dimension_numbers = #tpu.dot_dimension_numbers<[1], [0], [0], [1], [0, 0, 1, 1], [], []>} : vector<8x128xf32>, vector<128x384xf32>, vector<8x384xf32> -> vector<8x384xf32>
    %90 = arith.addf %89, %18 : vector<8x384xf32>
    %91 = vector.extract_strided_slice %83 {offsets = [0, 0], sizes = [8, 128], strides = [1, 1]} : vector<8x384xf32> to vector<8x128xf32>
    %92 = vector.extract_strided_slice %87 {offsets = [0, 0], sizes = [8, 128], strides = [1, 1]} : vector<8x384xf32> to vector<8x128xf32>
    %93 = arith.addf %91, %92 : vector<8x128xf32>
    %94 = arith.negf %93 : vector<8x128xf32>
    %95 = math.exp %94 : vector<8x128xf32>
    %cst_46 = arith.constant 1.000000e+00 : f32
    %96 = vector.broadcast %cst_46 : f32 to vector<8x128xf32>
    %97 = arith.addf %96, %95 : vector<8x128xf32>
    %98 = arith.divf %96, %97 : vector<8x128xf32>
    %99 = vector.extract_strided_slice %83 {offsets = [0, 128], sizes = [8, 128], strides = [1, 1]} : vector<8x384xf32> to vector<8x128xf32>
    %100 = vector.extract_strided_slice %87 {offsets = [0, 128], sizes = [8, 128], strides = [1, 1]} : vector<8x384xf32> to vector<8x128xf32>
    %101 = arith.addf %99, %100 : vector<8x128xf32>
    %102 = arith.negf %101 : vector<8x128xf32>
    %103 = math.exp %102 : vector<8x128xf32>
    %cst_47 = arith.constant 1.000000e+00 : f32
    %104 = vector.broadcast %cst_47 : f32 to vector<8x128xf32>
    %105 = arith.addf %104, %103 : vector<8x128xf32>
    %106 = arith.divf %104, %105 : vector<8x128xf32>
    %107 = vector.extract_strided_slice %83 {offsets = [0, 256], sizes = [8, 128], strides = [1, 1]} : vector<8x384xf32> to vector<8x128xf32>
    %108 = vector.extract_strided_slice %87 {offsets = [0, 256], sizes = [8, 128], strides = [1, 1]} : vector<8x384xf32> to vector<8x128xf32>
    %109 = arith.mulf %98, %108 : vector<8x128xf32>
    %110 = arith.addf %107, %109 : vector<8x128xf32>
    %111 = math.tanh %110 : vector<8x128xf32>
    %cst_48 = arith.constant 1.000000e+00 : f32
    %112 = vector.broadcast %cst_48 : f32 to vector<8x128xf32>
    %113 = arith.subf %112, %106 : vector<8x128xf32>
    %114 = arith.mulf %113, %111 : vector<8x128xf32>
    %115 = arith.mulf %106, %54 : vector<8x128xf32>
    %116 = arith.addf %114, %115 : vector<8x128xf32>
    %117 = vector.extract_strided_slice %84 {offsets = [0, 0], sizes = [8, 128], strides = [1, 1]} : vector<8x384xf32> to vector<8x128xf32>
    %118 = vector.extract_strided_slice %90 {offsets = [0, 0], sizes = [8, 128], strides = [1, 1]} : vector<8x384xf32> to vector<8x128xf32>
    %119 = arith.addf %117, %118 : vector<8x128xf32>
    %120 = arith.negf %119 : vector<8x128xf32>
    %121 = math.exp %120 : vector<8x128xf32>
    %cst_49 = arith.constant 1.000000e+00 : f32
    %122 = vector.broadcast %cst_49 : f32 to vector<8x128xf32>
    %123 = arith.addf %122, %121 : vector<8x128xf32>
    %124 = arith.divf %122, %123 : vector<8x128xf32>
    %125 = vector.extract_strided_slice %84 {offsets = [0, 128], sizes = [8, 128], strides = [1, 1]} : vector<8x384xf32> to vector<8x128xf32>
    %126 = vector.extract_strided_slice %90 {offsets = [0, 128], sizes = [8, 128], strides = [1, 1]} : vector<8x384xf32> to vector<8x128xf32>
    %127 = arith.addf %125, %126 : vector<8x128xf32>
    %128 = arith.negf %127 : vector<8x128xf32>
    %129 = math.exp %128 : vector<8x128xf32>
    %cst_50 = arith.constant 1.000000e+00 : f32
    %130 = vector.broadcast %cst_50 : f32 to vector<8x128xf32>
    %131 = arith.addf %130, %129 : vector<8x128xf32>
    %132 = arith.divf %130, %131 : vector<8x128xf32>
    %133 = vector.extract_strided_slice %84 {offsets = [0, 256], sizes = [8, 128], strides = [1, 1]} : vector<8x384xf32> to vector<8x128xf32>
    %134 = vector.extract_strided_slice %90 {offsets = [0, 256], sizes = [8, 128], strides = [1, 1]} : vector<8x384xf32> to vector<8x128xf32>
    %135 = arith.mulf %124, %134 : vector<8x128xf32>
    %136 = arith.addf %133, %135 : vector<8x128xf32>
    %137 = math.tanh %136 : vector<8x128xf32>
    %cst_51 = arith.constant 1.000000e+00 : f32
    %138 = vector.broadcast %cst_51 : f32 to vector<8x128xf32>
    %139 = arith.subf %138, %132 : vector<8x128xf32>
    %140 = arith.mulf %139, %137 : vector<8x128xf32>
    %141 = arith.mulf %132, %80 : vector<8x128xf32>
    %142 = arith.addf %140, %141 : vector<8x128xf32>
    %c8_52 = arith.constant 8 : index
    %c0_53 = arith.constant 0 : index
    %143 = vector.load %arg20[%c8_52, %c0_53] : memref<64x256xf32, #tpu.memory_space<vmem>>, vector<8x128xf32>
    tpu.vector_store %arg20[%c8_52, %c0_53], %116 {strides = array<i32>} : memref<64x256xf32, #tpu.memory_space<vmem>>, vector<8x128xf32>,
    %c48_54 = arith.constant 48 : index
    %c128_55 = arith.constant 128 : index
    %144 = vector.load %arg20[%c48_54, %c128_55] : memref<64x256xf32, #tpu.memory_space<vmem>>, vector<8x128xf32>
    tpu.vector_store %arg20[%c48_54, %c128_55], %142 {strides = array<i32>} : memref<64x256xf32, #tpu.memory_space<vmem>>, vector<8x128xf32>,
    %c16 = arith.constant 16 : index
    %c0_56 = arith.constant 0 : index
    %145 = vector.load %arg18[%c16, %c0_56] : memref<64x384xf32, #tpu.memory_space<vmem>>, vector<8x384xf32>
    %c40 = arith.constant 40 : index
    %c0_57 = arith.constant 0 : index
    %146 = vector.load %arg19[%c40, %c0_57] : memref<64x384xf32, #tpu.memory_space<vmem>>, vector<8x384xf32>
    %c0_58 = arith.constant 0 : index
    %c0_59 = arith.constant 0 : index
    %147 = vector.load %arg2[%c0_58, %c0_59] : memref<128x384xf32, #tpu.memory_space<vmem>>, vector<128x384xf32>
    %cst_60 = arith.constant dense<0.000000e+00> : vector<8x384xf32>
    %148 = tpu.matmul %116, %147, %cst_60 {dimension_numbers = #tpu.dot_dimension_numbers<[1], [0], [0], [1], [0, 0, 1, 1], [], []>} : vector<8x128xf32>, vector<128x384xf32>, vector<8x384xf32> -> vector<8x384xf32>
    %149 = arith.addf %148, %15 : vector<8x384xf32>
    %c0_61 = arith.constant 0 : index
    %c0_62 = arith.constant 0 : index
    %150 = vector.load %arg6[%c0_61, %c0_62] : memref<128x384xf32, #tpu.memory_space<vmem>>, vector<128x384xf32>
    %cst_63 = arith.constant dense<0.000000e+00> : vector<8x384xf32>
    %151 = tpu.matmul %142, %150, %cst_63 {dimension_numbers = #tpu.dot_dimension_numbers<[1], [0], [0], [1], [0, 0, 1, 1], [], []>} : vector<8x128xf32>, vector<128x384xf32>, vector<8x384xf32> -> vector<8x384xf32>
    %152 = arith.addf %151, %18 : vector<8x384xf32>
    %153 = vector.extract_strided_slice %145 {offsets = [0, 0], sizes = [8, 128], strides = [1, 1]} : vector<8x384xf32> to vector<8x128xf32>
    %154 = vector.extract_strided_slice %149 {offsets = [0, 0], sizes = [8, 128], strides = [1, 1]} : vector<8x384xf32> to vector<8x128xf32>
    %155 = arith.addf %153, %154 : vector<8x128xf32>
    %156 = arith.negf %155 : vector<8x128xf32>
    %157 = math.exp %156 : vector<8x128xf32>
    %cst_64 = arith.constant 1.000000e+00 : f32
    %158 = vector.broadcast %cst_64 : f32 to vector<8x128xf32>
    %159 = arith.addf %158, %157 : vector<8x128xf32>
    %160 = arith.divf %158, %159 : vector<8x128xf32>
    %161 = vector.extract_strided_slice %145 {offsets = [0, 128], sizes = [8, 128], strides = [1, 1]} : vector<8x384xf32> to vector<8x128xf32>
    %162 = vector.extract_strided_slice %149 {offsets = [0, 128], sizes = [8, 128], strides = [1, 1]} : vector<8x384xf32> to vector<8x128xf32>
    %163 = arith.addf %161, %162 : vector<8x128xf32>
    %164 = arith.negf %163 : vector<8x128xf32>
    %165 = math.exp %164 : vector<8x128xf32>
    %cst_65 = arith.constant 1.000000e+00 : f32
    %166 = vector.broadcast %cst_65 : f32 to vector<8x128xf32>
    %167 = arith.addf %166, %165 : vector<8x128xf32>
    %168 = arith.divf %166, %167 : vector<8x128xf32>
    %169 = vector.extract_strided_slice %145 {offsets = [0, 256], sizes = [8, 128], strides = [1, 1]} : vector<8x384xf32> to vector<8x128xf32>
    %170 = vector.extract_strided_slice %149 {offsets = [0, 256], sizes = [8, 128], strides = [1, 1]} : vector<8x384xf32> to vector<8x128xf32>
    %171 = arith.mulf %160, %170 : vector<8x128xf32>
    %172 = arith.addf %169, %171 : vector<8x128xf32>
    %173 = math.tanh %172 : vector<8x128xf32>
    %cst_66 = arith.constant 1.000000e+00 : f32
    %174 = vector.broadcast %cst_66 : f32 to vector<8x128xf32>
    %175 = arith.subf %174, %168 : vector<8x128xf32>
    %176 = arith.mulf %175, %173 : vector<8x128xf32>
    %177 = arith.mulf %168, %116 : vector<8x128xf32>
    %178 = arith.addf %176, %177 : vector<8x128xf32>
    %179 = vector.extract_strided_slice %146 {offsets = [0, 0], sizes = [8, 128], strides = [1, 1]} : vector<8x384xf32> to vector<8x128xf32>
    %180 = vector.extract_strided_slice %152 {offsets = [0, 0], sizes = [8, 128], strides = [1, 1]} : vector<8x384xf32> to vector<8x128xf32>
    %181 = arith.addf %179, %180 : vector<8x128xf32>
    %182 = arith.negf %181 : vector<8x128xf32>
    %183 = math.exp %182 : vector<8x128xf32>
    %cst_67 = arith.constant 1.000000e+00 : f32
    %184 = vector.broadcast %cst_67 : f32 to vector<8x128xf32>
    %185 = arith.addf %184, %183 : vector<8x128xf32>
    %186 = arith.divf %184, %185 : vector<8x128xf32>
    %187 = vector.extract_strided_slice %146 {offsets = [0, 128], sizes = [8, 128], strides = [1, 1]} : vector<8x384xf32> to vector<8x128xf32>
    %188 = vector.extract_strided_slice %152 {offsets = [0, 128], sizes = [8, 128], strides = [1, 1]} : vector<8x384xf32> to vector<8x128xf32>
    %189 = arith.addf %187, %188 : vector<8x128xf32>
    %190 = arith.negf %189 : vector<8x128xf32>
    %191 = math.exp %190 : vector<8x128xf32>
    %cst_68 = arith.constant 1.000000e+00 : f32
    %192 = vector.broadcast %cst_68 : f32 to vector<8x128xf32>
    %193 = arith.addf %192, %191 : vector<8x128xf32>
    %194 = arith.divf %192, %193 : vector<8x128xf32>
    %195 = vector.extract_strided_slice %146 {offsets = [0, 256], sizes = [8, 128], strides = [1, 1]} : vector<8x384xf32> to vector<8x128xf32>
    %196 = vector.extract_strided_slice %152 {offsets = [0, 256], sizes = [8, 128], strides = [1, 1]} : vector<8x384xf32> to vector<8x128xf32>
    %197 = arith.mulf %186, %196 : vector<8x128xf32>
    %198 = arith.addf %195, %197 : vector<8x128xf32>
    %199 = math.tanh %198 : vector<8x128xf32>
    %cst_69 = arith.constant 1.000000e+00 : f32
    %200 = vector.broadcast %cst_69 : f32 to vector<8x128xf32>
    %201 = arith.subf %200, %194 : vector<8x128xf32>
    %202 = arith.mulf %201, %199 : vector<8x128xf32>
    %203 = arith.mulf %194, %142 : vector<8x128xf32>
    %204 = arith.addf %202, %203 : vector<8x128xf32>
    %c16_70 = arith.constant 16 : index
    %c0_71 = arith.constant 0 : index
    %205 = vector.load %arg20[%c16_70, %c0_71] : memref<64x256xf32, #tpu.memory_space<vmem>>, vector<8x128xf32>
    tpu.vector_store %arg20[%c16_70, %c0_71], %178 {strides = array<i32>} : memref<64x256xf32, #tpu.memory_space<vmem>>, vector<8x128xf32>,
    %c40_72 = arith.constant 40 : index
    %c128_73 = arith.constant 128 : index
    %206 = vector.load %arg20[%c40_72, %c128_73] : memref<64x256xf32, #tpu.memory_space<vmem>>, vector<8x128xf32>
    tpu.vector_store %arg20[%c40_72, %c128_73], %204 {strides = array<i32>} : memref<64x256xf32, #tpu.memory_space<vmem>>, vector<8x128xf32>,
    %c24 = arith.constant 24 : index
    %c0_74 = arith.constant 0 : index
    %207 = vector.load %arg18[%c24, %c0_74] : memref<64x384xf32, #tpu.memory_space<vmem>>, vector<8x384xf32>
    %c32 = arith.constant 32 : index
    %c0_75 = arith.constant 0 : index
    %208 = vector.load %arg19[%c32, %c0_75] : memref<64x384xf32, #tpu.memory_space<vmem>>, vector<8x384xf32>
    %c0_76 = arith.constant 0 : index
    %c0_77 = arith.constant 0 : index
    %209 = vector.load %arg2[%c0_76, %c0_77] : memref<128x384xf32, #tpu.memory_space<vmem>>, vector<128x384xf32>
    %cst_78 = arith.constant dense<0.000000e+00> : vector<8x384xf32>
    %210 = tpu.matmul %178, %209, %cst_78 {dimension_numbers = #tpu.dot_dimension_numbers<[1], [0], [0], [1], [0, 0, 1, 1], [], []>} : vector<8x128xf32>, vector<128x384xf32>, vector<8x384xf32> -> vector<8x384xf32>
    %211 = arith.addf %210, %15 : vector<8x384xf32>
    %c0_79 = arith.constant 0 : index
    %c0_80 = arith.constant 0 : index
    %212 = vector.load %arg6[%c0_79, %c0_80] : memref<128x384xf32, #tpu.memory_space<vmem>>, vector<128x384xf32>
    %cst_81 = arith.constant dense<0.000000e+00> : vector<8x384xf32>
    %213 = tpu.matmul %204, %212, %cst_81 {dimension_numbers = #tpu.dot_dimension_numbers<[1], [0], [0], [1], [0, 0, 1, 1], [], []>} : vector<8x128xf32>, vector<128x384xf32>, vector<8x384xf32> -> vector<8x384xf32>
    %214 = arith.addf %213, %18 : vector<8x384xf32>
    %215 = vector.extract_strided_slice %207 {offsets = [0, 0], sizes = [8, 128], strides = [1, 1]} : vector<8x384xf32> to vector<8x128xf32>
    %216 = vector.extract_strided_slice %211 {offsets = [0, 0], sizes = [8, 128], strides = [1, 1]} : vector<8x384xf32> to vector<8x128xf32>
    %217 = arith.addf %215, %216 : vector<8x128xf32>
    %218 = arith.negf %217 : vector<8x128xf32>
    %219 = math.exp %218 : vector<8x128xf32>
    %cst_82 = arith.constant 1.000000e+00 : f32
    %220 = vector.broadcast %cst_82 : f32 to vector<8x128xf32>
    %221 = arith.addf %220, %219 : vector<8x128xf32>
    %222 = arith.divf %220, %221 : vector<8x128xf32>
    %223 = vector.extract_strided_slice %207 {offsets = [0, 128], sizes = [8, 128], strides = [1, 1]} : vector<8x384xf32> to vector<8x128xf32>
    %224 = vector.extract_strided_slice %211 {offsets = [0, 128], sizes = [8, 128], strides = [1, 1]} : vector<8x384xf32> to vector<8x128xf32>
    %225 = arith.addf %223, %224 : vector<8x128xf32>
    %226 = arith.negf %225 : vector<8x128xf32>
    %227 = math.exp %226 : vector<8x128xf32>
    %cst_83 = arith.constant 1.000000e+00 : f32
    %228 = vector.broadcast %cst_83 : f32 to vector<8x128xf32>
    %229 = arith.addf %228, %227 : vector<8x128xf32>
    %230 = arith.divf %228, %229 : vector<8x128xf32>
    %231 = vector.extract_strided_slice %207 {offsets = [0, 256], sizes = [8, 128], strides = [1, 1]} : vector<8x384xf32> to vector<8x128xf32>
    %232 = vector.extract_strided_slice %211 {offsets = [0, 256], sizes = [8, 128], strides = [1, 1]} : vector<8x384xf32> to vector<8x128xf32>
    %233 = arith.mulf %222, %232 : vector<8x128xf32>
    %234 = arith.addf %231, %233 : vector<8x128xf32>
    %235 = math.tanh %234 : vector<8x128xf32>
    %cst_84 = arith.constant 1.000000e+00 : f32
    %236 = vector.broadcast %cst_84 : f32 to vector<8x128xf32>
    %237 = arith.subf %236, %230 : vector<8x128xf32>
    %238 = arith.mulf %237, %235 : vector<8x128xf32>
    %239 = arith.mulf %230, %178 : vector<8x128xf32>
    %240 = arith.addf %238, %239 : vector<8x128xf32>
    %241 = vector.extract_strided_slice %208 {offsets = [0, 0], sizes = [8, 128], strides = [1, 1]} : vector<8x384xf32> to vector<8x128xf32>
    %242 = vector.extract_strided_slice %214 {offsets = [0, 0], sizes = [8, 128], strides = [1, 1]} : vector<8x384xf32> to vector<8x128xf32>
    %243 = arith.addf %241, %242 : vector<8x128xf32>
    %244 = arith.negf %243 : vector<8x128xf32>
    %245 = math.exp %244 : vector<8x128xf32>
    %cst_85 = arith.constant 1.000000e+00 : f32
    %246 = vector.broadcast %cst_85 : f32 to vector<8x128xf32>
    %247 = arith.addf %246, %245 : vector<8x128xf32>
    %248 = arith.divf %246, %247 : vector<8x128xf32>
    %249 = vector.extract_strided_slice %208 {offsets = [0, 128], sizes = [8, 128], strides = [1, 1]} : vector<8x384xf32> to vector<8x128xf32>
    %250 = vector.extract_strided_slice %214 {offsets = [0, 128], sizes = [8, 128], strides = [1, 1]} : vector<8x384xf32> to vector<8x128xf32>
    %251 = arith.addf %249, %250 : vector<8x128xf32>
    %252 = arith.negf %251 : vector<8x128xf32>
    %253 = math.exp %252 : vector<8x128xf32>
    %cst_86 = arith.constant 1.000000e+00 : f32
    %254 = vector.broadcast %cst_86 : f32 to vector<8x128xf32>
    %255 = arith.addf %254, %253 : vector<8x128xf32>
    %256 = arith.divf %254, %255 : vector<8x128xf32>
    %257 = vector.extract_strided_slice %208 {offsets = [0, 256], sizes = [8, 128], strides = [1, 1]} : vector<8x384xf32> to vector<8x128xf32>
    %258 = vector.extract_strided_slice %214 {offsets = [0, 256], sizes = [8, 128], strides = [1, 1]} : vector<8x384xf32> to vector<8x128xf32>
    %259 = arith.mulf %248, %258 : vector<8x128xf32>
    %260 = arith.addf %257, %259 : vector<8x128xf32>
    %261 = math.tanh %260 : vector<8x128xf32>
    %cst_87 = arith.constant 1.000000e+00 : f32
    %262 = vector.broadcast %cst_87 : f32 to vector<8x128xf32>
    %263 = arith.subf %262, %256 : vector<8x128xf32>
    %264 = arith.mulf %263, %261 : vector<8x128xf32>
    %265 = arith.mulf %256, %204 : vector<8x128xf32>
    %266 = arith.addf %264, %265 : vector<8x128xf32>
    %c24_88 = arith.constant 24 : index
    %c0_89 = arith.constant 0 : index
    %267 = vector.load %arg20[%c24_88, %c0_89] : memref<64x256xf32, #tpu.memory_space<vmem>>, vector<8x128xf32>
    tpu.vector_store %arg20[%c24_88, %c0_89], %240 {strides = array<i32>} : memref<64x256xf32, #tpu.memory_space<vmem>>, vector<8x128xf32>,
    %c32_90 = arith.constant 32 : index
    %c128_91 = arith.constant 128 : index
    %268 = vector.load %arg20[%c32_90, %c128_91] : memref<64x256xf32, #tpu.memory_space<vmem>>, vector<8x128xf32>
    tpu.vector_store %arg20[%c32_90, %c128_91], %266 {strides = array<i32>} : memref<64x256xf32, #tpu.memory_space<vmem>>, vector<8x128xf32>,
    %c32_92 = arith.constant 32 : index
    %c0_93 = arith.constant 0 : index
    %269 = vector.load %arg18[%c32_92, %c0_93] : memref<64x384xf32, #tpu.memory_space<vmem>>, vector<8x384xf32>
    %c24_94 = arith.constant 24 : index
    %c0_95 = arith.constant 0 : index
    %270 = vector.load %arg19[%c24_94, %c0_95] : memref<64x384xf32, #tpu.memory_space<vmem>>, vector<8x384xf32>
    %c0_96 = arith.constant 0 : index
    %c0_97 = arith.constant 0 : index
    %271 = vector.load %arg2[%c0_96, %c0_97] : memref<128x384xf32, #tpu.memory_space<vmem>>, vector<128x384xf32>
    %cst_98 = arith.constant dense<0.000000e+00> : vector<8x384xf32>
    %272 = tpu.matmul %240, %271, %cst_98 {dimension_numbers = #tpu.dot_dimension_numbers<[1], [0], [0], [1], [0, 0, 1, 1], [], []>} : vector<8x128xf32>, vector<128x384xf32>, vector<8x384xf32> -> vector<8x384xf32>
    %273 = arith.addf %272, %15 : vector<8x384xf32>
    %c0_99 = arith.constant 0 : index
    %c0_100 = arith.constant 0 : index
    %274 = vector.load %arg6[%c0_99, %c0_100] : memref<128x384xf32, #tpu.memory_space<vmem>>, vector<128x384xf32>
    %cst_101 = arith.constant dense<0.000000e+00> : vector<8x384xf32>
    %275 = tpu.matmul %266, %274, %cst_101 {dimension_numbers = #tpu.dot_dimension_numbers<[1], [0], [0], [1], [0, 0, 1, 1], [], []>} : vector<8x128xf32>, vector<128x384xf32>, vector<8x384xf32> -> vector<8x384xf32>
    %276 = arith.addf %275, %18 : vector<8x384xf32>
    %277 = vector.extract_strided_slice %269 {offsets = [0, 0], sizes = [8, 128], strides = [1, 1]} : vector<8x384xf32> to vector<8x128xf32>
    %278 = vector.extract_strided_slice %273 {offsets = [0, 0], sizes = [8, 128], strides = [1, 1]} : vector<8x384xf32> to vector<8x128xf32>
    %279 = arith.addf %277, %278 : vector<8x128xf32>
    %280 = arith.negf %279 : vector<8x128xf32>
    %281 = math.exp %280 : vector<8x128xf32>
    %cst_102 = arith.constant 1.000000e+00 : f32
    %282 = vector.broadcast %cst_102 : f32 to vector<8x128xf32>
    %283 = arith.addf %282, %281 : vector<8x128xf32>
    %284 = arith.divf %282, %283 : vector<8x128xf32>
    %285 = vector.extract_strided_slice %269 {offsets = [0, 128], sizes = [8, 128], strides = [1, 1]} : vector<8x384xf32> to vector<8x128xf32>
    %286 = vector.extract_strided_slice %273 {offsets = [0, 128], sizes = [8, 128], strides = [1, 1]} : vector<8x384xf32> to vector<8x128xf32>
    %287 = arith.addf %285, %286 : vector<8x128xf32>
    %288 = arith.negf %287 : vector<8x128xf32>
    %289 = math.exp %288 : vector<8x128xf32>
    %cst_103 = arith.constant 1.000000e+00 : f32
    %290 = vector.broadcast %cst_103 : f32 to vector<8x128xf32>
    %291 = arith.addf %290, %289 : vector<8x128xf32>
    %292 = arith.divf %290, %291 : vector<8x128xf32>
    %293 = vector.extract_strided_slice %269 {offsets = [0, 256], sizes = [8, 128], strides = [1, 1]} : vector<8x384xf32> to vector<8x128xf32>
    %294 = vector.extract_strided_slice %273 {offsets = [0, 256], sizes = [8, 128], strides = [1, 1]} : vector<8x384xf32> to vector<8x128xf32>
    %295 = arith.mulf %284, %294 : vector<8x128xf32>
    %296 = arith.addf %293, %295 : vector<8x128xf32>
    %297 = math.tanh %296 : vector<8x128xf32>
    %cst_104 = arith.constant 1.000000e+00 : f32
    %298 = vector.broadcast %cst_104 : f32 to vector<8x128xf32>
    %299 = arith.subf %298, %292 : vector<8x128xf32>
    %300 = arith.mulf %299, %297 : vector<8x128xf32>
    %301 = arith.mulf %292, %240 : vector<8x128xf32>
    %302 = arith.addf %300, %301 : vector<8x128xf32>
    %303 = vector.extract_strided_slice %270 {offsets = [0, 0], sizes = [8, 128], strides = [1, 1]} : vector<8x384xf32> to vector<8x128xf32>
    %304 = vector.extract_strided_slice %276 {offsets = [0, 0], sizes = [8, 128], strides = [1, 1]} : vector<8x384xf32> to vector<8x128xf32>
    %305 = arith.addf %303, %304 : vector<8x128xf32>
    %306 = arith.negf %305 : vector<8x128xf32>
    %307 = math.exp %306 : vector<8x128xf32>
    %cst_105 = arith.constant 1.000000e+00 : f32
    %308 = vector.broadcast %cst_105 : f32 to vector<8x128xf32>
    %309 = arith.addf %308, %307 : vector<8x128xf32>
    %310 = arith.divf %308, %309 : vector<8x128xf32>
    %311 = vector.extract_strided_slice %270 {offsets = [0, 128], sizes = [8, 128], strides = [1, 1]} : vector<8x384xf32> to vector<8x128xf32>
    %312 = vector.extract_strided_slice %276 {offsets = [0, 128], sizes = [8, 128], strides = [1, 1]} : vector<8x384xf32> to vector<8x128xf32>
    %313 = arith.addf %311, %312 : vector<8x128xf32>
    %314 = arith.negf %313 : vector<8x128xf32>
    %315 = math.exp %314 : vector<8x128xf32>
    %cst_106 = arith.constant 1.000000e+00 : f32
    %316 = vector.broadcast %cst_106 : f32 to vector<8x128xf32>
    %317 = arith.addf %316, %315 : vector<8x128xf32>
    %318 = arith.divf %316, %317 : vector<8x128xf32>
    %319 = vector.extract_strided_slice %270 {offsets = [0, 256], sizes = [8, 128], strides = [1, 1]} : vector<8x384xf32> to vector<8x128xf32>
    %320 = vector.extract_strided_slice %276 {offsets = [0, 256], sizes = [8, 128], strides = [1, 1]} : vector<8x384xf32> to vector<8x128xf32>
    %321 = arith.mulf %310, %320 : vector<8x128xf32>
    %322 = arith.addf %319, %321 : vector<8x128xf32>
    %323 = math.tanh %322 : vector<8x128xf32>
    %cst_107 = arith.constant 1.000000e+00 : f32
    %324 = vector.broadcast %cst_107 : f32 to vector<8x128xf32>
    %325 = arith.subf %324, %318 : vector<8x128xf32>
    %326 = arith.mulf %325, %323 : vector<8x128xf32>
    %327 = arith.mulf %318, %266 : vector<8x128xf32>
    %328 = arith.addf %326, %327 : vector<8x128xf32>
    %c32_108 = arith.constant 32 : index
    %c0_109 = arith.constant 0 : index
    %329 = vector.load %arg20[%c32_108, %c0_109] : memref<64x256xf32, #tpu.memory_space<vmem>>, vector<8x128xf32>
    tpu.vector_store %arg20[%c32_108, %c0_109], %302 {strides = array<i32>} : memref<64x256xf32, #tpu.memory_space<vmem>>, vector<8x128xf32>,
    %c24_110 = arith.constant 24 : index
    %c128_111 = arith.constant 128 : index
    %330 = vector.load %arg20[%c24_110, %c128_111] : memref<64x256xf32, #tpu.memory_space<vmem>>, vector<8x128xf32>
    tpu.vector_store %arg20[%c24_110, %c128_111], %328 {strides = array<i32>} : memref<64x256xf32, #tpu.memory_space<vmem>>, vector<8x128xf32>,
    %c40_112 = arith.constant 40 : index
    %c0_113 = arith.constant 0 : index
    %331 = vector.load %arg18[%c40_112, %c0_113] : memref<64x384xf32, #tpu.memory_space<vmem>>, vector<8x384xf32>
    %c16_114 = arith.constant 16 : index
    %c0_115 = arith.constant 0 : index
    %332 = vector.load %arg19[%c16_114, %c0_115] : memref<64x384xf32, #tpu.memory_space<vmem>>, vector<8x384xf32>
    %c0_116 = arith.constant 0 : index
    %c0_117 = arith.constant 0 : index
    %333 = vector.load %arg2[%c0_116, %c0_117] : memref<128x384xf32, #tpu.memory_space<vmem>>, vector<128x384xf32>
    %cst_118 = arith.constant dense<0.000000e+00> : vector<8x384xf32>
    %334 = tpu.matmul %302, %333, %cst_118 {dimension_numbers = #tpu.dot_dimension_numbers<[1], [0], [0], [1], [0, 0, 1, 1], [], []>} : vector<8x128xf32>, vector<128x384xf32>, vector<8x384xf32> -> vector<8x384xf32>
    %335 = arith.addf %334, %15 : vector<8x384xf32>
    %c0_119 = arith.constant 0 : index
    %c0_120 = arith.constant 0 : index
    %336 = vector.load %arg6[%c0_119, %c0_120] : memref<128x384xf32, #tpu.memory_space<vmem>>, vector<128x384xf32>
    %cst_121 = arith.constant dense<0.000000e+00> : vector<8x384xf32>
    %337 = tpu.matmul %328, %336, %cst_121 {dimension_numbers = #tpu.dot_dimension_numbers<[1], [0], [0], [1], [0, 0, 1, 1], [], []>} : vector<8x128xf32>, vector<128x384xf32>, vector<8x384xf32> -> vector<8x384xf32>
    %338 = arith.addf %337, %18 : vector<8x384xf32>
    %339 = vector.extract_strided_slice %331 {offsets = [0, 0], sizes = [8, 128], strides = [1, 1]} : vector<8x384xf32> to vector<8x128xf32>
    %340 = vector.extract_strided_slice %335 {offsets = [0, 0], sizes = [8, 128], strides = [1, 1]} : vector<8x384xf32> to vector<8x128xf32>
    %341 = arith.addf %339, %340 : vector<8x128xf32>
    %342 = arith.negf %341 : vector<8x128xf32>
    %343 = math.exp %342 : vector<8x128xf32>
    %cst_122 = arith.constant 1.000000e+00 : f32
    %344 = vector.broadcast %cst_122 : f32 to vector<8x128xf32>
    %345 = arith.addf %344, %343 : vector<8x128xf32>
    %346 = arith.divf %344, %345 : vector<8x128xf32>
    %347 = vector.extract_strided_slice %331 {offsets = [0, 128], sizes = [8, 128], strides = [1, 1]} : vector<8x384xf32> to vector<8x128xf32>
    %348 = vector.extract_strided_slice %335 {offsets = [0, 128], sizes = [8, 128], strides = [1, 1]} : vector<8x384xf32> to vector<8x128xf32>
    %349 = arith.addf %347, %348 : vector<8x128xf32>
    %350 = arith.negf %349 : vector<8x128xf32>
    %351 = math.exp %350 : vector<8x128xf32>
    %cst_123 = arith.constant 1.000000e+00 : f32
    %352 = vector.broadcast %cst_123 : f32 to vector<8x128xf32>
    %353 = arith.addf %352, %351 : vector<8x128xf32>
    %354 = arith.divf %352, %353 : vector<8x128xf32>
    %355 = vector.extract_strided_slice %331 {offsets = [0, 256], sizes = [8, 128], strides = [1, 1]} : vector<8x384xf32> to vector<8x128xf32>
    %356 = vector.extract_strided_slice %335 {offsets = [0, 256], sizes = [8, 128], strides = [1, 1]} : vector<8x384xf32> to vector<8x128xf32>
    %357 = arith.mulf %346, %356 : vector<8x128xf32>
    %358 = arith.addf %355, %357 : vector<8x128xf32>
    %359 = math.tanh %358 : vector<8x128xf32>
    %cst_124 = arith.constant 1.000000e+00 : f32
    %360 = vector.broadcast %cst_124 : f32 to vector<8x128xf32>
    %361 = arith.subf %360, %354 : vector<8x128xf32>
    %362 = arith.mulf %361, %359 : vector<8x128xf32>
    %363 = arith.mulf %354, %302 : vector<8x128xf32>
    %364 = arith.addf %362, %363 : vector<8x128xf32>
    %365 = vector.extract_strided_slice %332 {offsets = [0, 0], sizes = [8, 128], strides = [1, 1]} : vector<8x384xf32> to vector<8x128xf32>
    %366 = vector.extract_strided_slice %338 {offsets = [0, 0], sizes = [8, 128], strides = [1, 1]} : vector<8x384xf32> to vector<8x128xf32>
    %367 = arith.addf %365, %366 : vector<8x128xf32>
    %368 = arith.negf %367 : vector<8x128xf32>
    %369 = math.exp %368 : vector<8x128xf32>
    %cst_125 = arith.constant 1.000000e+00 : f32
    %370 = vector.broadcast %cst_125 : f32 to vector<8x128xf32>
    %371 = arith.addf %370, %369 : vector<8x128xf32>
    %372 = arith.divf %370, %371 : vector<8x128xf32>
    %373 = vector.extract_strided_slice %332 {offsets = [0, 128], sizes = [8, 128], strides = [1, 1]} : vector<8x384xf32> to vector<8x128xf32>
    %374 = vector.extract_strided_slice %338 {offsets = [0, 128], sizes = [8, 128], strides = [1, 1]} : vector<8x384xf32> to vector<8x128xf32>
    %375 = arith.addf %373, %374 : vector<8x128xf32>
    %376 = arith.negf %375 : vector<8x128xf32>
    %377 = math.exp %376 : vector<8x128xf32>
    %cst_126 = arith.constant 1.000000e+00 : f32
    %378 = vector.broadcast %cst_126 : f32 to vector<8x128xf32>
    %379 = arith.addf %378, %377 : vector<8x128xf32>
    %380 = arith.divf %378, %379 : vector<8x128xf32>
    %381 = vector.extract_strided_slice %332 {offsets = [0, 256], sizes = [8, 128], strides = [1, 1]} : vector<8x384xf32> to vector<8x128xf32>
    %382 = vector.extract_strided_slice %338 {offsets = [0, 256], sizes = [8, 128], strides = [1, 1]} : vector<8x384xf32> to vector<8x128xf32>
    %383 = arith.mulf %372, %382 : vector<8x128xf32>
    %384 = arith.addf %381, %383 : vector<8x128xf32>
    %385 = math.tanh %384 : vector<8x128xf32>
    %cst_127 = arith.constant 1.000000e+00 : f32
    %386 = vector.broadcast %cst_127 : f32 to vector<8x128xf32>
    %387 = arith.subf %386, %380 : vector<8x128xf32>
    %388 = arith.mulf %387, %385 : vector<8x128xf32>
    %389 = arith.mulf %380, %328 : vector<8x128xf32>
    %390 = arith.addf %388, %389 : vector<8x128xf32>
    %c40_128 = arith.constant 40 : index
    %c0_129 = arith.constant 0 : index
    %391 = vector.load %arg20[%c40_128, %c0_129] : memref<64x256xf32, #tpu.memory_space<vmem>>, vector<8x128xf32>
    tpu.vector_store %arg20[%c40_128, %c0_129], %364 {strides = array<i32>} : memref<64x256xf32, #tpu.memory_space<vmem>>, vector<8x128xf32>,
    %c16_130 = arith.constant 16 : index
    %c128_131 = arith.constant 128 : index
    %392 = vector.load %arg20[%c16_130, %c128_131] : memref<64x256xf32, #tpu.memory_space<vmem>>, vector<8x128xf32>
    tpu.vector_store %arg20[%c16_130, %c128_131], %390 {strides = array<i32>} : memref<64x256xf32, #tpu.memory_space<vmem>>, vector<8x128xf32>,
    %c48_132 = arith.constant 48 : index
    %c0_133 = arith.constant 0 : index
    %393 = vector.load %arg18[%c48_132, %c0_133] : memref<64x384xf32, #tpu.memory_space<vmem>>, vector<8x384xf32>
    %c8_134 = arith.constant 8 : index
    %c0_135 = arith.constant 0 : index
    %394 = vector.load %arg19[%c8_134, %c0_135] : memref<64x384xf32, #tpu.memory_space<vmem>>, vector<8x384xf32>
    %c0_136 = arith.constant 0 : index
    %c0_137 = arith.constant 0 : index
    %395 = vector.load %arg2[%c0_136, %c0_137] : memref<128x384xf32, #tpu.memory_space<vmem>>, vector<128x384xf32>
    %cst_138 = arith.constant dense<0.000000e+00> : vector<8x384xf32>
    %396 = tpu.matmul %364, %395, %cst_138 {dimension_numbers = #tpu.dot_dimension_numbers<[1], [0], [0], [1], [0, 0, 1, 1], [], []>} : vector<8x128xf32>, vector<128x384xf32>, vector<8x384xf32> -> vector<8x384xf32>
    %397 = arith.addf %396, %15 : vector<8x384xf32>
    %c0_139 = arith.constant 0 : index
    %c0_140 = arith.constant 0 : index
    %398 = vector.load %arg6[%c0_139, %c0_140] : memref<128x384xf32, #tpu.memory_space<vmem>>, vector<128x384xf32>
    %cst_141 = arith.constant dense<0.000000e+00> : vector<8x384xf32>
    %399 = tpu.matmul %390, %398, %cst_141 {dimension_numbers = #tpu.dot_dimension_numbers<[1], [0], [0], [1], [0, 0, 1, 1], [], []>} : vector<8x128xf32>, vector<128x384xf32>, vector<8x384xf32> -> vector<8x384xf32>
    %400 = arith.addf %399, %18 : vector<8x384xf32>
    %401 = vector.extract_strided_slice %393 {offsets = [0, 0], sizes = [8, 128], strides = [1, 1]} : vector<8x384xf32> to vector<8x128xf32>
    %402 = vector.extract_strided_slice %397 {offsets = [0, 0], sizes = [8, 128], strides = [1, 1]} : vector<8x384xf32> to vector<8x128xf32>
    %403 = arith.addf %401, %402 : vector<8x128xf32>
    %404 = arith.negf %403 : vector<8x128xf32>
    %405 = math.exp %404 : vector<8x128xf32>
    %cst_142 = arith.constant 1.000000e+00 : f32
    %406 = vector.broadcast %cst_142 : f32 to vector<8x128xf32>
    %407 = arith.addf %406, %405 : vector<8x128xf32>
    %408 = arith.divf %406, %407 : vector<8x128xf32>
    %409 = vector.extract_strided_slice %393 {offsets = [0, 128], sizes = [8, 128], strides = [1, 1]} : vector<8x384xf32> to vector<8x128xf32>
    %410 = vector.extract_strided_slice %397 {offsets = [0, 128], sizes = [8, 128], strides = [1, 1]} : vector<8x384xf32> to vector<8x128xf32>
    %411 = arith.addf %409, %410 : vector<8x128xf32>
    %412 = arith.negf %411 : vector<8x128xf32>
    %413 = math.exp %412 : vector<8x128xf32>
    %cst_143 = arith.constant 1.000000e+00 : f32
    %414 = vector.broadcast %cst_143 : f32 to vector<8x128xf32>
    %415 = arith.addf %414, %413 : vector<8x128xf32>
    %416 = arith.divf %414, %415 : vector<8x128xf32>
    %417 = vector.extract_strided_slice %393 {offsets = [0, 256], sizes = [8, 128], strides = [1, 1]} : vector<8x384xf32> to vector<8x128xf32>
    %418 = vector.extract_strided_slice %397 {offsets = [0, 256], sizes = [8, 128], strides = [1, 1]} : vector<8x384xf32> to vector<8x128xf32>
    %419 = arith.mulf %408, %418 : vector<8x128xf32>
    %420 = arith.addf %417, %419 : vector<8x128xf32>
    %421 = math.tanh %420 : vector<8x128xf32>
    %cst_144 = arith.constant 1.000000e+00 : f32
    %422 = vector.broadcast %cst_144 : f32 to vector<8x128xf32>
    %423 = arith.subf %422, %416 : vector<8x128xf32>
    %424 = arith.mulf %423, %421 : vector<8x128xf32>
    %425 = arith.mulf %416, %364 : vector<8x128xf32>
    %426 = arith.addf %424, %425 : vector<8x128xf32>
    %427 = vector.extract_strided_slice %394 {offsets = [0, 0], sizes = [8, 128], strides = [1, 1]} : vector<8x384xf32> to vector<8x128xf32>
    %428 = vector.extract_strided_slice %400 {offsets = [0, 0], sizes = [8, 128], strides = [1, 1]} : vector<8x384xf32> to vector<8x128xf32>
    %429 = arith.addf %427, %428 : vector<8x128xf32>
    %430 = arith.negf %429 : vector<8x128xf32>
    %431 = math.exp %430 : vector<8x128xf32>
    %cst_145 = arith.constant 1.000000e+00 : f32
    %432 = vector.broadcast %cst_145 : f32 to vector<8x128xf32>
    %433 = arith.addf %432, %431 : vector<8x128xf32>
    %434 = arith.divf %432, %433 : vector<8x128xf32>
    %435 = vector.extract_strided_slice %394 {offsets = [0, 128], sizes = [8, 128], strides = [1, 1]} : vector<8x384xf32> to vector<8x128xf32>
    %436 = vector.extract_strided_slice %400 {offsets = [0, 128], sizes = [8, 128], strides = [1, 1]} : vector<8x384xf32> to vector<8x128xf32>
    %437 = arith.addf %435, %436 : vector<8x128xf32>
    %438 = arith.negf %437 : vector<8x128xf32>
    %439 = math.exp %438 : vector<8x128xf32>
    %cst_146 = arith.constant 1.000000e+00 : f32
    %440 = vector.broadcast %cst_146 : f32 to vector<8x128xf32>
    %441 = arith.addf %440, %439 : vector<8x128xf32>
    %442 = arith.divf %440, %441 : vector<8x128xf32>
    %443 = vector.extract_strided_slice %394 {offsets = [0, 256], sizes = [8, 128], strides = [1, 1]} : vector<8x384xf32> to vector<8x128xf32>
    %444 = vector.extract_strided_slice %400 {offsets = [0, 256], sizes = [8, 128], strides = [1, 1]} : vector<8x384xf32> to vector<8x128xf32>
    %445 = arith.mulf %434, %444 : vector<8x128xf32>
    %446 = arith.addf %443, %445 : vector<8x128xf32>
    %447 = math.tanh %446 : vector<8x128xf32>
    %cst_147 = arith.constant 1.000000e+00 : f32
    %448 = vector.broadcast %cst_147 : f32 to vector<8x128xf32>
    %449 = arith.subf %448, %442 : vector<8x128xf32>
    %450 = arith.mulf %449, %447 : vector<8x128xf32>
    %451 = arith.mulf %442, %390 : vector<8x128xf32>
    %452 = arith.addf %450, %451 : vector<8x128xf32>
    %c48_148 = arith.constant 48 : index
    %c0_149 = arith.constant 0 : index
    %453 = vector.load %arg20[%c48_148, %c0_149] : memref<64x256xf32, #tpu.memory_space<vmem>>, vector<8x128xf32>
    tpu.vector_store %arg20[%c48_148, %c0_149], %426 {strides = array<i32>} : memref<64x256xf32, #tpu.memory_space<vmem>>, vector<8x128xf32>,
    %c8_150 = arith.constant 8 : index
    %c128_151 = arith.constant 128 : index
    %454 = vector.load %arg20[%c8_150, %c128_151] : memref<64x256xf32, #tpu.memory_space<vmem>>, vector<8x128xf32>
    tpu.vector_store %arg20[%c8_150, %c128_151], %452 {strides = array<i32>} : memref<64x256xf32, #tpu.memory_space<vmem>>, vector<8x128xf32>,
    %c56_152 = arith.constant 56 : index
    %c0_153 = arith.constant 0 : index
    %455 = vector.load %arg18[%c56_152, %c0_153] : memref<64x384xf32, #tpu.memory_space<vmem>>, vector<8x384xf32>
    %c0_154 = arith.constant 0 : index
    %c0_155 = arith.constant 0 : index
    %456 = vector.load %arg19[%c0_154, %c0_155] : memref<64x384xf32, #tpu.memory_space<vmem>>, vector<8x384xf32>
    %c0_156 = arith.constant 0 : index
    %c0_157 = arith.constant 0 : index
    %457 = vector.load %arg2[%c0_156, %c0_157] : memref<128x384xf32, #tpu.memory_space<vmem>>, vector<128x384xf32>
    %cst_158 = arith.constant dense<0.000000e+00> : vector<8x384xf32>
    %458 = tpu.matmul %426, %457, %cst_158 {dimension_numbers = #tpu.dot_dimension_numbers<[1], [0], [0], [1], [0, 0, 1, 1], [], []>} : vector<8x128xf32>, vector<128x384xf32>, vector<8x384xf32> -> vector<8x384xf32>
    %459 = arith.addf %458, %15 : vector<8x384xf32>
    %c0_159 = arith.constant 0 : index
    %c0_160 = arith.constant 0 : index
    %460 = vector.load %arg6[%c0_159, %c0_160] : memref<128x384xf32, #tpu.memory_space<vmem>>, vector<128x384xf32>
    %cst_161 = arith.constant dense<0.000000e+00> : vector<8x384xf32>
    %461 = tpu.matmul %452, %460, %cst_161 {dimension_numbers = #tpu.dot_dimension_numbers<[1], [0], [0], [1], [0, 0, 1, 1], [], []>} : vector<8x128xf32>, vector<128x384xf32>, vector<8x384xf32> -> vector<8x384xf32>
    %462 = arith.addf %461, %18 : vector<8x384xf32>
    %463 = vector.extract_strided_slice %455 {offsets = [0, 0], sizes = [8, 128], strides = [1, 1]} : vector<8x384xf32> to vector<8x128xf32>
    %464 = vector.extract_strided_slice %459 {offsets = [0, 0], sizes = [8, 128], strides = [1, 1]} : vector<8x384xf32> to vector<8x128xf32>
    %465 = arith.addf %463, %464 : vector<8x128xf32>
    %466 = arith.negf %465 : vector<8x128xf32>
    %467 = math.exp %466 : vector<8x128xf32>
    %cst_162 = arith.constant 1.000000e+00 : f32
    %468 = vector.broadcast %cst_162 : f32 to vector<8x128xf32>
    %469 = arith.addf %468, %467 : vector<8x128xf32>
    %470 = arith.divf %468, %469 : vector<8x128xf32>
    %471 = vector.extract_strided_slice %455 {offsets = [0, 128], sizes = [8, 128], strides = [1, 1]} : vector<8x384xf32> to vector<8x128xf32>
    %472 = vector.extract_strided_slice %459 {offsets = [0, 128], sizes = [8, 128], strides = [1, 1]} : vector<8x384xf32> to vector<8x128xf32>
    %473 = arith.addf %471, %472 : vector<8x128xf32>
    %474 = arith.negf %473 : vector<8x128xf32>
    %475 = math.exp %474 : vector<8x128xf32>
    %cst_163 = arith.constant 1.000000e+00 : f32
    %476 = vector.broadcast %cst_163 : f32 to vector<8x128xf32>
    %477 = arith.addf %476, %475 : vector<8x128xf32>
    %478 = arith.divf %476, %477 : vector<8x128xf32>
    %479 = vector.extract_strided_slice %455 {offsets = [0, 256], sizes = [8, 128], strides = [1, 1]} : vector<8x384xf32> to vector<8x128xf32>
    %480 = vector.extract_strided_slice %459 {offsets = [0, 256], sizes = [8, 128], strides = [1, 1]} : vector<8x384xf32> to vector<8x128xf32>
    %481 = arith.mulf %470, %480 : vector<8x128xf32>
    %482 = arith.addf %479, %481 : vector<8x128xf32>
    %483 = math.tanh %482 : vector<8x128xf32>
    %cst_164 = arith.constant 1.000000e+00 : f32
    %484 = vector.broadcast %cst_164 : f32 to vector<8x128xf32>
    %485 = arith.subf %484, %478 : vector<8x128xf32>
    %486 = arith.mulf %485, %483 : vector<8x128xf32>
    %487 = arith.mulf %478, %426 : vector<8x128xf32>
    %488 = arith.addf %486, %487 : vector<8x128xf32>
    %489 = vector.extract_strided_slice %456 {offsets = [0, 0], sizes = [8, 128], strides = [1, 1]} : vector<8x384xf32> to vector<8x128xf32>
    %490 = vector.extract_strided_slice %462 {offsets = [0, 0], sizes = [8, 128], strides = [1, 1]} : vector<8x384xf32> to vector<8x128xf32>
    %491 = arith.addf %489, %490 : vector<8x128xf32>
    %492 = arith.negf %491 : vector<8x128xf32>
    %493 = math.exp %492 : vector<8x128xf32>
    %cst_165 = arith.constant 1.000000e+00 : f32
    %494 = vector.broadcast %cst_165 : f32 to vector<8x128xf32>
    %495 = arith.addf %494, %493 : vector<8x128xf32>
    %496 = arith.divf %494, %495 : vector<8x128xf32>
    %497 = vector.extract_strided_slice %456 {offsets = [0, 128], sizes = [8, 128], strides = [1, 1]} : vector<8x384xf32> to vector<8x128xf32>
    %498 = vector.extract_strided_slice %462 {offsets = [0, 128], sizes = [8, 128], strides = [1, 1]} : vector<8x384xf32> to vector<8x128xf32>
    %499 = arith.addf %497, %498 : vector<8x128xf32>
    %500 = arith.negf %499 : vector<8x128xf32>
    %501 = math.exp %500 : vector<8x128xf32>
    %cst_166 = arith.constant 1.000000e+00 : f32
    %502 = vector.broadcast %cst_166 : f32 to vector<8x128xf32>
    %503 = arith.addf %502, %501 : vector<8x128xf32>
    %504 = arith.divf %502, %503 : vector<8x128xf32>
    %505 = vector.extract_strided_slice %456 {offsets = [0, 256], sizes = [8, 128], strides = [1, 1]} : vector<8x384xf32> to vector<8x128xf32>
    %506 = vector.extract_strided_slice %462 {offsets = [0, 256], sizes = [8, 128], strides = [1, 1]} : vector<8x384xf32> to vector<8x128xf32>
    %507 = arith.mulf %496, %506 : vector<8x128xf32>
    %508 = arith.addf %505, %507 : vector<8x128xf32>
    %509 = math.tanh %508 : vector<8x128xf32>
    %cst_167 = arith.constant 1.000000e+00 : f32
    %510 = vector.broadcast %cst_167 : f32 to vector<8x128xf32>
    %511 = arith.subf %510, %504 : vector<8x128xf32>
    %512 = arith.mulf %511, %509 : vector<8x128xf32>
    %513 = arith.mulf %504, %452 : vector<8x128xf32>
    %514 = arith.addf %512, %513 : vector<8x128xf32>
    %c56_168 = arith.constant 56 : index
    %c0_169 = arith.constant 0 : index
    %515 = vector.load %arg20[%c56_168, %c0_169] : memref<64x256xf32, #tpu.memory_space<vmem>>, vector<8x128xf32>
    tpu.vector_store %arg20[%c56_168, %c0_169], %488 {strides = array<i32>} : memref<64x256xf32, #tpu.memory_space<vmem>>, vector<8x128xf32>,
    %c0_170 = arith.constant 0 : index
    %c128_171 = arith.constant 128 : index
    %516 = vector.load %arg20[%c0_170, %c128_171] : memref<64x256xf32, #tpu.memory_space<vmem>>, vector<8x128xf32>
    tpu.vector_store %arg20[%c0_170, %c128_171], %514 {strides = array<i32>} : memref<64x256xf32, #tpu.memory_space<vmem>>, vector<8x128xf32>,
    %c0_172 = arith.constant 0 : index
    %c0_173 = arith.constant 0 : index
    %517 = vector.load %arg20[%c0_172, %c0_173] : memref<64x256xf32, #tpu.memory_space<vmem>>, vector<64x256xf32>
    %c0_174 = arith.constant 0 : index
    %c0_175 = arith.constant 0 : index
    %518 = vector.load %arg9[%c0_174, %c0_175] : memref<256x384xf32, #tpu.memory_space<vmem>>, vector<256x384xf32>
    %cst_176 = arith.constant dense<0.000000e+00> : vector<64x384xf32>
    %519 = tpu.matmul %517, %518, %cst_176 {dimension_numbers = #tpu.dot_dimension_numbers<[1], [0], [0], [1], [0, 0, 1, 1], [], []>} : vector<64x256xf32>, vector<256x384xf32>, vector<64x384xf32> -> vector<64x384xf32>
    %c0_177 = arith.constant 0 : index
    %c0_178 = arith.constant 0 : index
    %520 = vector.load %arg11[%c0_177, %c0_178] : memref<1x384xf32, #tpu.memory_space<vmem>>, vector<1x384xf32>
    %521 = vector.broadcast %520 : vector<1x384xf32> to vector<64x384xf32>
    %522 = arith.addf %519, %521 : vector<64x384xf32>
    %c0_179 = arith.constant 0 : index
    %c0_180 = arith.constant 0 : index
    %523 = vector.load %arg18[%c0_179, %c0_180] : memref<64x384xf32, #tpu.memory_space<vmem>>, vector<64x384xf32>
    tpu.vector_store %arg18[%c0_179, %c0_180], %522 {strides = array<i32>} : memref<64x384xf32, #tpu.memory_space<vmem>>, vector<64x384xf32>,
    %c0_181 = arith.constant 0 : index
    %c0_182 = arith.constant 0 : index
    %524 = vector.load %arg13[%c0_181, %c0_182] : memref<256x384xf32, #tpu.memory_space<vmem>>, vector<256x384xf32>
    %cst_183 = arith.constant dense<0.000000e+00> : vector<64x384xf32>
    %525 = tpu.matmul %517, %524, %cst_183 {dimension_numbers = #tpu.dot_dimension_numbers<[1], [0], [0], [1], [0, 0, 1, 1], [], []>} : vector<64x256xf32>, vector<256x384xf32>, vector<64x384xf32> -> vector<64x384xf32>
    %c0_184 = arith.constant 0 : index
    %c0_185 = arith.constant 0 : index
    %526 = vector.load %arg15[%c0_184, %c0_185] : memref<1x384xf32, #tpu.memory_space<vmem>>, vector<1x384xf32>
    %527 = vector.broadcast %526 : vector<1x384xf32> to vector<64x384xf32>
    %528 = arith.addf %525, %527 : vector<64x384xf32>
    %c0_186 = arith.constant 0 : index
    %c0_187 = arith.constant 0 : index
    %529 = vector.load %arg19[%c0_186, %c0_187] : memref<64x384xf32, #tpu.memory_space<vmem>>, vector<64x384xf32>
    tpu.vector_store %arg19[%c0_186, %c0_187], %528 {strides = array<i32>} : memref<64x384xf32, #tpu.memory_space<vmem>>, vector<64x384xf32>,
    %c0_188 = arith.constant 0 : index
    %c0_189 = arith.constant 0 : index
    %530 = vector.load %arg12[%c0_188, %c0_189] : memref<1x384xf32, #tpu.memory_space<vmem>>, vector<1x384xf32>
    %531 = vector.shape_cast %530 : vector<1x384xf32> to vector<1x384xf32>
    %532 = vector.broadcast %531 : vector<1x384xf32> to vector<8x384xf32>
    %c0_190 = arith.constant 0 : index
    %c0_191 = arith.constant 0 : index
    %533 = vector.load %arg16[%c0_190, %c0_191] : memref<1x384xf32, #tpu.memory_space<vmem>>, vector<1x384xf32>
    %534 = vector.shape_cast %533 : vector<1x384xf32> to vector<1x384xf32>
    %535 = vector.broadcast %534 : vector<1x384xf32> to vector<8x384xf32>
    %cst_192 = arith.constant 0.000000e+00 : f32
    %536 = vector.broadcast %cst_192 : f32 to vector<8x128xf32>
    %cst_193 = arith.constant 0.000000e+00 : f32
    %537 = vector.broadcast %cst_193 : f32 to vector<8x128xf32>
    %c0_194 = arith.constant 0 : index
    %c0_195 = arith.constant 0 : index
    %538 = vector.load %arg18[%c0_194, %c0_195] : memref<64x384xf32, #tpu.memory_space<vmem>>, vector<8x384xf32>
    %c56_196 = arith.constant 56 : index
    %c0_197 = arith.constant 0 : index
    %539 = vector.load %arg19[%c56_196, %c0_197] : memref<64x384xf32, #tpu.memory_space<vmem>>, vector<8x384xf32>
    %c0_198 = arith.constant 0 : index
    %c0_199 = arith.constant 0 : index
    %540 = vector.load %arg10[%c0_198, %c0_199] : memref<128x384xf32, #tpu.memory_space<vmem>>, vector<128x384xf32>
    %cst_200 = arith.constant dense<0.000000e+00> : vector<8x384xf32>
    %541 = tpu.matmul %536, %540, %cst_200 {dimension_numbers = #tpu.dot_dimension_numbers<[1], [0], [0], [1], [0, 0, 1, 1], [], []>} : vector<8x128xf32>, vector<128x384xf32>, vector<8x384xf32> -> vector<8x384xf32>
    %542 = arith.addf %541, %532 : vector<8x384xf32>
    %c0_201 = arith.constant 0 : index
    %c0_202 = arith.constant 0 : index
    %543 = vector.load %arg14[%c0_201, %c0_202] : memref<128x384xf32, #tpu.memory_space<vmem>>, vector<128x384xf32>
    %cst_203 = arith.constant dense<0.000000e+00> : vector<8x384xf32>
    %544 = tpu.matmul %537, %543, %cst_203 {dimension_numbers = #tpu.dot_dimension_numbers<[1], [0], [0], [1], [0, 0, 1, 1], [], []>} : vector<8x128xf32>, vector<128x384xf32>, vector<8x384xf32> -> vector<8x384xf32>
    %545 = arith.addf %544, %535 : vector<8x384xf32>
    %546 = vector.extract_strided_slice %538 {offsets = [0, 0], sizes = [8, 128], strides = [1, 1]} : vector<8x384xf32> to vector<8x128xf32>
    %547 = vector.extract_strided_slice %542 {offsets = [0, 0], sizes = [8, 128], strides = [1, 1]} : vector<8x384xf32> to vector<8x128xf32>
    %548 = arith.addf %546, %547 : vector<8x128xf32>
    %549 = arith.negf %548 : vector<8x128xf32>
    %550 = math.exp %549 : vector<8x128xf32>
    %cst_204 = arith.constant 1.000000e+00 : f32
    %551 = vector.broadcast %cst_204 : f32 to vector<8x128xf32>
    %552 = arith.addf %551, %550 : vector<8x128xf32>
    %553 = arith.divf %551, %552 : vector<8x128xf32>
    %554 = vector.extract_strided_slice %538 {offsets = [0, 128], sizes = [8, 128], strides = [1, 1]} : vector<8x384xf32> to vector<8x128xf32>
    %555 = vector.extract_strided_slice %542 {offsets = [0, 128], sizes = [8, 128], strides = [1, 1]} : vector<8x384xf32> to vector<8x128xf32>
    %556 = arith.addf %554, %555 : vector<8x128xf32>
    %557 = arith.negf %556 : vector<8x128xf32>
    %558 = math.exp %557 : vector<8x128xf32>
    %cst_205 = arith.constant 1.000000e+00 : f32
    %559 = vector.broadcast %cst_205 : f32 to vector<8x128xf32>
    %560 = arith.addf %559, %558 : vector<8x128xf32>
    %561 = arith.divf %559, %560 : vector<8x128xf32>
    %562 = vector.extract_strided_slice %538 {offsets = [0, 256], sizes = [8, 128], strides = [1, 1]} : vector<8x384xf32> to vector<8x128xf32>
    %563 = vector.extract_strided_slice %542 {offsets = [0, 256], sizes = [8, 128], strides = [1, 1]} : vector<8x384xf32> to vector<8x128xf32>
    %564 = arith.mulf %553, %563 : vector<8x128xf32>
    %565 = arith.addf %562, %564 : vector<8x128xf32>
    %566 = math.tanh %565 : vector<8x128xf32>
    %cst_206 = arith.constant 1.000000e+00 : f32
    %567 = vector.broadcast %cst_206 : f32 to vector<8x128xf32>
    %568 = arith.subf %567, %561 : vector<8x128xf32>
    %569 = arith.mulf %568, %566 : vector<8x128xf32>
    %570 = arith.mulf %561, %536 : vector<8x128xf32>
    %571 = arith.addf %569, %570 : vector<8x128xf32>
    %572 = vector.extract_strided_slice %539 {offsets = [0, 0], sizes = [8, 128], strides = [1, 1]} : vector<8x384xf32> to vector<8x128xf32>
    %573 = vector.extract_strided_slice %545 {offsets = [0, 0], sizes = [8, 128], strides = [1, 1]} : vector<8x384xf32> to vector<8x128xf32>
    %574 = arith.addf %572, %573 : vector<8x128xf32>
    %575 = arith.negf %574 : vector<8x128xf32>
    %576 = math.exp %575 : vector<8x128xf32>
    %cst_207 = arith.constant 1.000000e+00 : f32
    %577 = vector.broadcast %cst_207 : f32 to vector<8x128xf32>
    %578 = arith.addf %577, %576 : vector<8x128xf32>
    %579 = arith.divf %577, %578 : vector<8x128xf32>
    %580 = vector.extract_strided_slice %539 {offsets = [0, 128], sizes = [8, 128], strides = [1, 1]} : vector<8x384xf32> to vector<8x128xf32>
    %581 = vector.extract_strided_slice %545 {offsets = [0, 128], sizes = [8, 128], strides = [1, 1]} : vector<8x384xf32> to vector<8x128xf32>
    %582 = arith.addf %580, %581 : vector<8x128xf32>
    %583 = arith.negf %582 : vector<8x128xf32>
    %584 = math.exp %583 : vector<8x128xf32>
    %cst_208 = arith.constant 1.000000e+00 : f32
    %585 = vector.broadcast %cst_208 : f32 to vector<8x128xf32>
    %586 = arith.addf %585, %584 : vector<8x128xf32>
    %587 = arith.divf %585, %586 : vector<8x128xf32>
    %588 = vector.extract_strided_slice %539 {offsets = [0, 256], sizes = [8, 128], strides = [1, 1]} : vector<8x384xf32> to vector<8x128xf32>
    %589 = vector.extract_strided_slice %545 {offsets = [0, 256], sizes = [8, 128], strides = [1, 1]} : vector<8x384xf32> to vector<8x128xf32>
    %590 = arith.mulf %579, %589 : vector<8x128xf32>
    %591 = arith.addf %588, %590 : vector<8x128xf32>
    %592 = math.tanh %591 : vector<8x128xf32>
    %cst_209 = arith.constant 1.000000e+00 : f32
    %593 = vector.broadcast %cst_209 : f32 to vector<8x128xf32>
    %594 = arith.subf %593, %587 : vector<8x128xf32>
    %595 = arith.mulf %594, %592 : vector<8x128xf32>
    %596 = arith.mulf %587, %537 : vector<8x128xf32>
    %597 = arith.addf %595, %596 : vector<8x128xf32>
    %c8_210 = arith.constant 8 : index
    %c0_211 = arith.constant 0 : index
    %598 = vector.load %arg18[%c8_210, %c0_211] : memref<64x384xf32, #tpu.memory_space<vmem>>, vector<8x384xf32>
    %c48_212 = arith.constant 48 : index
    %c0_213 = arith.constant 0 : index
    %599 = vector.load %arg19[%c48_212, %c0_213] : memref<64x384xf32, #tpu.memory_space<vmem>>, vector<8x384xf32>
    %c0_214 = arith.constant 0 : index
    %c0_215 = arith.constant 0 : index
    %600 = vector.load %arg10[%c0_214, %c0_215] : memref<128x384xf32, #tpu.memory_space<vmem>>, vector<128x384xf32>
    %cst_216 = arith.constant dense<0.000000e+00> : vector<8x384xf32>
    %601 = tpu.matmul %571, %600, %cst_216 {dimension_numbers = #tpu.dot_dimension_numbers<[1], [0], [0], [1], [0, 0, 1, 1], [], []>} : vector<8x128xf32>, vector<128x384xf32>, vector<8x384xf32> -> vector<8x384xf32>
    %602 = arith.addf %601, %532 : vector<8x384xf32>
    %c0_217 = arith.constant 0 : index
    %c0_218 = arith.constant 0 : index
    %603 = vector.load %arg14[%c0_217, %c0_218] : memref<128x384xf32, #tpu.memory_space<vmem>>, vector<128x384xf32>
    %cst_219 = arith.constant dense<0.000000e+00> : vector<8x384xf32>
    %604 = tpu.matmul %597, %603, %cst_219 {dimension_numbers = #tpu.dot_dimension_numbers<[1], [0], [0], [1], [0, 0, 1, 1], [], []>} : vector<8x128xf32>, vector<128x384xf32>, vector<8x384xf32> -> vector<8x384xf32>
    %605 = arith.addf %604, %535 : vector<8x384xf32>
    %606 = vector.extract_strided_slice %598 {offsets = [0, 0], sizes = [8, 128], strides = [1, 1]} : vector<8x384xf32> to vector<8x128xf32>
    %607 = vector.extract_strided_slice %602 {offsets = [0, 0], sizes = [8, 128], strides = [1, 1]} : vector<8x384xf32> to vector<8x128xf32>
    %608 = arith.addf %606, %607 : vector<8x128xf32>
    %609 = arith.negf %608 : vector<8x128xf32>
    %610 = math.exp %609 : vector<8x128xf32>
    %cst_220 = arith.constant 1.000000e+00 : f32
    %611 = vector.broadcast %cst_220 : f32 to vector<8x128xf32>
    %612 = arith.addf %611, %610 : vector<8x128xf32>
    %613 = arith.divf %611, %612 : vector<8x128xf32>
    %614 = vector.extract_strided_slice %598 {offsets = [0, 128], sizes = [8, 128], strides = [1, 1]} : vector<8x384xf32> to vector<8x128xf32>
    %615 = vector.extract_strided_slice %602 {offsets = [0, 128], sizes = [8, 128], strides = [1, 1]} : vector<8x384xf32> to vector<8x128xf32>
    %616 = arith.addf %614, %615 : vector<8x128xf32>
    %617 = arith.negf %616 : vector<8x128xf32>
    %618 = math.exp %617 : vector<8x128xf32>
    %cst_221 = arith.constant 1.000000e+00 : f32
    %619 = vector.broadcast %cst_221 : f32 to vector<8x128xf32>
    %620 = arith.addf %619, %618 : vector<8x128xf32>
    %621 = arith.divf %619, %620 : vector<8x128xf32>
    %622 = vector.extract_strided_slice %598 {offsets = [0, 256], sizes = [8, 128], strides = [1, 1]} : vector<8x384xf32> to vector<8x128xf32>
    %623 = vector.extract_strided_slice %602 {offsets = [0, 256], sizes = [8, 128], strides = [1, 1]} : vector<8x384xf32> to vector<8x128xf32>
    %624 = arith.mulf %613, %623 : vector<8x128xf32>
    %625 = arith.addf %622, %624 : vector<8x128xf32>
    %626 = math.tanh %625 : vector<8x128xf32>
    %cst_222 = arith.constant 1.000000e+00 : f32
    %627 = vector.broadcast %cst_222 : f32 to vector<8x128xf32>
    %628 = arith.subf %627, %621 : vector<8x128xf32>
    %629 = arith.mulf %628, %626 : vector<8x128xf32>
    %630 = arith.mulf %621, %571 : vector<8x128xf32>
    %631 = arith.addf %629, %630 : vector<8x128xf32>
    %632 = vector.extract_strided_slice %599 {offsets = [0, 0], sizes = [8, 128], strides = [1, 1]} : vector<8x384xf32> to vector<8x128xf32>
    %633 = vector.extract_strided_slice %605 {offsets = [0, 0], sizes = [8, 128], strides = [1, 1]} : vector<8x384xf32> to vector<8x128xf32>
    %634 = arith.addf %632, %633 : vector<8x128xf32>
    %635 = arith.negf %634 : vector<8x128xf32>
    %636 = math.exp %635 : vector<8x128xf32>
    %cst_223 = arith.constant 1.000000e+00 : f32
    %637 = vector.broadcast %cst_223 : f32 to vector<8x128xf32>
    %638 = arith.addf %637, %636 : vector<8x128xf32>
    %639 = arith.divf %637, %638 : vector<8x128xf32>
    %640 = vector.extract_strided_slice %599 {offsets = [0, 128], sizes = [8, 128], strides = [1, 1]} : vector<8x384xf32> to vector<8x128xf32>
    %641 = vector.extract_strided_slice %605 {offsets = [0, 128], sizes = [8, 128], strides = [1, 1]} : vector<8x384xf32> to vector<8x128xf32>
    %642 = arith.addf %640, %641 : vector<8x128xf32>
    %643 = arith.negf %642 : vector<8x128xf32>
    %644 = math.exp %643 : vector<8x128xf32>
    %cst_224 = arith.constant 1.000000e+00 : f32
    %645 = vector.broadcast %cst_224 : f32 to vector<8x128xf32>
    %646 = arith.addf %645, %644 : vector<8x128xf32>
    %647 = arith.divf %645, %646 : vector<8x128xf32>
    %648 = vector.extract_strided_slice %599 {offsets = [0, 256], sizes = [8, 128], strides = [1, 1]} : vector<8x384xf32> to vector<8x128xf32>
    %649 = vector.extract_strided_slice %605 {offsets = [0, 256], sizes = [8, 128], strides = [1, 1]} : vector<8x384xf32> to vector<8x128xf32>
    %650 = arith.mulf %639, %649 : vector<8x128xf32>
    %651 = arith.addf %648, %650 : vector<8x128xf32>
    %652 = math.tanh %651 : vector<8x128xf32>
    %cst_225 = arith.constant 1.000000e+00 : f32
    %653 = vector.broadcast %cst_225 : f32 to vector<8x128xf32>
    %654 = arith.subf %653, %647 : vector<8x128xf32>
    %655 = arith.mulf %654, %652 : vector<8x128xf32>
    %656 = arith.mulf %647, %597 : vector<8x128xf32>
    %657 = arith.addf %655, %656 : vector<8x128xf32>
    %c16_226 = arith.constant 16 : index
    %c0_227 = arith.constant 0 : index
    %658 = vector.load %arg18[%c16_226, %c0_227] : memref<64x384xf32, #tpu.memory_space<vmem>>, vector<8x384xf32>
    %c40_228 = arith.constant 40 : index
    %c0_229 = arith.constant 0 : index
    %659 = vector.load %arg19[%c40_228, %c0_229] : memref<64x384xf32, #tpu.memory_space<vmem>>, vector<8x384xf32>
    %c0_230 = arith.constant 0 : index
    %c0_231 = arith.constant 0 : index
    %660 = vector.load %arg10[%c0_230, %c0_231] : memref<128x384xf32, #tpu.memory_space<vmem>>, vector<128x384xf32>
    %cst_232 = arith.constant dense<0.000000e+00> : vector<8x384xf32>
    %661 = tpu.matmul %631, %660, %cst_232 {dimension_numbers = #tpu.dot_dimension_numbers<[1], [0], [0], [1], [0, 0, 1, 1], [], []>} : vector<8x128xf32>, vector<128x384xf32>, vector<8x384xf32> -> vector<8x384xf32>
    %662 = arith.addf %661, %532 : vector<8x384xf32>
    %c0_233 = arith.constant 0 : index
    %c0_234 = arith.constant 0 : index
    %663 = vector.load %arg14[%c0_233, %c0_234] : memref<128x384xf32, #tpu.memory_space<vmem>>, vector<128x384xf32>
    %cst_235 = arith.constant dense<0.000000e+00> : vector<8x384xf32>
    %664 = tpu.matmul %657, %663, %cst_235 {dimension_numbers = #tpu.dot_dimension_numbers<[1], [0], [0], [1], [0, 0, 1, 1], [], []>} : vector<8x128xf32>, vector<128x384xf32>, vector<8x384xf32> -> vector<8x384xf32>
    %665 = arith.addf %664, %535 : vector<8x384xf32>
    %666 = vector.extract_strided_slice %658 {offsets = [0, 0], sizes = [8, 128], strides = [1, 1]} : vector<8x384xf32> to vector<8x128xf32>
    %667 = vector.extract_strided_slice %662 {offsets = [0, 0], sizes = [8, 128], strides = [1, 1]} : vector<8x384xf32> to vector<8x128xf32>
    %668 = arith.addf %666, %667 : vector<8x128xf32>
    %669 = arith.negf %668 : vector<8x128xf32>
    %670 = math.exp %669 : vector<8x128xf32>
    %cst_236 = arith.constant 1.000000e+00 : f32
    %671 = vector.broadcast %cst_236 : f32 to vector<8x128xf32>
    %672 = arith.addf %671, %670 : vector<8x128xf32>
    %673 = arith.divf %671, %672 : vector<8x128xf32>
    %674 = vector.extract_strided_slice %658 {offsets = [0, 128], sizes = [8, 128], strides = [1, 1]} : vector<8x384xf32> to vector<8x128xf32>
    %675 = vector.extract_strided_slice %662 {offsets = [0, 128], sizes = [8, 128], strides = [1, 1]} : vector<8x384xf32> to vector<8x128xf32>
    %676 = arith.addf %674, %675 : vector<8x128xf32>
    %677 = arith.negf %676 : vector<8x128xf32>
    %678 = math.exp %677 : vector<8x128xf32>
    %cst_237 = arith.constant 1.000000e+00 : f32
    %679 = vector.broadcast %cst_237 : f32 to vector<8x128xf32>
    %680 = arith.addf %679, %678 : vector<8x128xf32>
    %681 = arith.divf %679, %680 : vector<8x128xf32>
    %682 = vector.extract_strided_slice %658 {offsets = [0, 256], sizes = [8, 128], strides = [1, 1]} : vector<8x384xf32> to vector<8x128xf32>
    %683 = vector.extract_strided_slice %662 {offsets = [0, 256], sizes = [8, 128], strides = [1, 1]} : vector<8x384xf32> to vector<8x128xf32>
    %684 = arith.mulf %673, %683 : vector<8x128xf32>
    %685 = arith.addf %682, %684 : vector<8x128xf32>
    %686 = math.tanh %685 : vector<8x128xf32>
    %cst_238 = arith.constant 1.000000e+00 : f32
    %687 = vector.broadcast %cst_238 : f32 to vector<8x128xf32>
    %688 = arith.subf %687, %681 : vector<8x128xf32>
    %689 = arith.mulf %688, %686 : vector<8x128xf32>
    %690 = arith.mulf %681, %631 : vector<8x128xf32>
    %691 = arith.addf %689, %690 : vector<8x128xf32>
    %692 = vector.extract_strided_slice %659 {offsets = [0, 0], sizes = [8, 128], strides = [1, 1]} : vector<8x384xf32> to vector<8x128xf32>
    %693 = vector.extract_strided_slice %665 {offsets = [0, 0], sizes = [8, 128], strides = [1, 1]} : vector<8x384xf32> to vector<8x128xf32>
    %694 = arith.addf %692, %693 : vector<8x128xf32>
    %695 = arith.negf %694 : vector<8x128xf32>
    %696 = math.exp %695 : vector<8x128xf32>
    %cst_239 = arith.constant 1.000000e+00 : f32
    %697 = vector.broadcast %cst_239 : f32 to vector<8x128xf32>
    %698 = arith.addf %697, %696 : vector<8x128xf32>
    %699 = arith.divf %697, %698 : vector<8x128xf32>
    %700 = vector.extract_strided_slice %659 {offsets = [0, 128], sizes = [8, 128], strides = [1, 1]} : vector<8x384xf32> to vector<8x128xf32>
    %701 = vector.extract_strided_slice %665 {offsets = [0, 128], sizes = [8, 128], strides = [1, 1]} : vector<8x384xf32> to vector<8x128xf32>
    %702 = arith.addf %700, %701 : vector<8x128xf32>
    %703 = arith.negf %702 : vector<8x128xf32>
    %704 = math.exp %703 : vector<8x128xf32>
    %cst_240 = arith.constant 1.000000e+00 : f32
    %705 = vector.broadcast %cst_240 : f32 to vector<8x128xf32>
    %706 = arith.addf %705, %704 : vector<8x128xf32>
    %707 = arith.divf %705, %706 : vector<8x128xf32>
    %708 = vector.extract_strided_slice %659 {offsets = [0, 256], sizes = [8, 128], strides = [1, 1]} : vector<8x384xf32> to vector<8x128xf32>
    %709 = vector.extract_strided_slice %665 {offsets = [0, 256], sizes = [8, 128], strides = [1, 1]} : vector<8x384xf32> to vector<8x128xf32>
    %710 = arith.mulf %699, %709 : vector<8x128xf32>
    %711 = arith.addf %708, %710 : vector<8x128xf32>
    %712 = math.tanh %711 : vector<8x128xf32>
    %cst_241 = arith.constant 1.000000e+00 : f32
    %713 = vector.broadcast %cst_241 : f32 to vector<8x128xf32>
    %714 = arith.subf %713, %707 : vector<8x128xf32>
    %715 = arith.mulf %714, %712 : vector<8x128xf32>
    %716 = arith.mulf %707, %657 : vector<8x128xf32>
    %717 = arith.addf %715, %716 : vector<8x128xf32>
    %c24_242 = arith.constant 24 : index
    %c0_243 = arith.constant 0 : index
    %718 = vector.load %arg18[%c24_242, %c0_243] : memref<64x384xf32, #tpu.memory_space<vmem>>, vector<8x384xf32>
    %c32_244 = arith.constant 32 : index
    %c0_245 = arith.constant 0 : index
    %719 = vector.load %arg19[%c32_244, %c0_245] : memref<64x384xf32, #tpu.memory_space<vmem>>, vector<8x384xf32>
    %c0_246 = arith.constant 0 : index
    %c0_247 = arith.constant 0 : index
    %720 = vector.load %arg10[%c0_246, %c0_247] : memref<128x384xf32, #tpu.memory_space<vmem>>, vector<128x384xf32>
    %cst_248 = arith.constant dense<0.000000e+00> : vector<8x384xf32>
    %721 = tpu.matmul %691, %720, %cst_248 {dimension_numbers = #tpu.dot_dimension_numbers<[1], [0], [0], [1], [0, 0, 1, 1], [], []>} : vector<8x128xf32>, vector<128x384xf32>, vector<8x384xf32> -> vector<8x384xf32>
    %722 = arith.addf %721, %532 : vector<8x384xf32>
    %c0_249 = arith.constant 0 : index
    %c0_250 = arith.constant 0 : index
    %723 = vector.load %arg14[%c0_249, %c0_250] : memref<128x384xf32, #tpu.memory_space<vmem>>, vector<128x384xf32>
    %cst_251 = arith.constant dense<0.000000e+00> : vector<8x384xf32>
    %724 = tpu.matmul %717, %723, %cst_251 {dimension_numbers = #tpu.dot_dimension_numbers<[1], [0], [0], [1], [0, 0, 1, 1], [], []>} : vector<8x128xf32>, vector<128x384xf32>, vector<8x384xf32> -> vector<8x384xf32>
    %725 = arith.addf %724, %535 : vector<8x384xf32>
    %726 = vector.extract_strided_slice %718 {offsets = [0, 0], sizes = [8, 128], strides = [1, 1]} : vector<8x384xf32> to vector<8x128xf32>
    %727 = vector.extract_strided_slice %722 {offsets = [0, 0], sizes = [8, 128], strides = [1, 1]} : vector<8x384xf32> to vector<8x128xf32>
    %728 = arith.addf %726, %727 : vector<8x128xf32>
    %729 = arith.negf %728 : vector<8x128xf32>
    %730 = math.exp %729 : vector<8x128xf32>
    %cst_252 = arith.constant 1.000000e+00 : f32
    %731 = vector.broadcast %cst_252 : f32 to vector<8x128xf32>
    %732 = arith.addf %731, %730 : vector<8x128xf32>
    %733 = arith.divf %731, %732 : vector<8x128xf32>
    %734 = vector.extract_strided_slice %718 {offsets = [0, 128], sizes = [8, 128], strides = [1, 1]} : vector<8x384xf32> to vector<8x128xf32>
    %735 = vector.extract_strided_slice %722 {offsets = [0, 128], sizes = [8, 128], strides = [1, 1]} : vector<8x384xf32> to vector<8x128xf32>
    %736 = arith.addf %734, %735 : vector<8x128xf32>
    %737 = arith.negf %736 : vector<8x128xf32>
    %738 = math.exp %737 : vector<8x128xf32>
    %cst_253 = arith.constant 1.000000e+00 : f32
    %739 = vector.broadcast %cst_253 : f32 to vector<8x128xf32>
    %740 = arith.addf %739, %738 : vector<8x128xf32>
    %741 = arith.divf %739, %740 : vector<8x128xf32>
    %742 = vector.extract_strided_slice %718 {offsets = [0, 256], sizes = [8, 128], strides = [1, 1]} : vector<8x384xf32> to vector<8x128xf32>
    %743 = vector.extract_strided_slice %722 {offsets = [0, 256], sizes = [8, 128], strides = [1, 1]} : vector<8x384xf32> to vector<8x128xf32>
    %744 = arith.mulf %733, %743 : vector<8x128xf32>
    %745 = arith.addf %742, %744 : vector<8x128xf32>
    %746 = math.tanh %745 : vector<8x128xf32>
    %cst_254 = arith.constant 1.000000e+00 : f32
    %747 = vector.broadcast %cst_254 : f32 to vector<8x128xf32>
    %748 = arith.subf %747, %741 : vector<8x128xf32>
    %749 = arith.mulf %748, %746 : vector<8x128xf32>
    %750 = arith.mulf %741, %691 : vector<8x128xf32>
    %751 = arith.addf %749, %750 : vector<8x128xf32>
    %752 = vector.extract_strided_slice %719 {offsets = [0, 0], sizes = [8, 128], strides = [1, 1]} : vector<8x384xf32> to vector<8x128xf32>
    %753 = vector.extract_strided_slice %725 {offsets = [0, 0], sizes = [8, 128], strides = [1, 1]} : vector<8x384xf32> to vector<8x128xf32>
    %754 = arith.addf %752, %753 : vector<8x128xf32>
    %755 = arith.negf %754 : vector<8x128xf32>
    %756 = math.exp %755 : vector<8x128xf32>
    %cst_255 = arith.constant 1.000000e+00 : f32
    %757 = vector.broadcast %cst_255 : f32 to vector<8x128xf32>
    %758 = arith.addf %757, %756 : vector<8x128xf32>
    %759 = arith.divf %757, %758 : vector<8x128xf32>
    %760 = vector.extract_strided_slice %719 {offsets = [0, 128], sizes = [8, 128], strides = [1, 1]} : vector<8x384xf32> to vector<8x128xf32>
    %761 = vector.extract_strided_slice %725 {offsets = [0, 128], sizes = [8, 128], strides = [1, 1]} : vector<8x384xf32> to vector<8x128xf32>
    %762 = arith.addf %760, %761 : vector<8x128xf32>
    %763 = arith.negf %762 : vector<8x128xf32>
    %764 = math.exp %763 : vector<8x128xf32>
    %cst_256 = arith.constant 1.000000e+00 : f32
    %765 = vector.broadcast %cst_256 : f32 to vector<8x128xf32>
    %766 = arith.addf %765, %764 : vector<8x128xf32>
    %767 = arith.divf %765, %766 : vector<8x128xf32>
    %768 = vector.extract_strided_slice %719 {offsets = [0, 256], sizes = [8, 128], strides = [1, 1]} : vector<8x384xf32> to vector<8x128xf32>
    %769 = vector.extract_strided_slice %725 {offsets = [0, 256], sizes = [8, 128], strides = [1, 1]} : vector<8x384xf32> to vector<8x128xf32>
    %770 = arith.mulf %759, %769 : vector<8x128xf32>
    %771 = arith.addf %768, %770 : vector<8x128xf32>
    %772 = math.tanh %771 : vector<8x128xf32>
    %cst_257 = arith.constant 1.000000e+00 : f32
    %773 = vector.broadcast %cst_257 : f32 to vector<8x128xf32>
    %774 = arith.subf %773, %767 : vector<8x128xf32>
    %775 = arith.mulf %774, %772 : vector<8x128xf32>
    %776 = arith.mulf %767, %717 : vector<8x128xf32>
    %777 = arith.addf %775, %776 : vector<8x128xf32>
    %c32_258 = arith.constant 32 : index
    %c0_259 = arith.constant 0 : index
    %778 = vector.load %arg18[%c32_258, %c0_259] : memref<64x384xf32, #tpu.memory_space<vmem>>, vector<8x384xf32>
    %c24_260 = arith.constant 24 : index
    %c0_261 = arith.constant 0 : index
    %779 = vector.load %arg19[%c24_260, %c0_261] : memref<64x384xf32, #tpu.memory_space<vmem>>, vector<8x384xf32>
    %c0_262 = arith.constant 0 : index
    %c0_263 = arith.constant 0 : index
    %780 = vector.load %arg10[%c0_262, %c0_263] : memref<128x384xf32, #tpu.memory_space<vmem>>, vector<128x384xf32>
    %cst_264 = arith.constant dense<0.000000e+00> : vector<8x384xf32>
    %781 = tpu.matmul %751, %780, %cst_264 {dimension_numbers = #tpu.dot_dimension_numbers<[1], [0], [0], [1], [0, 0, 1, 1], [], []>} : vector<8x128xf32>, vector<128x384xf32>, vector<8x384xf32> -> vector<8x384xf32>
    %782 = arith.addf %781, %532 : vector<8x384xf32>
    %c0_265 = arith.constant 0 : index
    %c0_266 = arith.constant 0 : index
    %783 = vector.load %arg14[%c0_265, %c0_266] : memref<128x384xf32, #tpu.memory_space<vmem>>, vector<128x384xf32>
    %cst_267 = arith.constant dense<0.000000e+00> : vector<8x384xf32>
    %784 = tpu.matmul %777, %783, %cst_267 {dimension_numbers = #tpu.dot_dimension_numbers<[1], [0], [0], [1], [0, 0, 1, 1], [], []>} : vector<8x128xf32>, vector<128x384xf32>, vector<8x384xf32> -> vector<8x384xf32>
    %785 = arith.addf %784, %535 : vector<8x384xf32>
    %786 = vector.extract_strided_slice %778 {offsets = [0, 0], sizes = [8, 128], strides = [1, 1]} : vector<8x384xf32> to vector<8x128xf32>
    %787 = vector.extract_strided_slice %782 {offsets = [0, 0], sizes = [8, 128], strides = [1, 1]} : vector<8x384xf32> to vector<8x128xf32>
    %788 = arith.addf %786, %787 : vector<8x128xf32>
    %789 = arith.negf %788 : vector<8x128xf32>
    %790 = math.exp %789 : vector<8x128xf32>
    %cst_268 = arith.constant 1.000000e+00 : f32
    %791 = vector.broadcast %cst_268 : f32 to vector<8x128xf32>
    %792 = arith.addf %791, %790 : vector<8x128xf32>
    %793 = arith.divf %791, %792 : vector<8x128xf32>
    %794 = vector.extract_strided_slice %778 {offsets = [0, 128], sizes = [8, 128], strides = [1, 1]} : vector<8x384xf32> to vector<8x128xf32>
    %795 = vector.extract_strided_slice %782 {offsets = [0, 128], sizes = [8, 128], strides = [1, 1]} : vector<8x384xf32> to vector<8x128xf32>
    %796 = arith.addf %794, %795 : vector<8x128xf32>
    %797 = arith.negf %796 : vector<8x128xf32>
    %798 = math.exp %797 : vector<8x128xf32>
    %cst_269 = arith.constant 1.000000e+00 : f32
    %799 = vector.broadcast %cst_269 : f32 to vector<8x128xf32>
    %800 = arith.addf %799, %798 : vector<8x128xf32>
    %801 = arith.divf %799, %800 : vector<8x128xf32>
    %802 = vector.extract_strided_slice %778 {offsets = [0, 256], sizes = [8, 128], strides = [1, 1]} : vector<8x384xf32> to vector<8x128xf32>
    %803 = vector.extract_strided_slice %782 {offsets = [0, 256], sizes = [8, 128], strides = [1, 1]} : vector<8x384xf32> to vector<8x128xf32>
    %804 = arith.mulf %793, %803 : vector<8x128xf32>
    %805 = arith.addf %802, %804 : vector<8x128xf32>
    %806 = math.tanh %805 : vector<8x128xf32>
    %cst_270 = arith.constant 1.000000e+00 : f32
    %807 = vector.broadcast %cst_270 : f32 to vector<8x128xf32>
    %808 = arith.subf %807, %801 : vector<8x128xf32>
    %809 = arith.mulf %808, %806 : vector<8x128xf32>
    %810 = arith.mulf %801, %751 : vector<8x128xf32>
    %811 = arith.addf %809, %810 : vector<8x128xf32>
    %812 = vector.extract_strided_slice %779 {offsets = [0, 0], sizes = [8, 128], strides = [1, 1]} : vector<8x384xf32> to vector<8x128xf32>
    %813 = vector.extract_strided_slice %785 {offsets = [0, 0], sizes = [8, 128], strides = [1, 1]} : vector<8x384xf32> to vector<8x128xf32>
    %814 = arith.addf %812, %813 : vector<8x128xf32>
    %815 = arith.negf %814 : vector<8x128xf32>
    %816 = math.exp %815 : vector<8x128xf32>
    %cst_271 = arith.constant 1.000000e+00 : f32
    %817 = vector.broadcast %cst_271 : f32 to vector<8x128xf32>
    %818 = arith.addf %817, %816 : vector<8x128xf32>
    %819 = arith.divf %817, %818 : vector<8x128xf32>
    %820 = vector.extract_strided_slice %779 {offsets = [0, 128], sizes = [8, 128], strides = [1, 1]} : vector<8x384xf32> to vector<8x128xf32>
    %821 = vector.extract_strided_slice %785 {offsets = [0, 128], sizes = [8, 128], strides = [1, 1]} : vector<8x384xf32> to vector<8x128xf32>
    %822 = arith.addf %820, %821 : vector<8x128xf32>
    %823 = arith.negf %822 : vector<8x128xf32>
    %824 = math.exp %823 : vector<8x128xf32>
    %cst_272 = arith.constant 1.000000e+00 : f32
    %825 = vector.broadcast %cst_272 : f32 to vector<8x128xf32>
    %826 = arith.addf %825, %824 : vector<8x128xf32>
    %827 = arith.divf %825, %826 : vector<8x128xf32>
    %828 = vector.extract_strided_slice %779 {offsets = [0, 256], sizes = [8, 128], strides = [1, 1]} : vector<8x384xf32> to vector<8x128xf32>
    %829 = vector.extract_strided_slice %785 {offsets = [0, 256], sizes = [8, 128], strides = [1, 1]} : vector<8x384xf32> to vector<8x128xf32>
    %830 = arith.mulf %819, %829 : vector<8x128xf32>
    %831 = arith.addf %828, %830 : vector<8x128xf32>
    %832 = math.tanh %831 : vector<8x128xf32>
    %cst_273 = arith.constant 1.000000e+00 : f32
    %833 = vector.broadcast %cst_273 : f32 to vector<8x128xf32>
    %834 = arith.subf %833, %827 : vector<8x128xf32>
    %835 = arith.mulf %834, %832 : vector<8x128xf32>
    %836 = arith.mulf %827, %777 : vector<8x128xf32>
    %837 = arith.addf %835, %836 : vector<8x128xf32>
    %c40_274 = arith.constant 40 : index
    %c0_275 = arith.constant 0 : index
    %838 = vector.load %arg18[%c40_274, %c0_275] : memref<64x384xf32, #tpu.memory_space<vmem>>, vector<8x384xf32>
    %c16_276 = arith.constant 16 : index
    %c0_277 = arith.constant 0 : index
    %839 = vector.load %arg19[%c16_276, %c0_277] : memref<64x384xf32, #tpu.memory_space<vmem>>, vector<8x384xf32>
    %c0_278 = arith.constant 0 : index
    %c0_279 = arith.constant 0 : index
    %840 = vector.load %arg10[%c0_278, %c0_279] : memref<128x384xf32, #tpu.memory_space<vmem>>, vector<128x384xf32>
    %cst_280 = arith.constant dense<0.000000e+00> : vector<8x384xf32>
    %841 = tpu.matmul %811, %840, %cst_280 {dimension_numbers = #tpu.dot_dimension_numbers<[1], [0], [0], [1], [0, 0, 1, 1], [], []>} : vector<8x128xf32>, vector<128x384xf32>, vector<8x384xf32> -> vector<8x384xf32>
    %842 = arith.addf %841, %532 : vector<8x384xf32>
    %c0_281 = arith.constant 0 : index
    %c0_282 = arith.constant 0 : index
    %843 = vector.load %arg14[%c0_281, %c0_282] : memref<128x384xf32, #tpu.memory_space<vmem>>, vector<128x384xf32>
    %cst_283 = arith.constant dense<0.000000e+00> : vector<8x384xf32>
    %844 = tpu.matmul %837, %843, %cst_283 {dimension_numbers = #tpu.dot_dimension_numbers<[1], [0], [0], [1], [0, 0, 1, 1], [], []>} : vector<8x128xf32>, vector<128x384xf32>, vector<8x384xf32> -> vector<8x384xf32>
    %845 = arith.addf %844, %535 : vector<8x384xf32>
    %846 = vector.extract_strided_slice %838 {offsets = [0, 0], sizes = [8, 128], strides = [1, 1]} : vector<8x384xf32> to vector<8x128xf32>
    %847 = vector.extract_strided_slice %842 {offsets = [0, 0], sizes = [8, 128], strides = [1, 1]} : vector<8x384xf32> to vector<8x128xf32>
    %848 = arith.addf %846, %847 : vector<8x128xf32>
    %849 = arith.negf %848 : vector<8x128xf32>
    %850 = math.exp %849 : vector<8x128xf32>
    %cst_284 = arith.constant 1.000000e+00 : f32
    %851 = vector.broadcast %cst_284 : f32 to vector<8x128xf32>
    %852 = arith.addf %851, %850 : vector<8x128xf32>
    %853 = arith.divf %851, %852 : vector<8x128xf32>
    %854 = vector.extract_strided_slice %838 {offsets = [0, 128], sizes = [8, 128], strides = [1, 1]} : vector<8x384xf32> to vector<8x128xf32>
    %855 = vector.extract_strided_slice %842 {offsets = [0, 128], sizes = [8, 128], strides = [1, 1]} : vector<8x384xf32> to vector<8x128xf32>
    %856 = arith.addf %854, %855 : vector<8x128xf32>
    %857 = arith.negf %856 : vector<8x128xf32>
    %858 = math.exp %857 : vector<8x128xf32>
    %cst_285 = arith.constant 1.000000e+00 : f32
    %859 = vector.broadcast %cst_285 : f32 to vector<8x128xf32>
    %860 = arith.addf %859, %858 : vector<8x128xf32>
    %861 = arith.divf %859, %860 : vector<8x128xf32>
    %862 = vector.extract_strided_slice %838 {offsets = [0, 256], sizes = [8, 128], strides = [1, 1]} : vector<8x384xf32> to vector<8x128xf32>
    %863 = vector.extract_strided_slice %842 {offsets = [0, 256], sizes = [8, 128], strides = [1, 1]} : vector<8x384xf32> to vector<8x128xf32>
    %864 = arith.mulf %853, %863 : vector<8x128xf32>
    %865 = arith.addf %862, %864 : vector<8x128xf32>
    %866 = math.tanh %865 : vector<8x128xf32>
    %cst_286 = arith.constant 1.000000e+00 : f32
    %867 = vector.broadcast %cst_286 : f32 to vector<8x128xf32>
    %868 = arith.subf %867, %861 : vector<8x128xf32>
    %869 = arith.mulf %868, %866 : vector<8x128xf32>
    %870 = arith.mulf %861, %811 : vector<8x128xf32>
    %871 = arith.addf %869, %870 : vector<8x128xf32>
    %872 = vector.extract_strided_slice %839 {offsets = [0, 0], sizes = [8, 128], strides = [1, 1]} : vector<8x384xf32> to vector<8x128xf32>
    %873 = vector.extract_strided_slice %845 {offsets = [0, 0], sizes = [8, 128], strides = [1, 1]} : vector<8x384xf32> to vector<8x128xf32>
    %874 = arith.addf %872, %873 : vector<8x128xf32>
    %875 = arith.negf %874 : vector<8x128xf32>
    %876 = math.exp %875 : vector<8x128xf32>
    %cst_287 = arith.constant 1.000000e+00 : f32
    %877 = vector.broadcast %cst_287 : f32 to vector<8x128xf32>
    %878 = arith.addf %877, %876 : vector<8x128xf32>
    %879 = arith.divf %877, %878 : vector<8x128xf32>
    %880 = vector.extract_strided_slice %839 {offsets = [0, 128], sizes = [8, 128], strides = [1, 1]} : vector<8x384xf32> to vector<8x128xf32>
    %881 = vector.extract_strided_slice %845 {offsets = [0, 128], sizes = [8, 128], strides = [1, 1]} : vector<8x384xf32> to vector<8x128xf32>
    %882 = arith.addf %880, %881 : vector<8x128xf32>
    %883 = arith.negf %882 : vector<8x128xf32>
    %884 = math.exp %883 : vector<8x128xf32>
    %cst_288 = arith.constant 1.000000e+00 : f32
    %885 = vector.broadcast %cst_288 : f32 to vector<8x128xf32>
    %886 = arith.addf %885, %884 : vector<8x128xf32>
    %887 = arith.divf %885, %886 : vector<8x128xf32>
    %888 = vector.extract_strided_slice %839 {offsets = [0, 256], sizes = [8, 128], strides = [1, 1]} : vector<8x384xf32> to vector<8x128xf32>
    %889 = vector.extract_strided_slice %845 {offsets = [0, 256], sizes = [8, 128], strides = [1, 1]} : vector<8x384xf32> to vector<8x128xf32>
    %890 = arith.mulf %879, %889 : vector<8x128xf32>
    %891 = arith.addf %888, %890 : vector<8x128xf32>
    %892 = math.tanh %891 : vector<8x128xf32>
    %cst_289 = arith.constant 1.000000e+00 : f32
    %893 = vector.broadcast %cst_289 : f32 to vector<8x128xf32>
    %894 = arith.subf %893, %887 : vector<8x128xf32>
    %895 = arith.mulf %894, %892 : vector<8x128xf32>
    %896 = arith.mulf %887, %837 : vector<8x128xf32>
    %897 = arith.addf %895, %896 : vector<8x128xf32>
    %c48_290 = arith.constant 48 : index
    %c0_291 = arith.constant 0 : index
    %898 = vector.load %arg18[%c48_290, %c0_291] : memref<64x384xf32, #tpu.memory_space<vmem>>, vector<8x384xf32>
    %c8_292 = arith.constant 8 : index
    %c0_293 = arith.constant 0 : index
    %899 = vector.load %arg19[%c8_292, %c0_293] : memref<64x384xf32, #tpu.memory_space<vmem>>, vector<8x384xf32>
    %c0_294 = arith.constant 0 : index
    %c0_295 = arith.constant 0 : index
    %900 = vector.load %arg10[%c0_294, %c0_295] : memref<128x384xf32, #tpu.memory_space<vmem>>, vector<128x384xf32>
    %cst_296 = arith.constant dense<0.000000e+00> : vector<8x384xf32>
    %901 = tpu.matmul %871, %900, %cst_296 {dimension_numbers = #tpu.dot_dimension_numbers<[1], [0], [0], [1], [0, 0, 1, 1], [], []>} : vector<8x128xf32>, vector<128x384xf32>, vector<8x384xf32> -> vector<8x384xf32>
    %902 = arith.addf %901, %532 : vector<8x384xf32>
    %c0_297 = arith.constant 0 : index
    %c0_298 = arith.constant 0 : index
    %903 = vector.load %arg14[%c0_297, %c0_298] : memref<128x384xf32, #tpu.memory_space<vmem>>, vector<128x384xf32>
    %cst_299 = arith.constant dense<0.000000e+00> : vector<8x384xf32>
    %904 = tpu.matmul %897, %903, %cst_299 {dimension_numbers = #tpu.dot_dimension_numbers<[1], [0], [0], [1], [0, 0, 1, 1], [], []>} : vector<8x128xf32>, vector<128x384xf32>, vector<8x384xf32> -> vector<8x384xf32>
    %905 = arith.addf %904, %535 : vector<8x384xf32>
    %906 = vector.extract_strided_slice %898 {offsets = [0, 0], sizes = [8, 128], strides = [1, 1]} : vector<8x384xf32> to vector<8x128xf32>
    %907 = vector.extract_strided_slice %902 {offsets = [0, 0], sizes = [8, 128], strides = [1, 1]} : vector<8x384xf32> to vector<8x128xf32>
    %908 = arith.addf %906, %907 : vector<8x128xf32>
    %909 = arith.negf %908 : vector<8x128xf32>
    %910 = math.exp %909 : vector<8x128xf32>
    %cst_300 = arith.constant 1.000000e+00 : f32
    %911 = vector.broadcast %cst_300 : f32 to vector<8x128xf32>
    %912 = arith.addf %911, %910 : vector<8x128xf32>
    %913 = arith.divf %911, %912 : vector<8x128xf32>
    %914 = vector.extract_strided_slice %898 {offsets = [0, 128], sizes = [8, 128], strides = [1, 1]} : vector<8x384xf32> to vector<8x128xf32>
    %915 = vector.extract_strided_slice %902 {offsets = [0, 128], sizes = [8, 128], strides = [1, 1]} : vector<8x384xf32> to vector<8x128xf32>
    %916 = arith.addf %914, %915 : vector<8x128xf32>
    %917 = arith.negf %916 : vector<8x128xf32>
    %918 = math.exp %917 : vector<8x128xf32>
    %cst_301 = arith.constant 1.000000e+00 : f32
    %919 = vector.broadcast %cst_301 : f32 to vector<8x128xf32>
    %920 = arith.addf %919, %918 : vector<8x128xf32>
    %921 = arith.divf %919, %920 : vector<8x128xf32>
    %922 = vector.extract_strided_slice %898 {offsets = [0, 256], sizes = [8, 128], strides = [1, 1]} : vector<8x384xf32> to vector<8x128xf32>
    %923 = vector.extract_strided_slice %902 {offsets = [0, 256], sizes = [8, 128], strides = [1, 1]} : vector<8x384xf32> to vector<8x128xf32>
    %924 = arith.mulf %913, %923 : vector<8x128xf32>
    %925 = arith.addf %922, %924 : vector<8x128xf32>
    %926 = math.tanh %925 : vector<8x128xf32>
    %cst_302 = arith.constant 1.000000e+00 : f32
    %927 = vector.broadcast %cst_302 : f32 to vector<8x128xf32>
    %928 = arith.subf %927, %921 : vector<8x128xf32>
    %929 = arith.mulf %928, %926 : vector<8x128xf32>
    %930 = arith.mulf %921, %871 : vector<8x128xf32>
    %931 = arith.addf %929, %930 : vector<8x128xf32>
    %932 = vector.extract_strided_slice %899 {offsets = [0, 0], sizes = [8, 128], strides = [1, 1]} : vector<8x384xf32> to vector<8x128xf32>
    %933 = vector.extract_strided_slice %905 {offsets = [0, 0], sizes = [8, 128], strides = [1, 1]} : vector<8x384xf32> to vector<8x128xf32>
    %934 = arith.addf %932, %933 : vector<8x128xf32>
    %935 = arith.negf %934 : vector<8x128xf32>
    %936 = math.exp %935 : vector<8x128xf32>
    %cst_303 = arith.constant 1.000000e+00 : f32
    %937 = vector.broadcast %cst_303 : f32 to vector<8x128xf32>
    %938 = arith.addf %937, %936 : vector<8x128xf32>
    %939 = arith.divf %937, %938 : vector<8x128xf32>
    %940 = vector.extract_strided_slice %899 {offsets = [0, 128], sizes = [8, 128], strides = [1, 1]} : vector<8x384xf32> to vector<8x128xf32>
    %941 = vector.extract_strided_slice %905 {offsets = [0, 128], sizes = [8, 128], strides = [1, 1]} : vector<8x384xf32> to vector<8x128xf32>
    %942 = arith.addf %940, %941 : vector<8x128xf32>
    %943 = arith.negf %942 : vector<8x128xf32>
    %944 = math.exp %943 : vector<8x128xf32>
    %cst_304 = arith.constant 1.000000e+00 : f32
    %945 = vector.broadcast %cst_304 : f32 to vector<8x128xf32>
    %946 = arith.addf %945, %944 : vector<8x128xf32>
    %947 = arith.divf %945, %946 : vector<8x128xf32>
    %948 = vector.extract_strided_slice %899 {offsets = [0, 256], sizes = [8, 128], strides = [1, 1]} : vector<8x384xf32> to vector<8x128xf32>
    %949 = vector.extract_strided_slice %905 {offsets = [0, 256], sizes = [8, 128], strides = [1, 1]} : vector<8x384xf32> to vector<8x128xf32>
    %950 = arith.mulf %939, %949 : vector<8x128xf32>
    %951 = arith.addf %948, %950 : vector<8x128xf32>
    %952 = math.tanh %951 : vector<8x128xf32>
    %cst_305 = arith.constant 1.000000e+00 : f32
    %953 = vector.broadcast %cst_305 : f32 to vector<8x128xf32>
    %954 = arith.subf %953, %947 : vector<8x128xf32>
    %955 = arith.mulf %954, %952 : vector<8x128xf32>
    %956 = arith.mulf %947, %897 : vector<8x128xf32>
    %957 = arith.addf %955, %956 : vector<8x128xf32>
    %c56_306 = arith.constant 56 : index
    %c0_307 = arith.constant 0 : index
    %958 = vector.load %arg18[%c56_306, %c0_307] : memref<64x384xf32, #tpu.memory_space<vmem>>, vector<8x384xf32>
    %c0_308 = arith.constant 0 : index
    %c0_309 = arith.constant 0 : index
    %959 = vector.load %arg19[%c0_308, %c0_309] : memref<64x384xf32, #tpu.memory_space<vmem>>, vector<8x384xf32>
    %c0_310 = arith.constant 0 : index
    %c0_311 = arith.constant 0 : index
    %960 = vector.load %arg10[%c0_310, %c0_311] : memref<128x384xf32, #tpu.memory_space<vmem>>, vector<128x384xf32>
    %cst_312 = arith.constant dense<0.000000e+00> : vector<8x384xf32>
    %961 = tpu.matmul %931, %960, %cst_312 {dimension_numbers = #tpu.dot_dimension_numbers<[1], [0], [0], [1], [0, 0, 1, 1], [], []>} : vector<8x128xf32>, vector<128x384xf32>, vector<8x384xf32> -> vector<8x384xf32>
    %962 = arith.addf %961, %532 : vector<8x384xf32>
    %c0_313 = arith.constant 0 : index
    %c0_314 = arith.constant 0 : index
    %963 = vector.load %arg14[%c0_313, %c0_314] : memref<128x384xf32, #tpu.memory_space<vmem>>, vector<128x384xf32>
    %cst_315 = arith.constant dense<0.000000e+00> : vector<8x384xf32>
    %964 = tpu.matmul %957, %963, %cst_315 {dimension_numbers = #tpu.dot_dimension_numbers<[1], [0], [0], [1], [0, 0, 1, 1], [], []>} : vector<8x128xf32>, vector<128x384xf32>, vector<8x384xf32> -> vector<8x384xf32>
    %965 = arith.addf %964, %535 : vector<8x384xf32>
    %966 = vector.extract_strided_slice %958 {offsets = [0, 0], sizes = [8, 128], strides = [1, 1]} : vector<8x384xf32> to vector<8x128xf32>
    %967 = vector.extract_strided_slice %962 {offsets = [0, 0], sizes = [8, 128], strides = [1, 1]} : vector<8x384xf32> to vector<8x128xf32>
    %968 = arith.addf %966, %967 : vector<8x128xf32>
    %969 = arith.negf %968 : vector<8x128xf32>
    %970 = math.exp %969 : vector<8x128xf32>
    %cst_316 = arith.constant 1.000000e+00 : f32
    %971 = vector.broadcast %cst_316 : f32 to vector<8x128xf32>
    %972 = arith.addf %971, %970 : vector<8x128xf32>
    %973 = arith.divf %971, %972 : vector<8x128xf32>
    %974 = vector.extract_strided_slice %958 {offsets = [0, 128], sizes = [8, 128], strides = [1, 1]} : vector<8x384xf32> to vector<8x128xf32>
    %975 = vector.extract_strided_slice %962 {offsets = [0, 128], sizes = [8, 128], strides = [1, 1]} : vector<8x384xf32> to vector<8x128xf32>
    %976 = arith.addf %974, %975 : vector<8x128xf32>
    %977 = arith.negf %976 : vector<8x128xf32>
    %978 = math.exp %977 : vector<8x128xf32>
    %cst_317 = arith.constant 1.000000e+00 : f32
    %979 = vector.broadcast %cst_317 : f32 to vector<8x128xf32>
    %980 = arith.addf %979, %978 : vector<8x128xf32>
    %981 = arith.divf %979, %980 : vector<8x128xf32>
    %982 = vector.extract_strided_slice %958 {offsets = [0, 256], sizes = [8, 128], strides = [1, 1]} : vector<8x384xf32> to vector<8x128xf32>
    %983 = vector.extract_strided_slice %962 {offsets = [0, 256], sizes = [8, 128], strides = [1, 1]} : vector<8x384xf32> to vector<8x128xf32>
    %984 = arith.mulf %973, %983 : vector<8x128xf32>
    %985 = arith.addf %982, %984 : vector<8x128xf32>
    %986 = math.tanh %985 : vector<8x128xf32>
    %cst_318 = arith.constant 1.000000e+00 : f32
    %987 = vector.broadcast %cst_318 : f32 to vector<8x128xf32>
    %988 = arith.subf %987, %981 : vector<8x128xf32>
    %989 = arith.mulf %988, %986 : vector<8x128xf32>
    %990 = arith.mulf %981, %931 : vector<8x128xf32>
    %991 = arith.addf %989, %990 : vector<8x128xf32>
    %992 = vector.extract_strided_slice %959 {offsets = [0, 0], sizes = [8, 128], strides = [1, 1]} : vector<8x384xf32> to vector<8x128xf32>
    %993 = vector.extract_strided_slice %965 {offsets = [0, 0], sizes = [8, 128], strides = [1, 1]} : vector<8x384xf32> to vector<8x128xf32>
    %994 = arith.addf %992, %993 : vector<8x128xf32>
    %995 = arith.negf %994 : vector<8x128xf32>
    %996 = math.exp %995 : vector<8x128xf32>
    %cst_319 = arith.constant 1.000000e+00 : f32
    %997 = vector.broadcast %cst_319 : f32 to vector<8x128xf32>
    %998 = arith.addf %997, %996 : vector<8x128xf32>
    %999 = arith.divf %997, %998 : vector<8x128xf32>
    %1000 = vector.extract_strided_slice %959 {offsets = [0, 128], sizes = [8, 128], strides = [1, 1]} : vector<8x384xf32> to vector<8x128xf32>
    %1001 = vector.extract_strided_slice %965 {offsets = [0, 128], sizes = [8, 128], strides = [1, 1]} : vector<8x384xf32> to vector<8x128xf32>
    %1002 = arith.addf %1000, %1001 : vector<8x128xf32>
    %1003 = arith.negf %1002 : vector<8x128xf32>
    %1004 = math.exp %1003 : vector<8x128xf32>
    %cst_320 = arith.constant 1.000000e+00 : f32
    %1005 = vector.broadcast %cst_320 : f32 to vector<8x128xf32>
    %1006 = arith.addf %1005, %1004 : vector<8x128xf32>
    %1007 = arith.divf %1005, %1006 : vector<8x128xf32>
    %1008 = vector.extract_strided_slice %959 {offsets = [0, 256], sizes = [8, 128], strides = [1, 1]} : vector<8x384xf32> to vector<8x128xf32>
    %1009 = vector.extract_strided_slice %965 {offsets = [0, 256], sizes = [8, 128], strides = [1, 1]} : vector<8x384xf32> to vector<8x128xf32>
    %1010 = arith.mulf %999, %1009 : vector<8x128xf32>
    %1011 = arith.addf %1008, %1010 : vector<8x128xf32>
    %1012 = math.tanh %1011 : vector<8x128xf32>
    %cst_321 = arith.constant 1.000000e+00 : f32
    %1013 = vector.broadcast %cst_321 : f32 to vector<8x128xf32>
    %1014 = arith.subf %1013, %1007 : vector<8x128xf32>
    %1015 = arith.mulf %1014, %1012 : vector<8x128xf32>
    %1016 = arith.mulf %1007, %957 : vector<8x128xf32>
    %1017 = arith.addf %1015, %1016 : vector<8x128xf32>
    %c0_322 = arith.constant 0 : index
    %c0_323 = arith.constant 0 : index
    %1018 = vector.load %arg17[%c0_322, %c0_323] : memref<8x512xf32, #tpu.memory_space<vmem>>, vector<8x128xf32>
    tpu.vector_store %arg17[%c0_322, %c0_323], %488 {strides = array<i32>} : memref<8x512xf32, #tpu.memory_space<vmem>>, vector<8x128xf32>,
    %c0_324 = arith.constant 0 : index
    %c128_325 = arith.constant 128 : index
    %1019 = vector.load %arg17[%c0_324, %c128_325] : memref<8x512xf32, #tpu.memory_space<vmem>>, vector<8x128xf32>
    tpu.vector_store %arg17[%c0_324, %c128_325], %514 {strides = array<i32>} : memref<8x512xf32, #tpu.memory_space<vmem>>, vector<8x128xf32>,
    %c0_326 = arith.constant 0 : index
    %c256 = arith.constant 256 : index
    %1020 = vector.load %arg17[%c0_326, %c256] : memref<8x512xf32, #tpu.memory_space<vmem>>, vector<8x128xf32>
    tpu.vector_store %arg17[%c0_326, %c256], %991 {strides = array<i32>} : memref<8x512xf32, #tpu.memory_space<vmem>>, vector<8x128xf32>,
    %c0_327 = arith.constant 0 : index
    %c384 = arith.constant 384 : index
    %1021 = vector.load %arg17[%c0_327, %c384] : memref<8x512xf32, #tpu.memory_space<vmem>>, vector<8x128xf32>
    tpu.vector_store %arg17[%c0_327, %c384], %1017 {strides = array<i32>} : memref<8x512xf32, #tpu.memory_space<vmem>>, vector<8x128xf32>,
    return
  }
}

</mosaic_0001>

<bundles_post_ra>
// kernel: tpu_custom_call.1
= control target key start
LH: loop header
LB: loop body
LE: loop exit
PB: predicated region body
PF: predicated region fallthrough
CT: control target
= control target key end

     0   :  { %s15078_s0 = inlined_call_operand.hbm [shape: f32[64,128], index: 0, kind: input, shape index: {}]   ;;  %s15079_s1 = inlined_call_operand.hbm [shape: f32[128,384], index: 1, kind: input, shape index: {}]   ;;  %s15080_s2 = inlined_call_operand.hbm [shape: f32[128,384], index: 2, kind: input, shape index: {}]   ;;  %s15081_s3 = inlined_call_operand.vmem [shape: f32[1,384], index: 3, kind: input, shape index: {}]   ;;  %s15082_s4 = inlined_call_operand.vmem [shape: f32[1,384], index: 4, kind: input, shape index: {}]   ;;  %s15083_s5 = inlined_call_operand.hbm [shape: f32[128,384], index: 5, kind: input, shape index: {}]   ;;  %s15084_s6 = inlined_call_operand.hbm [shape: f32[128,384], index: 6, kind: input, shape index: {}]   ;;  %s15085_s7 = inlined_call_operand.vmem [shape: f32[1,384], index: 7, kind: input, shape index: {}]   ;;  %s15086_s8 = inlined_call_operand.vmem [shape: f32[1,384], index: 8, kind: input, shape index: {}]   ;;  %s15087_s9 = inlined_call_operand.hbm [shape: f32[256,384], index: 9, kind: input, shape index: {}]   ;;  %s15088_s10 = inlined_call_operand.hbm [shape: f32[128,384], index: 10, kind: input, shape index: {}]   ;;  %s15089_s11 = inlined_call_operand.vmem [shape: f32[1,384], index: 11, kind: input, shape index: {}]   ;;  %s15090_s12 = inlined_call_operand.vmem [shape: f32[1,384], index: 12, kind: input, shape index: {}]   ;;  %s15091_s13 = inlined_call_operand.hbm [shape: f32[256,384], index: 13, kind: input, shape index: {}]   ;;  %s15092_s14 = inlined_call_operand.hbm [shape: f32[128,384], index: 14, kind: input, shape index: {}]   ;;  %s15093_s15 = inlined_call_operand.vmem [shape: f32[1,384], index: 15, kind: input, shape index: {}]   ;;  %s15094_s16 = inlined_call_operand.vmem [shape: f32[1,384], index: 16, kind: input, shape index: {}]   ;;  %s15095_s17 = inlined_call_operand.hbm [shape: f32[8,512], index: 17, kind: output, shape index: {}]  }
   0x1   :  { %15160 = sst [smem:[#allocation54_spill]] %s15078_s0 }
   0x2   :  { %15161 = sst [smem:[#allocation55_spill]] %s15079_s1 }
   0x3   :  { %15162 = sst [smem:[#allocation56_spill]] %s15094_s16 }
   0x4   :  { %15163 = sst [smem:[#allocation57_spill]] %s15095_s17 }
   0x5   :  { %22 = vsyncpa [#allocation6], 0 }
   0x6   :  { %23 = vsyncpa [#allocation9], 0 }
   0x7   :  { %24 = vsyncpa [#allocation12], 0 }
   0x8   :  { %25 = vsyncpa [#allocation15], 0 }
   0x9   :  { %26 = vsyncpa [#allocation18], 0 }
   0xa   :  { %27 = vsyncpa [#allocation7], 0  ;;  %s12627_s24 = smov [#allocation8]   ;;  %s15164_s28 = sld [smem:[#allocation55_spill]] }
   0xb   :  { %s45_s25 = sshll.u32 %s12627_s24, 4  ;;  %s46_s25 = int_to_ptr.vmem [resolvable:$true] %s45_s25 }
  0x10   :  { %s12395_s29 = scalar_lea.hbm %s15164_s28, 6144 }
  0x11   :  { %p12396_p0 = scmp.ne.s32.totalorder %s15164_s28, %s12395_s29  ;;  %p12399_p1 = scmp.lt.u32.totalorder %s12395_s29, %s15164_s28 }
  0x13   :  { %p12401_p2 = pnand %p12399_p1, %p12396_p0 }
  0x15   :  { %12404 = shalt.err (!%p12401_p2)
}
  0x16   :  { %s12405_s1 = scalar_lea.vmem %s46_s25, 6144  ;;  %p12410_p4 = scmp.lt.s32.totalorder %s46_s25, %s46_s25 }
  0x17   :  { %p12406_p3 = scmp.ne.s32.totalorder %s46_s25, %s12405_s1  ;;  %p12411_p5 = scmp.lt.s32.totalorder %s12405_s1, %s12405_s1 }
  0x19   :  { %p12412_p6 = por %p12411_p5, %p12410_p4 }
  0x1b   :  { %p12413_p7 = pnand %p12412_p6, %p12406_p3 }
  0x1d   :  { %12416 = shalt.err (!%p12413_p7)
}
  0x1e   :  { %s12628_s20 = smov 384   ;;  %s12629_s21 = smov 24  }
  0x1f   :  { %51 = dma.hbm_to_vmem [thread:$0]  %s15164_s28, 6144, %s46_s25, [#allocation9], %s12628_s20, %s12628_s20, %s12629_s21  }
  0x20   :  { %s12630_s24 = smov [#allocation11]   ;;  %s12631_s27 = smov [#allocation14]  }
  0x21   :  { %s73_s26 = sshll.u32 %s12630_s24, 4  ;;  %s101_s29 = sshll.u32 %s12631_s27, 4  ;;  %s74_s26 = int_to_ptr.vmem [resolvable:$true] %s73_s26  ;;  %s102_s29 = int_to_ptr.vmem [resolvable:$true] %s101_s29 }
  0x22   :  { %s12417_s18 = scalar_lea.hbm %s15083_s5, 6144 }
  0x23   :  { %p12418_p8 = scmp.ne.s32.totalorder %s15083_s5, %s12417_s18  ;;  %p12421_p9 = scmp.lt.u32.totalorder %s12417_s18, %s15083_s5 }
  0x25   :  { %p12423_p10 = pnand %p12421_p9, %p12418_p8 }
  0x27   :  { %12426 = shalt.err (!%p12423_p10)
}
  0x28   :  { %s12427_s25 = scalar_lea.vmem %s74_s26, 6144  ;;  %p12432_p12 = scmp.lt.s32.totalorder %s74_s26, %s74_s26 }
  0x29   :  { %p12428_p11 = scmp.ne.s32.totalorder %s74_s26, %s12427_s25  ;;  %p12433_p13 = scmp.lt.s32.totalorder %s12427_s25, %s12427_s25 }
  0x2b   :  { %p12434_p0 = por %p12433_p13, %p12432_p12 }
  0x2d   :  { %p12435_p1 = pnand %p12434_p0, %p12428_p11 }
  0x2f   :  { %12438 = shalt.err (!%p12435_p1)
}
  0x30   :  { %79 = dma.hbm_to_vmem [thread:$0]  %s15083_s5, 6144, %s74_s26, [#allocation12], %s12628_s20, %s12628_s20, %s12629_s21  }
  0x31   :  { %s12439_s17 = scalar_lea.hbm %s15087_s9, 12288 }
  0x32   :  { %p12440_p2 = scmp.ne.s32.totalorder %s15087_s9, %s12439_s17  ;;  %p12443_p3 = scmp.lt.u32.totalorder %s12439_s17, %s15087_s9 }
  0x34   :  { %p12445_p4 = pnand %p12443_p3, %p12440_p2 }
  0x36   :  { %12448 = shalt.err (!%p12445_p4)
}
  0x37   :  { %s12449_s18 = scalar_lea.vmem %s102_s29, 12288  ;;  %p12454_p6 = scmp.lt.s32.totalorder %s102_s29, %s102_s29 }
  0x38   :  { %p12450_p5 = scmp.ne.s32.totalorder %s102_s29, %s12449_s18  ;;  %p12455_p7 = scmp.lt.s32.totalorder %s12449_s18, %s12449_s18 }
  0x3a   :  { %p12456_p8 = por %p12455_p7, %p12454_p6 }
  0x3c   :  { %p12457_p9 = pnand %p12456_p8, %p12450_p5 }
  0x3e   :  { %12460 = shalt.err (!%p12457_p9)
}
  0x3f   :  { %107 = dma.hbm_to_vmem [thread:$0]  %s15087_s9, 12288, %s102_s29, [#allocation15], %s12628_s20, %s12628_s20, %s12629_s21  }
  0x40   :  { %s12632_s19 = smov [#allocation17]   ;;  %s12633_s25 = smov [#allocation5]  }
  0x41   :  { %s129_s1 = sshll.u32 %s12632_s19, 4  ;;  %s33_s28 = sshll.u32 %s12633_s25, 4  ;;  %s130_s1 = int_to_ptr.vmem [resolvable:$true] %s129_s1  ;;  %s34_s28 = int_to_ptr.vmem [resolvable:$true] %s33_s28 }
  0x42   :  { %s12461_s16 = scalar_lea.hbm %s15091_s13, 12288 }
  0x43   :  { %p12462_p10 = scmp.ne.s32.totalorder %s15091_s13, %s12461_s16  ;;  %p12465_p11 = scmp.lt.u32.totalorder %s12461_s16, %s15091_s13 }
  0x45   :  { %p12467_p12 = pnand %p12465_p11, %p12462_p10 }
  0x47   :  { %12470 = shalt.err (!%p12467_p12)
}
  0x48   :  { %s12471_s9 = scalar_lea.vmem %s130_s1, 12288  ;;  %p12476_p0 = scmp.lt.s32.totalorder %s130_s1, %s130_s1 }
  0x49   :  { %p12472_p13 = scmp.ne.s32.totalorder %s130_s1, %s12471_s9  ;;  %p12477_p1 = scmp.lt.s32.totalorder %s12471_s9, %s12471_s9 }
  0x4b   :  { %p12478_p2 = por %p12477_p1, %p12476_p0 }
  0x4d   :  { %p12479_p3 = pnand %p12478_p2, %p12472_p13 }
  0x4f   :  { %12482 = shalt.err (!%p12479_p3)
}
  0x50   :  { %135 = dma.hbm_to_vmem [thread:$0]  %s15091_s13, 12288, %s130_s1, [#allocation18], %s12628_s20, %s12628_s20, %s12629_s21  }
  0x51   :  { %s15165_s26 = sld [smem:[#allocation54_spill]] }
  0x57   :  { %s12483_s19 = scalar_lea.hbm %s15165_s26, 1024 }
  0x58   :  { %p12484_p4 = scmp.ne.s32.totalorder %s15165_s26, %s12483_s19  ;;  %p12487_p5 = scmp.lt.u32.totalorder %s12483_s19, %s15165_s26 }
  0x5a   :  { %p12489_p6 = pnand %p12487_p5, %p12484_p4 }
  0x5c   :  { %12492 = shalt.err (!%p12489_p6)
}
  0x5d   :  { %s12493_s17 = scalar_lea.vmem %s34_s28, 1024  ;;  %p12498_p8 = scmp.lt.s32.totalorder %s34_s28, %s34_s28 }
  0x5e   :  { %p12494_p7 = scmp.ne.s32.totalorder %s34_s28, %s12493_s17  ;;  %p12499_p9 = scmp.lt.s32.totalorder %s12493_s17, %s12493_s17 }
  0x60   :  { %p12500_p10 = por %p12499_p9, %p12498_p8 }
  0x62   :  { %p12501_p11 = pnand %p12500_p10, %p12494_p7 }
  0x64   :  { %12504 = shalt.err (!%p12501_p11)
}
  0x65   :  { %s12634_s13 = smov 128   ;;  %s12635_s1 = smov 8  }
  0x66   :  { %39 = dma.hbm_to_vmem [thread:$0]  %s15165_s26, 1024, %s34_s28, [#allocation6], %s12634_s13, %s12634_s13, %s12635_s1  }
  0x67   :  { %s12636_s0 = smov [#allocation10]   ;;  %s12637_s29 = smov [#allocation13]  }
  0x68   :  { %s57_s9 = sshll.u32 %s12636_s0, 4  ;;  %s85_s30 = sshll.u32 %s12637_s29, 4  ;;  %s58_s9 = int_to_ptr.vmem [resolvable:$true] %s57_s9  ;;  %s86_s30 = int_to_ptr.vmem [resolvable:$true] %s85_s30 }
  0x69   :  { %s12505_s19 = scalar_lea.hbm %s15080_s2, 6144 }
  0x6a   :  { %p12506_p12 = scmp.ne.s32.totalorder %s15080_s2, %s12505_s19  ;;  %p12509_p13 = scmp.lt.u32.totalorder %s12505_s19, %s15080_s2 }
  0x6c   :  { %p12511_p0 = pnand %p12509_p13, %p12506_p12 }
  0x6e   :  { %12514 = shalt.err (!%p12511_p0)
}
  0x6f   :  { %s12515_s28 = scalar_lea.vmem %s58_s9, 6144  ;;  %p12520_p2 = scmp.lt.s32.totalorder %s58_s9, %s58_s9 }
  0x70   :  { %p12516_p1 = scmp.ne.s32.totalorder %s58_s9, %s12515_s28  ;;  %p12521_p3 = scmp.lt.s32.totalorder %s12515_s28, %s12515_s28 }
  0x72   :  { %p12522_p4 = por %p12521_p3, %p12520_p2 }
  0x74   :  { %p12523_p5 = pnand %p12522_p4, %p12516_p1 }
  0x76   :  { %12526 = shalt.err (!%p12523_p5)
}
  0x77   :  { %63 = dma.hbm_to_vmem [thread:$0]  %s15080_s2, 6144, %s58_s9, [#allocation9], %s12628_s20, %s12628_s20, %s12629_s21  }
  0x78   :  { %s12527_s24 = scalar_lea.hbm %s15084_s6, 6144 }
  0x79   :  { %p12528_p6 = scmp.ne.s32.totalorder %s15084_s6, %s12527_s24  ;;  %p12531_p7 = scmp.lt.u32.totalorder %s12527_s24, %s15084_s6 }
  0x7b   :  { %p12533_p8 = pnand %p12531_p7, %p12528_p6 }
  0x7d   :  { %12536 = shalt.err (!%p12533_p8)
}
  0x7e   :  { %s12537_s5 = scalar_lea.vmem %s86_s30, 6144  ;;  %p12542_p10 = scmp.lt.s32.totalorder %s86_s30, %s86_s30 }
  0x7f   :  { %p12538_p9 = scmp.ne.s32.totalorder %s86_s30, %s12537_s5  ;;  %p12543_p11 = scmp.lt.s32.totalorder %s12537_s5, %s12537_s5 }
  0x81   :  { %p12544_p12 = por %p12543_p11, %p12542_p10 }
  0x83   :  { %p12545_p13 = pnand %p12544_p12, %p12538_p9 }
  0x85   :  { %12548 = shalt.err (!%p12545_p13)
}
  0x86   :  { %91 = dma.hbm_to_vmem [thread:$0]  %s15084_s6, 6144, %s86_s30, [#allocation12], %s12628_s20, %s12628_s20, %s12629_s21  }
  0x87   :  { %s12638_s19 = smov [#allocation16]   ;;  %s12639_s22 = smov [#allocation19]  }
  0x88   :  { %s113_s25 = sshll.u32 %s12638_s19, 4  ;;  %s141_s23 = sshll.u32 %s12639_s22, 4  ;;  %s114_s25 = int_to_ptr.vmem [resolvable:$true] %s113_s25  ;;  %s142_s23 = int_to_ptr.vmem [resolvable:$true] %s141_s23 }
  0x89   :  { %s12549_s26 = scalar_lea.hbm %s15088_s10, 6144 }
  0x8a   :  { %p12550_p0 = scmp.ne.s32.totalorder %s15088_s10, %s12549_s26  ;;  %p12553_p1 = scmp.lt.u32.totalorder %s12549_s26, %s15088_s10 }
  0x8c   :  { %p12555_p2 = pnand %p12553_p1, %p12550_p0 }
  0x8e   :  { %12558 = shalt.err (!%p12555_p2)
}
  0x8f   :  { %s12559_s6 = scalar_lea.vmem %s114_s25, 6144  ;;  %p12564_p4 = scmp.lt.s32.totalorder %s114_s25, %s114_s25 }
  0x90   :  { %p12560_p3 = scmp.ne.s32.totalorder %s114_s25, %s12559_s6  ;;  %p12565_p5 = scmp.lt.s32.totalorder %s12559_s6, %s12559_s6 }
  0x92   :  { %p12566_p6 = por %p12565_p5, %p12564_p4 }
  0x94   :  { %p12567_p7 = pnand %p12566_p6, %p12560_p3 }
  0x96   :  { %12570 = shalt.err (!%p12567_p7)
}
  0x97   :  { %119 = dma.hbm_to_vmem [thread:$0]  %s15088_s10, 6144, %s114_s25, [#allocation15], %s12628_s20, %s12628_s20, %s12629_s21  }
  0x98   :  { %s12571_s18 = scalar_lea.hbm %s15092_s14, 6144 }
  0x99   :  { %p12572_p8 = scmp.ne.s32.totalorder %s15092_s14, %s12571_s18  ;;  %p12575_p9 = scmp.lt.u32.totalorder %s12571_s18, %s15092_s14 }
  0x9b   :  { %p12577_p10 = pnand %p12575_p9, %p12572_p8 }
  0x9d   :  { %12580 = shalt.err (!%p12577_p10)
}
  0x9e   :  { %s12581_s22 = scalar_lea.vmem %s142_s23, 6144  ;;  %p12586_p12 = scmp.lt.s32.totalorder %s142_s23, %s142_s23 }
  0x9f   :  { %p12582_p11 = scmp.ne.s32.totalorder %s142_s23, %s12581_s22  ;;  %p12587_p13 = scmp.lt.s32.totalorder %s12581_s22, %s12581_s22 }
  0xa1   :  { %p12588_p0 = por %p12587_p13, %p12586_p12 }
  0xa3   :  { %p12589_p1 = pnand %p12588_p0, %p12582_p11 }
  0xa5   :  { %12592 = shalt.err (!%p12589_p1)
}
  0xa6   :  { %147 = dma.hbm_to_vmem [thread:$0]  %s15092_s14, 6144, %s142_s23, [#allocation18], %s12628_s20, %s12628_s20, %s12629_s21  }
  0xa7   :  { %12615 = dma.done.wait [#allocation6], 1024  }
  0xa8   :  { %12616 = vsyncadd [#allocation6], 4294966272 }
  0xa9   :  { %12617 = dma.done.wait [#allocation9], 12288  }
  0xaa   :  { %12618 = vsyncadd [#allocation9], 4294955008 }
  0xab   :  { %12619 = dma.done.wait [#allocation12], 12288  }
  0xac   :  { %12620 = vsyncadd [#allocation12], 4294955008 }
  0xad   :  { %12621 = dma.done.wait [#allocation15], 18432  }
  0xae   :  { %12622 = vsyncadd [#allocation15], 4294948864 }
  0xaf   :  { %12623 = dma.done.wait [#allocation18], 18432  }
  0xb0   :  { %12624 = vsyncadd [#allocation18], 4294948864  ;;  %v15099_v0 = vmov 0.0   ;;  %v188_v1 = vld [vmem:[#allocation8 + $0x8] sm:$0xff]  ;;  %v191_v2 = vld [vmem:[#allocation8 + $0x20] sm:$0xff]  ;;  %vm12642_vm0 = vmmov 0  }
  0xb1   :  { %316 = vmatprep.mubr.f32.mxu0 %v15099_v0  ;;  %v187_v3 = vld [vmem:[#allocation8] sm:$0xff]  ;;  %v9754_v4 = vpack.c.bf16 %v191_v2, %v188_v1  ;;  %v190_v5 = vld [vmem:[#allocation8 + $0x18] sm:$0xff]  ;;  %v197_v7 = vld [vmem:[#allocation8 + $0x50] sm:$0xff]  ;;  %s15255_s1 = sld [smem:[#allocation56_spill]]  ;;  %s12643_s24 = smov [#allocation20]  }
  0xb2   :  { %v194_v6 = vld [vmem:[#allocation8 + $0x38] sm:$0xff]  ;;  %v9756_v8 = vpack.c.bf16 %v190_v5, %v187_v3  ;;  %v193_v10 = vld [vmem:[#allocation8 + $0x30] sm:$0xff]  ;;  %v196_v11 = vld [vmem:[#allocation8 + $0x48] sm:$0xff]  ;;  %s7765_s6 = sshll.u32 %s12643_s24, 4  ;;  %s7766_s6 = int_to_ptr.vmem [resolvable:$true] %s7765_s6 }
  0xb3   :  { %v9758_v9 = vpack.c.bf16 %v197_v7, %v194_v6  ;;  %v200_v12 = vld [vmem:[#allocation8 + $0x68] sm:$0xff]  ;;  %9755 = vmatprep.subr.bf16.mxu0 %v9754_v4  ;;  %v203_v13 = vld [vmem:[#allocation8 + $0x80] sm:$0xff]  ;;  %v9760_v14 = vpack.c.bf16 %v196_v11, %v193_v10  ;;  %v202_v17 = vld [vmem:[#allocation8 + $0x78] sm:$0xff]  ;;  %s12593_s30 = scalar_lea.vmem %s7766_s6, 512  ;;  %p12598_p3 = scmp.lt.s32.totalorder %s7766_s6, %s7766_s6 }
  0xb4   :  { %9757 = vmatpush1.bf16.msra.mxu0 %v9756_v8  ;;  %v9762_v15 = vpack.c.bf16 %v203_v13, %v200_v12  ;;  %v199_v16 = vld [vmem:[#allocation8 + $0x60] sm:$0xff]  ;;  %v206_v18 = vld [vmem:[#allocation8 + $0x98] sm:$0xff]  ;;  %v209_v19 = vld [vmem:[#allocation8 + $0xb0] sm:$0xff]  ;;  %p12594_p2 = scmp.ne.s32.totalorder %s7766_s6, %s12593_s30  ;;  %p12599_p4 = scmp.lt.s32.totalorder %s12593_s30, %s12593_s30 }
  0xb5   :  { %9759 = vmatprep.subr.bf16.mxu0 %v9758_v9  ;;  %v9764_v20 = vpack.c.bf16 %v202_v17, %v199_v16  ;;  %v205_v21 = vld [vmem:[#allocation8 + $0x90] sm:$0xff]  ;;  %v9766_v22 = vpack.c.bf16 %v209_v19, %v206_v18  ;;  %v208_v23 = vld [vmem:[#allocation8 + $0xa8] sm:$0xff]  ;;  %v215_v27 = vld [vmem:[#allocation8 + $0xe0] sm:$0xff] }
  0xb6   :  { %v189_v24 = vld [vmem:[#allocation8 + $0x10] sm:$0xff]  ;;  %v192_v25 = vld [vmem:[#allocation8 + $0x28] sm:$0xff]  ;;  %v195_v29 = vld [vmem:[#allocation8 + $0x40] sm:$0xff]  ;;  %v9768_v31 = vpack.c.bf16 %v208_v23, %v205_v21  ;;  %p12600_p5 = por %p12599_p4, %p12598_p3 }
  0xb7   :  { %v212_v26 = vld [vmem:[#allocation8 + $0xc8] sm:$0xff]  ;;  %v9786_v28 = vpack.c.bf16 %v192_v25, %v189_v24  ;;  %v198_v30 = vld [vmem:[#allocation8 + $0x58] sm:$0xff]  ;;  %v211_v32 = vld [vmem:[#allocation8 + $0xc0] sm:$0xff] }
  0xb8   :  { %9761 = vmatpush1.bf16.msra.mxu0 %v9760_v14  ;;  %v214_v33 = vld [vmem:[#allocation8 + $0xd8] sm:$0xff]  ;;  %v9790_v34 = vpack.c.bf16 %v198_v30, %v195_v29  ;;  %v9770_v35 = vpack.c.bf16 %v215_v27, %v212_v26  ;;  %v12867_v36 = vld [vmem:[#allocation5] sm:$0xff]  ;;  %v201_v37 = vld [vmem:[#allocation8 + $0x70] sm:$0xff]  ;;  %p12601_p6 = pnand %p12600_p5, %p12594_p2 }
  0xb9   :  { %9763 = vmatprep.subr.bf16.mxu0 %v9762_v15  ;;  %9787 = vmatprep.subr.bf16.mxu1 %v9786_v28  ;;  %v204_v38 = vld [vmem:[#allocation8 + $0x88] sm:$0xff]  ;;  %v218_v39 = vld [vmem:[#allocation8 + $0xf8] sm:$0xff]  ;;  %v221_v40 = vld [vmem:[#allocation8 + $0x110] sm:$0xff]  ;;  %v9772_v44 = vpack.c.bf16 %v214_v33, %v211_v32 }
  0xba   :  { %9789 = vmatpush3.bf16.msra.mxu1 %v9786_v28  ;;  %v9794_v41 = vpack.c.bf16 %v204_v38, %v201_v37  ;;  %8578 = vmatprep.mubr.f32.mxu1 %v12867_v36  ;;  %v207_v42 = vld [vmem:[#allocation8 + $0xa0] sm:$0xff]  ;;  %v210_v43 = vld [vmem:[#allocation8 + $0xb8] sm:$0xff]  ;;  %v9774_v45 = vpack.c.bf16 %v221_v40, %v218_v39  ;;  %v217_v46 = vld [vmem:[#allocation8 + $0xf0] sm:$0xff] }
  0xbb   :  { %9791 = vmatprep.subr.bf16.mxu1 %v9790_v34  ;;  %v220_v47 = vld [vmem:[#allocation8 + $0x108] sm:$0xff]  ;;  %v227_v49 = vld [vmem:[#allocation8 + $0x140] sm:$0xff]  ;;  %v9798_v50 = vpack.c.bf16 %v210_v43, %v207_v42  ;;  %v213_v51 = vld [vmem:[#allocation8 + $0xd0] sm:$0xff] }
  0xbc   :  { %9765 = vmatpush1.bf16.msra.mxu0 %v9764_v20  ;;  %v224_v48 = vld [vmem:[#allocation8 + $0x128] sm:$0xff]  ;;  %v9776_v53 = vpack.c.bf16 %v220_v47, %v217_v46  ;;  %v223_v55 = vld [vmem:[#allocation8 + $0x120] sm:$0xff]  ;;  %v226_v56 = vld [vmem:[#allocation8 + $0x138] sm:$0xff] }
  0xbd   :  { %9767 = vmatprep.subr.bf16.mxu0 %v9766_v22  ;;  %v216_v52 = vld [vmem:[#allocation8 + $0xe8] sm:$0xff]  ;;  %v9778_v54 = vpack.c.bf16 %v227_v49, %v224_v48  ;;  %v230_v57 = vld [vmem:[#allocation8 + $0x158] sm:$0xff]  ;;  %v233_v58 = vld [vmem:[#allocation8 + $0x170] sm:$0xff]  ;;  %v9780_v62 = vpack.c.bf16 %v226_v56, %v223_v55 }
  0xbe   :  { %9793 = vmatpush3.bf16.msra.mxu1 %v9790_v34  ;;  %v9802_v59 = vpack.c.bf16 %v216_v52, %v213_v51  ;;  %v219_v60 = vld [vmem:[#allocation8 + $0x100] sm:$0xff]  ;;  %v222_v61 = vld [vmem:[#allocation8 + $0x118] sm:$0xff]  ;;  %v9782_v63 = vpack.c.bf16 %v233_v58, %v230_v57  ;;  %v229_v1 = vld [vmem:[#allocation8 + $0x150] sm:$0xff] }
  0xbf   :  { %9795 = vmatprep.subr.bf16.mxu1 %v9794_v41  ;;  %v232_v2 = vld [vmem:[#allocation8 + $0x168] sm:$0xff]  ;;  %v498_v4 = vld [vmem:[#allocation11 + $0x20] sm:$0xff]  ;;  %v9806_v5 = vpack.c.bf16 %v222_v61, %v219_v60  ;;  %v225_v6 = vld [vmem:[#allocation8 + $0x130] sm:$0xff] }
  0xc0   :  { %9769 = vmatpush1.bf16.msra.mxu0 %v9768_v31  ;;  %v495_v3 = vld [vmem:[#allocation11 + $0x8] sm:$0xff]  ;;  %v9784_v8 = vpack.c.bf16 %v232_v2, %v229_v1  ;;  %v494_v10 = vld [vmem:[#allocation11] sm:$0xff]  ;;  %v497_v11 = vld [vmem:[#allocation11 + $0x18] sm:$0xff] }
  0xc1   :  { %9771 = vmatprep.subr.bf16.mxu0 %v9770_v35  ;;  %v228_v7 = vld [vmem:[#allocation8 + $0x148] sm:$0xff]  ;;  %v9818_v9 = vpack.c.bf16 %v498_v4, %v495_v3  ;;  %v501_v12 = vld [vmem:[#allocation11 + $0x38] sm:$0xff]  ;;  %v504_v13 = vld [vmem:[#allocation11 + $0x50] sm:$0xff]  ;;  %v9820_v17 = vpack.c.bf16 %v497_v11, %v494_v10 }
  0xc2   :  { %9797 = vmatpush3.bf16.msra.mxu1 %v9794_v41  ;;  %v9810_v14 = vpack.c.bf16 %v228_v7, %v225_v6  ;;  %v231_v15 = vld [vmem:[#allocation8 + $0x160] sm:$0xff]  ;;  %v234_v16 = vld [vmem:[#allocation8 + $0x178] sm:$0xff]  ;;  %v9822_v18 = vpack.c.bf16 %v504_v13, %v501_v12  ;;  %v500_v19 = vld [vmem:[#allocation11 + $0x30] sm:$0xff] }
  0xc3   :  { %9799 = vmatprep.subr.bf16.mxu1 %v9798_v50  ;;  %v503_v20 = vld [vmem:[#allocation11 + $0x48] sm:$0xff]  ;;  %v510_v22 = vld [vmem:[#allocation11 + $0x80] sm:$0xff]  ;;  %v9814_v23 = vpack.c.bf16 %v234_v16, %v231_v15  ;;  %v496_v24 = vld [vmem:[#allocation11 + $0x10] sm:$0xff] }
  0xc4   :  { %9773 = vmatpush1.bf16.msra.mxu0 %v9772_v44  ;;  %v507_v21 = vld [vmem:[#allocation11 + $0x68] sm:$0xff]  ;;  %v9824_v27 = vpack.c.bf16 %v503_v20, %v500_v19  ;;  %v506_v29 = vld [vmem:[#allocation11 + $0x60] sm:$0xff]  ;;  %v509_v30 = vld [vmem:[#allocation11 + $0x78] sm:$0xff] }
  0xc5   :  { %9775 = vmatprep.subr.bf16.mxu0 %v9774_v45  ;;  %v499_v25 = vld [vmem:[#allocation11 + $0x28] sm:$0xff]  ;;  %v9826_v28 = vpack.c.bf16 %v510_v22, %v507_v21  ;;  %v513_v31 = vld [vmem:[#allocation11 + $0x98] sm:$0xff]  ;;  %v516_v32 = vld [vmem:[#allocation11 + $0xb0] sm:$0xff]  ;;  %v9828_v35 = vpack.c.bf16 %v509_v30, %v506_v29 }
  0xc6   :  { %9801 = vmatpush3.bf16.msra.mxu1 %v9798_v50  ;;  %v12872_v26 = vld [vmem:[#allocation5 + $0x8] sm:$0xff]  ;;  %v9850_v33 = vpack.c.bf16 %v499_v25, %v496_v24  ;;  %v12876_v34 = vld [vmem:[#allocation5 + $0x10] sm:$0xff]  ;;  %v502_v37 = vld [vmem:[#allocation11 + $0x40] sm:$0xff]  ;;  %v9830_v39 = vpack.c.bf16 %v516_v32, %v513_v31 }
  0xc7   :  { %9803 = vmatprep.subr.bf16.mxu1 %v9802_v59  ;;  %v505_v38 = vld [vmem:[#allocation11 + $0x58] sm:$0xff]  ;;  %v512_v40 = vld [vmem:[#allocation11 + $0x90] sm:$0xff]  ;;  %v515_v41 = vld [vmem:[#allocation11 + $0xa8] sm:$0xff] }
  0xc8   :  { %9777 = vmatpush1.bf16.msra.mxu0 %v9776_v53  ;;  %v519_v42 = vld [vmem:[#allocation11 + $0xc8] sm:$0xff]  ;;  %v522_v43 = vld [vmem:[#allocation11 + $0xe0] sm:$0xff]  ;;  %v9854_v44 = vpack.c.bf16 %v505_v38, %v502_v37  ;;  %v12880_v45 = vld [vmem:[#allocation5 + $0x18] sm:$0xff]  ;;  %v9832_v46 = vpack.c.bf16 %v515_v41, %v512_v40 }
  0xc9   :  { %9779 = vmatprep.subr.bf16.mxu0 %v9778_v54  ;;  %v508_v47 = vld [vmem:[#allocation11 + $0x70] sm:$0xff]  ;;  %v511_v48 = vld [vmem:[#allocation11 + $0x88] sm:$0xff]  ;;  %v9834_v49 = vpack.c.bf16 %v522_v43, %v519_v42  ;;  %v518_v50 = vld [vmem:[#allocation11 + $0xc0] sm:$0xff] }
  0xca   :  { %9805 = vmatpush3.bf16.msra.mxu1 %v9802_v59  ;;  %v521_v51 = vld [vmem:[#allocation11 + $0xd8] sm:$0xff]  ;;  %v528_v53 = vld [vmem:[#allocation11 + $0x110] sm:$0xff]  ;;  %v9858_v54 = vpack.c.bf16 %v511_v48, %v508_v47  ;;  %v12886_v55 = vld [vmem:[#allocation5 + $0x20] sm:$0xff] }
  0xcb   :  { %9807 = vmatprep.subr.bf16.mxu1 %v9806_v5  ;;  %v525_v52 = vld [vmem:[#allocation11 + $0xf8] sm:$0xff]  ;;  %v9836_v56 = vpack.c.bf16 %v521_v51, %v518_v50  ;;  %v514_v57 = vld [vmem:[#allocation11 + $0xa0] sm:$0xff]  ;;  %v524_v60 = vld [vmem:[#allocation11 + $0xf0] sm:$0xff] }
  0xcc   :  { %9781 = vmatpush1.bf16.msra.mxu0 %v9780_v62  ;;  %v517_v58 = vld [vmem:[#allocation11 + $0xb8] sm:$0xff]  ;;  %v9838_v59 = vpack.c.bf16 %v528_v53, %v525_v52  ;;  %v527_v61 = vld [vmem:[#allocation11 + $0x108] sm:$0xff]  ;;  %v520_v4 = vld [vmem:[#allocation11 + $0xd0] sm:$0xff] }
  0xcd   :  { %9783 = vmatprep.subr.bf16.mxu0 %v9782_v63  ;;  %v531_v62 = vld [vmem:[#allocation11 + $0x128] sm:$0xff]  ;;  %v534_v63 = vld [vmem:[#allocation11 + $0x140] sm:$0xff]  ;;  %v9862_v1 = vpack.c.bf16 %v517_v58, %v514_v57  ;;  %v9840_v3 = vpack.c.bf16 %v527_v61, %v524_v60  ;;  %v12894_v6 = vld [vmem:[#allocation5 + $0x30] sm:$0xff]  ;;  %v15101_v60 = vmov 0.0|0.0  }
  0xce   :  { %9809 = vmatpush3.bf16.msra.mxu1 %v9806_v5  ;;  %v12892_v2 = vld [vmem:[#allocation5 + $0x28] sm:$0xff]  ;;  %v9842_v7 = vpack.c.bf16 %v534_v63, %v531_v62  ;;  %v537_v10 = vld [vmem:[#allocation11 + $0x158] sm:$0xff]  ;;  %v540_v11 = vld [vmem:[#allocation11 + $0x170] sm:$0xff] }
  0xcf   :  { %9811 = vmatprep.subr.bf16.mxu1 %v9810_v14  ;;  %v523_v5 = vld [vmem:[#allocation11 + $0xe8] sm:$0xff]  ;;  %v526_v15 = vld [vmem:[#allocation11 + $0x100] sm:$0xff]  ;;  %v529_v16 = vld [vmem:[#allocation11 + $0x118] sm:$0xff] }
  0xd0   :  { %9785 = vmatpush1.bf16.msra.mxu0 %v9784_v8  ;;  %v530_v8 = vld [vmem:[#allocation11 + $0x120] sm:$0xff]  ;;  %v9866_v12 = vpack.c.bf16 %v523_v5, %v520_v4  ;;  %v539_v19 = vld [vmem:[#allocation11 + $0x168] sm:$0xff]  ;;  %v9870_v22 = vpack.c.bf16 %v529_v16, %v526_v15  ;;  %v532_v24 = vld [vmem:[#allocation11 + $0x130] sm:$0xff] }
  0xd1   :  { %9819 = vmatprep.subr.bf16.mxu0 %v9818_v9  ;;  %v533_v9 = vld [vmem:[#allocation11 + $0x138] sm:$0xff]  ;;  %v842_v20 = vld [vmem:[#allocation10 + $0x8] sm:$0xff]  ;;  %v845_v21 = vld [vmem:[#allocation10 + $0x20] sm:$0xff] }
  0xd2   :  { %9813 = vmatpush3.bf16.msra.mxu1 %v9810_v14  ;;  %v9844_v13 = vpack.c.bf16 %v533_v9, %v530_v8  ;;  %v12900_v14 = vld [vmem:[#allocation5 + $0x38] sm:$0xff]  ;;  %v535_v25 = vld [vmem:[#allocation11 + $0x148] sm:$0xff]  ;;  %v851_v31 = vld [vmem:[#allocation10 + $0x50] sm:$0xff] }
  0xd3   :  { %317 = vmatmul.mubr.f32.vlgmr.msra.gmra.mrb[0].mxu0 %v12867_v36  ;;  %9815 = vmatprep.subr.bf16.mxu1 %v9814_v23  ;;  %v844_v29 = vld [vmem:[#allocation10 + $0x18] sm:$0xff]  ;;  %v9874_v32 = vpack.c.bf16 %v535_v25, %v532_v24  ;;  %v850_v40 = vld [vmem:[#allocation10 + $0x48] sm:$0xff]  ;;  %v857_v42 = vld [vmem:[#allocation10 + $0x80] sm:$0xff] }
  0xd4   :  { %9821 = vmatpush1.bf16.msra.mxu0 %v9820_v17  ;;  %322 = vmatprep.mubr.f32.mxu0 %v15099_v0  ;;  %v9846_v17 = vpack.c.bf16 %v540_v11, %v537_v10  ;;  %v848_v30 = vld [vmem:[#allocation10 + $0x38] sm:$0xff]  ;;  %v854_v41 = vld [vmem:[#allocation10 + $0x68] sm:$0xff]  ;;  %v853_v47 = vld [vmem:[#allocation10 + $0x60] sm:$0xff] }
  0xd5   :  { %9823 = vmatprep.subr.bf16.mxu0 %v9822_v18  ;;  %v536_v18 = vld [vmem:[#allocation11 + $0x150] sm:$0xff]  ;;  %v541_v37 = vld [vmem:[#allocation11 + $0x178] sm:$0xff]  ;;  %v12913_v38 = vpack.c.bf16 %v851_v31, %v848_v30  ;;  %v846_v51 = vld [vmem:[#allocation10 + $0x28] sm:$0xff] }
  0xd6   :  { %9817 = vmatpush3.bf16.msra.mxu1 %v9814_v23  ;;  %v9848_v23 = vpack.c.bf16 %v539_v19, %v536_v18  ;;  %v856_v48 = vld [vmem:[#allocation10 + $0x78] sm:$0xff]  ;;  %v863_v50 = vld [vmem:[#allocation10 + $0xb0] sm:$0xff]  ;;  %v866_v57 = vld [vmem:[#allocation10 + $0xc8] sm:$0xff] }
  0xd7   :  { %323 = vmatmul.mubr.f32.gmra.mrb[2].mxu0 %v12872_v26  ;;  %9851 = vmatprep.subr.bf16.mxu1 %v9850_v33  ;;  %v12926_v52 = vpack.c.bf16 %v856_v48, %v853_v47  ;;  %v869_v58 = vld [vmem:[#allocation10 + $0xe0] sm:$0xff]  ;;  %v852_v62 = vld [vmem:[#allocation10 + $0x58] sm:$0xff]  ;;  %v855_v9 = vld [vmem:[#allocation10 + $0x70] sm:$0xff] }
  0xd8   :  { %9825 = vmatpush1.bf16.msra.mxu0 %v9824_v27  ;;  %328 = vmatprep.mubr.f32.mxu0 %v15099_v0  ;;  %v12906_v27 = vpack.c.bf16 %v845_v21, %v842_v20  ;;  %v849_v61 = vld [vmem:[#allocation10 + $0x40] sm:$0xff]  ;;  %v868_v4 = vld [vmem:[#allocation10 + $0xd8] sm:$0xff]  ;;  %v858_v10 = vld [vmem:[#allocation10 + $0x88] sm:$0xff] }
  0xd9   :  { %9827 = vmatprep.subr.bf16.mxu0 %v9826_v28  ;;  %8579 = vmatmul.mubr.f32.vlgmr.msra.gmra.mrb[0].mxu1 %v12872_v26  ;;  %v841_v28 = vld [vmem:[#allocation10] sm:$0xff]  ;;  %v872_v5 = vld [vmem:[#allocation10 + $0xf8] sm:$0xff]  ;;  %v12944_v8 = vpack.c.bf16 %v852_v62, %v849_v61  ;;  %v12958_v16 = vpack.c.bf16 %v858_v10, %v855_v9  ;;  %v867_v24 = vld [vmem:[#allocation10 + $0xd0] sm:$0xff] }
  0xda   :  { %9853 = vmatpush3.bf16.msra.mxu1 %v9850_v33  ;;  %8581 = vmatprep.mubr.f32.mxu1 %v12876_v34  ;;  %v12910_v33 = vpack.c.bf16 %v844_v29, %v841_v28  ;;  %v881_v15 = vld [vmem:[#allocation10 + $0x140] sm:$0xff]  ;;  %v864_v18 = vld [vmem:[#allocation10 + $0xb8] sm:$0xff]  ;;  %v870_v25 = vld [vmem:[#allocation10 + $0xe8] sm:$0xff] }
  0xdb   :  { %329 = vmatmul.mubr.f32.gmra.mrb[4].mxu0 %v12876_v34  ;;  %9855 = vmatprep.subr.bf16.mxu1 %v9854_v44  ;;  %v877_v20 = vld [vmem:[#allocation10 + $0x120] sm:$0xff]  ;;  %v880_v21 = vld [vmem:[#allocation10 + $0x138] sm:$0xff]  ;;  %v883_v30 = vld [vmem:[#allocation10 + $0x150] sm:$0xff] }
  0xdc   :  { %9829 = vmatpush1.bf16.msra.mxu0 %v9828_v35  ;;  %334 = vmatprep.mubr.f32.mxu0 %v15099_v0  ;;  %v538_v35 = vld [vmem:[#allocation11 + $0x160] sm:$0xff]  ;;  %v12979_v28 = vpack.c.bf16 %v880_v21, %v877_v20  ;;  %v886_v31 = vld [vmem:[#allocation10 + $0x168] sm:$0xff]  ;;  %v1037_v47 = vld [vmem:[#allocation13 + $0x38] sm:$0xff] }
  0xdd   :  { %9831 = vmatprep.subr.bf16.mxu0 %v9830_v39  ;;  %8582 = vmatmul.mubr.f32.gmra.mrb[2].mxu1 %v12880_v45  ;;  %v847_v39 = vld [vmem:[#allocation10 + $0x30] sm:$0xff]  ;;  %v9878_v43 = vpack.c.bf16 %v541_v37, %v538_v35  ;;  %v12986_v35 = vpack.c.bf16 %v870_v25, %v867_v24  ;;  %v873_v37 = vld [vmem:[#allocation10 + $0x100] sm:$0xff]  ;;  %v888_v62 = vld [vmem:[#allocation10 + $0x178] sm:$0xff] }
  0xde   :  { %9857 = vmatpush3.bf16.msra.mxu1 %v9854_v44  ;;  %8584 = vmatprep.mubr.f32.mxu1 %v12886_v55  ;;  %v12918_v44 = vpack.c.bf16 %v850_v40, %v847_v39  ;;  %v876_v39 = vld [vmem:[#allocation10 + $0x118] sm:$0xff]  ;;  %v12994_v40 = vpack.c.bf16 %v886_v31, %v883_v30  ;;  %v1040_v48 = vld [vmem:[#allocation13 + $0x50] sm:$0xff]  ;;  %v885_v61 = vld [vmem:[#allocation10 + $0x160] sm:$0xff] }
  0xdf   :  { %335 = vmatmul.mubr.f32.gmra.mrb[6].mxu0 %v12880_v45  ;;  %9859 = vmatprep.subr.bf16.mxu1 %v9858_v54  ;;  %v1049_v9 = vld [vmem:[#allocation13 + $0x98] sm:$0xff]  ;;  %v1052_v10 = vld [vmem:[#allocation13 + $0xb0] sm:$0xff]  ;;  %v1051_v20 = vld [vmem:[#allocation13 + $0xa8] sm:$0xff] }
  0xe0   :  { %9833 = vmatpush1.bf16.msra.mxu0 %v9832_v46  ;;  %340 = vmatprep.mubr.f32.mxu0 %v15099_v0  ;;  %v12921_v46 = vpack.c.bf16 %v857_v42, %v854_v41  ;;  %v1030_v42 = vld [vmem:[#allocation13] sm:$0xff]  ;;  %v1055_v21 = vld [vmem:[#allocation13 + $0xc8] sm:$0xff]  ;;  %v1041_v25 = vld [vmem:[#allocation13 + $0x58] sm:$0xff] }
  0xe1   :  { %9835 = vmatprep.subr.bf16.mxu0 %v9834_v49  ;;  %8585 = vmatmul.mubr.f32.gmra.mrb[4].mxu1 %v12892_v2  ;;  %v860_v49 = vld [vmem:[#allocation10 + $0x98] sm:$0xff]  ;;  %v1038_v24 = vld [vmem:[#allocation13 + $0x40] sm:$0xff] }
  0xe2   :  { %9861 = vmatpush3.bf16.msra.mxu1 %v9858_v54  ;;  %8587 = vmatprep.mubr.f32.mxu1 %v12894_v6  ;;  %v12929_v53 = vpack.c.bf16 %v863_v50, %v860_v49  ;;  %v859_v54 = vld [vmem:[#allocation10 + $0x90] sm:$0xff]  ;;  %v882_v50 = vld [vmem:[#allocation10 + $0x148] sm:$0xff] }
  0xe3   :  { %341 = vmatmul.mubr.f32.gmra.mrb[8].mxu0 %v12886_v55  ;;  %9863 = vmatprep.subr.bf16.mxu1 %v9862_v1  ;;  %v879_v49 = vld [vmem:[#allocation10 + $0x130] sm:$0xff] }
  0xe4   :  { %9837 = vmatpush1.bf16.msra.mxu0 %v9836_v56  ;;  %346 = vmatprep.mubr.f32.mxu0 %v15099_v0  ;;  %v862_v56 = vld [vmem:[#allocation10 + $0xa8] sm:$0xff] }
  0xe5   :  { %9839 = vmatprep.subr.bf16.mxu0 %v9838_v59  ;;  %8588 = vmatmul.mubr.f32.gmra.mrb[6].mxu1 %v12900_v14  ;;  %v12937_v63 = vpack.c.bf16 %v862_v56, %v859_v54  ;;  %v1036_v54 = vld [vmem:[#allocation13 + $0x30] sm:$0xff]  ;;  %v1039_v56 = vld [vmem:[#allocation13 + $0x48] sm:$0xff] }
  0xe6   :  { %9865 = vmatpush3.bf16.msra.mxu1 %v9862_v1  ;;  %8622 = vmatprep.mubr.f32.mxu1 %v12867_v36  ;;  %v12940_v1 = vpack.c.bf16 %v869_v58, %v866_v57  ;;  %v1043_v57 = vld [vmem:[#allocation13 + $0x68] sm:$0xff]  ;;  %v1046_v58 = vld [vmem:[#allocation13 + $0x80] sm:$0xff] }
  0xe7   :  { %347 = vmatmul.mubr.f32.gmra.mrb[10].mxu0 %v12892_v2  ;;  %9867 = vmatprep.subr.bf16.mxu1 %v9866_v12 }
  0xe8   :  { %9841 = vmatpush1.bf16.msra.mxu0 %v9840_v3  ;;  %352 = vmatprep.mubr.f32.mxu0 %v15099_v0  ;;  %v865_v3 = vld [vmem:[#allocation10 + $0xc0] sm:$0xff] }
  0xe9   :  { %9843 = vmatprep.subr.bf16.mxu0 %v9842_v7  ;;  %v875_v7 = vld [vmem:[#allocation10 + $0x110] sm:$0xff]  ;;  %v12951_v11 = vpack.c.bf16 %v868_v4, %v865_v3  ;;  %v13017_v3 = vpack.c.bf16 %v1039_v56, %v1036_v54  ;;  %v13021_v4 = vpack.c.bf16 %v1046_v58, %v1043_v57  ;;  %v1063_v54 = vld [vmem:[#allocation13 + $0x108] sm:$0xff]  ;;  %v1070_v57 = vld [vmem:[#allocation13 + $0x140] sm:$0xff] }
  0xea   :  { %9869 = vmatpush3.bf16.msra.mxu1 %v9866_v12  ;;  %v871_v12 = vld [vmem:[#allocation10 + $0xf0] sm:$0xff]  ;;  %v1067_v56 = vld [vmem:[#allocation13 + $0x128] sm:$0xff] }
  0xeb   :  { %353 = vmatmul.mubr.f32.gmra.mrb[12].mxu0 %v12894_v6  ;;  %9871 = vmatprep.subr.bf16.mxu1 %v9870_v22 }
  0xec   :  { %9845 = vmatpush1.bf16.msra.mxu0 %v9844_v13  ;;  %358 = vmatprep.mubr.f32.mxu0 %v15099_v0  ;;  %v874_v13 = vld [vmem:[#allocation10 + $0x108] sm:$0xff] }
  0xed   :  { %9847 = vmatprep.subr.bf16.mxu0 %v9846_v17  ;;  %v861_v17 = vld [vmem:[#allocation10 + $0xa0] sm:$0xff]  ;;  %v12965_v19 = vpack.c.bf16 %v874_v13, %v871_v12  ;;  %v13024_v12 = vpack.c.bf16 %v888_v62, %v885_v61  ;;  %v1032_v13 = vld [vmem:[#allocation13 + $0x10] sm:$0xff]  ;;  %v1053_v62 = vld [vmem:[#allocation13 + $0xb8] sm:$0xff] }
  0xee   :  { %9873 = vmatpush3.bf16.msra.mxu1 %v9870_v22  ;;  %v884_v22 = vld [vmem:[#allocation10 + $0x158] sm:$0xff]  ;;  %v1050_v61 = vld [vmem:[#allocation13 + $0xa0] sm:$0xff] }
  0xef   :  { %359 = vmatmul.mubr.f32.gmra.mrb[14].mxu0 %v12900_v14  ;;  %9875 = vmatprep.subr.bf16.mxu1 %v9874_v32 }
  0xf0   :  { %9849 = vmatpush1.bf16.msra.mxu0 %v9848_v23  ;;  %623 = vmatprep.mubr.f32.mxu0 %v15099_v0  ;;  %v12972_v23 = vpack.c.bf16 %v864_v18, %v861_v17  ;;  %v13031_v17 = vpack.c.bf16 %v1052_v10, %v1049_v9  ;;  %v1048_v18 = vld [vmem:[#allocation13 + $0x90] sm:$0xff]  ;;  %v1066_v9 = vld [vmem:[#allocation13 + $0x120] sm:$0xff]  ;;  %v1069_v10 = vld [vmem:[#allocation13 + $0x138] sm:$0xff] }
  0xf1   :  { %9883 = vmatprep.subr.bf16.mxu0 %v12906_v27  ;;  %v13038_v30 = vpack.c.bf16 %v1051_v20, %v1048_v18  ;;  %v13067_v18 = vpack.c.bf16 %v1053_v62, %v1050_v61  ;;  %v1056_v20 = vld [vmem:[#allocation13 + $0xd0] sm:$0xff]  ;;  %v1077_v61 = vld [vmem:[#allocation13 + $0x178] sm:$0xff] }
  0xf2   :  { %9877 = vmatpush3.bf16.msra.mxu1 %v9874_v32  ;;  %v1031_v32 = vld [vmem:[#allocation13 + $0x8] sm:$0xff] }
  0xf3   :  { %624 = vmatmul.mubr.f32.vlgmr.msra.gmra.mrb[16].mxu0 %v12867_v36  ;;  %9879 = vmatprep.subr.bf16.mxu1 %v9878_v43  ;;  %v843_v36 = vld [vmem:[#allocation10 + $0x10] sm:$0xff] }
  0xf4   :  { %9885 = vmatpush1.bf16.msra.mxu0 %v12910_v33  ;;  %629 = vmatprep.mubr.f32.mxu0 %v15099_v0  ;;  %v12931_v59 = vpack.c.bf16 %v846_v51, %v843_v36  ;;  %v13009_v51 = vpack.c.bf16 %v1040_v48, %v1037_v47  ;;  %v1047_v47 = vld [vmem:[#allocation13 + $0x88] sm:$0xff] }
  0xf5   :  { %9887 = vmatprep.subr.bf16.mxu0 %v12913_v38 }
  0xf6   :  { %9881 = vmatpush3.bf16.msra.mxu1 %v9878_v43  ;;  %v1033_v43 = vld [vmem:[#allocation13 + $0x18] sm:$0xff] }
  0xf7   :  { %630 = vmatmul.mubr.f32.gmra.mrb[18].mxu0 %v12872_v26  ;;  %9914 = vmatprep.subr.bf16.mxu1 %v15101_v60  ;;  %v13006_v36 = vpack.c.bf16 %v1033_v43, %v1030_v42  ;;  %v13045_v42 = vpack.c.bf16 %v1041_v25, %v1038_v24  ;;  %v1044_v43 = vld [vmem:[#allocation13 + $0x70] sm:$0xff] }
  0xf8   :  { %9889 = vmatpush1.bf16.msra.mxu0 %v12918_v44  ;;  %635 = vmatprep.mubr.f32.mxu0 %v15099_v0  ;;  %v13057_v58 = vpack.c.bf16 %v1047_v47, %v1044_v43  ;;  %v1072_v25 = vld [vmem:[#allocation13 + $0x150] sm:$0xff] }
  0xf9   :  { %9891 = vmatprep.subr.bf16.mxu0 %v12921_v46  ;;  %8623 = vmatmul.mubr.f32.vlgmr.msra.gmra.mrb[8].mxu1 %v12872_v26  ;;  %v12954_v26 = vpack.c.bf16 %v875_v7, %v872_v5  ;;  %v1042_v5 = vld [vmem:[#allocation13 + $0x60] sm:$0xff]  ;;  %v1045_v7 = vld [vmem:[#allocation13 + $0x78] sm:$0xff] }
  0xfa   :  { %9916 = vmatpush3.bf16.msra.mxu1 %v12931_v59  ;;  %8625 = vmatprep.mubr.f32.mxu1 %v12876_v34 }
  0xfb   :  { %636 = vmatmul.mubr.f32.gmra.mrb[20].mxu0 %v12876_v34  ;;  %9917 = vmatprep.subr.bf16.mxu1 %v15101_v60  ;;  %v878_v34 = vld [vmem:[#allocation10 + $0x128] sm:$0xff] }
  0xfc   :  { %9893 = vmatpush1.bf16.msra.mxu0 %v12926_v52  ;;  %641 = vmatprep.mubr.f32.mxu0 %v15099_v0 }
  0xfd   :  { %9895 = vmatprep.subr.bf16.mxu0 %v12929_v53  ;;  %8626 = vmatmul.mubr.f32.gmra.mrb[10].mxu1 %v12880_v45 }
  0xfe   :  { %9919 = vmatpush3.bf16.msra.mxu1 %v12944_v8  ;;  %8628 = vmatprep.mubr.f32.mxu1 %v12886_v55 }
  0xff   :  { %642 = vmatmul.mubr.f32.gmra.mrb[22].mxu0 %v12880_v45  ;;  %9920 = vmatprep.subr.bf16.mxu1 %v15101_v60  ;;  %v12968_v45 = vpack.c.bf16 %v881_v15, %v878_v34  ;;  %v1035_v34 = vld [vmem:[#allocation13 + $0x28] sm:$0xff]  ;;  %v13028_v15 = vpack.c.bf16 %v1045_v7, %v1042_v5  ;;  %v13064_v7 = vpack.c.bf16 %v1070_v57, %v1067_v56  ;;  %v1074_v57 = vld [vmem:[#allocation13 + $0x160] sm:$0xff] }
 0x100   :  { %9897 = vmatpush1.bf16.msra.mxu0 %v12937_v63  ;;  %647 = vmatprep.mubr.f32.mxu0 %v15099_v0  ;;  %v13099_v62 = vpack.c.bf16 %v1077_v61, %v1074_v57  ;;  %v801_v57 = vld [vmem:[%s15082_s4] sm:$0x7] }
 0x101   :  { %9899 = vmatprep.subr.bf16.mxu0 %v12940_v1  ;;  %8629 = vmatmul.mubr.f32.gmra.mrb[12].mxu1 %v12892_v2 }
 0x102   :  { %9922 = vmatpush3.bf16.msra.mxu1 %v12958_v16  ;;  %8631 = vmatprep.mubr.f32.mxu1 %v12894_v6 }
 0x103   :  { %648 = vmatmul.mubr.f32.gmra.mrb[24].mxu0 %v12886_v55  ;;  %v887_v55 = vld [vmem:[#allocation10 + $0x170] sm:$0xff]  ;;  %9923 = vmatprep.subr.bf16.mxu1 %v15101_v60 }
 0x104   :  { %9901 = vmatpush1.bf16.msra.mxu0 %v12951_v11  ;;  %653 = vmatprep.mubr.f32.mxu0 %v15099_v0  ;;  %v12982_v29 = vpack.c.bf16 %v887_v55, %v884_v22  ;;  %v1058_v22 = vld [vmem:[#allocation13 + $0xe0] sm:$0xff]  ;;  %v13034_v55 = vpack.c.bf16 %v1035_v34, %v1032_v13  ;;  %v1073_v13 = vld [vmem:[#allocation13 + $0x158] sm:$0xff]  ;;  %v1076_v34 = vld [vmem:[#allocation13 + $0x170] sm:$0xff] }
 0x105   :  { %9903 = vmatprep.subr.bf16.mxu0 %v12954_v26  ;;  %8632 = vmatmul.mubr.f32.gmra.mrb[14].mxu1 %v12900_v14  ;;  %v13041_v31 = vpack.c.bf16 %v1058_v22, %v1055_v21  ;;  %v1059_v21 = vld [vmem:[#allocation13 + $0xe8] sm:$0xff]  ;;  %v13071_v22 = vpack.c.bf16 %v1069_v10, %v1066_v9  ;;  %v13074_v24 = vpack.c.bf16 %v1076_v34, %v1073_v13 }
 0x106   :  { %9925 = vmatpush3.bf16.msra.mxu1 %v12972_v23  ;;  %8666 = vmatprep.mubr.msk.f32.mxu1 %vm12642_vm0, %v15099_v0 }
 0x107   :  { %654 = vmatmul.mubr.f32.gmra.mrb[26].mxu0 %v12892_v2  ;;  %v1034_v2 = vld [vmem:[#allocation13 + $0x20] sm:$0xff]  ;;  %9926 = vmatprep.subr.bf16.mxu1 %v15101_v60 }
 0x108   :  { %9905 = vmatpush1.bf16.msra.mxu0 %v12965_v19  ;;  %659 = vmatprep.mubr.f32.mxu0 %v15099_v0  ;;  %v12997_v41 = vpack.c.bf16 %v1034_v2, %v1031_v32  ;;  %v1054_v32 = vld [vmem:[#allocation13 + $0xc0] sm:$0xff]  ;;  %v1057_v2 = vld [vmem:[#allocation13 + $0xd8] sm:$0xff] }
 0x109   :  { %9907 = vmatprep.subr.bf16.mxu0 %v12968_v45  ;;  %v13051_v48 = vpack.c.bf16 %v1057_v2, %v1054_v32  ;;  %v1075_v32 = vld [vmem:[#allocation13 + $0x168] sm:$0xff]  ;;  %v13077_v2 = vpack.c.bf16 %v1059_v21, %v1056_v20 }
 0x10a   :  { %9928 = vmatpush3.bf16.msra.mxu1 %v12986_v35  ;;  %v13081_v43 = vpack.c.bf16 %v1075_v32, %v1072_v25 }
 0x10b   :  { %660 = vmatmul.mubr.f32.gmra.mrb[28].mxu0 %v12894_v6  ;;  %v13000_v6 = vpack.c.bf16 %v876_v39, %v873_v37  ;;  %9929 = vmatprep.subr.bf16.mxu1 %v15101_v60  ;;  %v1061_v37 = vld [vmem:[#allocation13 + $0xf8] sm:$0xff]  ;;  %v1064_v39 = vld [vmem:[#allocation13 + $0x110] sm:$0xff] }
 0x10c   :  { %9909 = vmatpush1.bf16.msra.mxu0 %v12979_v28  ;;  %665 = vmatprep.mubr.f32.mxu0 %v15099_v0 }
 0x10d   :  { %9911 = vmatprep.subr.bf16.mxu0 %v12982_v29 }
 0x10e   :  { %9931 = vmatpush3.bf16.msra.mxu1 %v13000_v6 }
 0x10f   :  { %666 = vmatmul.mubr.f32.gmra.mrb[30].mxu0 %v12900_v14  ;;  %v13012_v14 = vpack.c.bf16 %v882_v50, %v879_v49  ;;  %9932 = vmatprep.subr.bf16.mxu1 %v15101_v60  ;;  %v13054_v49 = vpack.c.bf16 %v1064_v39, %v1061_v37  ;;  %v1060_v50 = vld [vmem:[#allocation13 + $0xf0] sm:$0xff]  ;;  %v1062_v37 = vld [vmem:[#allocation13 + $0x100] sm:$0xff]  ;;  %v1065_v39 = vld [vmem:[#allocation13 + $0x118] sm:$0xff] }
 0x110   :  { %9913 = vmatpush1.bf16.msra.mxu0 %v12994_v40  ;;  %953 = vmatprep.mubr.f32.mxu0 %v15099_v0  ;;  %v13061_v5 = vpack.c.bf16 %v1063_v54, %v1060_v50  ;;  %v13085_v47 = vpack.c.bf16 %v1065_v39, %v1062_v37  ;;  %v1068_v50 = vld [vmem:[#allocation13 + $0x130] sm:$0xff]  ;;  %v1071_v54 = vld [vmem:[#allocation13 + $0x148] sm:$0xff] }
 0x111   :  { %9939 = vmatprep.subr.bf16.mxu0 %v12997_v41  ;;  %v13091_v56 = vpack.c.bf16 %v1071_v54, %v1068_v50 }
 0x112   :  { %9934 = vmatpush3.bf16.msra.mxu1 %v13012_v14 }
 0x113   :  { %954 = vmatmul.mubr.f32.vlgmr.msra.gmra.mrb[0].mxu0 %v15099_v0  ;;  %9935 = vmatprep.subr.bf16.mxu1 %v15101_v60 }
 0x114   :  { %9941 = vmatpush1.bf16.msra.mxu0 %v13006_v36  ;;  %1142 = vmatprep.mubr.f32.mxu0 %v15099_v0 }
 0x115   :  { %9943 = vmatprep.subr.bf16.mxu0 %v13009_v51 }
 0x116   :  { %9937 = vmatpush3.bf16.msra.mxu1 %v13024_v12 }
 0x117   :  { %9970 = vmatprep.subr.bf16.mxu1 %v15101_v60 }
 0x118   :  { %9945 = vmatpush1.bf16.msra.mxu0 %v13017_v3 }
 0x119   :  { %9947 = vmatprep.subr.bf16.mxu0 %v13021_v4  ;;  %8667 = vmatmul.mubr.f32.vlgmr.msra.gmra.mrb[16].mxu1 %v15099_v0 }
 0x11a   :  { %9972 = vmatpush3.bf16.msra.mxu1 %v13034_v55  ;;  %8701 = vmatprep.mubr.msk.f32.mxu1 %vm12642_vm0, %v15099_v0 }
 0x11b   :  { %9973 = vmatprep.subr.bf16.mxu1 %v15101_v60 }
 0x11c   :  { %9949 = vmatpush1.bf16.msra.mxu0 %v13028_v15 }
 0x11d   :  { %9951 = vmatprep.subr.bf16.mxu0 %v13031_v17 }
 0x11e   :  { %9975 = vmatpush3.bf16.msra.mxu1 %v13045_v42 }
 0x11f   :  { %9976 = vmatprep.subr.bf16.mxu1 %v15101_v60 }
 0x120   :  { %9953 = vmatpush1.bf16.msra.mxu0 %v13038_v30 }
 0x121   :  { %9955 = vmatprep.subr.bf16.mxu0 %v13041_v31 }
 0x122   :  { %9978 = vmatpush3.bf16.msra.mxu1 %v13057_v58 }
 0x123   :  { %9979 = vmatprep.subr.bf16.mxu1 %v15101_v60 }
 0x124   :  { %9957 = vmatpush1.bf16.msra.mxu0 %v13051_v48 }
 0x125   :  { %9959 = vmatprep.subr.bf16.mxu0 %v13054_v49 }
 0x126   :  { %9981 = vmatpush3.bf16.msra.mxu1 %v13067_v18 }
 0x127   :  { %9982 = vmatprep.subr.bf16.mxu1 %v15101_v60 }
 0x128   :  { %9961 = vmatpush1.bf16.msra.mxu0 %v13061_v5 }
 0x129   :  { %9963 = vmatprep.subr.bf16.mxu0 %v13064_v7 }
 0x12a   :  { %9984 = vmatpush3.bf16.msra.mxu1 %v13077_v2 }
 0x12b   :  { %9985 = vmatprep.subr.bf16.mxu1 %v15101_v60 }
 0x12c   :  { %9965 = vmatpush1.bf16.msra.mxu0 %v13071_v22 }
 0x12d   :  { %9967 = vmatprep.subr.bf16.mxu0 %v13074_v24 }
 0x12e   :  { %9987 = vmatpush3.bf16.msra.mxu1 %v13085_v47 }
 0x12f   :  { %9988 = vmatprep.subr.bf16.mxu1 %v15101_v60 }
 0x130   :  { %9969 = vmatpush1.bf16.msra.mxu0 %v13081_v43 }
 0x131   :  { %9995 = vmatprep.subr.bf16.mxu0 %v12906_v27  ;;  %v237_v27 = vlaneseq }
 0x132   :  { %9990 = vmatpush3.bf16.msra.mxu1 %v13091_v56 }
 0x133   :  { %1143 = vmatmul.mubr.f32.vlgmr.msra.gmra.mrb[30].mxu0 %v15099_v0  ;;  %9991 = vmatprep.subr.bf16.mxu1 %v15101_v60 }
 0x134   :  { %9997 = vmatpush1.bf16.msra.mxu0 %v12910_v33  ;;  %1381 = vmatprep.mubr.f32.mxu0 %v15099_v0  ;;  %v238_v33 = vshrl.u32 %v237_v27, 7 }
 0x135   :  { %9999 = vmatprep.subr.bf16.mxu0 %v12913_v38 }
 0x136   :  { %9993 = vmatpush3.bf16.msra.mxu1 %v13099_v62  ;;  %v13137_v38 = vsub.s32 2, %v238_v33  ;;  %v13190_v54 = vsub.s32 0, %v238_v33 }
 0x137   :  { %10026 = vmatprep.subr.bf16.mxu1 %v15101_v60 }
 0x138   :  { %10001 = vmatpush1.bf16.msra.mxu0 %v12918_v44  ;;  %15166 = vst [vmem:[#allocation27_spill] sm:$0xff] %v13137_v38  ;;  %v235_v44 = vld [vmem:[%s15081_s3] sm:$0x7]  ;;  %15178 = vst [vmem:[#allocation39_spill] sm:$0xff] %v13190_v54 }
 0x139   :  { %10003 = vmatprep.subr.bf16.mxu0 %v12921_v46  ;;  %8702 = vmatmul.mubr.f32.vlgmr.msra.gmra.mrb[18].mxu1 %v15099_v0  ;;  %v13143_v46 = vrot.slane %v235_v44, %v13137_v38 }
 0x13a   :  { %10028 = vmatpush3.bf16.msra.mxu1 %v12931_v59  ;;  %8736 = vmatprep.mubr.msk.f32.mxu1 %vm12642_vm0, %v15099_v0 }
 0x13b   :  { %10029 = vmatprep.subr.bf16.mxu1 %v15101_v60 }
 0x13c   :  { %10005 = vmatpush1.bf16.msra.mxu0 %v12926_v52 }
 0x13d   :  { %10007 = vmatprep.subr.bf16.mxu0 %v12929_v53 }
 0x13e   :  { %10031 = vmatpush3.bf16.msra.mxu1 %v12944_v8 }
 0x13f   :  { %10032 = vmatprep.subr.bf16.mxu1 %v15101_v60 }
 0x140   :  { %10009 = vmatpush1.bf16.msra.mxu0 %v12937_v63 }
 0x141   :  { %10011 = vmatprep.subr.bf16.mxu0 %v12940_v1 }
 0x142   :  { %10034 = vmatpush3.bf16.msra.mxu1 %v12958_v16 }
 0x143   :  { %10035 = vmatprep.subr.bf16.mxu1 %v15101_v60 }
 0x144   :  { %10013 = vmatpush1.bf16.msra.mxu0 %v12951_v11 }
 0x145   :  { %10015 = vmatprep.subr.bf16.mxu0 %v12954_v26 }
 0x146   :  { %10037 = vmatpush3.bf16.msra.mxu1 %v12972_v23 }
 0x147   :  { %10038 = vmatprep.subr.bf16.mxu1 %v15101_v60 }
 0x148   :  { %10017 = vmatpush1.bf16.msra.mxu0 %v12965_v19 }
 0x149   :  { %10019 = vmatprep.subr.bf16.mxu0 %v12968_v45 }
 0x14a   :  { %10040 = vmatpush3.bf16.msra.mxu1 %v12986_v35 }
 0x14b   :  { %10041 = vmatprep.subr.bf16.mxu1 %v15101_v60 }
 0x14c   :  { %10021 = vmatpush1.bf16.msra.mxu0 %v12979_v28 }
 0x14d   :  { %10023 = vmatprep.subr.bf16.mxu0 %v12982_v29 }
 0x14e   :  { %10043 = vmatpush3.bf16.msra.mxu1 %v13000_v6  ;;  %v542_v6 = vld [vmem:[%s15085_s7] sm:$0x7] }
 0x14f   :  { %10044 = vmatprep.subr.bf16.mxu1 %v15101_v60 }
 0x150   :  { %10025 = vmatpush1.bf16.msra.mxu0 %v12994_v40 }
 0x151   :  { %10051 = vmatprep.subr.bf16.mxu0 %v12997_v41 }
 0x152   :  { %10046 = vmatpush3.bf16.msra.mxu1 %v13012_v14  ;;  %v13170_v14 = vrot.slane %v542_v6, %v13137_v38 }
 0x153   :  { %10047 = vmatprep.subr.bf16.mxu1 %v15101_v60 }
 0x156   :  { %10049 = vmatpush3.bf16.msra.mxu1 %v13024_v12 }
 0x157   :  { %10082 = vmatprep.subr.bf16.mxu1 %v15101_v60 }
 0x1ac   :  { %v8580_v52 = vpop.f32.mrb[0].mxu1 }
 0x1ad   :  { %v13146_v53 = vadd.f32 %v8580_v52, %v13143_v46  ;;  %v431_v59 = vpop.f32.mrb[1].mxu1  ;;  %v13197_v52 = vsub.s32 1, %v238_v33 }
 0x1af   :  { %15179 = vst [vmem:[#allocation40_spill] sm:$0xff] %v13197_v52 }
 0x1b0   :  { %v8583_v63 = vpop.f32.mrb[2].mxu1 }
 0x1b1   :  { %v13149_v1 = vadd.f32 %v8583_v63, %v13143_v46  ;;  %v441_v8 = vpop.f32.mrb[3].mxu1 }
 0x1b2   :  { %v13152_v11 = vadd.f32 %v441_v8, %v13143_v46  ;;  %v240_v8 = vrot.slane %v235_v44, %v13190_v54 }
 0x1b3   :  { %15167 = vst [vmem:[#allocation28_spill] sm:$0xff] %v13149_v1 }
 0x1b4   :  { %v8586_v26 = vpop.f32.mrb[4].mxu1 }
 0x1b5   :  { %v13155_v19 = vadd.f32 %v8586_v26, %v13143_v46  ;;  %v451_v45 = vpop.f32.mrb[5].mxu1  ;;  %v806_v26 = vrot.slane %v801_v57, %v13190_v54 }
 0x1b6   :  { %v13158_v28 = vadd.f32 %v451_v45, %v13143_v46  ;;  %v244_v45 = vrot.slane %v235_v44, %v13197_v52 }
 0x1b7   :  { %15168 = vst [vmem:[#allocation29_spill] sm:$0xff] %v13155_v19  ;;  %v1902_v19 = vld [vmem:[#allocation13 + $0x80] sm:$0xff] }
 0x1b8   :  { %15169 = vst [vmem:[#allocation30_spill] sm:$0xff] %v13158_v28  ;;  %v8589_v29 = vpop.f32.mrb[6].mxu1  ;;  %v1917_v28 = vld [vmem:[#allocation13 + $0xf8] sm:$0xff] }
 0x1b9   :  { %v13161_v35 = vadd.f32 %v8589_v29, %v13143_v46  ;;  %v461_v40 = vpop.f32.mrb[7].mxu1  ;;  %v810_v29 = vrot.slane %v801_v57, %v13197_v52 }
 0x1ba   :  { %v13164_v41 = vadd.f32 %v461_v40, %v13143_v46  ;;  %v13206_v40 = vadd.f32 %v806_v26, %v240_v8  ;;  %v13213_v8 = vrot.slane %v801_v57, %v13137_v38  ;;  %v432_v57 = vadd.f32 %v431_v59, %v13143_v46 }
 0x1bb   :  { %15170 = vst [vmem:[#allocation31_spill] sm:$0xff] %v13161_v35 }
 0x1bc   :  { %15171 = vst [vmem:[#allocation32_spill] sm:$0xff] %v13164_v41 }
 0x1cc   :  { %v8624_v12 = vpop.f32.mrb[8].mxu1 }
 0x1cd   :  { %v13173_v9 = vadd.f32 %v8624_v12, %v13170_v14  ;;  %v738_v10 = vpop.f32.mrb[9].mxu1 }
 0x1ce   :  { %v13176_v13 = vadd.f32 %v738_v10, %v13170_v14  ;;  %v13208_v10 = vadd.f32 %v810_v29, %v244_v45  ;;  %v818_v45 = vld [vmem:[%s15086_s8] sm:$0x7] }
 0x1cf   :  { %15172 = vst [vmem:[#allocation33_spill] sm:$0xff] %v13173_v9 }
 0x1d0   :  { %15173 = vst [vmem:[#allocation34_spill] sm:$0xff] %v13176_v13  ;;  %v8627_v34 = vpop.f32.mrb[10].mxu1 }
 0x1d1   :  { %v13179_v20 = vadd.f32 %v8627_v34, %v13170_v14  ;;  %v748_v21 = vpop.f32.mrb[11].mxu1 }
 0x1d2   :  { %v13182_v25 = vadd.f32 %v748_v21, %v13170_v14 }
 0x1d3   :  { %15174 = vst [vmem:[#allocation35_spill] sm:$0xff] %v13179_v20 }
 0x1d4   :  { %15175 = vst [vmem:[#allocation36_spill] sm:$0xff] %v13182_v25  ;;  %v8630_v32 = vpop.f32.mrb[12].mxu1  ;;  %v1899_v25 = vld [vmem:[#allocation13 + $0x68] sm:$0xff] }
 0x1d5   :  { %v13185_v37 = vadd.f32 %v8630_v32, %v13170_v14  ;;  %v758_v39 = vpop.f32.mrb[13].mxu1 }
 0x1d6   :  { %v13188_v50 = vadd.f32 %v758_v39, %v13170_v14 }
 0x1d7   :  { %15176 = vst [vmem:[#allocation37_spill] sm:$0xff] %v13185_v37  ;;  %v1921_v37 = vld [vmem:[#allocation13 + $0x118] sm:$0xff] }
 0x1d8   :  { %15177 = vst [vmem:[#allocation38_spill] sm:$0xff] %v13188_v50  ;;  %v13195_v61 = vpop.f32.mrb[14].mxu1  ;;  %v1920_v50 = vld [vmem:[#allocation13 + $0x110] sm:$0xff] }
 0x1d9   :  { %v768_v27 = vpop.f32.mrb[15].mxu1 }
 0x1da   :  { %v13200_v63 = vadd.f32 %v768_v27, %v13170_v14 }
 0x1e6   :  { %v955_v12 = vpop.f32.mrb[0].mxu0 }
 0x1e7   :  { %v11867_v34 = vadd.f32 %v13206_v40, %v955_v12  ;;  %v957_v33 = vpop.f32.mrb[1].mxu0 }
 0x1e8   :  { %v11869_v32 = vadd.f32 %v13208_v10, %v957_v33  ;;  %v823_v33 = vrot.slane %v818_v45, %v13190_v54 }
 0x1e9   :  { %v7778_v21 = vmul.f32 -1.442695, %v11867_v34  ;;  %v547_v34 = vrot.slane %v542_v6, %v13190_v54 }
 0x1ea   :  { %v7779_v39 = vmul.f32 -1.442695, %v11869_v32 }
 0x1eb   :  { %12075 = vpow2.f32 %v7778_v21  ;;  %v551_v21 = vrot.slane %v542_v6, %v13197_v52 }
 0x1ec   :  { %v1026_v27 = vpop.f32.mrb[16].mxu1  ;;  %12077 = vpow2.f32 %v7779_v39  ;;  %v13224_v39 = vadd.f32 %v823_v33, %v547_v34 }
 0x1ed   :  { %v8668_v0 = vpop.f32.mrb[17].mxu1  ;;  %v1027_v12 = vadd.f32 %v1026_v27, %v13213_v8 }
 0x1f5   :  { %v12076_v60 = vpop.eup %12075 }
 0x1f6   :  { %v1223_v44 = vadd.f32 1.0, %v12076_v60  ;;  %v12078_v26 = vpop.eup %12077  ;;  %v827_v60 = vrot.slane %v818_v45, %v13197_v52 }
 0x1f7   :  { %v1230_v29 = vadd.f32 1.0, %v12078_v26 }
 0x1f8   :  { %12079 = vrcp.f32 %v1223_v44  ;;  %v13226_v26 = vadd.f32 %v827_v60, %v551_v21  ;;  %v1708_v60 = vld [vmem:[#allocation10 + $0x58] sm:$0xff] }
 0x1f9   :  { %12081 = vrcp.f32 %v1230_v29 }
 0x202   :  { %v12080_v0 = vpop.eup %12079 }
 0x203   :  { %v1233_v32 = vmul.f32 %v12080_v0, %v1027_v12  ;;  %v12082_v6 = vpop.eup %12081 }
 0x204   :  { %v1236_v41 = vsub.f32 1.0, %v12082_v6  ;;  %v1238_v12 = vmul.f32 0.0, %v12082_v6  ;;  %v1709_v6 = vld [vmem:[#allocation10 + $0x60] sm:$0xff] }
 0x205   :  { %v1234_v44 = vadd.f32 %v1233_v32, %v432_v57  ;;  %v1710_v32 = vld [vmem:[#allocation10 + $0x68] sm:$0xff] }
 0x206   :  { %v1144_v13 = vpop.f32.mrb[30].mxu0 }
 0x207   :  { %12083 = vtanh.f32 %v1234_v44  ;;  %v11927_v27 = vadd.f32 %v13224_v39, %v1144_v13  ;;  %v1146_v35 = vpop.f32.mrb[31].mxu0  ;;  %v1713_v44 = vld [vmem:[#allocation10 + $0x80] sm:$0xff] }
 0x208   :  { %v11929_v9 = vadd.f32 %v13226_v26, %v1146_v35  ;;  %v15181_v35 = vmov 0.0|0.0  }
 0x209   :  { %v7780_v54 = vmul.f32 -1.442695, %v11927_v27  ;;  %v13300_v27 = vpack.c.bf16 %v1713_v44, %v1710_v32  ;;  %v1738_v32 = vld [vmem:[#allocation10 + $0x148] sm:$0xff] }
 0x20a   :  { %v7781_v52 = vmul.f32 -1.442695, %v11929_v9  ;;  %v15182_v9 = vmov 0.0  }
 0x20b   :  { %12085 = vpow2.f32 %v7780_v54  ;;  %v1703_v54 = vld [vmem:[#allocation10 + $0x30] sm:$0xff] }
 0x20c   :  { %v1215_v46 = vpop.f32.mrb[18].mxu1  ;;  %12087 = vpow2.f32 %v7781_v52  ;;  %v1705_v52 = vld [vmem:[#allocation10 + $0x40] sm:$0xff] }
 0x20d   :  { %v8703_v29 = vpop.f32.mrb[19].mxu1  ;;  %v13296_v57 = vpack.c.bf16 %v1708_v60, %v1705_v52  ;;  %v1735_v52 = vld [vmem:[#allocation10 + $0x130] sm:$0xff] }
 0x20e   :  { %v1716_v29 = vld [vmem:[#allocation10 + $0x98] sm:$0xff]  ;;  %v13342_v44 = vpack.c.bf16 %v1738_v32, %v1735_v52 }
 0x211   :  { %v12084_v59 = vpop.eup %12083 }
 0x212   :  { %v1237_v34 = vmul.f32 %v12084_v59, %v1236_v41  ;;  %v13244_v41 = vrot.slane %v818_v45, %v13137_v38 }
 0x214   :  { %v13230_v33 = vadd.f32 %v1238_v12, %v1237_v34  ;;  %v1719_v12 = vld [vmem:[#allocation10 + $0xb0] sm:$0xff] }
 0x215   :  { %v12086_v0 = vpop.eup %12085  ;;  %v13308_v34 = vpack.c.bf16 %v1719_v12, %v1716_v29  ;;  %v1739_v12 = vld [vmem:[#allocation10 + $0x150] sm:$0xff] }
 0x216   :  { %15180 = vst [vmem:[#allocation41_spill] sm:$0xff] %v13230_v33  ;;  %v1244_v21 = vadd.f32 1.0, %v12086_v0  ;;  %1382 = vmatmul.mubr.f32.vlgmr.msra.gmra.mrb[2].mxu0 %v13230_v33  ;;  %8737 = vmatmul.mubr.f32.vlgmr.msra.gmra.mrb[20].mxu1 %v13230_v33  ;;  %v1715_v0 = vld [vmem:[#allocation10 + $0x90] sm:$0xff] }
 0x217   :  { %10053 = vmatpush1.bf16.msra.mxu0 %v13006_v36  ;;  %10084 = vmatpush3.bf16.msra.mxu1 %v13034_v55  ;;  %v12088_v36 = vpop.eup %12087  ;;  %v1216_v55 = vadd.f32 %v1215_v46, %v13244_v41  ;;  %v1712_v46 = vld [vmem:[#allocation10 + $0x78] sm:$0xff] }
 0x218   :  { %12089 = vrcp.f32 %v1244_v21  ;;  %10055 = vmatprep.subr.bf16.mxu0 %v13009_v51  ;;  %10085 = vmatprep.subr.bf16.mxu1 %v15181_v35  ;;  %v1251_v51 = vadd.f32 1.0, %v12088_v36  ;;  %v13303_v59 = vpack.c.bf16 %v1712_v46, %v1709_v6  ;;  %v1718_v21 = vld [vmem:[#allocation10 + $0xa8] sm:$0xff]  ;;  %v1740_v6 = vld [vmem:[#allocation10 + $0x158] sm:$0xff]  ;;  %v1743_v46 = vld [vmem:[#allocation10 + $0x170] sm:$0xff] }
 0x219   :  { %1570 = vmatprep.mubr.f32.mxu0 %v15182_v9  ;;  %8771 = vmatprep.mubr.msk.f32.mxu1 %vm12642_vm0, %v15182_v9  ;;  %v13311_v36 = vpack.c.bf16 %v1718_v21, %v1715_v0  ;;  %v13346_v29 = vpack.c.bf16 %v1743_v46, %v1740_v6  ;;  %v1742_v0 = vld [vmem:[#allocation10 + $0x168] sm:$0xff]  ;;  %v1741_v21 = vld [vmem:[#allocation10 + $0x160] sm:$0xff] }
 0x21a   :  { %12091 = vrcp.f32 %v1251_v51  ;;  %v1722_v51 = vld [vmem:[#allocation10 + $0xc8] sm:$0xff] }
 0x21b   :  { %10057 = vmatpush1.bf16.msra.mxu0 %v13017_v3  ;;  %10087 = vmatpush3.bf16.msra.mxu1 %v13045_v42  ;;  %v774_v42 = vadd.f32 %v13195_v61, %v13170_v14  ;;  %v1706_v61 = vld [vmem:[#allocation10 + $0x48] sm:$0xff] }
 0x21c   :  { %10059 = vmatprep.subr.bf16.mxu0 %v13021_v4  ;;  %10088 = vmatprep.subr.bf16.mxu1 %v15181_v35  ;;  %v13293_v45 = vpack.c.bf16 %v1706_v61, %v1703_v54  ;;  %v1733_v54 = vld [vmem:[#allocation10 + $0x120] sm:$0xff]  ;;  %v1736_v61 = vld [vmem:[#allocation10 + $0x138] sm:$0xff] }
 0x21d   :  { %v13339_v60 = vpack.c.bf16 %v1736_v61, %v1733_v54 }
 0x21f   :  { %10061 = vmatpush1.bf16.msra.mxu0 %v13028_v15  ;;  %10090 = vmatpush3.bf16.msra.mxu1 %v13057_v58  ;;  %v1698_v58 = vld [vmem:[#allocation10 + $0x8] sm:$0xff] }
 0x220   :  { %10063 = vmatprep.subr.bf16.mxu0 %v13031_v17  ;;  %10091 = vmatprep.subr.bf16.mxu1 %v15181_v35 }
 0x222   :  { %v12090_v3 = vpop.eup %12089 }
 0x223   :  { %v1254_v13 = vmul.f32 %v12090_v3, %v1216_v55  ;;  %10065 = vmatpush1.bf16.msra.mxu0 %v13038_v30  ;;  %10093 = vmatpush3.bf16.msra.mxu1 %v13067_v18  ;;  %v1697_v18 = vld [vmem:[#allocation10] sm:$0xff] }
 0x224   :  { %10067 = vmatprep.subr.bf16.mxu0 %v13041_v31  ;;  %10094 = vmatprep.subr.bf16.mxu1 %v15181_v35  ;;  %v12092_v15 = vpop.eup %12091  ;;  %v1725_v55 = vld [vmem:[#allocation10 + $0xe0] sm:$0xff] }
 0x225   :  { %v1255_v4 = vadd.f32 %v1254_v13, %v774_v42  ;;  %v1257_v17 = vsub.f32 1.0, %v12092_v15  ;;  %v1259_v31 = vmul.f32 0.0, %v12092_v15  ;;  %v13316_v3 = vpack.c.bf16 %v1725_v55, %v1722_v51  ;;  %v1721_v42 = vld [vmem:[#allocation10 + $0xc0] sm:$0xff]  ;;  %v1723_v13 = vld [vmem:[#allocation10 + $0xd0] sm:$0xff]  ;;  %v1726_v15 = vld [vmem:[#allocation10 + $0xe8] sm:$0xff] }
 0x226   :  { %v13349_v51 = vpack.c.bf16 %v1742_v0, %v1739_v12  ;;  %v1744_v55 = vld [vmem:[#allocation10 + $0x178] sm:$0xff] }
 0x227   :  { %12093 = vtanh.f32 %v1255_v4  ;;  %10069 = vmatpush1.bf16.msra.mxu0 %v13051_v48  ;;  %10096 = vmatpush3.bf16.msra.mxu1 %v13077_v2 }
 0x228   :  { %10071 = vmatprep.subr.bf16.mxu0 %v13054_v49  ;;  %10097 = vmatprep.subr.bf16.mxu1 %v15181_v35 }
 0x22b   :  { %10073 = vmatpush1.bf16.msra.mxu0 %v13061_v5  ;;  %10099 = vmatpush3.bf16.msra.mxu1 %v13085_v47  ;;  %v1701_v5 = vld [vmem:[#allocation10 + $0x20] sm:$0xff] }
 0x22c   :  { %10075 = vmatprep.subr.bf16.mxu0 %v13064_v7  ;;  %10100 = vmatprep.subr.bf16.mxu1 %v15181_v35  ;;  %v13281_v7 = vpack.c.bf16 %v1701_v5, %v1698_v58  ;;  %v1730_v58 = vld [vmem:[#allocation10 + $0x108] sm:$0xff]  ;;  %v1729_v5 = vld [vmem:[#allocation10 + $0x100] sm:$0xff] }
 0x22f   :  { %10077 = vmatpush1.bf16.msra.mxu0 %v13071_v22  ;;  %10102 = vmatpush3.bf16.msra.mxu1 %v13091_v56  ;;  %v1700_v22 = vld [vmem:[#allocation10 + $0x18] sm:$0xff] }
 0x230   :  { %10079 = vmatprep.subr.bf16.mxu0 %v13074_v24  ;;  %10103 = vmatprep.subr.bf16.mxu1 %v15181_v35  ;;  %v1699_v24 = vld [vmem:[#allocation10 + $0x10] sm:$0xff]  ;;  %v13283_v2 = vpack.c.bf16 %v1700_v22, %v1697_v18  ;;  %v1704_v56 = vld [vmem:[#allocation10 + $0x38] sm:$0xff] }
 0x231   :  { %v12094_v30 = vpop.eup %12093  ;;  %v1732_v22 = vld [vmem:[#allocation10 + $0x118] sm:$0xff] }
 0x232   :  { %v1258_v48 = vmul.f32 %v12094_v30, %v1257_v17  ;;  %v13322_v17 = vpack.c.bf16 %v1726_v15, %v1723_v13  ;;  %v1728_v30 = vld [vmem:[#allocation10 + $0xf8] sm:$0xff]  ;;  %v1890_v13 = vld [vmem:[#allocation13 + $0x20] sm:$0xff] }
 0x233   :  { %10081 = vmatpush1.bf16.msra.mxu0 %v13081_v43  ;;  %10105 = vmatpush3.bf16.msra.mxu1 %v13099_v62  ;;  %v1702_v43 = vld [vmem:[#allocation10 + $0x28] sm:$0xff]  ;;  %v1707_v62 = vld [vmem:[#allocation10 + $0x50] sm:$0xff] }
 0x234   :  { %v13273_v49 = vadd.f32 %v1259_v31, %v1258_v48  ;;  %10138 = vmatprep.subr.bf16.mxu1 %v15181_v35  ;;  %10107 = vmatprep.subr.bf16.mxu0 %v13281_v7  ;;  %v13286_v47 = vpack.c.bf16 %v1702_v43, %v1699_v24  ;;  %v13290_v14 = vpack.c.bf16 %v1707_v62, %v1704_v56  ;;  %v1731_v31 = vld [vmem:[#allocation10 + $0x110] sm:$0xff]  ;;  %v1734_v43 = vld [vmem:[#allocation10 + $0x128] sm:$0xff]  ;;  %v1737_v56 = vld [vmem:[#allocation10 + $0x140] sm:$0xff] }
 0x235   :  { %v1727_v48 = vld [vmem:[#allocation10 + $0xf0] sm:$0xff]  ;;  %v13332_v24 = vpack.c.bf16 %v1732_v22, %v1729_v5  ;;  %v13336_v62 = vpack.c.bf16 %v1737_v56, %v1734_v43 }
 0x236   :  { %15183 = vst [vmem:[#allocation42_spill] sm:$0xff] %v13273_v49  ;;  %1571 = vmatmul.mubr.f32.vlgmr.msra.gmra.mrb[28].mxu0 %v13273_v49  ;;  %8772 = vmatmul.mubr.f32.vlgmr.msra.gmra.mrb[22].mxu1 %v13273_v49  ;;  %v13329_v18 = vpack.c.bf16 %v1730_v58, %v1727_v48 }
 0x237   :  { %1809 = vmatprep.mubr.f32.mxu0 %v15182_v9  ;;  %8806 = vmatprep.mubr.msk.f32.mxu1 %vm12642_vm0, %v15182_v9 }
 0x238   :  { %10109 = vmatpush1.bf16.msra.mxu0 %v13283_v2  ;;  %10140 = vmatpush3.bf16.msra.mxu1 %v13286_v47 }
 0x239   :  { %10141 = vmatprep.subr.bf16.mxu1 %v15181_v35  ;;  %10111 = vmatprep.subr.bf16.mxu0 %v13290_v14 }
 0x23c   :  { %10113 = vmatpush1.bf16.msra.mxu0 %v13293_v45  ;;  %10143 = vmatpush3.bf16.msra.mxu1 %v13296_v57 }
 0x23d   :  { %10144 = vmatprep.subr.bf16.mxu1 %v15181_v35  ;;  %10115 = vmatprep.subr.bf16.mxu0 %v13300_v27 }
 0x240   :  { %10117 = vmatpush1.bf16.msra.mxu0 %v13303_v59  ;;  %10146 = vmatpush3.bf16.msra.mxu1 %v12958_v16  ;;  %v1724_v16 = vld [vmem:[#allocation10 + $0xd8] sm:$0xff] }
 0x241   :  { %10147 = vmatprep.subr.bf16.mxu1 %v15181_v35  ;;  %10119 = vmatprep.subr.bf16.mxu0 %v13308_v34  ;;  %v13319_v4 = vpack.c.bf16 %v1724_v16, %v1721_v42  ;;  %v13352_v42 = vpack.c.bf16 %v1744_v55, %v1741_v21  ;;  %v1887_v16 = vld [vmem:[#allocation13 + $0x8] sm:$0xff] }
 0x242   :  { %v13356_v15 = vpack.c.bf16 %v1890_v13, %v1887_v16 }
 0x244   :  { %10121 = vmatpush1.bf16.msra.mxu0 %v13311_v36  ;;  %10149 = vmatpush3.bf16.msra.mxu1 %v12972_v23  ;;  %v13326_v23 = vpack.c.bf16 %v1731_v31, %v1728_v30 }
 0x245   :  { %10150 = vmatprep.subr.bf16.mxu1 %v15181_v35  ;;  %10123 = vmatprep.subr.bf16.mxu0 %v13316_v3 }
 0x248   :  { %10125 = vmatpush1.bf16.msra.mxu0 %v13319_v4  ;;  %10152 = vmatpush3.bf16.msra.mxu1 %v13322_v17 }
 0x249   :  { %10153 = vmatprep.subr.bf16.mxu1 %v15181_v35  ;;  %10127 = vmatprep.subr.bf16.mxu0 %v13326_v23 }
 0x24c   :  { %10129 = vmatpush1.bf16.msra.mxu0 %v13329_v18  ;;  %10155 = vmatpush3.bf16.msra.mxu1 %v13332_v24 }
 0x24d   :  { %10156 = vmatprep.subr.bf16.mxu1 %v15181_v35  ;;  %10131 = vmatprep.subr.bf16.mxu0 %v13336_v62 }
 0x250   :  { %10133 = vmatpush1.bf16.msra.mxu0 %v13339_v60  ;;  %10158 = vmatpush3.bf16.msra.mxu1 %v13342_v44 }
 0x251   :  { %10159 = vmatprep.subr.bf16.mxu1 %v15181_v35  ;;  %10135 = vmatprep.subr.bf16.mxu0 %v13346_v29 }
 0x254   :  { %10137 = vmatpush1.bf16.msra.mxu0 %v13349_v51  ;;  %10161 = vmatpush3.bf16.msra.mxu1 %v13352_v42 }
 0x255   :  { %10194 = vmatprep.subr.bf16.mxu1 %v15181_v35  ;;  %10163 = vmatprep.subr.bf16.mxu0 %v13356_v15 }
 0x2e9   :  { %v1383_v30 = vpop.f32.mrb[2].mxu0  ;;  %v1454_v31 = vpop.f32.mrb[20].mxu1 }
 0x2ea   :  { %v11871_v48 = vadd.f32 %v13206_v40, %v1383_v30  ;;  %v1385_v58 = vpop.f32.mrb[3].mxu0  ;;  %v8738_v5 = vpop.f32.mrb[21].mxu1  ;;  %v1455_v6 = vadd.f32 %v1454_v31, %v13213_v8  ;;  %v1886_v31 = vld [vmem:[#allocation13] sm:$0xff] }
 0x2eb   :  { %v11873_v43 = vadd.f32 %v13208_v10, %v1385_v58 }
 0x2ec   :  { %v7782_v22 = vmul.f32 -1.442695, %v11871_v48 }
 0x2ed   :  { %v7783_v56 = vmul.f32 -1.442695, %v11873_v43 }
 0x2ee   :  { %12095 = vpow2.f32 %v7782_v22 }
 0x2ef   :  { %12097 = vpow2.f32 %v7783_v56  ;;  %v1889_v56 = vld [vmem:[#allocation13 + $0x18] sm:$0xff] }
 0x2f8   :  { %v12096_v54 = vpop.eup %12095 }
 0x2f9   :  { %v1651_v61 = vadd.f32 1.0, %v12096_v54  ;;  %v12098_v52 = vpop.eup %12097  ;;  %v1888_v54 = vld [vmem:[#allocation13 + $0x10] sm:$0xff] }
 0x2fa   :  { %v1658_v32 = vadd.f32 1.0, %v12098_v52  ;;  %v1893_v52 = vld [vmem:[#allocation13 + $0x38] sm:$0xff] }
 0x2fb   :  { %12099 = vrcp.f32 %v1651_v61  ;;  %v1891_v61 = vld [vmem:[#allocation13 + $0x28] sm:$0xff] }
 0x2fc   :  { %12101 = vrcp.f32 %v1658_v32  ;;  %v1896_v32 = vld [vmem:[#allocation13 + $0x50] sm:$0xff] }
 0x305   :  { %v12100_v46 = vpop.eup %12099 }
 0x306   :  { %v1661_v12 = vmul.f32 %v12100_v46, %v1455_v6  ;;  %v12102_v5 = vpop.eup %12101 }
 0x307   :  { %v1664_v43 = vsub.f32 1.0, %v12102_v5  ;;  %v1666_v46 = vmul.f32 %v12102_v5, %v13230_v33  ;;  %v1915_v33 = vld [vmem:[#allocation13 + $0xe8] sm:$0xff] }
 0x308   :  { %v1662_v0 = vadd.f32 %v1661_v12, %v13146_v53  ;;  %v13369_v12 = vpack.c.bf16 %v1889_v56, %v1886_v31  ;;  %v1898_v31 = vld [vmem:[#allocation13 + $0x60] sm:$0xff]  ;;  %v1900_v56 = vld [vmem:[#allocation13 + $0x70] sm:$0xff] }
 0x309   :  { %v1572_v21 = vpop.f32.mrb[28].mxu0  ;;  %v13364_v55 = vpop.f32.mrb[22].mxu1 }
 0x30a   :  { %12103 = vtanh.f32 %v1662_v0  ;;  %v11923_v16 = vadd.f32 %v13224_v39, %v1572_v21  ;;  %v1574_v13 = vpop.f32.mrb[29].mxu0  ;;  %v8773_v30 = vpop.f32.mrb[23].mxu1  ;;  %v13371_v0 = vpack.c.bf16 %v1891_v61, %v1888_v54  ;;  %v1892_v21 = vld [vmem:[#allocation13 + $0x30] sm:$0xff]  ;;  %v1903_v54 = vld [vmem:[#allocation13 + $0x88] sm:$0xff]  ;;  %v1905_v61 = vld [vmem:[#allocation13 + $0x98] sm:$0xff] }
 0x30b   :  { %v11925_v58 = vadd.f32 %v13226_v26, %v1574_v13  ;;  %v13375_v13 = vpack.c.bf16 %v1896_v32, %v1893_v52  ;;  %v1895_v30 = vld [vmem:[#allocation13 + $0x48] sm:$0xff]  ;;  %v13396_v52 = vpack.c.bf16 %v1903_v54, %v1900_v56  ;;  %v1910_v56 = vld [vmem:[#allocation13 + $0xc0] sm:$0xff] }
 0x30c   :  { %v7784_v48 = vmul.f32 -1.442695, %v11923_v16  ;;  %v13381_v5 = vpack.c.bf16 %v1895_v30, %v1892_v21  ;;  %v1909_v21 = vld [vmem:[#allocation13 + $0xb8] sm:$0xff]  ;;  %v1911_v30 = vld [vmem:[#allocation13 + $0xc8] sm:$0xff] }
 0x30d   :  { %v7785_v22 = vmul.f32 -1.442695, %v11925_v58  ;;  %v1897_v58 = vld [vmem:[#allocation13 + $0x58] sm:$0xff] }
 0x30e   :  { %12105 = vpow2.f32 %v7784_v48  ;;  %v1894_v48 = vld [vmem:[#allocation13 + $0x40] sm:$0xff] }
 0x30f   :  { %12107 = vpow2.f32 %v7785_v22  ;;  %v13383_v22 = vpack.c.bf16 %v1897_v58, %v1894_v48  ;;  %v1914_v48 = vld [vmem:[#allocation13 + $0xe0] sm:$0xff] }
 0x310   :  { %v13410_v54 = vpack.c.bf16 %v1914_v48, %v1911_v30  ;;  %v13422_v30 = vpack.c.bf16 %v1920_v50, %v1917_v28  ;;  %v1918_v48 = vld [vmem:[#allocation13 + $0x100] sm:$0xff]  ;;  %v1925_v50 = vld [vmem:[#allocation13 + $0x138] sm:$0xff] }
 0x312   :  { %15186 = vst [vmem:[#allocation45_spill] sm:$0xff] %v13422_v30 }
 0x314   :  { %v12104_v53 = vpop.eup %12103 }
 0x315   :  { %v1665_v6 = vmul.f32 %v12104_v53, %v1664_v43  ;;  %v13387_v43 = vpack.c.bf16 %v1902_v19, %v1899_v25  ;;  %v1908_v53 = vld [vmem:[#allocation13 + $0xb0] sm:$0xff] }
 0x316   :  { %v1904_v19 = vld [vmem:[#allocation13 + $0x90] sm:$0xff]  ;;  %v13400_v32 = vpack.c.bf16 %v1908_v53, %v1905_v61  ;;  %v1913_v61 = vld [vmem:[#allocation13 + $0xd8] sm:$0xff] }
 0x317   :  { %v13373_v16 = vadd.f32 %v1666_v46, %v1665_v6  ;;  %v1907_v6 = vld [vmem:[#allocation13 + $0xa8] sm:$0xff]  ;;  %v1906_v46 = vld [vmem:[#allocation13 + $0xa0] sm:$0xff]  ;;  %v1912_v53 = vld [vmem:[#allocation13 + $0xd0] sm:$0xff] }
 0x318   :  { %v12106_v38 = vpop.eup %12105 }
 0x319   :  { %15184 = vst [vmem:[#allocation43_spill] sm:$0xff] %v13373_v16  ;;  %v1672_v20 = vadd.f32 1.0, %v12106_v38  ;;  %1810 = vmatmul.mubr.f32.vlgmr.msra.gmra.mrb[4].mxu0 %v13373_v16  ;;  %8807 = vmatmul.mubr.f32.vlgmr.msra.gmra.mrb[24].mxu1 %v13373_v16  ;;  %v1901_v38 = vld [vmem:[#allocation13 + $0x78] sm:$0xff]  ;;  %v12108_v25 = vpop.eup %12107 }
 0x31a   :  { %10165 = vmatpush1.bf16.msra.mxu0 %v13369_v12  ;;  %10196 = vmatpush3.bf16.msra.mxu1 %v13371_v0  ;;  %v1679_v58 = vadd.f32 1.0, %v12108_v25  ;;  %v1644_v25 = vadd.f32 %v13364_v55, %v13244_v41  ;;  %v1919_v55 = vld [vmem:[#allocation13 + $0x108] sm:$0xff] }
 0x31b   :  { %12109 = vrcp.f32 %v1672_v20  ;;  %10167 = vmatprep.subr.bf16.mxu0 %v13375_v13  ;;  %10197 = vmatprep.subr.bf16.mxu1 %v15181_v35  ;;  %v13394_v20 = vpack.c.bf16 %v1901_v38, %v1898_v31  ;;  %v13404_v31 = vpack.c.bf16 %v1907_v6, %v1904_v19  ;;  %v13406_v38 = vpack.c.bf16 %v1909_v21, %v1906_v46  ;;  %v1916_v21 = vld [vmem:[#allocation13 + $0xf0] sm:$0xff] }
 0x31c   :  { %1998 = vmatprep.mubr.f32.mxu0 %v15182_v9  ;;  %8841 = vmatprep.mubr.msk.f32.mxu1 %vm12642_vm0, %v15182_v9  ;;  %12111 = vrcp.f32 %v1679_v58  ;;  %v13416_v6 = vpack.c.bf16 %v1913_v61, %v1910_v56  ;;  %v13418_v46 = vpack.c.bf16 %v1915_v33, %v1912_v53  ;;  %v1923_v58 = vld [vmem:[#allocation13 + $0x128] sm:$0xff]  ;;  %v13427_v33 = vpack.c.bf16 %v1919_v55, %v1916_v21  ;;  %v1922_v61 = vld [vmem:[#allocation13 + $0x120] sm:$0xff]  ;;  %v1928_v55 = vld [vmem:[#allocation13 + $0x150] sm:$0xff] }
 0x31d   :  { %v13429_v56 = vpack.c.bf16 %v1921_v37, %v1918_v48  ;;  %v1927_v53 = vld [vmem:[#allocation13 + $0x148] sm:$0xff]  ;;  %v13437_v21 = vpack.c.bf16 %v1925_v50, %v1922_v61 }
 0x31e   :  { %10169 = vmatpush1.bf16.msra.mxu0 %v13381_v5  ;;  %10199 = vmatpush3.bf16.msra.mxu1 %v13383_v22  ;;  %15185 = vst [vmem:[#allocation44_spill] sm:$0xff] %v13418_v46 }
 0x31f   :  { %10171 = vmatprep.subr.bf16.mxu0 %v13387_v43  ;;  %10200 = vmatprep.subr.bf16.mxu1 %v15181_v35  ;;  %15187 = vst [vmem:[#allocation46_spill] sm:$0xff] %v13429_v56 }
 0x322   :  { %10173 = vmatpush1.bf16.msra.mxu0 %v13394_v20  ;;  %10202 = vmatpush3.bf16.msra.mxu1 %v13396_v52 }
 0x323   :  { %10175 = vmatprep.subr.bf16.mxu0 %v13400_v32  ;;  %10203 = vmatprep.subr.bf16.mxu1 %v15181_v35 }
 0x325   :  { %v12110_v1 = vpop.eup %12109 }
 0x326   :  { %v1682_v19 = vmul.f32 %v12110_v1, %v1644_v25  ;;  %10177 = vmatpush1.bf16.msra.mxu0 %v13404_v31  ;;  %10205 = vmatpush3.bf16.msra.mxu1 %v13406_v38  ;;  %v1926_v25 = vld [vmem:[#allocation13 + $0x140] sm:$0xff] }
 0x327   :  { %10179 = vmatprep.subr.bf16.mxu0 %v13410_v54  ;;  %10206 = vmatprep.subr.bf16.mxu1 %v15181_v35  ;;  %v13433_v28 = vpack.c.bf16 %v1926_v25, %v1923_v58  ;;  %v1931_v58 = vld [vmem:[#allocation13 + $0x168] sm:$0xff]  ;;  %v1930_v25 = vld [vmem:[#allocation13 + $0x160] sm:$0xff] }
 0x328   :  { %v1683_v1 = vadd.f32 %v1682_v19, %v13200_v63  ;;  %v1924_v63 = vld [vmem:[#allocation13 + $0x130] sm:$0xff]  ;;  %v1929_v19 = vld [vmem:[#allocation13 + $0x158] sm:$0xff] }
 0x329   :  { %v13439_v37 = vpack.c.bf16 %v1927_v53, %v1924_v63 }
 0x32a   :  { %12113 = vtanh.f32 %v1683_v1  ;;  %10181 = vmatpush1.bf16.msra.mxu0 %v13416_v6  ;;  %10208 = vmatpush3.bf16.msra.mxu1 %v13418_v46  ;;  %v1932_v1 = vld [vmem:[#allocation13 + $0x170] sm:$0xff]  ;;  %v12112_v46 = vpop.eup %12111 }
 0x32b   :  { %10183 = vmatprep.subr.bf16.mxu0 %v13422_v30  ;;  %10209 = vmatprep.subr.bf16.mxu1 %v15181_v35  ;;  %v13443_v48 = vpack.c.bf16 %v1932_v1, %v1929_v19  ;;  %v1933_v30 = vld [vmem:[#allocation13 + $0x178] sm:$0xff]  ;;  %v1685_v50 = vsub.f32 1.0, %v12112_v46  ;;  %v1687_v19 = vmul.f32 %v12112_v46, %v13273_v49 }
 0x32c   :  { %v13449_v61 = vpack.c.bf16 %v1933_v30, %v1930_v25 }
 0x32e   :  { %10185 = vmatpush1.bf16.msra.mxu0 %v13427_v33  ;;  %10211 = vmatpush3.bf16.msra.mxu1 %v13429_v56  ;;  %v13447_v56 = vpack.c.bf16 %v1931_v58, %v1928_v55 }
 0x32f   :  { %10187 = vmatprep.subr.bf16.mxu0 %v13433_v28  ;;  %10212 = vmatprep.subr.bf16.mxu1 %v15181_v35 }
 0x332   :  { %10189 = vmatpush1.bf16.msra.mxu0 %v13437_v21  ;;  %10214 = vmatpush3.bf16.msra.mxu1 %v13439_v37 }
 0x333   :  { %10191 = vmatprep.subr.bf16.mxu0 %v13443_v48  ;;  %10215 = vmatprep.subr.bf16.mxu1 %v15181_v35 }
 0x334   :  { %v12114_v63 = vpop.eup %12113 }
 0x335   :  { %v1686_v53 = vmul.f32 %v12114_v63, %v1685_v50 }
 0x336   :  { %10193 = vmatpush1.bf16.msra.mxu0 %v13447_v56  ;;  %10217 = vmatpush3.bf16.msra.mxu1 %v13449_v61 }
 0x337   :  { %v13456_v1 = vadd.f32 %v1687_v19, %v1686_v53  ;;  %10219 = vmatprep.subr.bf16.mxu0 %v13281_v7  ;;  %10250 = vmatprep.subr.bf16.mxu1 %v15181_v35  ;;  %v2139_v7 = vld [vmem:[#allocation10 + $0x70] sm:$0xff] }
 0x339   :  { %15188 = vst [vmem:[#allocation47_spill] sm:$0xff] %v13456_v1  ;;  %1999 = vmatmul.mubr.f32.vlgmr.msra.gmra.mrb[26].mxu0 %v13456_v1  ;;  %8842 = vmatmul.mubr.f32.vlgmr.msra.gmra.mrb[26].mxu1 %v13456_v1 }
 0x33a   :  { %10221 = vmatpush1.bf16.msra.mxu0 %v13283_v2  ;;  %10252 = vmatpush3.bf16.msra.mxu1 %v13286_v47  ;;  %v2142_v2 = vld [vmem:[#allocation10 + $0x88] sm:$0xff] }
 0x33b   :  { %10223 = vmatprep.subr.bf16.mxu0 %v13290_v14  ;;  %10253 = vmatprep.subr.bf16.mxu1 %v15181_v35  ;;  %v13485_v47 = vpack.c.bf16 %v2142_v2, %v2139_v7  ;;  %v2145_v14 = vld [vmem:[#allocation10 + $0xa0] sm:$0xff] }
 0x33c   :  { %2237 = vmatprep.mubr.f32.mxu0 %v15182_v9  ;;  %8876 = vmatprep.mubr.msk.f32.mxu1 %vm12642_vm0, %v15182_v9 }
 0x33e   :  { %10225 = vmatpush1.bf16.msra.mxu0 %v13293_v45  ;;  %10255 = vmatpush3.bf16.msra.mxu1 %v13296_v57  ;;  %v2148_v45 = vld [vmem:[#allocation10 + $0xb8] sm:$0xff] }
 0x33f   :  { %10227 = vmatprep.subr.bf16.mxu0 %v13300_v27  ;;  %10256 = vmatprep.subr.bf16.mxu1 %v15181_v35  ;;  %v13489_v57 = vpack.c.bf16 %v2148_v45, %v2145_v14 }
 0x342   :  { %10229 = vmatpush1.bf16.msra.mxu0 %v13303_v59  ;;  %10258 = vmatpush3.bf16.msra.mxu1 %v13485_v47 }
 0x343   :  { %10231 = vmatprep.subr.bf16.mxu0 %v13308_v34  ;;  %10259 = vmatprep.subr.bf16.mxu1 %v15181_v35 }
 0x346   :  { %10233 = vmatpush1.bf16.msra.mxu0 %v13311_v36  ;;  %10261 = vmatpush3.bf16.msra.mxu1 %v13489_v57 }
 0x347   :  { %10235 = vmatprep.subr.bf16.mxu0 %v13316_v3  ;;  %10262 = vmatprep.subr.bf16.mxu1 %v15181_v35 }
 0x34a   :  { %10237 = vmatpush1.bf16.msra.mxu0 %v13319_v4  ;;  %10264 = vmatpush3.bf16.msra.mxu1 %v13322_v17 }
 0x34b   :  { %10239 = vmatprep.subr.bf16.mxu0 %v13326_v23  ;;  %10265 = vmatprep.subr.bf16.mxu1 %v15181_v35 }
 0x34e   :  { %10241 = vmatpush1.bf16.msra.mxu0 %v13329_v18  ;;  %10267 = vmatpush3.bf16.msra.mxu1 %v13332_v24 }
 0x34f   :  { %10243 = vmatprep.subr.bf16.mxu0 %v13336_v62  ;;  %10268 = vmatprep.subr.bf16.mxu1 %v15181_v35 }
 0x352   :  { %10245 = vmatpush1.bf16.msra.mxu0 %v13339_v60  ;;  %10270 = vmatpush3.bf16.msra.mxu1 %v13342_v44 }
 0x353   :  { %10247 = vmatprep.subr.bf16.mxu0 %v13346_v29  ;;  %10271 = vmatprep.subr.bf16.mxu1 %v15181_v35 }
 0x356   :  { %10249 = vmatpush1.bf16.msra.mxu0 %v13349_v51  ;;  %10273 = vmatpush3.bf16.msra.mxu1 %v13352_v42 }
 0x357   :  { %10275 = vmatprep.subr.bf16.mxu0 %v13356_v15  ;;  %10306 = vmatprep.subr.bf16.mxu1 %v15181_v35 }
 0x3ec   :  { %v1811_v27 = vpop.f32.mrb[4].mxu0  ;;  %v1882_v59 = vpop.f32.mrb[24].mxu1 }
 0x3ed   :  { %v11875_v34 = vadd.f32 %v13206_v40, %v1811_v27  ;;  %v1813_v36 = vpop.f32.mrb[5].mxu0  ;;  %v8808_v3 = vpop.f32.mrb[25].mxu1  ;;  %v1883_v44 = vadd.f32 %v1882_v59, %v13213_v8 }
 0x3ee   :  { %v11877_v17 = vadd.f32 %v13208_v10, %v1813_v36  ;;  %v2558_v3 = vld [vmem:[#allocation10 + $0x28] sm:$0xff] }
 0x3ef   :  { %v7786_v4 = vmul.f32 -1.442695, %v11875_v34  ;;  %v2556_v34 = vld [vmem:[#allocation10 + $0x18] sm:$0xff] }
 0x3f0   :  { %v7787_v23 = vmul.f32 -1.442695, %v11877_v17  ;;  %v2560_v17 = vld [vmem:[#allocation10 + $0x38] sm:$0xff] }
 0x3f1   :  { %12115 = vpow2.f32 %v7786_v4 }
 0x3f2   :  { %12117 = vpow2.f32 %v7787_v23  ;;  %v2563_v23 = vld [vmem:[#allocation10 + $0x50] sm:$0xff] }
 0x3fb   :  { %v12116_v18 = vpop.eup %12115 }
 0x3fc   :  { %v2079_v24 = vadd.f32 1.0, %v12116_v18  ;;  %v12118_v62 = vpop.eup %12117  ;;  %v13565_v18 = vpack.c.bf16 %v2563_v23, %v2560_v17  ;;  %v2596_v17 = vld [vmem:[#allocation10 + $0x158] sm:$0xff]  ;;  %v2599_v23 = vld [vmem:[#allocation10 + $0x170] sm:$0xff] }
 0x3fd   :  { %v2086_v60 = vadd.f32 1.0, %v12118_v62  ;;  %v2562_v62 = vld [vmem:[#allocation10 + $0x48] sm:$0xff] }
 0x3fe   :  { %12119 = vrcp.f32 %v2079_v24  ;;  %v2559_v24 = vld [vmem:[#allocation10 + $0x30] sm:$0xff] }
 0x3ff   :  { %12121 = vrcp.f32 %v2086_v60  ;;  %v2561_v60 = vld [vmem:[#allocation10 + $0x40] sm:$0xff] }
 0x408   :  { %v12120_v29 = vpop.eup %12119 }
 0x409   :  { %v2089_v51 = vmul.f32 %v12120_v29, %v1883_v44  ;;  %v12122_v63 = vpop.eup %12121  ;;  %v13568_v44 = vpack.c.bf16 %v2562_v62, %v2559_v24  ;;  %v2564_v29 = vld [vmem:[#allocation10 + $0x58] sm:$0xff]  ;;  %v13621_v24 = vpack.c.bf16 %v2599_v23, %v2596_v17  ;;  %v2595_v62 = vld [vmem:[#allocation10 + $0x150] sm:$0xff] }
 0x40a   :  { %v2092_v19 = vsub.f32 1.0, %v12122_v63  ;;  %v2094_v14 = vmul.f32 %v12122_v63, %v13373_v16  ;;  %v2789_v16 = vld [vmem:[#allocation13 + $0x178] sm:$0xff] }
 0x40b   :  { %v2090_v42 = vadd.f32 %v2089_v51, %v13152_v11  ;;  %v13571_v51 = vpack.c.bf16 %v2564_v29, %v2561_v60  ;;  %v2598_v60 = vld [vmem:[#allocation10 + $0x168] sm:$0xff]  ;;  %v2597_v29 = vld [vmem:[#allocation10 + $0x160] sm:$0xff] }
 0x40c   :  { %v2000_v15 = vpop.f32.mrb[26].mxu0  ;;  %v2071_v46 = vpop.f32.mrb[26].mxu1 }
 0x40d   :  { %12123 = vtanh.f32 %v2090_v42  ;;  %v11919_v30 = vadd.f32 %v13224_v39, %v2000_v15  ;;  %v2002_v55 = vpop.f32.mrb[27].mxu0  ;;  %v8843_v58 = vpop.f32.mrb[27].mxu1  ;;  %v2566_v42 = vld [vmem:[#allocation10 + $0x68] sm:$0xff]  ;;  %v2569_v15 = vld [vmem:[#allocation10 + $0x80] sm:$0xff] }
 0x40e   :  { %v11921_v50 = vadd.f32 %v13226_v26, %v2002_v55  ;;  %v2568_v55 = vld [vmem:[#allocation10 + $0x78] sm:$0xff] }
 0x40f   :  { %v7788_v25 = vmul.f32 -1.442695, %v11919_v30  ;;  %v2565_v30 = vld [vmem:[#allocation10 + $0x60] sm:$0xff] }
 0x410   :  { %v7789_v53 = vmul.f32 -1.442695, %v11921_v50  ;;  %v13578_v58 = vpack.c.bf16 %v2568_v55, %v2565_v30  ;;  %v2575_v50 = vld [vmem:[#allocation10 + $0xb0] sm:$0xff]  ;;  %v2743_v55 = vld [vmem:[#allocation13 + $0x8] sm:$0xff] }
 0x411   :  { %12125 = vpow2.f32 %v7788_v25  ;;  %v2572_v25 = vld [vmem:[#allocation10 + $0x98] sm:$0xff] }
 0x412   :  { %12127 = vpow2.f32 %v7789_v53  ;;  %v13583_v63 = vpack.c.bf16 %v2575_v50, %v2572_v25  ;;  %v2571_v53 = vld [vmem:[#allocation10 + $0x90] sm:$0xff]  ;;  %v2746_v25 = vld [vmem:[#allocation13 + $0x20] sm:$0xff] }
 0x413   :  { %v13631_v50 = vpack.c.bf16 %v2746_v25, %v2743_v55  ;;  %v2742_v55 = vld [vmem:[#allocation13] sm:$0xff] }
 0x417   :  { %v12124_v7 = vpop.eup %12123 }
 0x418   :  { %v2093_v2 = vmul.f32 %v12124_v7, %v2092_v19  ;;  %v2574_v19 = vld [vmem:[#allocation10 + $0xa8] sm:$0xff] }
 0x419   :  { %v13586_v7 = vpack.c.bf16 %v2574_v19, %v2571_v53 }
 0x41a   :  { %v13508_v11 = vadd.f32 %v2094_v14, %v2093_v2  ;;  %v2578_v2 = vld [vmem:[#allocation10 + $0xc8] sm:$0xff]  ;;  %v2581_v14 = vld [vmem:[#allocation10 + $0xe0] sm:$0xff] }
 0x41b   :  { %v12126_v45 = vpop.eup %12125 }
 0x41c   :  { %15189 = vst [vmem:[#allocation48_spill] sm:$0xff] %v13508_v11  ;;  %v2100_v27 = vadd.f32 1.0, %v12126_v45  ;;  %2238 = vmatmul.mubr.f32.vlgmr.msra.gmra.mrb[6].mxu0 %v13508_v11  ;;  %8877 = vmatmul.mubr.f32.vlgmr.msra.gmra.mrb[28].mxu1 %v13508_v11  ;;  %v12128_v59 = vpop.eup %12127  ;;  %v13591_v45 = vpack.c.bf16 %v2581_v14, %v2578_v2 }
 0x41d   :  { %10277 = vmatpush1.bf16.msra.mxu0 %v13369_v12  ;;  %10308 = vmatpush3.bf16.msra.mxu1 %v13371_v0  ;;  %v2107_v12 = vadd.f32 1.0, %v12128_v59  ;;  %v2072_v0 = vadd.f32 %v2071_v46, %v13244_v41  ;;  %v13575_v46 = vpack.c.bf16 %v2569_v15, %v2566_v42  ;;  %v2579_v59 = vld [vmem:[#allocation10 + $0xd0] sm:$0xff]  ;;  %v13624_v42 = vpack.c.bf16 %v2598_v60, %v2595_v62  ;;  %v2600_v15 = vld [vmem:[#allocation10 + $0x178] sm:$0xff] }
 0x41e   :  { %12129 = vrcp.f32 %v2100_v27  ;;  %10279 = vmatprep.subr.bf16.mxu0 %v13375_v13  ;;  %10309 = vmatprep.subr.bf16.mxu1 %v15181_v35  ;;  %v2577_v27 = vld [vmem:[#allocation10 + $0xc0] sm:$0xff]  ;;  %v13627_v30 = vpack.c.bf16 %v2600_v15, %v2597_v29 }
 0x41f   :  { %2426 = vmatprep.mubr.f32.mxu0 %v15182_v9  ;;  %8911 = vmatprep.mubr.msk.f32.mxu1 %vm12642_vm0, %v15182_v9  ;;  %12131 = vrcp.f32 %v2107_v12 }
 0x421   :  { %10281 = vmatpush1.bf16.msra.mxu0 %v13381_v5  ;;  %10311 = vmatpush3.bf16.msra.mxu1 %v13383_v22  ;;  %v15190_v22 = vld [vmem:[#allocation37_spill] sm:$0xff] }
 0x422   :  { %10283 = vmatprep.subr.bf16.mxu0 %v13387_v43  ;;  %10312 = vmatprep.subr.bf16.mxu1 %v15181_v35 }
 0x425   :  { %10285 = vmatpush1.bf16.msra.mxu0 %v13394_v20  ;;  %10314 = vmatpush3.bf16.msra.mxu1 %v13396_v52  ;;  %v15191_v20 = vld [vmem:[#allocation44_spill] sm:$0xff]  ;;  %v15192_v52 = vld [vmem:[#allocation45_spill] sm:$0xff] }
 0x426   :  { %10287 = vmatprep.subr.bf16.mxu0 %v13400_v32  ;;  %10315 = vmatprep.subr.bf16.mxu1 %v15181_v35  ;;  %v15193_v32 = vld [vmem:[#allocation46_spill] sm:$0xff] }
 0x428   :  { %v12130_v13 = vpop.eup %12129 }
 0x429   :  { %v2110_v5 = vmul.f32 %v12130_v13, %v2072_v0  ;;  %10289 = vmatpush1.bf16.msra.mxu0 %v13404_v31  ;;  %10317 = vmatpush3.bf16.msra.mxu1 %v13406_v38  ;;  %v12132_v31 = vpop.eup %12131  ;;  %v2582_v0 = vld [vmem:[#allocation10 + $0xe8] sm:$0xff] }
 0x42a   :  { %10291 = vmatprep.subr.bf16.mxu0 %v13410_v54  ;;  %10318 = vmatprep.subr.bf16.mxu1 %v15181_v35  ;;  %v2113_v38 = vsub.f32 1.0, %v12132_v31  ;;  %v13597_v13 = vpack.c.bf16 %v2582_v0, %v2579_v59 }
 0x42b   :  { %v2111_v43 = vadd.f32 %v2110_v5, %v15190_v22  ;;  %v2584_v5 = vld [vmem:[#allocation10 + $0xf8] sm:$0xff]  ;;  %v2587_v22 = vld [vmem:[#allocation10 + $0x110] sm:$0xff] }
 0x42d   :  { %12133 = vtanh.f32 %v2111_v43  ;;  %10293 = vmatpush1.bf16.msra.mxu0 %v13416_v6  ;;  %10320 = vmatpush3.bf16.msra.mxu1 %v15191_v20  ;;  %v2583_v43 = vld [vmem:[#allocation10 + $0xf0] sm:$0xff]  ;;  %v2586_v20 = vld [vmem:[#allocation10 + $0x108] sm:$0xff] }
 0x42e   :  { %10295 = vmatprep.subr.bf16.mxu0 %v15192_v52  ;;  %10321 = vmatprep.subr.bf16.mxu1 %v15181_v35  ;;  %v2585_v52 = vld [vmem:[#allocation10 + $0x100] sm:$0xff] }
 0x431   :  { %10297 = vmatpush1.bf16.msra.mxu0 %v13427_v33  ;;  %10323 = vmatpush3.bf16.msra.mxu1 %v15193_v32  ;;  %v2115_v33 = vmul.f32 %v12132_v31, %v13456_v1  ;;  %v13604_v32 = vpack.c.bf16 %v2586_v20, %v2583_v43  ;;  %v2588_v31 = vld [vmem:[#allocation10 + $0x118] sm:$0xff] }
 0x432   :  { %10299 = vmatprep.subr.bf16.mxu0 %v13433_v28  ;;  %10324 = vmatprep.subr.bf16.mxu1 %v15181_v35  ;;  %v2777_v1 = vld [vmem:[#allocation13 + $0x118] sm:$0xff] }
 0x435   :  { %10301 = vmatpush1.bf16.msra.mxu0 %v13437_v21  ;;  %10326 = vmatpush3.bf16.msra.mxu1 %v13439_v37  ;;  %v2554_v21 = vld [vmem:[#allocation10 + $0x8] sm:$0xff]  ;;  %v2557_v37 = vld [vmem:[#allocation10 + $0x20] sm:$0xff] }
 0x436   :  { %10303 = vmatprep.subr.bf16.mxu0 %v13443_v48  ;;  %10327 = vmatprep.subr.bf16.mxu1 %v15181_v35  ;;  %v13556_v48 = vpack.c.bf16 %v2557_v37, %v2554_v21  ;;  %v2589_v21 = vld [vmem:[#allocation10 + $0x120] sm:$0xff]  ;;  %v2592_v37 = vld [vmem:[#allocation10 + $0x138] sm:$0xff] }
 0x437   :  { %v12134_v54 = vpop.eup %12133 }
 0x438   :  { %v2114_v6 = vmul.f32 %v12134_v54, %v2113_v38  ;;  %v13607_v38 = vpack.c.bf16 %v2588_v31, %v2585_v52  ;;  %v2590_v54 = vld [vmem:[#allocation10 + $0x128] sm:$0xff] }
 0x439   :  { %10305 = vmatpush1.bf16.msra.mxu0 %v13447_v56  ;;  %10329 = vmatpush3.bf16.msra.mxu1 %v13449_v61  ;;  %v2553_v56 = vld [vmem:[#allocation10] sm:$0xff]  ;;  %v2555_v61 = vld [vmem:[#allocation10 + $0x10] sm:$0xff] }
 0x43a   :  { %v13548_v28 = vadd.f32 %v2115_v33, %v2114_v6  ;;  %10362 = vmatprep.subr.bf16.mxu1 %v15181_v35  ;;  %v13558_v36 = vpack.c.bf16 %v2556_v34, %v2553_v56  ;;  %10331 = vmatprep.subr.bf16.mxu0 %v13556_v48  ;;  %v13561_v4 = vpack.c.bf16 %v2558_v3, %v2555_v61  ;;  %v2593_v6 = vld [vmem:[#allocation10 + $0x140] sm:$0xff]  ;;  %v2591_v56 = vld [vmem:[#allocation10 + $0x130] sm:$0xff]  ;;  %v2594_v61 = vld [vmem:[#allocation10 + $0x148] sm:$0xff] }
 0x43b   :  { %v13611_v33 = vpack.c.bf16 %v2593_v6, %v2590_v54  ;;  %v13614_v34 = vpack.c.bf16 %v2592_v37, %v2589_v21  ;;  %v13617_v3 = vpack.c.bf16 %v2594_v61, %v2591_v56  ;;  %v15195_v6 = vld [vmem:[#allocation28_spill] sm:$0xff] }
 0x43c   :  { %15194 = vst [vmem:[#allocation37_spill] sm:$0xff] %v13548_v28  ;;  %2427 = vmatmul.mubr.f32.vlgmr.msra.gmra.mrb[24].mxu0 %v13548_v28  ;;  %8912 = vmatmul.mubr.f32.vlgmr.msra.gmra.mrb[30].mxu1 %v13548_v28 }
 0x43d   :  { %2665 = vmatprep.mubr.f32.mxu0 %v15182_v9  ;;  %8946 = vmatprep.mubr.msk.f32.mxu1 %vm12642_vm0, %v15182_v9 }
 0x43e   :  { %10333 = vmatpush1.bf16.msra.mxu0 %v13558_v36  ;;  %10364 = vmatpush3.bf16.msra.mxu1 %v13561_v4 }
 0x43f   :  { %10365 = vmatprep.subr.bf16.mxu1 %v15181_v35  ;;  %10335 = vmatprep.subr.bf16.mxu0 %v13565_v18 }
 0x442   :  { %10337 = vmatpush1.bf16.msra.mxu0 %v13568_v44  ;;  %10367 = vmatpush3.bf16.msra.mxu1 %v13571_v51 }
 0x443   :  { %10368 = vmatprep.subr.bf16.mxu1 %v15181_v35  ;;  %10339 = vmatprep.subr.bf16.mxu0 %v13575_v46 }
 0x446   :  { %10341 = vmatpush1.bf16.msra.mxu0 %v13578_v58  ;;  %10370 = vmatpush3.bf16.msra.mxu1 %v13485_v47  ;;  %v2580_v47 = vld [vmem:[#allocation10 + $0xd8] sm:$0xff] }
 0x447   :  { %10371 = vmatprep.subr.bf16.mxu1 %v15181_v35  ;;  %10343 = vmatprep.subr.bf16.mxu0 %v13583_v63  ;;  %v13594_v12 = vpack.c.bf16 %v2580_v47, %v2577_v27 }
 0x44a   :  { %10345 = vmatpush1.bf16.msra.mxu0 %v13586_v7  ;;  %10373 = vmatpush3.bf16.msra.mxu1 %v13489_v57  ;;  %v13601_v57 = vpack.c.bf16 %v2587_v22, %v2584_v5 }
 0x44b   :  { %10374 = vmatprep.subr.bf16.mxu1 %v15181_v35  ;;  %10347 = vmatprep.subr.bf16.mxu0 %v13591_v45 }
 0x44e   :  { %10349 = vmatpush1.bf16.msra.mxu0 %v13594_v12  ;;  %10376 = vmatpush3.bf16.msra.mxu1 %v13597_v13 }
 0x44f   :  { %10377 = vmatprep.subr.bf16.mxu1 %v15181_v35  ;;  %10351 = vmatprep.subr.bf16.mxu0 %v13601_v57 }
 0x452   :  { %10353 = vmatpush1.bf16.msra.mxu0 %v13604_v32  ;;  %10379 = vmatpush3.bf16.msra.mxu1 %v13607_v38 }
 0x453   :  { %10380 = vmatprep.subr.bf16.mxu1 %v15181_v35  ;;  %10355 = vmatprep.subr.bf16.mxu0 %v13611_v33 }
 0x456   :  { %10357 = vmatpush1.bf16.msra.mxu0 %v13614_v34  ;;  %10382 = vmatpush3.bf16.msra.mxu1 %v13617_v3 }
 0x457   :  { %10383 = vmatprep.subr.bf16.mxu1 %v15181_v35  ;;  %10359 = vmatprep.subr.bf16.mxu0 %v13621_v24 }
 0x45a   :  { %10361 = vmatpush1.bf16.msra.mxu0 %v13624_v42  ;;  %10385 = vmatpush3.bf16.msra.mxu1 %v13627_v30 }
 0x45b   :  { %10418 = vmatprep.subr.bf16.mxu1 %v15181_v35  ;;  %10387 = vmatprep.subr.bf16.mxu0 %v13631_v50 }
 0x4ef   :  { %v2239_v53 = vpop.f32.mrb[6].mxu0  ;;  %v2310_v19 = vpop.f32.mrb[28].mxu1 }
 0x4f0   :  { %v11879_v2 = vadd.f32 %v13206_v40, %v2239_v53  ;;  %v2241_v14 = vpop.f32.mrb[7].mxu0  ;;  %v8878_v27 = vpop.f32.mrb[29].mxu1  ;;  %v2311_v52 = vadd.f32 %v2310_v19, %v13213_v8  ;;  %v2745_v53 = vld [vmem:[#allocation13 + $0x18] sm:$0xff]  ;;  %v2744_v19 = vld [vmem:[#allocation13 + $0x10] sm:$0xff] }
 0x4f1   :  { %v11881_v59 = vadd.f32 %v13208_v10, %v2241_v14  ;;  %v2749_v27 = vld [vmem:[#allocation13 + $0x38] sm:$0xff] }
 0x4f2   :  { %v7790_v47 = vmul.f32 -1.442695, %v11879_v2  ;;  %v2747_v2 = vld [vmem:[#allocation13 + $0x28] sm:$0xff] }
 0x4f3   :  { %v7791_v0 = vmul.f32 -1.442695, %v11881_v59 }
 0x4f4   :  { %12135 = vpow2.f32 %v7790_v47  ;;  %v2752_v47 = vld [vmem:[#allocation13 + $0x50] sm:$0xff] }
 0x4f5   :  { %12137 = vpow2.f32 %v7791_v0 }
 0x4fe   :  { %v12136_v5 = vpop.eup %12135 }
 0x4ff   :  { %v2507_v22 = vadd.f32 1.0, %v12136_v5  ;;  %v12138_v43 = vpop.eup %12137  ;;  %v13644_v5 = vpack.c.bf16 %v2745_v53, %v2742_v55  ;;  %v2756_v55 = vld [vmem:[#allocation13 + $0x70] sm:$0xff]  ;;  %v2761_v53 = vld [vmem:[#allocation13 + $0x98] sm:$0xff] }
 0x500   :  { %v2514_v20 = vadd.f32 1.0, %v12138_v43  ;;  %v2748_v43 = vld [vmem:[#allocation13 + $0x30] sm:$0xff] }
 0x501   :  { %12139 = vrcp.f32 %v2507_v22  ;;  %v13646_v22 = vpack.c.bf16 %v2747_v2, %v2744_v19  ;;  %v2764_v19 = vld [vmem:[#allocation13 + $0xb0] sm:$0xff] }
 0x502   :  { %12141 = vrcp.f32 %v2514_v20 }
 0x50b   :  { %v12140_v31 = vpop.eup %12139 }
 0x50c   :  { %v2517_v54 = vmul.f32 %v12140_v31, %v2311_v52  ;;  %v12142_v29 = vpop.eup %12141  ;;  %v13650_v52 = vpack.c.bf16 %v2752_v47, %v2749_v27  ;;  %v2751_v31 = vld [vmem:[#allocation13 + $0x48] sm:$0xff]  ;;  %v2760_v27 = vld [vmem:[#allocation13 + $0x90] sm:$0xff] }
 0x50d   :  { %v2520_v25 = vsub.f32 1.0, %v12142_v29  ;;  %v2522_v0 = vmul.f32 %v12142_v29, %v13508_v11  ;;  %v2782_v11 = vld [vmem:[#allocation13 + $0x140] sm:$0xff] }
 0x50e   :  { %v2518_v21 = vadd.f32 %v2517_v54, %v15195_v6  ;;  %v2750_v54 = vld [vmem:[#allocation13 + $0x40] sm:$0xff]  ;;  %v2753_v6 = vld [vmem:[#allocation13 + $0x58] sm:$0xff] }
 0x50f   :  { %v2428_v37 = vpop.f32.mrb[24].mxu0  ;;  %v13639_v56 = vpop.f32.mrb[30].mxu1 }
 0x510   :  { %12143 = vtanh.f32 %v2518_v21  ;;  %v11915_v61 = vadd.f32 %v13224_v39, %v2428_v37  ;;  %v2430_v17 = vpop.f32.mrb[25].mxu0  ;;  %v8913_v23 = vpop.f32.mrb[31].mxu1  ;;  %v2755_v37 = vld [vmem:[#allocation13 + $0x68] sm:$0xff] }
 0x511   :  { %v11917_v60 = vadd.f32 %v13226_v26, %v2430_v17  ;;  %v13656_v23 = vpack.c.bf16 %v2751_v31, %v2748_v43  ;;  %v2762_v43 = vld [vmem:[#allocation13 + $0xa0] sm:$0xff]  ;;  %v2765_v31 = vld [vmem:[#allocation13 + $0xb8] sm:$0xff] }
 0x512   :  { %v7792_v62 = vmul.f32 -1.442695, %v11915_v61  ;;  %v2758_v61 = vld [vmem:[#allocation13 + $0x80] sm:$0xff] }
 0x513   :  { %v7793_v15 = vmul.f32 -1.442695, %v11917_v60  ;;  %v2754_v60 = vld [vmem:[#allocation13 + $0x60] sm:$0xff]  ;;  %v13662_v29 = vpack.c.bf16 %v2758_v61, %v2755_v37  ;;  %v13681_v61 = vpack.c.bf16 %v2765_v31, %v2762_v43  ;;  %v2772_v31 = vld [vmem:[#allocation13 + $0xf0] sm:$0xff] }
 0x514   :  { %12145 = vpow2.f32 %v7792_v62  ;;  %v13658_v62 = vpack.c.bf16 %v2753_v6, %v2750_v54  ;;  %v2767_v54 = vld [vmem:[#allocation13 + $0xc8] sm:$0xff]  ;;  %v2770_v6 = vld [vmem:[#allocation13 + $0xe0] sm:$0xff] }
 0x515   :  { %12147 = vpow2.f32 %v7793_v15  ;;  %v2757_v15 = vld [vmem:[#allocation13 + $0x78] sm:$0xff] }
 0x516   :  { %v13669_v2 = vpack.c.bf16 %v2757_v15, %v2754_v60  ;;  %v13685_v60 = vpack.c.bf16 %v2770_v6, %v2767_v54  ;;  %v2769_v15 = vld [vmem:[#allocation13 + $0xd8] sm:$0xff]  ;;  %v2774_v6 = vld [vmem:[#allocation13 + $0x100] sm:$0xff] }
 0x51a   :  { %v12144_v14 = vpop.eup %12143 }
 0x51b   :  { %v2521_v59 = vmul.f32 %v12144_v14, %v2520_v25  ;;  %v2759_v25 = vld [vmem:[#allocation13 + $0x88] sm:$0xff] }
 0x51c   :  { %v13671_v14 = vpack.c.bf16 %v2759_v25, %v2756_v55  ;;  %v2768_v55 = vld [vmem:[#allocation13 + $0xd0] sm:$0xff]  ;;  %v2771_v25 = vld [vmem:[#allocation13 + $0xe8] sm:$0xff] }
 0x51d   :  { %v13648_v20 = vadd.f32 %v2522_v0, %v2521_v59  ;;  %v13675_v59 = vpack.c.bf16 %v2764_v19, %v2761_v53  ;;  %v2763_v0 = vld [vmem:[#allocation13 + $0xa8] sm:$0xff]  ;;  %v2500_v53 = vadd.f32 %v13639_v56, %v13244_v41  ;;  %v2773_v19 = vld [vmem:[#allocation13 + $0xf8] sm:$0xff]  ;;  %v13693_v43 = vpack.c.bf16 %v2771_v25, %v2768_v55  ;;  %v2778_v55 = vld [vmem:[#allocation13 + $0x120] sm:$0xff] }
 0x51e   :  { %v12146_v21 = vpop.eup %12145  ;;  %v13679_v37 = vpack.c.bf16 %v2763_v0, %v2760_v27  ;;  %v2775_v56 = vld [vmem:[#allocation13 + $0x108] sm:$0xff] }
 0x51f   :  { %15196 = vst [vmem:[#allocation44_spill] sm:$0xff] %v13648_v20  ;;  %v2528_v17 = vadd.f32 1.0, %v12146_v21  ;;  %2666 = vmatmul.mubr.f32.vlgmr.msra.gmra.mrb[8].mxu0 %v13648_v20  ;;  %8947 = vmatmul.mubr.f32.vlgmr.msra.gmra.mrb[32].mxu1 %v13648_v20  ;;  %v12148_v47 = vpop.eup %12147 }
 0x520   :  { %10389 = vmatpush1.bf16.msra.mxu0 %v13644_v5  ;;  %10420 = vmatpush3.bf16.msra.mxu1 %v13646_v22  ;;  %v2535_v21 = vadd.f32 1.0, %v12148_v47  ;;  %v2776_v47 = vld [vmem:[#allocation13 + $0x110] sm:$0xff] }
 0x521   :  { %12149 = vrcp.f32 %v2528_v17  ;;  %10391 = vmatprep.subr.bf16.mxu0 %v13650_v52  ;;  %10421 = vmatprep.subr.bf16.mxu1 %v15181_v35  ;;  %v2766_v17 = vld [vmem:[#allocation13 + $0xc0] sm:$0xff]  ;;  %v13697_v54 = vpack.c.bf16 %v2776_v47, %v2773_v19  ;;  %v2781_v19 = vld [vmem:[#allocation13 + $0x138] sm:$0xff]  ;;  %v2780_v47 = vld [vmem:[#allocation13 + $0x130] sm:$0xff] }
 0x522   :  { %2854 = vmatprep.mubr.f32.mxu0 %v15182_v9  ;;  %8981 = vmatprep.mubr.msk.f32.mxu1 %vm12642_vm0, %v15182_v9  ;;  %12151 = vrcp.f32 %v2535_v21  ;;  %v13691_v0 = vpack.c.bf16 %v2769_v15, %v2766_v17  ;;  %v13702_v17 = vpack.c.bf16 %v2775_v56, %v2772_v31  ;;  %v13704_v15 = vpack.c.bf16 %v2777_v1, %v2774_v6  ;;  %v2784_v56 = vld [vmem:[#allocation13 + $0x150] sm:$0xff]  ;;  %v2787_v6 = vld [vmem:[#allocation13 + $0x168] sm:$0xff] }
 0x523   :  { %15197 = vst [vmem:[#allocation45_spill] sm:$0xff] %v13697_v54  ;;  %v13712_v31 = vpack.c.bf16 %v2781_v19, %v2778_v55 }
 0x524   :  { %10393 = vmatpush1.bf16.msra.mxu0 %v13656_v23  ;;  %10423 = vmatpush3.bf16.msra.mxu1 %v13658_v62  ;;  %15199 = vst [vmem:[#allocation46_spill] sm:$0xff] %v13704_v15 }
 0x525   :  { %10395 = vmatprep.subr.bf16.mxu0 %v13662_v29  ;;  %10424 = vmatprep.subr.bf16.mxu1 %v15181_v35 }
 0x528   :  { %10397 = vmatpush1.bf16.msra.mxu0 %v13669_v2  ;;  %10426 = vmatpush3.bf16.msra.mxu1 %v13671_v14 }
 0x529   :  { %10399 = vmatprep.subr.bf16.mxu0 %v13675_v59  ;;  %10427 = vmatprep.subr.bf16.mxu1 %v15181_v35 }
 0x52b   :  { %v12150_v49 = vpop.eup %12149 }
 0x52c   :  { %v2538_v27 = vmul.f32 %v12150_v49, %v2500_v53  ;;  %10401 = vmatpush1.bf16.msra.mxu0 %v13679_v37  ;;  %10429 = vmatpush3.bf16.msra.mxu1 %v13681_v61  ;;  %v15198_v49 = vld [vmem:[#allocation38_spill] sm:$0xff]  ;;  %v2779_v53 = vld [vmem:[#allocation13 + $0x128] sm:$0xff] }
 0x52d   :  { %10403 = vmatprep.subr.bf16.mxu0 %v13685_v60  ;;  %10430 = vmatprep.subr.bf16.mxu1 %v15181_v35  ;;  %v13708_v25 = vpack.c.bf16 %v2782_v11, %v2779_v53  ;;  %v2786_v53 = vld [vmem:[#allocation13 + $0x160] sm:$0xff] }
 0x52e   :  { %v2539_v21 = vadd.f32 %v2538_v27, %v15198_v49  ;;  %v2783_v27 = vld [vmem:[#allocation13 + $0x148] sm:$0xff]  ;;  %v2785_v49 = vld [vmem:[#allocation13 + $0x158] sm:$0xff]  ;;  %v13724_v55 = vpack.c.bf16 %v2789_v16, %v2786_v53  ;;  %v2995_v16 = vld [vmem:[#allocation10 + $0x70] sm:$0xff] }
 0x52f   :  { %v13714_v1 = vpack.c.bf16 %v2783_v27, %v2780_v47 }
 0x530   :  { %12153 = vtanh.f32 %v2539_v21  ;;  %10405 = vmatpush1.bf16.msra.mxu0 %v13691_v0  ;;  %10432 = vmatpush3.bf16.msra.mxu1 %v13693_v43  ;;  %v2788_v21 = vld [vmem:[#allocation13 + $0x170] sm:$0xff] }
 0x531   :  { %10407 = vmatprep.subr.bf16.mxu0 %v13697_v54  ;;  %10433 = vmatprep.subr.bf16.mxu1 %v15181_v35  ;;  %v13718_v11 = vpack.c.bf16 %v2788_v21, %v2785_v49  ;;  %v12152_v54 = vpop.eup %12151 }
 0x532   :  { %v2541_v19 = vsub.f32 1.0, %v12152_v54  ;;  %v2543_v49 = vmul.f32 %v12152_v54, %v13548_v28 }
 0x534   :  { %10409 = vmatpush1.bf16.msra.mxu0 %v13702_v17  ;;  %10435 = vmatpush3.bf16.msra.mxu1 %v13704_v15  ;;  %v13722_v15 = vpack.c.bf16 %v2787_v6, %v2784_v56 }
 0x535   :  { %10411 = vmatprep.subr.bf16.mxu0 %v13708_v25  ;;  %10436 = vmatprep.subr.bf16.mxu1 %v15181_v35 }
 0x538   :  { %10413 = vmatpush1.bf16.msra.mxu0 %v13712_v31  ;;  %10438 = vmatpush3.bf16.msra.mxu1 %v13714_v1 }
 0x539   :  { %10415 = vmatprep.subr.bf16.mxu0 %v13718_v11  ;;  %10439 = vmatprep.subr.bf16.mxu1 %v15181_v35 }
 0x53a   :  { %v12154_v47 = vpop.eup %12153 }
 0x53b   :  { %v2542_v27 = vmul.f32 %v12154_v47, %v2541_v19 }
 0x53c   :  { %10417 = vmatpush1.bf16.msra.mxu0 %v13722_v15  ;;  %10441 = vmatpush3.bf16.msra.mxu1 %v13724_v55 }
 0x53d   :  { %v13731_v21 = vadd.f32 %v2543_v49, %v2542_v27  ;;  %10443 = vmatprep.subr.bf16.mxu0 %v13556_v48  ;;  %10474 = vmatprep.subr.bf16.mxu1 %v15181_v35  ;;  %v2998_v48 = vld [vmem:[#allocation10 + $0x88] sm:$0xff] }
 0x53f   :  { %15200 = vst [vmem:[#allocation28_spill] sm:$0xff] %v13731_v21  ;;  %2855 = vmatmul.mubr.f32.vlgmr.msra.gmra.mrb[22].mxu0 %v13731_v21  ;;  %8982 = vmatmul.mubr.f32.vlgmr.msra.gmra.mrb[34].mxu1 %v13731_v21 }
 0x540   :  { %10445 = vmatpush1.bf16.msra.mxu0 %v13558_v36  ;;  %10476 = vmatpush3.bf16.msra.mxu1 %v13561_v4  ;;  %v13760_v36 = vpack.c.bf16 %v2998_v48, %v2995_v16  ;;  %v3001_v4 = vld [vmem:[#allocation10 + $0xa0] sm:$0xff] }
 0x541   :  { %10447 = vmatprep.subr.bf16.mxu0 %v13565_v18  ;;  %10477 = vmatprep.subr.bf16.mxu1 %v15181_v35  ;;  %v3004_v18 = vld [vmem:[#allocation10 + $0xb8] sm:$0xff] }
 0x542   :  { %3093 = vmatprep.mubr.f32.mxu0 %v15182_v9  ;;  %9016 = vmatprep.mubr.msk.f32.mxu1 %vm12642_vm0, %v15182_v9 }
 0x544   :  { %10449 = vmatpush1.bf16.msra.mxu0 %v13568_v44  ;;  %10479 = vmatpush3.bf16.msra.mxu1 %v13571_v51  ;;  %v13764_v44 = vpack.c.bf16 %v3004_v18, %v3001_v4 }
 0x545   :  { %10451 = vmatprep.subr.bf16.mxu0 %v13575_v46  ;;  %10480 = vmatprep.subr.bf16.mxu1 %v15181_v35 }
 0x548   :  { %10453 = vmatpush1.bf16.msra.mxu0 %v13578_v58  ;;  %10482 = vmatpush3.bf16.msra.mxu1 %v13760_v36 }
 0x549   :  { %10455 = vmatprep.subr.bf16.mxu0 %v13583_v63  ;;  %10483 = vmatprep.subr.bf16.mxu1 %v15181_v35 }
 0x54c   :  { %10457 = vmatpush1.bf16.msra.mxu0 %v13586_v7  ;;  %10485 = vmatpush3.bf16.msra.mxu1 %v13764_v44 }
 0x54d   :  { %10459 = vmatprep.subr.bf16.mxu0 %v13591_v45  ;;  %10486 = vmatprep.subr.bf16.mxu1 %v15181_v35 }
 0x550   :  { %10461 = vmatpush1.bf16.msra.mxu0 %v13594_v12  ;;  %10488 = vmatpush3.bf16.msra.mxu1 %v13597_v13 }
 0x551   :  { %10463 = vmatprep.subr.bf16.mxu0 %v13601_v57  ;;  %10489 = vmatprep.subr.bf16.mxu1 %v15181_v35 }
 0x554   :  { %10465 = vmatpush1.bf16.msra.mxu0 %v13604_v32  ;;  %10491 = vmatpush3.bf16.msra.mxu1 %v13607_v38 }
 0x555   :  { %10467 = vmatprep.subr.bf16.mxu0 %v13611_v33  ;;  %10492 = vmatprep.subr.bf16.mxu1 %v15181_v35 }
 0x558   :  { %10469 = vmatpush1.bf16.msra.mxu0 %v13614_v34  ;;  %10494 = vmatpush3.bf16.msra.mxu1 %v13617_v3 }
 0x559   :  { %10471 = vmatprep.subr.bf16.mxu0 %v13621_v24  ;;  %10495 = vmatprep.subr.bf16.mxu1 %v15181_v35 }
 0x55c   :  { %10473 = vmatpush1.bf16.msra.mxu0 %v13624_v42  ;;  %10497 = vmatpush3.bf16.msra.mxu1 %v13627_v30  ;;  %v15201_v42 = vld [vmem:[#allocation30_spill] sm:$0xff] }
 0x55d   :  { %10499 = vmatprep.subr.bf16.mxu0 %v13631_v50  ;;  %10530 = vmatprep.subr.bf16.mxu1 %v15181_v35 }
 0x5f2   :  { %v2667_v51 = vpop.f32.mrb[8].mxu0  ;;  %v2738_v46 = vpop.f32.mrb[32].mxu1 }
 0x5f3   :  { %v11883_v58 = vadd.f32 %v13206_v40, %v2667_v51  ;;  %v2669_v63 = vpop.f32.mrb[9].mxu0  ;;  %v8948_v7 = vpop.f32.mrb[33].mxu1  ;;  %v2739_v34 = vadd.f32 %v2738_v46, %v13213_v8 }
 0x5f4   :  { %v11885_v12 = vadd.f32 %v13208_v10, %v2669_v63  ;;  %v3414_v7 = vld [vmem:[#allocation10 + $0x28] sm:$0xff] }
 0x5f5   :  { %v7794_v45 = vmul.f32 -1.442695, %v11883_v58 }
 0x5f6   :  { %v7795_v13 = vmul.f32 -1.442695, %v11885_v12  ;;  %v3416_v12 = vld [vmem:[#allocation10 + $0x38] sm:$0xff] }
 0x5f7   :  { %12155 = vpow2.f32 %v7794_v45 }
 0x5f8   :  { %12157 = vpow2.f32 %v7795_v13  ;;  %v3419_v13 = vld [vmem:[#allocation10 + $0x50] sm:$0xff] }
 0x601   :  { %v12156_v57 = vpop.eup %12155 }
 0x602   :  { %v2935_v32 = vadd.f32 1.0, %v12156_v57  ;;  %v12158_v38 = vpop.eup %12157  ;;  %v13840_v57 = vpack.c.bf16 %v3419_v13, %v3416_v12  ;;  %v3452_v12 = vld [vmem:[#allocation10 + $0x158] sm:$0xff]  ;;  %v3455_v13 = vld [vmem:[#allocation10 + $0x170] sm:$0xff] }
 0x603   :  { %v2942_v33 = vadd.f32 1.0, %v12158_v38  ;;  %v3418_v38 = vld [vmem:[#allocation10 + $0x48] sm:$0xff] }
 0x604   :  { %12159 = vrcp.f32 %v2935_v32  ;;  %v3415_v32 = vld [vmem:[#allocation10 + $0x30] sm:$0xff] }
 0x605   :  { %12161 = vrcp.f32 %v2942_v33  ;;  %v3417_v33 = vld [vmem:[#allocation10 + $0x40] sm:$0xff] }
 0x60e   :  { %v12160_v3 = vpop.eup %12159 }
 0x60f   :  { %v2945_v24 = vmul.f32 %v12160_v3, %v2739_v34  ;;  %v12162_v27 = vpop.eup %12161  ;;  %v13843_v34 = vpack.c.bf16 %v3418_v38, %v3415_v32  ;;  %v3420_v3 = vld [vmem:[#allocation10 + $0x58] sm:$0xff]  ;;  %v13896_v32 = vpack.c.bf16 %v3455_v13, %v3452_v12  ;;  %v3451_v38 = vld [vmem:[#allocation10 + $0x150] sm:$0xff] }
 0x610   :  { %v2948_v16 = vsub.f32 1.0, %v12162_v27  ;;  %v2950_v18 = vmul.f32 %v12162_v27, %v13648_v20  ;;  %v3427_v27 = vld [vmem:[#allocation10 + $0x90] sm:$0xff]  ;;  %v3645_v20 = vld [vmem:[#allocation13 + $0x178] sm:$0xff] }
 0x611   :  { %v2946_v30 = vadd.f32 %v2945_v24, %v15201_v42  ;;  %v13846_v24 = vpack.c.bf16 %v3420_v3, %v3417_v33  ;;  %v3422_v42 = vld [vmem:[#allocation10 + $0x68] sm:$0xff]  ;;  %v3453_v3 = vld [vmem:[#allocation10 + $0x160] sm:$0xff] }
 0x612   :  { %v2856_v50 = vpop.f32.mrb[22].mxu0  ;;  %v2927_v54 = vpop.f32.mrb[34].mxu1  ;;  %v3454_v33 = vld [vmem:[#allocation10 + $0x168] sm:$0xff] }
 0x613   :  { %12163 = vtanh.f32 %v2946_v30  ;;  %v11911_v56 = vadd.f32 %v13224_v39, %v2856_v50  ;;  %v2858_v6 = vpop.f32.mrb[23].mxu0  ;;  %v8983_v53 = vpop.f32.mrb[35].mxu1  ;;  %v3425_v30 = vld [vmem:[#allocation10 + $0x80] sm:$0xff] }
 0x614   :  { %v11913_v47 = vadd.f32 %v13226_v26, %v2858_v6  ;;  %v13850_v50 = vpack.c.bf16 %v3425_v30, %v3422_v42  ;;  %v3428_v53 = vld [vmem:[#allocation10 + $0x98] sm:$0xff]  ;;  %v13899_v42 = vpack.c.bf16 %v3454_v33, %v3451_v38 }
 0x615   :  { %v7796_v19 = vmul.f32 -1.442695, %v11911_v56  ;;  %v3424_v56 = vld [vmem:[#allocation10 + $0x78] sm:$0xff] }
 0x616   :  { %v7797_v49 = vmul.f32 -1.442695, %v11913_v47  ;;  %v3456_v30 = vld [vmem:[#allocation10 + $0x178] sm:$0xff] }
 0x617   :  { %12165 = vpow2.f32 %v7796_v19  ;;  %v3431_v19 = vld [vmem:[#allocation10 + $0xb0] sm:$0xff] }
 0x618   :  { %12167 = vpow2.f32 %v7797_v49  ;;  %v13858_v47 = vpack.c.bf16 %v3431_v19, %v3428_v53  ;;  %v3430_v49 = vld [vmem:[#allocation10 + $0xa8] sm:$0xff]  ;;  %v3602_v53 = vld [vmem:[#allocation13 + $0x20] sm:$0xff] }
 0x61d   :  { %v12164_v48 = vpop.eup %12163 }
 0x61e   :  { %v2949_v4 = vmul.f32 %v12164_v48, %v2948_v16  ;;  %v13861_v16 = vpack.c.bf16 %v3430_v49, %v3427_v27  ;;  %v3434_v48 = vld [vmem:[#allocation10 + $0xc8] sm:$0xff] }
 0x620   :  { %v13783_v51 = vadd.f32 %v2950_v18, %v2949_v4  ;;  %v3437_v4 = vld [vmem:[#allocation10 + $0xe0] sm:$0xff] }
 0x621   :  { %v12166_v46 = vpop.eup %12165  ;;  %v13866_v18 = vpack.c.bf16 %v3437_v4, %v3434_v48 }
 0x622   :  { %15202 = vst [vmem:[#allocation38_spill] sm:$0xff] %v13783_v51  ;;  %v2956_v58 = vadd.f32 1.0, %v12166_v46  ;;  %3094 = vmatmul.mubr.f32.vlgmr.msra.gmra.mrb[10].mxu0 %v13783_v51  ;;  %9017 = vmatmul.mubr.f32.vlgmr.msra.gmra.mrb[36].mxu1 %v13783_v51  ;;  %v12168_v63 = vpop.eup %12167  ;;  %v3433_v46 = vld [vmem:[#allocation10 + $0xc0] sm:$0xff] }
 0x623   :  { %10501 = vmatpush1.bf16.msra.mxu0 %v13644_v5  ;;  %10532 = vmatpush3.bf16.msra.mxu1 %v13646_v22  ;;  %v2963_v5 = vadd.f32 1.0, %v12168_v63  ;;  %v2928_v22 = vadd.f32 %v2927_v54, %v13244_v41  ;;  %v3421_v54 = vld [vmem:[#allocation10 + $0x60] sm:$0xff] }
 0x624   :  { %12169 = vrcp.f32 %v2956_v58  ;;  %10503 = vmatprep.subr.bf16.mxu0 %v13650_v52  ;;  %10533 = vmatprep.subr.bf16.mxu1 %v15181_v35  ;;  %v13853_v6 = vpack.c.bf16 %v3424_v56, %v3421_v54  ;;  %v3435_v58 = vld [vmem:[#allocation10 + $0xd0] sm:$0xff]  ;;  %v13902_v54 = vpack.c.bf16 %v3456_v30, %v3453_v3  ;;  %v3599_v56 = vld [vmem:[#allocation13 + $0x8] sm:$0xff] }
 0x625   :  { %3282 = vmatprep.mubr.f32.mxu0 %v15182_v9  ;;  %9051 = vmatprep.mubr.msk.f32.mxu1 %vm12642_vm0, %v15182_v9  ;;  %12171 = vrcp.f32 %v2963_v5  ;;  %v3438_v5 = vld [vmem:[#allocation10 + $0xe8] sm:$0xff]  ;;  %v13906_v19 = vpack.c.bf16 %v3602_v53, %v3599_v56  ;;  %v3598_v56 = vld [vmem:[#allocation13] sm:$0xff] }
 0x627   :  { %10505 = vmatpush1.bf16.msra.mxu0 %v13656_v23  ;;  %10535 = vmatpush3.bf16.msra.mxu1 %v13658_v62  ;;  %v15203_v62 = vld [vmem:[#allocation35_spill] sm:$0xff] }
 0x628   :  { %10507 = vmatprep.subr.bf16.mxu0 %v13662_v29  ;;  %10536 = vmatprep.subr.bf16.mxu1 %v15181_v35 }
 0x62b   :  { %10509 = vmatpush1.bf16.msra.mxu0 %v13669_v2  ;;  %10538 = vmatpush3.bf16.msra.mxu1 %v13671_v14  ;;  %v15204_v2 = vld [vmem:[#allocation45_spill] sm:$0xff]  ;;  %v15205_v14 = vld [vmem:[#allocation46_spill] sm:$0xff] }
 0x62c   :  { %10511 = vmatprep.subr.bf16.mxu0 %v13675_v59  ;;  %10539 = vmatprep.subr.bf16.mxu1 %v15181_v35 }
 0x62e   :  { %v12170_v52 = vpop.eup %12169 }
 0x62f   :  { %v2966_v23 = vmul.f32 %v12170_v52, %v2928_v22  ;;  %10513 = vmatpush1.bf16.msra.mxu0 %v13679_v37  ;;  %10541 = vmatpush3.bf16.msra.mxu1 %v13681_v61  ;;  %v12172_v59 = vpop.eup %12171  ;;  %v13872_v22 = vpack.c.bf16 %v3438_v5, %v3435_v58  ;;  %v3440_v52 = vld [vmem:[#allocation10 + $0xf8] sm:$0xff] }
 0x630   :  { %10515 = vmatprep.subr.bf16.mxu0 %v13685_v60  ;;  %10542 = vmatprep.subr.bf16.mxu1 %v15181_v35  ;;  %v2969_v37 = vsub.f32 1.0, %v12172_v59 }
 0x631   :  { %v2967_v29 = vadd.f32 %v2966_v23, %v15203_v62  ;;  %v3443_v23 = vld [vmem:[#allocation10 + $0x110] sm:$0xff] }
 0x632   :  { %v3439_v62 = vld [vmem:[#allocation10 + $0xf0] sm:$0xff] }
 0x633   :  { %12173 = vtanh.f32 %v2967_v29  ;;  %10517 = vmatpush1.bf16.msra.mxu0 %v13691_v0  ;;  %10544 = vmatpush3.bf16.msra.mxu1 %v13693_v43  ;;  %v2971_v0 = vmul.f32 %v12172_v59, %v13731_v21  ;;  %v3442_v29 = vld [vmem:[#allocation10 + $0x108] sm:$0xff]  ;;  %v3444_v59 = vld [vmem:[#allocation10 + $0x118] sm:$0xff]  ;;  %v3638_v21 = vld [vmem:[#allocation13 + $0x140] sm:$0xff] }
 0x634   :  { %10519 = vmatprep.subr.bf16.mxu0 %v15204_v2  ;;  %10545 = vmatprep.subr.bf16.mxu1 %v15181_v35  ;;  %v3441_v2 = vld [vmem:[#allocation10 + $0x100] sm:$0xff] }
 0x637   :  { %10521 = vmatpush1.bf16.msra.mxu0 %v13702_v17  ;;  %10547 = vmatpush3.bf16.msra.mxu1 %v15205_v14  ;;  %v3410_v17 = vld [vmem:[#allocation10 + $0x8] sm:$0xff]  ;;  %v13879_v14 = vpack.c.bf16 %v3442_v29, %v3439_v62 }
 0x638   :  { %10523 = vmatprep.subr.bf16.mxu0 %v13708_v25  ;;  %10548 = vmatprep.subr.bf16.mxu1 %v15181_v35  ;;  %v3413_v25 = vld [vmem:[#allocation10 + $0x20] sm:$0xff] }
 0x63b   :  { %10525 = vmatpush1.bf16.msra.mxu0 %v13712_v31  ;;  %10550 = vmatpush3.bf16.msra.mxu1 %v13714_v1  ;;  %v13831_v31 = vpack.c.bf16 %v3413_v25, %v3410_v17  ;;  %v3412_v1 = vld [vmem:[#allocation10 + $0x18] sm:$0xff]  ;;  %v3445_v17 = vld [vmem:[#allocation10 + $0x120] sm:$0xff] }
 0x63c   :  { %10527 = vmatprep.subr.bf16.mxu0 %v13718_v11  ;;  %10551 = vmatprep.subr.bf16.mxu1 %v15181_v35  ;;  %v3411_v11 = vld [vmem:[#allocation10 + $0x10] sm:$0xff]  ;;  %v3448_v25 = vld [vmem:[#allocation10 + $0x138] sm:$0xff] }
 0x63d   :  { %v12174_v61 = vpop.eup %12173  ;;  %v13836_v45 = vpack.c.bf16 %v3414_v7, %v3411_v11  ;;  %v3450_v11 = vld [vmem:[#allocation10 + $0x148] sm:$0xff] }
 0x63e   :  { %v2970_v60 = vmul.f32 %v12174_v61, %v2969_v37  ;;  %v13882_v37 = vpack.c.bf16 %v3444_v59, %v3441_v2  ;;  %v3446_v61 = vld [vmem:[#allocation10 + $0x128] sm:$0xff] }
 0x63f   :  { %10529 = vmatpush1.bf16.msra.mxu0 %v13722_v15  ;;  %10553 = vmatpush3.bf16.msra.mxu1 %v13724_v55  ;;  %v3409_v15 = vld [vmem:[#allocation10] sm:$0xff] }
 0x640   :  { %v13823_v43 = vadd.f32 %v2971_v0, %v2970_v60  ;;  %10586 = vmatprep.subr.bf16.mxu1 %v15181_v35  ;;  %v13833_v55 = vpack.c.bf16 %v3412_v1, %v3409_v15  ;;  %10555 = vmatprep.subr.bf16.mxu0 %v13831_v31  ;;  %v3449_v60 = vld [vmem:[#allocation10 + $0x140] sm:$0xff]  ;;  %v3447_v15 = vld [vmem:[#allocation10 + $0x130] sm:$0xff]  ;;  %v13889_v1 = vpack.c.bf16 %v3448_v25, %v3445_v17 }
 0x641   :  { %v13886_v0 = vpack.c.bf16 %v3449_v60, %v3446_v61  ;;  %v13892_v7 = vpack.c.bf16 %v3450_v11, %v3447_v15  ;;  %v15206_v60 = vld [vmem:[#allocation29_spill] sm:$0xff] }
 0x642   :  { %3283 = vmatmul.mubr.f32.vlgmr.msra.gmra.mrb[20].mxu0 %v13823_v43  ;;  %9052 = vmatmul.mubr.f32.vlgmr.msra.gmra.mrb[38].mxu1 %v13823_v43 }
 0x643   :  { %3521 = vmatprep.mubr.f32.mxu0 %v15182_v9  ;;  %9086 = vmatprep.mubr.msk.f32.mxu1 %vm12642_vm0, %v15182_v9 }
 0x644   :  { %10557 = vmatpush1.bf16.msra.mxu0 %v13833_v55  ;;  %10588 = vmatpush3.bf16.msra.mxu1 %v13836_v45 }
 0x645   :  { %10589 = vmatprep.subr.bf16.mxu1 %v15181_v35  ;;  %10559 = vmatprep.subr.bf16.mxu0 %v13840_v57 }
 0x648   :  { %10561 = vmatpush1.bf16.msra.mxu0 %v13843_v34  ;;  %10591 = vmatpush3.bf16.msra.mxu1 %v13846_v24 }
 0x649   :  { %10592 = vmatprep.subr.bf16.mxu1 %v15181_v35  ;;  %10563 = vmatprep.subr.bf16.mxu0 %v13850_v50 }
 0x64c   :  { %10565 = vmatpush1.bf16.msra.mxu0 %v13853_v6  ;;  %10594 = vmatpush3.bf16.msra.mxu1 %v13760_v36  ;;  %v3436_v36 = vld [vmem:[#allocation10 + $0xd8] sm:$0xff] }
 0x64d   :  { %10595 = vmatprep.subr.bf16.mxu1 %v15181_v35  ;;  %10567 = vmatprep.subr.bf16.mxu0 %v13858_v47  ;;  %v13869_v63 = vpack.c.bf16 %v3436_v36, %v3433_v46 }
 0x650   :  { %10569 = vmatpush1.bf16.msra.mxu0 %v13861_v16  ;;  %10597 = vmatpush3.bf16.msra.mxu1 %v13764_v44  ;;  %v13876_v44 = vpack.c.bf16 %v3443_v23, %v3440_v52 }
 0x651   :  { %10598 = vmatprep.subr.bf16.mxu1 %v15181_v35  ;;  %10571 = vmatprep.subr.bf16.mxu0 %v13866_v18 }
 0x654   :  { %10573 = vmatpush1.bf16.msra.mxu0 %v13869_v63  ;;  %10600 = vmatpush3.bf16.msra.mxu1 %v13872_v22 }
 0x655   :  { %10601 = vmatprep.subr.bf16.mxu1 %v15181_v35  ;;  %10575 = vmatprep.subr.bf16.mxu0 %v13876_v44 }
 0x658   :  { %10577 = vmatpush1.bf16.msra.mxu0 %v13879_v14  ;;  %10603 = vmatpush3.bf16.msra.mxu1 %v13882_v37 }
 0x659   :  { %10604 = vmatprep.subr.bf16.mxu1 %v15181_v35  ;;  %10579 = vmatprep.subr.bf16.mxu0 %v13886_v0 }
 0x65c   :  { %10581 = vmatpush1.bf16.msra.mxu0 %v13889_v1  ;;  %10606 = vmatpush3.bf16.msra.mxu1 %v13892_v7 }
 0x65d   :  { %10607 = vmatprep.subr.bf16.mxu1 %v15181_v35  ;;  %10583 = vmatprep.subr.bf16.mxu0 %v13896_v32 }
 0x660   :  { %10585 = vmatpush1.bf16.msra.mxu0 %v13899_v42  ;;  %10609 = vmatpush3.bf16.msra.mxu1 %v13902_v54 }
 0x661   :  { %10642 = vmatprep.subr.bf16.mxu1 %v15181_v35  ;;  %10611 = vmatprep.subr.bf16.mxu0 %v13906_v19 }
 0x6f5   :  { %v3095_v27 = vpop.f32.mrb[10].mxu0  ;;  %v3166_v49 = vpop.f32.mrb[36].mxu1 }
 0x6f6   :  { %v11887_v48 = vadd.f32 %v13206_v40, %v3095_v27  ;;  %v3097_v4 = vpop.f32.mrb[11].mxu0  ;;  %v9018_v46 = vpop.f32.mrb[37].mxu1  ;;  %v3167_v2 = vadd.f32 %v3166_v49, %v13213_v8  ;;  %v3601_v27 = vld [vmem:[#allocation13 + $0x18] sm:$0xff]  ;;  %v3600_v49 = vld [vmem:[#allocation13 + $0x10] sm:$0xff] }
 0x6f7   :  { %v11889_v58 = vadd.f32 %v13208_v10, %v3097_v4  ;;  %v3605_v46 = vld [vmem:[#allocation13 + $0x38] sm:$0xff] }
 0x6f8   :  { %v7798_v36 = vmul.f32 -1.442695, %v11887_v48  ;;  %v3603_v48 = vld [vmem:[#allocation13 + $0x28] sm:$0xff] }
 0x6f9   :  { %v7799_v5 = vmul.f32 -1.442695, %v11889_v58 }
 0x6fa   :  { %12175 = vpow2.f32 %v7798_v36  ;;  %v3608_v36 = vld [vmem:[#allocation13 + $0x50] sm:$0xff] }
 0x6fb   :  { %12177 = vpow2.f32 %v7799_v5 }
 0x704   :  { %v12176_v52 = vpop.eup %12175 }
 0x705   :  { %v3363_v23 = vadd.f32 1.0, %v12176_v52  ;;  %v12178_v62 = vpop.eup %12177  ;;  %v13919_v52 = vpack.c.bf16 %v3601_v27, %v3598_v56  ;;  %v3612_v56 = vld [vmem:[#allocation13 + $0x70] sm:$0xff]  ;;  %v3617_v27 = vld [vmem:[#allocation13 + $0x98] sm:$0xff] }
 0x706   :  { %v3370_v29 = vadd.f32 1.0, %v12178_v62  ;;  %v3604_v62 = vld [vmem:[#allocation13 + $0x30] sm:$0xff] }
 0x707   :  { %12179 = vrcp.f32 %v3363_v23  ;;  %v13921_v23 = vpack.c.bf16 %v3603_v48, %v3600_v49  ;;  %v3620_v49 = vld [vmem:[#allocation13 + $0xb0] sm:$0xff] }
 0x708   :  { %12181 = vrcp.f32 %v3370_v29 }
 0x711   :  { %v12180_v59 = vpop.eup %12179 }
 0x712   :  { %v3373_v61 = vmul.f32 %v12180_v59, %v3167_v2  ;;  %v12182_v3 = vpop.eup %12181  ;;  %v13925_v2 = vpack.c.bf16 %v3608_v36, %v3605_v46  ;;  %v3607_v59 = vld [vmem:[#allocation13 + $0x48] sm:$0xff]  ;;  %v3616_v46 = vld [vmem:[#allocation13 + $0x90] sm:$0xff] }
 0x713   :  { %v3376_v53 = vsub.f32 1.0, %v12182_v3  ;;  %v3378_v5 = vmul.f32 %v12182_v3, %v13783_v51  ;;  %v3633_v51 = vld [vmem:[#allocation13 + $0x118] sm:$0xff] }
 0x714   :  { %v3374_v17 = vadd.f32 %v3373_v61, %v15206_v60  ;;  %v3606_v61 = vld [vmem:[#allocation13 + $0x40] sm:$0xff]  ;;  %v3609_v60 = vld [vmem:[#allocation13 + $0x58] sm:$0xff] }
 0x715   :  { %v3284_v25 = vpop.f32.mrb[20].mxu0  ;;  %v13914_v15 = vpop.f32.mrb[38].mxu1 }
 0x716   :  { %12183 = vtanh.f32 %v3374_v17  ;;  %v11907_v11 = vadd.f32 %v13224_v39, %v3284_v25  ;;  %v3286_v12 = vpop.f32.mrb[21].mxu0  ;;  %v9053_v13 = vpop.f32.mrb[39].mxu1  ;;  %v3611_v25 = vld [vmem:[#allocation13 + $0x68] sm:$0xff] }
 0x717   :  { %v11909_v33 = vadd.f32 %v13226_v26, %v3286_v12  ;;  %v13931_v13 = vpack.c.bf16 %v3607_v59, %v3604_v62  ;;  %v3618_v62 = vld [vmem:[#allocation13 + $0xa0] sm:$0xff]  ;;  %v3621_v59 = vld [vmem:[#allocation13 + $0xb8] sm:$0xff] }
 0x718   :  { %v7800_v38 = vmul.f32 -1.442695, %v11907_v11  ;;  %v3614_v11 = vld [vmem:[#allocation13 + $0x80] sm:$0xff] }
 0x719   :  { %v7801_v30 = vmul.f32 -1.442695, %v11909_v33  ;;  %v3610_v33 = vld [vmem:[#allocation13 + $0x60] sm:$0xff]  ;;  %v13937_v3 = vpack.c.bf16 %v3614_v11, %v3611_v25  ;;  %v13956_v11 = vpack.c.bf16 %v3621_v59, %v3618_v62  ;;  %v3628_v59 = vld [vmem:[#allocation13 + $0xf0] sm:$0xff] }
 0x71a   :  { %12185 = vpow2.f32 %v7800_v38  ;;  %v13933_v38 = vpack.c.bf16 %v3609_v60, %v3606_v61  ;;  %v3623_v61 = vld [vmem:[#allocation13 + $0xc8] sm:$0xff]  ;;  %v3626_v60 = vld [vmem:[#allocation13 + $0xe0] sm:$0xff] }
 0x71b   :  { %12187 = vpow2.f32 %v7801_v30  ;;  %v3613_v30 = vld [vmem:[#allocation13 + $0x78] sm:$0xff] }
 0x71c   :  { %v13944_v48 = vpack.c.bf16 %v3613_v30, %v3610_v33  ;;  %v13960_v33 = vpack.c.bf16 %v3626_v60, %v3623_v61  ;;  %v3625_v30 = vld [vmem:[#allocation13 + $0xd8] sm:$0xff]  ;;  %v3630_v60 = vld [vmem:[#allocation13 + $0x100] sm:$0xff] }
 0x720   :  { %v12184_v4 = vpop.eup %12183 }
 0x721   :  { %v3377_v58 = vmul.f32 %v12184_v4, %v3376_v53  ;;  %v3615_v53 = vld [vmem:[#allocation13 + $0x88] sm:$0xff] }
 0x722   :  { %v13946_v4 = vpack.c.bf16 %v3615_v53, %v3612_v56  ;;  %v3624_v56 = vld [vmem:[#allocation13 + $0xd0] sm:$0xff]  ;;  %v3627_v53 = vld [vmem:[#allocation13 + $0xe8] sm:$0xff] }
 0x723   :  { %v13923_v29 = vadd.f32 %v3378_v5, %v3377_v58  ;;  %v13950_v58 = vpack.c.bf16 %v3620_v49, %v3617_v27  ;;  %v3619_v5 = vld [vmem:[#allocation13 + $0xa8] sm:$0xff]  ;;  %v3356_v27 = vadd.f32 %v13914_v15, %v13244_v41  ;;  %v3629_v49 = vld [vmem:[#allocation13 + $0xf8] sm:$0xff]  ;;  %v13968_v62 = vpack.c.bf16 %v3627_v53, %v3624_v56  ;;  %v3634_v56 = vld [vmem:[#allocation13 + $0x120] sm:$0xff] }
 0x724   :  { %v12186_v17 = vpop.eup %12185  ;;  %v13954_v25 = vpack.c.bf16 %v3619_v5, %v3616_v46  ;;  %v3631_v15 = vld [vmem:[#allocation13 + $0x108] sm:$0xff] }
 0x725   :  { %v3384_v12 = vadd.f32 1.0, %v12186_v17  ;;  %3522 = vmatmul.mubr.f32.vlgmr.msra.gmra.mrb[12].mxu0 %v13923_v29  ;;  %9087 = vmatmul.mubr.f32.vlgmr.msra.gmra.mrb[40].mxu1 %v13923_v29  ;;  %v12188_v36 = vpop.eup %12187 }
 0x726   :  { %10613 = vmatpush1.bf16.msra.mxu0 %v13919_v52  ;;  %10644 = vmatpush3.bf16.msra.mxu1 %v13921_v23  ;;  %v3391_v17 = vadd.f32 1.0, %v12188_v36  ;;  %v3632_v36 = vld [vmem:[#allocation13 + $0x110] sm:$0xff] }
 0x727   :  { %12189 = vrcp.f32 %v3384_v12  ;;  %10615 = vmatprep.subr.bf16.mxu0 %v13925_v2  ;;  %10645 = vmatprep.subr.bf16.mxu1 %v15181_v35  ;;  %v3622_v12 = vld [vmem:[#allocation13 + $0xc0] sm:$0xff]  ;;  %v13972_v61 = vpack.c.bf16 %v3632_v36, %v3629_v49  ;;  %v3637_v49 = vld [vmem:[#allocation13 + $0x138] sm:$0xff]  ;;  %v3636_v36 = vld [vmem:[#allocation13 + $0x130] sm:$0xff] }
 0x728   :  { %3710 = vmatprep.mubr.f32.mxu0 %v15182_v9  ;;  %9121 = vmatprep.mubr.msk.f32.mxu1 %vm12642_vm0, %v15182_v9  ;;  %12191 = vrcp.f32 %v3391_v17  ;;  %v13966_v5 = vpack.c.bf16 %v3625_v30, %v3622_v12  ;;  %v13977_v12 = vpack.c.bf16 %v3631_v15, %v3628_v59  ;;  %v13979_v30 = vpack.c.bf16 %v3633_v51, %v3630_v60  ;;  %v3640_v15 = vld [vmem:[#allocation13 + $0x150] sm:$0xff]  ;;  %v3643_v60 = vld [vmem:[#allocation13 + $0x168] sm:$0xff] }
 0x729   :  { %15207 = vst [vmem:[#allocation30_spill] sm:$0xff] %v13972_v61  ;;  %v13987_v59 = vpack.c.bf16 %v3637_v49, %v3634_v56 }
 0x72a   :  { %10617 = vmatpush1.bf16.msra.mxu0 %v13931_v13  ;;  %10647 = vmatpush3.bf16.msra.mxu1 %v13933_v38  ;;  %15209 = vst [vmem:[#allocation35_spill] sm:$0xff] %v13979_v30 }
 0x72b   :  { %10619 = vmatprep.subr.bf16.mxu0 %v13937_v3  ;;  %10648 = vmatprep.subr.bf16.mxu1 %v15181_v35 }
 0x72e   :  { %10621 = vmatpush1.bf16.msra.mxu0 %v13944_v48  ;;  %10650 = vmatpush3.bf16.msra.mxu1 %v13946_v4 }
 0x72f   :  { %10623 = vmatprep.subr.bf16.mxu0 %v13950_v58  ;;  %10651 = vmatprep.subr.bf16.mxu1 %v15181_v35 }
 0x731   :  { %v12190_v28 = vpop.eup %12189 }
 0x732   :  { %v3394_v46 = vmul.f32 %v12190_v28, %v3356_v27  ;;  %10625 = vmatpush1.bf16.msra.mxu0 %v13954_v25  ;;  %10653 = vmatpush3.bf16.msra.mxu1 %v13956_v11  ;;  %v15208_v28 = vld [vmem:[#allocation36_spill] sm:$0xff] }
 0x733   :  { %10627 = vmatprep.subr.bf16.mxu0 %v13960_v33  ;;  %10654 = vmatprep.subr.bf16.mxu1 %v15181_v35  ;;  %v3635_v27 = vld [vmem:[#allocation13 + $0x128] sm:$0xff] }
 0x734   :  { %v3395_v17 = vadd.f32 %v3394_v46, %v15208_v28  ;;  %v13983_v53 = vpack.c.bf16 %v3638_v21, %v3635_v27  ;;  %v3639_v46 = vld [vmem:[#allocation13 + $0x148] sm:$0xff]  ;;  %v3641_v28 = vld [vmem:[#allocation13 + $0x158] sm:$0xff]  ;;  %v3642_v27 = vld [vmem:[#allocation13 + $0x160] sm:$0xff] }
 0x735   :  { %v13989_v51 = vpack.c.bf16 %v3639_v46, %v3636_v36  ;;  %v13999_v56 = vpack.c.bf16 %v3645_v20, %v3642_v27  ;;  %v3851_v20 = vld [vmem:[#allocation10 + $0x70] sm:$0xff] }
 0x736   :  { %12193 = vtanh.f32 %v3395_v17  ;;  %10629 = vmatpush1.bf16.msra.mxu0 %v13966_v5  ;;  %10656 = vmatpush3.bf16.msra.mxu1 %v13968_v62  ;;  %v3644_v17 = vld [vmem:[#allocation13 + $0x170] sm:$0xff] }
 0x737   :  { %10631 = vmatprep.subr.bf16.mxu0 %v13972_v61  ;;  %10657 = vmatprep.subr.bf16.mxu1 %v15181_v35  ;;  %v13993_v21 = vpack.c.bf16 %v3644_v17, %v3641_v28  ;;  %v12192_v61 = vpop.eup %12191 }
 0x738   :  { %v3397_v49 = vsub.f32 1.0, %v12192_v61  ;;  %v3399_v28 = vmul.f32 %v12192_v61, %v13823_v43 }
 0x73a   :  { %10633 = vmatpush1.bf16.msra.mxu0 %v13977_v12  ;;  %10659 = vmatpush3.bf16.msra.mxu1 %v13979_v30  ;;  %v13997_v30 = vpack.c.bf16 %v3643_v60, %v3640_v15 }
 0x73b   :  { %10635 = vmatprep.subr.bf16.mxu0 %v13983_v53  ;;  %10660 = vmatprep.subr.bf16.mxu1 %v15181_v35 }
 0x73e   :  { %10637 = vmatpush1.bf16.msra.mxu0 %v13987_v59  ;;  %10662 = vmatpush3.bf16.msra.mxu1 %v13989_v51 }
 0x73f   :  { %10639 = vmatprep.subr.bf16.mxu0 %v13993_v21  ;;  %10663 = vmatprep.subr.bf16.mxu1 %v15181_v35 }
 0x740   :  { %v12194_v36 = vpop.eup %12193 }
 0x741   :  { %v3398_v46 = vmul.f32 %v12194_v36, %v3397_v49 }
 0x742   :  { %10641 = vmatpush1.bf16.msra.mxu0 %v13997_v30  ;;  %10665 = vmatpush3.bf16.msra.mxu1 %v13999_v56 }
 0x743   :  { %v14006_v17 = vadd.f32 %v3399_v28, %v3398_v46  ;;  %10667 = vmatprep.subr.bf16.mxu0 %v13831_v31  ;;  %10698 = vmatprep.subr.bf16.mxu1 %v15181_v35  ;;  %v3854_v31 = vld [vmem:[#allocation10 + $0x88] sm:$0xff] }
 0x745   :  { %3711 = vmatmul.mubr.f32.vlgmr.msra.gmra.mrb[18].mxu0 %v14006_v17  ;;  %9122 = vmatmul.mubr.f32.vlgmr.msra.gmra.mrb[42].mxu1 %v14006_v17 }
 0x746   :  { %10669 = vmatpush1.bf16.msra.mxu0 %v13833_v55  ;;  %10700 = vmatpush3.bf16.msra.mxu1 %v13836_v45  ;;  %v10705_v55 = vpack.c.bf16 %v3854_v31, %v3851_v20  ;;  %v3857_v45 = vld [vmem:[#allocation10 + $0xa0] sm:$0xff] }
 0x747   :  { %10671 = vmatprep.subr.bf16.mxu0 %v13840_v57  ;;  %10701 = vmatprep.subr.bf16.mxu1 %v15181_v35  ;;  %v3860_v57 = vld [vmem:[#allocation10 + $0xb8] sm:$0xff] }
 0x748   :  { %3949 = vmatprep.mubr.f32.mxu0 %v15182_v9  ;;  %9156 = vmatprep.mubr.msk.f32.mxu1 %vm12642_vm0, %v15182_v9 }
 0x74a   :  { %10673 = vmatpush1.bf16.msra.mxu0 %v13843_v34  ;;  %10703 = vmatpush3.bf16.msra.mxu1 %v13846_v24  ;;  %v10708_v34 = vpack.c.bf16 %v3860_v57, %v3857_v45 }
 0x74b   :  { %10675 = vmatprep.subr.bf16.mxu0 %v13850_v50  ;;  %10704 = vmatprep.subr.bf16.mxu1 %v15181_v35 }
 0x74e   :  { %10677 = vmatpush1.bf16.msra.mxu0 %v13853_v6  ;;  %10706 = vmatpush3.bf16.msra.mxu1 %v10705_v55 }
 0x74f   :  { %10679 = vmatprep.subr.bf16.mxu0 %v13858_v47  ;;  %10707 = vmatprep.subr.bf16.mxu1 %v15181_v35 }
 0x752   :  { %10681 = vmatpush1.bf16.msra.mxu0 %v13861_v16  ;;  %10709 = vmatpush3.bf16.msra.mxu1 %v10708_v34 }
 0x753   :  { %10683 = vmatprep.subr.bf16.mxu0 %v13866_v18  ;;  %10710 = vmatprep.subr.bf16.mxu1 %v15181_v35 }
 0x756   :  { %10685 = vmatpush1.bf16.msra.mxu0 %v13869_v63  ;;  %10712 = vmatpush3.bf16.msra.mxu1 %v13872_v22 }
 0x757   :  { %10687 = vmatprep.subr.bf16.mxu0 %v13876_v44  ;;  %10713 = vmatprep.subr.bf16.mxu1 %v15181_v35 }
 0x75a   :  { %10689 = vmatpush1.bf16.msra.mxu0 %v13879_v14  ;;  %10715 = vmatpush3.bf16.msra.mxu1 %v13882_v37 }
 0x75b   :  { %10691 = vmatprep.subr.bf16.mxu0 %v13886_v0  ;;  %10716 = vmatprep.subr.bf16.mxu1 %v15181_v35 }
 0x75e   :  { %10693 = vmatpush1.bf16.msra.mxu0 %v13889_v1  ;;  %10718 = vmatpush3.bf16.msra.mxu1 %v13892_v7 }
 0x75f   :  { %10695 = vmatprep.subr.bf16.mxu0 %v13896_v32  ;;  %10719 = vmatprep.subr.bf16.mxu1 %v15181_v35 }
 0x762   :  { %10697 = vmatpush1.bf16.msra.mxu0 %v13899_v42  ;;  %10721 = vmatpush3.bf16.msra.mxu1 %v13902_v54  ;;  %v15210_v42 = vld [vmem:[#allocation32_spill] sm:$0xff] }
 0x763   :  { %10723 = vmatprep.subr.bf16.mxu0 %v13906_v19  ;;  %10754 = vmatprep.subr.bf16.mxu1 %v15181_v35 }
 0x7f8   :  { %v3523_v24 = vpop.f32.mrb[12].mxu0  ;;  %v3594_v50 = vpop.f32.mrb[40].mxu1 }
 0x7f9   :  { %v11891_v6 = vadd.f32 %v13206_v40, %v3523_v24  ;;  %v3525_v47 = vpop.f32.mrb[13].mxu0  ;;  %v9088_v16 = vpop.f32.mrb[41].mxu1  ;;  %v3595_v1 = vadd.f32 %v3594_v50, %v13213_v8 }
 0x7fa   :  { %v11893_v63 = vadd.f32 %v13208_v10, %v3525_v47  ;;  %v4282_v47 = vld [vmem:[#allocation14 + $0x38] sm:$0xff]  ;;  %v4285_v16 = vld [vmem:[#allocation14 + $0x50] sm:$0xff] }
 0x7fb   :  { %v7802_v18 = vmul.f32 -1.442695, %v11891_v6 }
 0x7fc   :  { %v7803_v22 = vmul.f32 -1.442695, %v11893_v63  ;;  %v4284_v63 = vld [vmem:[#allocation14 + $0x48] sm:$0xff] }
 0x7fd   :  { %12195 = vpow2.f32 %v7802_v18  ;;  %v10782_v18 = vpack.c.bf16 %v4285_v16, %v4282_v47  ;;  %v4326_v47 = vld [vmem:[#allocation14 + $0x198] sm:$0xff] }
 0x7fe   :  { %12197 = vpow2.f32 %v7803_v22  ;;  %v4288_v22 = vld [vmem:[#allocation14 + $0x68] sm:$0xff] }
 0x807   :  { %v12196_v44 = vpop.eup %12195 }
 0x808   :  { %v3791_v14 = vadd.f32 1.0, %v12196_v44  ;;  %v12198_v37 = vpop.eup %12197  ;;  %v4291_v44 = vld [vmem:[#allocation14 + $0x80] sm:$0xff] }
 0x809   :  { %v3798_v0 = vadd.f32 1.0, %v12198_v37  ;;  %v4287_v37 = vld [vmem:[#allocation14 + $0x60] sm:$0xff] }
 0x80a   :  { %12199 = vrcp.f32 %v3791_v14  ;;  %v10786_v14 = vpack.c.bf16 %v4291_v44, %v4288_v22  ;;  %v4330_v22 = vld [vmem:[#allocation14 + $0x1b8] sm:$0xff]  ;;  %v4333_v44 = vld [vmem:[#allocation14 + $0x1d0] sm:$0xff] }
 0x80b   :  { %12201 = vrcp.f32 %v3798_v0  ;;  %v4290_v0 = vld [vmem:[#allocation14 + $0x78] sm:$0xff] }
 0x814   :  { %v12200_v7 = vpop.eup %12199 }
 0x815   :  { %v3801_v32 = vmul.f32 %v12200_v7, %v3595_v1  ;;  %v12202_v46 = vpop.eup %12201  ;;  %v10788_v1 = vpack.c.bf16 %v4290_v0, %v4287_v37  ;;  %v4294_v7 = vld [vmem:[#allocation14 + $0x98] sm:$0xff]  ;;  %v10814_v37 = vpack.c.bf16 %v4333_v44, %v4330_v22 }
 0x816   :  { %v3804_v20 = vsub.f32 1.0, %v12202_v46  ;;  %v3806_v45 = vmul.f32 %v12202_v46, %v13923_v29  ;;  %v4286_v0 = vld [vmem:[#allocation14 + $0x58] sm:$0xff] }
 0x817   :  { %v3802_v54 = vadd.f32 %v3801_v32, %v15210_v42  ;;  %v4297_v32 = vld [vmem:[#allocation14 + $0xb0] sm:$0xff]  ;;  %v4310_v22 = vld [vmem:[#allocation14 + $0x118] sm:$0xff] }
 0x818   :  { %v3712_v19 = vpop.f32.mrb[18].mxu0  ;;  %v3783_v61 = vpop.f32.mrb[42].mxu1  ;;  %v10790_v42 = vpack.c.bf16 %v4297_v32, %v4294_v7  ;;  %v4332_v7 = vld [vmem:[#allocation14 + $0x1c8] sm:$0xff] }
 0x819   :  { %12203 = vtanh.f32 %v3802_v54  ;;  %v11903_v15 = vadd.f32 %v13224_v39, %v3712_v19  ;;  %v3714_v60 = vpop.f32.mrb[19].mxu0  ;;  %v9123_v27 = vpop.f32.mrb[43].mxu1  ;;  %v4293_v54 = vld [vmem:[#allocation14 + $0x90] sm:$0xff]  ;;  %v4296_v19 = vld [vmem:[#allocation14 + $0xa8] sm:$0xff] }
 0x81a   :  { %v11905_v36 = vadd.f32 %v13226_v26, %v3714_v60  ;;  %v4303_v60 = vld [vmem:[#allocation14 + $0xe0] sm:$0xff] }
 0x81b   :  { %v7804_v49 = vmul.f32 -1.442695, %v11903_v15  ;;  %v4300_v15 = vld [vmem:[#allocation14 + $0xc8] sm:$0xff] }
 0x81c   :  { %v7805_v28 = vmul.f32 -1.442695, %v11905_v36  ;;  %v10794_v27 = vpack.c.bf16 %v4303_v60, %v4300_v15  ;;  %v4302_v36 = vld [vmem:[#allocation14 + $0xd8] sm:$0xff]  ;;  %v4336_v15 = vld [vmem:[#allocation14 + $0x1e8] sm:$0xff]  ;;  %v4339_v60 = vld [vmem:[#allocation14 + $0x200] sm:$0xff] }
 0x81d   :  { %12205 = vpow2.f32 %v7804_v49  ;;  %v4299_v49 = vld [vmem:[#allocation14 + $0xc0] sm:$0xff] }
 0x81e   :  { %12207 = vpow2.f32 %v7805_v28  ;;  %v10796_v46 = vpack.c.bf16 %v4302_v36, %v4299_v49  ;;  %v4306_v28 = vld [vmem:[#allocation14 + $0xf8] sm:$0xff]  ;;  %v10818_v49 = vpack.c.bf16 %v4339_v60, %v4336_v15  ;;  %v4292_v36 = vld [vmem:[#allocation14 + $0x88] sm:$0xff]  ;;  %v4313_v15 = vld [vmem:[#allocation14 + $0x130] sm:$0xff] }
 0x81f   :  { %v4316_v60 = vld [vmem:[#allocation14 + $0x148] sm:$0xff] }
 0x823   :  { %v12204_v31 = vpop.eup %12203 }
 0x824   :  { %v3805_v55 = vmul.f32 %v12204_v31, %v3804_v20  ;;  %v4309_v20 = vld [vmem:[#allocation14 + $0x110] sm:$0xff] }
 0x825   :  { %v10798_v31 = vpack.c.bf16 %v4309_v20, %v4306_v28  ;;  %v4338_v28 = vld [vmem:[#allocation14 + $0x1f8] sm:$0xff] }
 0x826   :  { %v14052_v57 = vadd.f32 %v3806_v45, %v3805_v55  ;;  %v4305_v55 = vld [vmem:[#allocation14 + $0xf0] sm:$0xff]  ;;  %v4308_v45 = vld [vmem:[#allocation14 + $0x108] sm:$0xff] }
 0x827   :  { %v12206_v34 = vpop.eup %12205 }
 0x828   :  { %v3812_v24 = vadd.f32 1.0, %v12206_v34  ;;  %3950 = vmatmul.mubr.f32.vlgmr.msra.gmra.mrb[14].mxu0 %v14052_v57  ;;  %9157 = vmatmul.mubr.f32.vlgmr.msra.gmra.mrb[44].mxu1 %v14052_v57  ;;  %v12208_v50 = vpop.eup %12207  ;;  %v10800_v34 = vpack.c.bf16 %v4308_v45, %v4305_v55  ;;  %v4343_v55 = vld [vmem:[#allocation14 + $0x220] sm:$0xff]  ;;  %v4346_v45 = vld [vmem:[#allocation14 + $0x238] sm:$0xff] }
 0x829   :  { %10725 = vmatpush1.bf16.msra.mxu0 %v13919_v52  ;;  %10756 = vmatpush3.bf16.msra.mxu1 %v13921_v23  ;;  %v3819_v52 = vadd.f32 1.0, %v12208_v50  ;;  %v3784_v23 = vadd.f32 %v3783_v61, %v13244_v41  ;;  %v10792_v61 = vpack.c.bf16 %v4296_v19, %v4293_v54  ;;  %v4315_v50 = vld [vmem:[#allocation14 + $0x140] sm:$0xff]  ;;  %v4337_v54 = vld [vmem:[#allocation14 + $0x1f0] sm:$0xff]  ;;  %v4340_v19 = vld [vmem:[#allocation14 + $0x208] sm:$0xff] }
 0x82a   :  { %12209 = vrcp.f32 %v3812_v24  ;;  %10727 = vmatprep.subr.bf16.mxu0 %v13925_v2  ;;  %10757 = vmatprep.subr.bf16.mxu1 %v15181_v35  ;;  %v4312_v24 = vld [vmem:[#allocation14 + $0x128] sm:$0xff] }
 0x82b   :  { %4138 = vmatprep.mubr.f32.mxu0 %v15182_v9  ;;  %9191 = vmatprep.mubr.msk.f32.mxu1 %vm12642_vm0, %v15182_v9  ;;  %12211 = vrcp.f32 %v3819_v52  ;;  %v10802_v52 = vpack.c.bf16 %v4315_v50, %v4312_v24  ;;  %v4342_v24 = vld [vmem:[#allocation14 + $0x218] sm:$0xff]  ;;  %v4345_v50 = vld [vmem:[#allocation14 + $0x230] sm:$0xff] }
 0x82d   :  { %10729 = vmatpush1.bf16.msra.mxu0 %v13931_v13  ;;  %10759 = vmatpush3.bf16.msra.mxu1 %v13933_v38  ;;  %v15211_v38 = vld [vmem:[#allocation33_spill] sm:$0xff] }
 0x82e   :  { %10731 = vmatprep.subr.bf16.mxu0 %v13937_v3  ;;  %10760 = vmatprep.subr.bf16.mxu1 %v15181_v35 }
 0x831   :  { %10733 = vmatpush1.bf16.msra.mxu0 %v13944_v48  ;;  %10762 = vmatpush3.bf16.msra.mxu1 %v13946_v4  ;;  %v15212_v48 = vld [vmem:[#allocation30_spill] sm:$0xff]  ;;  %v15213_v4 = vld [vmem:[#allocation35_spill] sm:$0xff] }
 0x832   :  { %10735 = vmatprep.subr.bf16.mxu0 %v13950_v58  ;;  %10763 = vmatprep.subr.bf16.mxu1 %v15181_v35 }
 0x834   :  { %v12210_v2 = vpop.eup %12209 }
 0x835   :  { %v3822_v13 = vmul.f32 %v12210_v2, %v3784_v23  ;;  %10737 = vmatpush1.bf16.msra.mxu0 %v13954_v25  ;;  %10765 = vmatpush3.bf16.msra.mxu1 %v13956_v11  ;;  %v12212_v58 = vpop.eup %12211  ;;  %v4311_v23 = vld [vmem:[#allocation14 + $0x120] sm:$0xff]  ;;  %v4314_v2 = vld [vmem:[#allocation14 + $0x138] sm:$0xff] }
 0x836   :  { %10739 = vmatprep.subr.bf16.mxu0 %v13960_v33  ;;  %10766 = vmatprep.subr.bf16.mxu1 %v15181_v35  ;;  %v3825_v25 = vsub.f32 1.0, %v12212_v58 }
 0x837   :  { %v3823_v3 = vadd.f32 %v3822_v13, %v15211_v38  ;;  %v10804_v13 = vpack.c.bf16 %v4314_v2, %v4311_v23  ;;  %v4318_v38 = vld [vmem:[#allocation14 + $0x158] sm:$0xff]  ;;  %v10822_v23 = vpack.c.bf16 %v4345_v50, %v4342_v24 }
 0x838   :  { %v4298_v2 = vld [vmem:[#allocation14 + $0xb8] sm:$0xff] }
 0x839   :  { %12213 = vtanh.f32 %v3823_v3  ;;  %10741 = vmatpush1.bf16.msra.mxu0 %v13966_v5  ;;  %10768 = vmatpush3.bf16.msra.mxu1 %v13968_v62  ;;  %v3827_v5 = vmul.f32 %v12212_v58, %v14006_v17  ;;  %v4321_v3 = vld [vmem:[#allocation14 + $0x170] sm:$0xff]  ;;  %v4320_v58 = vld [vmem:[#allocation14 + $0x168] sm:$0xff]  ;;  %v4322_v50 = vld [vmem:[#allocation14 + $0x178] sm:$0xff] }
 0x83a   :  { %10743 = vmatprep.subr.bf16.mxu0 %v15212_v48  ;;  %10769 = vmatprep.subr.bf16.mxu1 %v15181_v35  ;;  %v10806_v48 = vpack.c.bf16 %v4321_v3, %v4318_v38  ;;  %v4344_v38 = vld [vmem:[#allocation14 + $0x228] sm:$0xff] }
 0x83d   :  { %10745 = vmatpush1.bf16.msra.mxu0 %v13977_v12  ;;  %10771 = vmatpush3.bf16.msra.mxu1 %v15213_v4  ;;  %v4276_v12 = vld [vmem:[#allocation14 + $0x8] sm:$0xff]  ;;  %v4317_v4 = vld [vmem:[#allocation14 + $0x150] sm:$0xff] }
 0x83e   :  { %10747 = vmatprep.subr.bf16.mxu0 %v13983_v53  ;;  %10772 = vmatprep.subr.bf16.mxu1 %v15181_v35  ;;  %v4279_v53 = vld [vmem:[#allocation14 + $0x20] sm:$0xff] }
 0x841   :  { %10749 = vmatpush1.bf16.msra.mxu0 %v13987_v59  ;;  %10774 = vmatpush3.bf16.msra.mxu1 %v13989_v51  ;;  %v10778_v59 = vpack.c.bf16 %v4279_v53, %v4276_v12  ;;  %v4275_v51 = vld [vmem:[#allocation14] sm:$0xff]  ;;  %v4324_v12 = vld [vmem:[#allocation14 + $0x188] sm:$0xff] }
 0x842   :  { %10751 = vmatprep.subr.bf16.mxu0 %v13993_v21  ;;  %10775 = vmatprep.subr.bf16.mxu1 %v15181_v35  ;;  %v4278_v21 = vld [vmem:[#allocation14 + $0x18] sm:$0xff]  ;;  %v4327_v53 = vld [vmem:[#allocation14 + $0x1a0] sm:$0xff] }
 0x843   :  { %v12214_v11 = vpop.eup %12213  ;;  %v10780_v6 = vpack.c.bf16 %v4278_v21, %v4275_v51  ;;  %v10810_v51 = vpack.c.bf16 %v4327_v53, %v4324_v12  ;;  %v4280_v21 = vld [vmem:[#allocation14 + $0x28] sm:$0xff] }
 0x844   :  { %v3826_v33 = vmul.f32 %v12214_v11, %v3825_v25  ;;  %v10808_v25 = vpack.c.bf16 %v4320_v58, %v4317_v4  ;;  %v4325_v11 = vld [vmem:[#allocation14 + $0x190] sm:$0xff]  ;;  %v4352_v58 = vld [vmem:[#allocation14 + $0x268] sm:$0xff] }
 0x845   :  { %10753 = vmatpush1.bf16.msra.mxu0 %v13997_v30  ;;  %10777 = vmatpush3.bf16.msra.mxu1 %v13999_v56  ;;  %v4281_v30 = vld [vmem:[#allocation14 + $0x30] sm:$0xff]  ;;  %v4304_v53 = vld [vmem:[#allocation14 + $0xe8] sm:$0xff] }
 0x846   :  { %v14092_v62 = vadd.f32 %v3827_v5, %v3826_v33  ;;  %10779 = vmatprep.subr.bf16.mxu0 %v10778_v59  ;;  %v10784_v56 = vpack.c.bf16 %v4284_v63, %v4281_v30  ;;  %v4328_v33 = vld [vmem:[#allocation14 + $0x1a8] sm:$0xff]  ;;  %v4277_v59 = vld [vmem:[#allocation14 + $0x10] sm:$0xff]  ;;  %v4331_v30 = vld [vmem:[#allocation14 + $0x1c0] sm:$0xff] }
 0x847   :  { %v10842_v5 = vpack.c.bf16 %v4328_v33, %v4325_v11  ;;  %v10844_v16 = vpack.c.bf16 %v4280_v21, %v4277_v59  ;;  %v4334_v63 = vld [vmem:[#allocation14 + $0x1d8] sm:$0xff]  ;;  %v4349_v4 = vld [vmem:[#allocation14 + $0x250] sm:$0xff]  ;;  %v4348_v11 = vld [vmem:[#allocation14 + $0x248] sm:$0xff] }
 0x848   :  { %4139 = vmatmul.mubr.f32.vlgmr.msra.gmra.mrb[16].mxu0 %v14092_v62  ;;  %9192 = vmatmul.mubr.f32.vlgmr.msra.gmra.mrb[46].mxu1 %v14092_v62  ;;  %v4351_v33 = vld [vmem:[#allocation14 + $0x260] sm:$0xff] }
 0x849   :  { %10781 = vmatpush1.bf16.msra.mxu0 %v10780_v6  ;;  %v4323_v6 = vld [vmem:[#allocation14 + $0x180] sm:$0xff]  ;;  %10843 = vmatprep.subr.bf16.mxu1 %v10842_v5  ;;  %v4301_v5 = vld [vmem:[#allocation14 + $0xd0] sm:$0xff]  ;;  %v10826_v12 = vpack.c.bf16 %v4351_v33, %v4348_v11 }
 0x84a   :  { %10783 = vmatprep.subr.bf16.mxu0 %v10782_v18  ;;  %v10812_v18 = vpack.c.bf16 %v4326_v47, %v4323_v6  ;;  %10845 = vmatpush3.bf16.msra.mxu1 %v10844_v16  ;;  %v4347_v59 = vld [vmem:[#allocation14 + $0x240] sm:$0xff]  ;;  %v10860_v21 = vpack.c.bf16 %v4304_v53, %v4301_v5  ;;  %v4358_v16 = vld [vmem:[#allocation14 + $0x298] sm:$0xff] }
 0x84b   :  { %v4355_v47 = vld [vmem:[#allocation14 + $0x280] sm:$0xff] }
 0x84d   :  { %10785 = vmatpush1.bf16.msra.mxu0 %v10784_v56  ;;  %v10846_v56 = vpack.c.bf16 %v4334_v63, %v4331_v30  ;;  %v10862_v30 = vpack.c.bf16 %v4358_v16, %v4355_v47  ;;  %v4357_v63 = vld [vmem:[#allocation14 + $0x290] sm:$0xff] }
 0x84e   :  { %10787 = vmatprep.subr.bf16.mxu0 %v10786_v14  ;;  %v4283_v14 = vld [vmem:[#allocation14 + $0x40] sm:$0xff] }
 0x84f   :  { %10847 = vmatprep.subr.bf16.mxu1 %v10846_v56  ;;  %v10848_v32 = vpack.c.bf16 %v4286_v0, %v4283_v14  ;;  %v4307_v56 = vld [vmem:[#allocation14 + $0x100] sm:$0xff]  ;;  %v4356_v0 = vld [vmem:[#allocation14 + $0x288] sm:$0xff] }
 0x850   :  { %v10864_v14 = vpack.c.bf16 %v4310_v22, %v4307_v56  ;;  %v15214_v22 = vld [vmem:[#allocation31_spill] sm:$0xff] }
 0x851   :  { %10789 = vmatpush1.bf16.msra.mxu0 %v10788_v1  ;;  %v4329_v1 = vld [vmem:[#allocation14 + $0x1b0] sm:$0xff]  ;;  %10849 = vmatpush3.bf16.msra.mxu1 %v10848_v32  ;;  %v4364_v32 = vld [vmem:[#allocation14 + $0x2c8] sm:$0xff] }
 0x852   :  { %10791 = vmatprep.subr.bf16.mxu0 %v10790_v42  ;;  %v10816_v42 = vpack.c.bf16 %v4332_v7, %v4329_v1  ;;  %v4361_v1 = vld [vmem:[#allocation14 + $0x2b0] sm:$0xff] }
 0x855   :  { %10793 = vmatpush1.bf16.msra.mxu0 %v10792_v61  ;;  %v10850_v61 = vpack.c.bf16 %v4340_v19, %v4337_v54  ;;  %v4363_v54 = vld [vmem:[#allocation14 + $0x2c0] sm:$0xff]  ;;  %v10866_v19 = vpack.c.bf16 %v4364_v32, %v4361_v1 }
 0x856   :  { %10795 = vmatprep.subr.bf16.mxu0 %v10794_v27  ;;  %v4289_v27 = vld [vmem:[#allocation14 + $0x70] sm:$0xff] }
 0x857   :  { %10851 = vmatprep.subr.bf16.mxu1 %v10850_v61  ;;  %v10852_v20 = vpack.c.bf16 %v4292_v36, %v4289_v27  ;;  %v4359_v27 = vld [vmem:[#allocation14 + $0x2a0] sm:$0xff]  ;;  %v4362_v36 = vld [vmem:[#allocation14 + $0x2b8] sm:$0xff] }
 0x859   :  { %10797 = vmatpush1.bf16.msra.mxu0 %v10796_v46  ;;  %v4335_v46 = vld [vmem:[#allocation14 + $0x1e0] sm:$0xff]  ;;  %10853 = vmatpush3.bf16.msra.mxu1 %v10852_v20  ;;  %v10836_v20 = vpack.c.bf16 %v4362_v36, %v4359_v27 }
 0x85a   :  { %10799 = vmatprep.subr.bf16.mxu0 %v10798_v31  ;;  %v10820_v31 = vpack.c.bf16 %v4338_v28, %v4335_v46  ;;  %v4367_v46 = vld [vmem:[#allocation14 + $0x2e0] sm:$0xff]  ;;  %v4370_v28 = vld [vmem:[#allocation14 + $0x2f8] sm:$0xff] }
 0x85d   :  { %10801 = vmatpush1.bf16.msra.mxu0 %v10800_v34  ;;  %v10854_v34 = vpack.c.bf16 %v4346_v45, %v4343_v55  ;;  %v4366_v55 = vld [vmem:[#allocation14 + $0x2d8] sm:$0xff]  ;;  %v4369_v45 = vld [vmem:[#allocation14 + $0x2f0] sm:$0xff] }
 0x85e   :  { %10803 = vmatprep.subr.bf16.mxu0 %v10802_v52  ;;  %v4295_v52 = vld [vmem:[#allocation14 + $0xa0] sm:$0xff]  ;;  %v10838_v24 = vpack.c.bf16 %v4369_v45, %v4366_v55 }
 0x85f   :  { %10855 = vmatprep.subr.bf16.mxu1 %v10854_v34  ;;  %v10856_v3 = vpack.c.bf16 %v4298_v2, %v4295_v52  ;;  %v4319_v34 = vld [vmem:[#allocation14 + $0x160] sm:$0xff]  ;;  %v4365_v52 = vld [vmem:[#allocation14 + $0x2d0] sm:$0xff] }
 0x860   :  { %v10872_v2 = vpack.c.bf16 %v4322_v50, %v4319_v34  ;;  %v4630_v34 = vld [vmem:[#allocation17] sm:$0xff] }
 0x861   :  { %10805 = vmatpush1.bf16.msra.mxu0 %v10804_v13  ;;  %v4341_v13 = vld [vmem:[#allocation14 + $0x210] sm:$0xff]  ;;  %10857 = vmatpush3.bf16.msra.mxu1 %v10856_v3  ;;  %v4634_v3 = vld [vmem:[#allocation17 + $0x20] sm:$0xff] }
 0x862   :  { %10807 = vmatprep.subr.bf16.mxu0 %v10806_v48  ;;  %v10824_v48 = vpack.c.bf16 %v4344_v38, %v4341_v13  ;;  %v4631_v38 = vld [vmem:[#allocation17 + $0x8] sm:$0xff] }
 0x865   :  { %10809 = vmatpush1.bf16.msra.mxu0 %v10808_v25  ;;  %v10858_v25 = vpack.c.bf16 %v4352_v58, %v4349_v4  ;;  %v4680_v4 = vld [vmem:[#allocation17 + $0x190] sm:$0xff]  ;;  %v4683_v58 = vld [vmem:[#allocation17 + $0x1a8] sm:$0xff] }
 0x866   :  { %10811 = vmatprep.subr.bf16.mxu0 %v10810_v51  ;;  %v4350_v51 = vld [vmem:[#allocation14 + $0x258] sm:$0xff] }
 0x867   :  { %10859 = vmatprep.subr.bf16.mxu1 %v10858_v25  ;;  %v10828_v6 = vpack.c.bf16 %v4350_v51, %v4347_v59  ;;  %v10938_v25 = vpack.c.bf16 %v4683_v58, %v4680_v4 }
 0x868   :  { %10861 = vmatpush3.bf16.msra.mxu1 %v10860_v21 }
 0x869   :  { %10813 = vmatpush1.bf16.msra.mxu0 %v10812_v18  ;;  %v4354_v18 = vld [vmem:[#allocation14 + $0x278] sm:$0xff]  ;;  %10863 = vmatprep.subr.bf16.mxu1 %v10862_v30 }
 0x86a   :  { %10815 = vmatprep.subr.bf16.mxu0 %v10814_v37  ;;  %v10830_v44 = vpack.c.bf16 %v4357_v63, %v4354_v18  ;;  %v4353_v37 = vld [vmem:[#allocation14 + $0x270] sm:$0xff] }
 0x86b   :  { %v10832_v7 = vpack.c.bf16 %v4356_v0, %v4353_v37 }
 0x86c   :  { %10865 = vmatpush3.bf16.msra.mxu1 %v10864_v14 }
 0x86d   :  { %10817 = vmatpush1.bf16.msra.mxu0 %v10816_v42  ;;  %v4360_v42 = vld [vmem:[#allocation14 + $0x2a8] sm:$0xff]  ;;  %10867 = vmatprep.subr.bf16.mxu1 %v10866_v19 }
 0x86e   :  { %10819 = vmatprep.subr.bf16.mxu0 %v10818_v49  ;;  %v10834_v61 = vpack.c.bf16 %v4363_v54, %v4360_v42  ;;  %v10868_v49 = vpack.c.bf16 %v4316_v60, %v4313_v15 }
 0x870   :  { %10869 = vmatpush3.bf16.msra.mxu1 %v10868_v49 }
 0x871   :  { %10821 = vmatpush1.bf16.msra.mxu0 %v10820_v31  ;;  %v10870_v31 = vpack.c.bf16 %v4370_v28, %v4367_v46  ;;  %v15215_v28 = vld [vmem:[#allocation34_spill] sm:$0xff] }
 0x872   :  { %10823 = vmatprep.subr.bf16.mxu0 %v10822_v23  ;;  %v4368_v23 = vld [vmem:[#allocation14 + $0x2e8] sm:$0xff] }
 0x873   :  { %v10840_v13 = vpack.c.bf16 %v4368_v23, %v4365_v52  ;;  %10871 = vmatprep.subr.bf16.mxu1 %v10870_v31  ;;  %v4632_v23 = vld [vmem:[#allocation17 + $0x10] sm:$0xff] }
 0x874   :  { %10873 = vmatpush3.bf16.msra.mxu1 %v10872_v2  ;;  %v4635_v2 = vld [vmem:[#allocation17 + $0x28] sm:$0xff] }
 0x875   :  { %10825 = vmatpush1.bf16.msra.mxu0 %v10824_v48  ;;  %v10874_v48 = vpack.c.bf16 %v4634_v3, %v4631_v38  ;;  %v4640_v38 = vld [vmem:[#allocation17 + $0x50] sm:$0xff]  ;;  %v4686_v3 = vld [vmem:[#allocation17 + $0x1c0] sm:$0xff]  ;;  %v10940_v58 = vpack.c.bf16 %v4635_v2, %v4632_v23 }
 0x876   :  { %10827 = vmatprep.subr.bf16.mxu0 %v10826_v12  ;;  %v4664_v23 = vld [vmem:[#allocation17 + $0x110] sm:$0xff]  ;;  %v4710_v2 = vld [vmem:[#allocation17 + $0x280] sm:$0xff] }
 0x877   :  { %10875 = vmatprep.subr.bf16.mxu1 %v10874_v48 }
 0x879   :  { %10829 = vmatpush1.bf16.msra.mxu0 %v10828_v6 }
 0x87a   :  { %10831 = vmatprep.subr.bf16.mxu0 %v10830_v44 }
 0x87d   :  { %10833 = vmatpush1.bf16.msra.mxu0 %v10832_v7 }
 0x87e   :  { %10835 = vmatprep.subr.bf16.mxu0 %v10834_v61 }
 0x881   :  { %10837 = vmatpush1.bf16.msra.mxu0 %v10836_v20 }
 0x882   :  { %10839 = vmatprep.subr.bf16.mxu0 %v10838_v24  ;;  %v4633_v24 = vld [vmem:[#allocation17 + $0x18] sm:$0xff] }
 0x883   :  { %v10876_v4 = vpack.c.bf16 %v4633_v24, %v4630_v34  ;;  %v4656_v34 = vld [vmem:[#allocation17 + $0xd0] sm:$0xff]  ;;  %v4659_v24 = vld [vmem:[#allocation17 + $0xe8] sm:$0xff] }
 0x885   :  { %10841 = vmatpush1.bf16.msra.mxu0 %v10840_v13  ;;  %v4637_v13 = vld [vmem:[#allocation17 + $0x38] sm:$0xff] }
 0x886   :  { %10939 = vmatprep.subr.bf16.mxu0 %v10938_v25  ;;  %v4636_v25 = vld [vmem:[#allocation17 + $0x30] sm:$0xff] }
 0x8fb   :  { %v3951_v11 = vpop.f32.mrb[14].mxu0  ;;  %v4022_v33 = vpop.f32.mrb[44].mxu1 }
 0x8fc   :  { %v11895_v5 = vadd.f32 %v13206_v40, %v3951_v11  ;;  %v3953_v12 = vpop.f32.mrb[15].mxu0  ;;  %v9158_v53 = vpop.f32.mrb[45].mxu1  ;;  %v4023_v30 = vadd.f32 %v4022_v33, %v13213_v8  ;;  %v4639_v11 = vld [vmem:[#allocation17 + $0x48] sm:$0xff]  ;;  %v10878_v33 = vpack.c.bf16 %v4640_v38, %v4637_v13  ;;  %v4713_v13 = vld [vmem:[#allocation17 + $0x298] sm:$0xff] }
 0x8fd   :  { %v11897_v51 = vadd.f32 %v13208_v10, %v3953_v12  ;;  %v4638_v12 = vld [vmem:[#allocation17 + $0x40] sm:$0xff]  ;;  %v4641_v53 = vld [vmem:[#allocation17 + $0x58] sm:$0xff]  ;;  %v15220_v38 = vld [vmem:[#allocation28_spill] sm:$0xff] }
 0x8fe   :  { %v7806_v59 = vmul.f32 -1.442695, %v11895_v5 }
 0x8ff   :  { %v7807_v21 = vmul.f32 -1.442695, %v11897_v51  ;;  %v15216_v51 = vld [vmem:[#allocation41_spill] sm:$0xff] }
 0x900   :  { %12215 = vpow2.f32 %v7806_v59  ;;  %v4643_v59 = vld [vmem:[#allocation17 + $0x68] sm:$0xff] }
 0x901   :  { %12217 = vpow2.f32 %v7807_v21  ;;  %v4646_v21 = vld [vmem:[#allocation17 + $0x80] sm:$0xff] }
 0x90a   :  { %v12216_v6 = vpop.eup %12215 }
 0x90b   :  { %v4219_v47 = vadd.f32 1.0, %v12216_v6  ;;  %v12218_v16 = vpop.eup %12217  ;;  %v4692_v6 = vld [vmem:[#allocation17 + $0x1f0] sm:$0xff] }
 0x90c   :  { %v4226_v18 = vadd.f32 1.0, %v12218_v16  ;;  %v10880_v16 = vpack.c.bf16 %v4639_v11, %v4636_v25  ;;  %v10958_v11 = vpack.c.bf16 %v4713_v13, %v4710_v2  ;;  %v4685_v2 = vld [vmem:[#allocation17 + $0x1b8] sm:$0xff]  ;;  %v4688_v13 = vld [vmem:[#allocation17 + $0x1d0] sm:$0xff] }
 0x90d   :  { %12219 = vrcp.f32 %v4219_v47  ;;  %v4695_v47 = vld [vmem:[#allocation17 + $0x208] sm:$0xff] }
 0x90e   :  { %12221 = vrcp.f32 %v4226_v18  ;;  %v10944_v18 = vpack.c.bf16 %v4641_v53, %v4638_v12  ;;  %v4667_v12 = vld [vmem:[#allocation17 + $0x128] sm:$0xff]  ;;  %v15221_v53 = vld [vmem:[#allocation38_spill] sm:$0xff] }
 0x917   :  { %v12220_v63 = vpop.eup %12219 }
 0x918   :  { %v4229_v56 = vmul.f32 %v12220_v63, %v4023_v30  ;;  %v12222_v32 = vpop.eup %12221  ;;  %v4642_v30 = vld [vmem:[#allocation17 + $0x60] sm:$0xff]  ;;  %v4645_v63 = vld [vmem:[#allocation17 + $0x78] sm:$0xff] }
 0x919   :  { %v4232_v54 = vsub.f32 1.0, %v12222_v32  ;;  %v4234_v61 = vmul.f32 %v12222_v32, %v14052_v57 }
 0x91a   :  { %v4230_v40 = vadd.f32 %v4229_v56, %v15214_v22  ;;  %v10882_v56 = vpack.c.bf16 %v4646_v21, %v4643_v59  ;;  %v10946_v22 = vpack.c.bf16 %v4695_v47, %v4692_v6  ;;  %v4670_v59 = vld [vmem:[#allocation17 + $0x140] sm:$0xff]  ;;  %v4716_v21 = vld [vmem:[#allocation17 + $0x2b0] sm:$0xff]  ;;  %v4719_v6 = vld [vmem:[#allocation17 + $0x2c8] sm:$0xff] }
 0x91b   :  { %v4140_v44 = vpop.f32.mrb[16].mxu0  ;;  %v4211_v14 = vpop.f32.mrb[46].mxu1  ;;  %v15222_v47 = vld [vmem:[#allocation37_spill] sm:$0xff] }
 0x91c   :  { %12223 = vtanh.f32 %v4230_v40  ;;  %v11899_v10 = vadd.f32 %v13224_v39, %v4140_v44  ;;  %v4142_v37 = vpop.f32.mrb[17].mxu0  ;;  %v9193_v0 = vpop.f32.mrb[47].mxu1  ;;  %v4644_v40 = vld [vmem:[#allocation17 + $0x70] sm:$0xff]  ;;  %v4647_v44 = vld [vmem:[#allocation17 + $0x88] sm:$0xff] }
 0x91d   :  { %v11901_v7 = vadd.f32 %v13226_v26, %v4142_v37  ;;  %v4212_v26 = vadd.f32 %v4211_v14, %v13244_v41  ;;  %v4689_v41 = vld [vmem:[#allocation17 + $0x1d8] sm:$0xff]  ;;  %v4652_v37 = vld [vmem:[#allocation17 + $0xb0] sm:$0xff]  ;;  %v4698_v0 = vld [vmem:[#allocation17 + $0x220] sm:$0xff]  ;;  %v10948_v32 = vpack.c.bf16 %v4647_v44, %v4644_v40 }
 0x91e   :  { %v7808_v1 = vmul.f32 -1.442695, %v11899_v10  ;;  %v10942_v5 = vpack.c.bf16 %v4689_v41, %v4686_v3  ;;  %v4649_v14 = vld [vmem:[#allocation17 + $0x98] sm:$0xff]  ;;  %v15217_v10 = vld [vmem:[#allocation43_spill] sm:$0xff]  ;;  %v10956_v41 = vpack.c.bf16 %v4659_v24, %v4656_v34  ;;  %v4668_v40 = vld [vmem:[#allocation17 + $0x130] sm:$0xff] }
 0x91f   :  { %v7809_v42 = vmul.f32 -1.442695, %v11901_v7  ;;  %v10884_v7 = vpack.c.bf16 %v4645_v63, %v4642_v30  ;;  %v4666_v30 = vld [vmem:[#allocation17 + $0x120] sm:$0xff]  ;;  %v4669_v63 = vld [vmem:[#allocation17 + $0x138] sm:$0xff]  ;;  %v4671_v44 = vld [vmem:[#allocation17 + $0x148] sm:$0xff] }
 0x920   :  { %12225 = vpow2.f32 %v7808_v1  ;;  %v4701_v1 = vld [vmem:[#allocation17 + $0x238] sm:$0xff] }
 0x921   :  { %12227 = vpow2.f32 %v7809_v42  ;;  %v4648_v42 = vld [vmem:[#allocation17 + $0x90] sm:$0xff] }
 0x926   :  { %v12224_v8 = vpop.eup %12223 }
 0x927   :  { %v4233_v19 = vmul.f32 %v12224_v8, %v4232_v54  ;;  %v4651_v54 = vld [vmem:[#allocation17 + $0xa8] sm:$0xff]  ;;  %v10886_v8 = vpack.c.bf16 %v4652_v37, %v4649_v14  ;;  %v4673_v14 = vld [vmem:[#allocation17 + $0x158] sm:$0xff]  ;;  %v4676_v37 = vld [vmem:[#allocation17 + $0x170] sm:$0xff] }
 0x929   :  { %v14103_v15 = vadd.f32 %v4234_v61, %v4233_v19  ;;  %v10950_v19 = vpack.c.bf16 %v4701_v1, %v4698_v0  ;;  %v4650_v61 = vld [vmem:[#allocation17 + $0xa0] sm:$0xff]  ;;  %v4725_v1 = vld [vmem:[#allocation17 + $0x2f8] sm:$0xff] }
 0x92a   :  { %v12226_v60 = vpop.eup %12225  ;;  %v4722_v0 = vld [vmem:[#allocation17 + $0x2e0] sm:$0xff] }
 0x92b   :  { %v4240_v27 = vadd.f32 1.0, %v12226_v60  ;;  %7755 = vst [vmem:[#allocation20] sm:$0xff] %v14103_v15  ;;  %v12228_v39 = vpop.eup %12227  ;;  %v4653_v60 = vld [vmem:[#allocation17 + $0xb8] sm:$0xff] }
 0x92c   :  { %v4247_v49 = vadd.f32 1.0, %v12228_v39  ;;  %v15218_v39 = vld [vmem:[#allocation48_spill] sm:$0xff] }
 0x92d   :  { %12229 = vrcp.f32 %v4240_v27  ;;  %v4655_v27 = vld [vmem:[#allocation17 + $0xc8] sm:$0xff] }
 0x92e   :  { %12231 = vrcp.f32 %v4247_v49  ;;  %v4658_v49 = vld [vmem:[#allocation17 + $0xe0] sm:$0xff] }
 0x937   :  { %v12230_v36 = vpop.eup %12229 }
 0x938   :  { %v4250_v46 = vmul.f32 %v12230_v36, %v4212_v26  ;;  %v12232_v31 = vpop.eup %12231  ;;  %v4704_v26 = vld [vmem:[#allocation17 + $0x250] sm:$0xff]  ;;  %v4707_v36 = vld [vmem:[#allocation17 + $0x268] sm:$0xff] }
 0x939   :  { %v4253_v55 = vsub.f32 1.0, %v12232_v31  ;;  %v4255_v52 = vmul.f32 %v12232_v31, %v14092_v62  ;;  %v4657_v31 = vld [vmem:[#allocation17 + $0xd8] sm:$0xff] }
 0x93a   :  { %v4251_v20 = vadd.f32 %v4250_v46, %v15215_v28  ;;  %v10888_v46 = vpack.c.bf16 %v4651_v54, %v4648_v42  ;;  %v10952_v28 = vpack.c.bf16 %v4653_v60, %v4650_v61  ;;  %v10964_v42 = vpack.c.bf16 %v4671_v44, %v4668_v40  ;;  %v4672_v54 = vld [vmem:[#allocation17 + $0x150] sm:$0xff]  ;;  %v4674_v60 = vld [vmem:[#allocation17 + $0x160] sm:$0xff] }
 0x93b   :  { %v10966_v61 = vpack.c.bf16 %v4725_v1, %v4722_v0  ;;  %v5037_v44 = vld [vmem:[#allocation16 + $0x60] sm:$0xff]  ;;  %v4700_v0 = vld [vmem:[#allocation17 + $0x230] sm:$0xff]  ;;  %v5044_v1 = vld [vmem:[#allocation16 + $0x98] sm:$0xff] }
 0x93c   :  { %12233 = vtanh.f32 %v4251_v20  ;;  %v4654_v20 = vld [vmem:[#allocation17 + $0xc0] sm:$0xff] }
 0x93d   :  { %v10892_v3 = vpack.c.bf16 %v4657_v31, %v4654_v20 }
 0x946   :  { %v12234_v45 = vpop.eup %12233 }
 0x947   :  { %v4254_v50 = vmul.f32 %v12234_v45, %v4253_v55  ;;  %v10890_v55 = vpack.c.bf16 %v4658_v49, %v4655_v27  ;;  %v10954_v45 = vpack.c.bf16 %v4707_v36, %v4704_v26  ;;  %v4677_v27 = vld [vmem:[#allocation17 + $0x178] sm:$0xff]  ;;  %v4679_v49 = vld [vmem:[#allocation17 + $0x188] sm:$0xff]  ;;  %v4682_v26 = vld [vmem:[#allocation17 + $0x1a0] sm:$0xff] }
 0x948   :  { %v5026_v36 = vld [vmem:[#allocation16 + $0x8] sm:$0xff]  ;;  %v10968_v31 = vpack.c.bf16 %v4677_v27, %v4674_v60  ;;  %v10906_v34 = vpack.c.bf16 %v4682_v26, %v4679_v49  ;;  %v5043_v27 = vld [vmem:[#allocation16 + $0x90] sm:$0xff] }
 0x949   :  { %v14109_v48 = vadd.f32 %v4255_v52, %v4254_v50  ;;  %v4661_v50 = vld [vmem:[#allocation17 + $0xf8] sm:$0xff]  ;;  %v15219_v52 = vld [vmem:[#allocation44_spill] sm:$0xff] }
 0x94a   :  { %v10894_v25 = vpack.c.bf16 %v4664_v23, %v4661_v50  ;;  %v5025_v50 = vld [vmem:[#allocation16] sm:$0xff]  ;;  %v5028_v23 = vld [vmem:[#allocation16 + $0x18] sm:$0xff]  ;;  %v5046_v49 = vld [vmem:[#allocation16 + $0xa8] sm:$0xff] }
 0x94b   :  { %4452 = vmatprep.mubr.f32.mxu0 %v14109_v48  ;;  %7756 = vst [vmem:[#allocation20 + $0x8] sm:$0xff] %v14109_v48  ;;  %4565 = vmatprep.mubr.f32.mxu1 %v14109_v48  ;;  %v4703_v26 = vld [vmem:[#allocation17 + $0x248] sm:$0xff] }
 0x94c   :  { %4453 = vmatmul.mubr.f32.vlgmr.msra.gmra.mrb[32].mxu0 %v15216_v51  ;;  %4566 = vmatmul.mubr.f32.vlgmr.msra.gmra.mrb[48].mxu1 %v15216_v51 }
 0x94d   :  { %10877 = vmatpush1.bf16.msra.mxu1 %v10876_v4  ;;  %4458 = vmatprep.mubr.f32.mxu0 %v14092_v62  ;;  %v4660_v4 = vld [vmem:[#allocation17 + $0xf0] sm:$0xff] }
 0x94e   :  { %4570 = vmatprep.mubr.f32.mxu1 %v14092_v62  ;;  %10941 = vmatpush3.bf16.msra.mxu0 %v10940_v58  ;;  %v4663_v58 = vld [vmem:[#allocation17 + $0x108] sm:$0xff] }
 0x94f   :  { %10879 = vmatprep.subr.bf16.mxu1 %v10878_v33  ;;  %10943 = vmatprep.subr.bf16.mxu0 %v10942_v5  ;;  %v4662_v33 = vld [vmem:[#allocation17 + $0x100] sm:$0xff]  ;;  %v4665_v5 = vld [vmem:[#allocation17 + $0x118] sm:$0xff] }
 0x950   :  { %4459 = vmatmul.mubr.f32.gmra.mrb[34].mxu0 %v15217_v10  ;;  %4571 = vmatmul.mubr.f32.gmra.mrb[50].mxu1 %v15217_v10 }
 0x951   :  { %10881 = vmatpush1.bf16.msra.mxu1 %v10880_v16  ;;  %4464 = vmatprep.mubr.f32.mxu0 %v14006_v17  ;;  %v10896_v16 = vpack.c.bf16 %v4663_v58, %v4660_v4  ;;  %v14148_v58 = vpack.c.bf16 %v5028_v23, %v5025_v50 }
 0x952   :  { %4575 = vmatprep.mubr.f32.mxu1 %v14006_v17  ;;  %10945 = vmatpush3.bf16.msra.mxu0 %v10944_v18  ;;  %v10960_v18 = vpack.c.bf16 %v4665_v5, %v4662_v33  ;;  %v10910_v33 = vpack.c.bf16 %v4688_v13, %v4685_v2  ;;  %v5049_v2 = vld [vmem:[#allocation16 + $0xc0] sm:$0xff]  ;;  %v5052_v13 = vld [vmem:[#allocation16 + $0xd8] sm:$0xff] }
 0x953   :  { %10883 = vmatprep.subr.bf16.mxu1 %v10882_v56  ;;  %10947 = vmatprep.subr.bf16.mxu0 %v10946_v22  ;;  %v10898_v56 = vpack.c.bf16 %v4670_v59, %v4667_v12  ;;  %v10962_v22 = vpack.c.bf16 %v4719_v6, %v4716_v21  ;;  %v5031_v12 = vld [vmem:[#allocation16 + $0x30] sm:$0xff]  ;;  %v5034_v59 = vld [vmem:[#allocation16 + $0x48] sm:$0xff]  ;;  %v4694_v6 = vld [vmem:[#allocation17 + $0x200] sm:$0xff] }
 0x954   :  { %4465 = vmatmul.mubr.f32.gmra.mrb[36].mxu0 %v15218_v39  ;;  %4576 = vmatmul.mubr.f32.gmra.mrb[52].mxu1 %v15218_v39  ;;  %v4691_v21 = vld [vmem:[#allocation17 + $0x1e8] sm:$0xff] }
 0x955   :  { %10885 = vmatpush1.bf16.msra.mxu1 %v10884_v7  ;;  %4470 = vmatprep.mubr.f32.mxu0 %v13823_v43  ;;  %v15223_v7 = vld [vmem:[#allocation47_spill] sm:$0xff] }
 0x956   :  { %4580 = vmatprep.mubr.f32.mxu1 %v13823_v43  ;;  %10949 = vmatpush3.bf16.msra.mxu0 %v10948_v32  ;;  %v10900_v32 = vpack.c.bf16 %v4669_v63, %v4666_v30  ;;  %v14156_v30 = vpack.c.bf16 %v5034_v59, %v5031_v12  ;;  %v4690_v63 = vld [vmem:[#allocation17 + $0x1e0] sm:$0xff]  ;;  %v4708_v12 = vld [vmem:[#allocation17 + $0x270] sm:$0xff]  ;;  %v4711_v59 = vld [vmem:[#allocation17 + $0x288] sm:$0xff] }
 0x957   :  { %10887 = vmatprep.subr.bf16.mxu1 %v10886_v8  ;;  %10951 = vmatprep.subr.bf16.mxu0 %v10950_v19  ;;  %v4675_v8 = vld [vmem:[#allocation17 + $0x168] sm:$0xff]  ;;  %v10902_v19 = vpack.c.bf16 %v4676_v37, %v4673_v14  ;;  %v5040_v14 = vld [vmem:[#allocation16 + $0x78] sm:$0xff] }
 0x958   :  { %4471 = vmatmul.mubr.f32.gmra.mrb[38].mxu0 %v15219_v52  ;;  %4581 = vmatmul.mubr.f32.gmra.mrb[54].mxu1 %v15219_v52  ;;  %v10904_v20 = vpack.c.bf16 %v4675_v8, %v4672_v54  ;;  %v4697_v37 = vld [vmem:[#allocation17 + $0x218] sm:$0xff]  ;;  %v14164_v54 = vpack.c.bf16 %v5040_v14, %v5037_v44  ;;  %v4696_v8 = vld [vmem:[#allocation17 + $0x210] sm:$0xff]  ;;  %v10928_v44 = vpack.c.bf16 %v4711_v59, %v4708_v12  ;;  %v5033_v12 = vld [vmem:[#allocation16 + $0x40] sm:$0xff] }
 0x959   :  { %10889 = vmatpush1.bf16.msra.mxu1 %v10888_v46  ;;  %4476 = vmatprep.mubr.f32.mxu0 %v15220_v38  ;;  %v5029_v46 = vld [vmem:[#allocation16 + $0x20] sm:$0xff] }
 0x95a   :  { %4585 = vmatprep.mubr.f32.mxu1 %v15220_v38  ;;  %10953 = vmatpush3.bf16.msra.mxu0 %v10952_v28  ;;  %v15224_v28 = vld [vmem:[#allocation42_spill] sm:$0xff]  ;;  %v14142_v24 = vpack.c.bf16 %v5029_v46, %v5026_v36  ;;  %v4706_v36 = vld [vmem:[#allocation17 + $0x260] sm:$0xff]  ;;  %v5050_v46 = vld [vmem:[#allocation16 + $0xc8] sm:$0xff] }
 0x95b   :  { %10891 = vmatprep.subr.bf16.mxu1 %v10890_v55  ;;  %10955 = vmatprep.subr.bf16.mxu0 %v10954_v45  ;;  %v4678_v55 = vld [vmem:[#allocation17 + $0x180] sm:$0xff]  ;;  %v4681_v45 = vld [vmem:[#allocation17 + $0x198] sm:$0xff]  ;;  %v10922_v50 = vpack.c.bf16 %v4706_v36, %v4703_v26 }
 0x95c   :  { %4477 = vmatmul.mubr.f32.gmra.mrb[40].mxu0 %v15221_v53  ;;  %4586 = vmatmul.mubr.f32.gmra.mrb[56].mxu1 %v15221_v53  ;;  %v10908_v4 = vpack.c.bf16 %v4681_v45, %v4678_v55  ;;  %v14172_v55 = vpack.c.bf16 %v5046_v49, %v5043_v27  ;;  %v4702_v45 = vld [vmem:[#allocation17 + $0x240] sm:$0xff]  ;;  %v5068_v27 = vld [vmem:[#allocation16 + $0x158] sm:$0xff]  ;;  %v5071_v49 = vld [vmem:[#allocation16 + $0x170] sm:$0xff] }
 0x95d   :  { %10893 = vmatpush1.bf16.msra.mxu1 %v10892_v3  ;;  %4482 = vmatprep.mubr.f32.mxu0 %v15222_v47  ;;  %v5032_v3 = vld [vmem:[#allocation16 + $0x38] sm:$0xff] }
 0x95e   :  { %4590 = vmatprep.mubr.f32.mxu1 %v15222_v47  ;;  %10957 = vmatpush3.bf16.msra.mxu0 %v10956_v41  ;;  %v5035_v41 = vld [vmem:[#allocation16 + $0x50] sm:$0xff] }
 0x95f   :  { %10895 = vmatprep.subr.bf16.mxu1 %v10894_v25  ;;  %10959 = vmatprep.subr.bf16.mxu0 %v10958_v11  ;;  %v4684_v25 = vld [vmem:[#allocation17 + $0x1b0] sm:$0xff]  ;;  %v4687_v11 = vld [vmem:[#allocation17 + $0x1c8] sm:$0xff]  ;;  %v14151_v5 = vpack.c.bf16 %v5035_v41, %v5032_v3  ;;  %v4709_v3 = vld [vmem:[#allocation17 + $0x278] sm:$0xff] }
 0x960   :  { %4483 = vmatmul.mubr.f32.gmra.mrb[42].mxu0 %v13923_v29  ;;  %4591 = vmatmul.mubr.f32.gmra.mrb[58].mxu1 %v13923_v29  ;;  %v4712_v41 = vld [vmem:[#allocation17 + $0x290] sm:$0xff] }
 0x961   :  { %10897 = vmatpush1.bf16.msra.mxu1 %v10896_v16  ;;  %4488 = vmatprep.mubr.f32.mxu0 %v15223_v7  ;;  %v5038_v16 = vld [vmem:[#allocation16 + $0x68] sm:$0xff] }
 0x962   :  { %4595 = vmatprep.mubr.f32.mxu1 %v15223_v7  ;;  %10961 = vmatpush3.bf16.msra.mxu0 %v10960_v18  ;;  %v5041_v18 = vld [vmem:[#allocation16 + $0x80] sm:$0xff] }
 0x963   :  { %10899 = vmatprep.subr.bf16.mxu1 %v10898_v56  ;;  %10963 = vmatprep.subr.bf16.mxu0 %v10962_v22  ;;  %v4693_v56 = vld [vmem:[#allocation17 + $0x1f8] sm:$0xff]  ;;  %v10914_v22 = vpack.c.bf16 %v4694_v6, %v4691_v21  ;;  %v14159_v40 = vpack.c.bf16 %v5041_v18, %v5038_v16  ;;  %v10926_v21 = vpack.c.bf16 %v4712_v41, %v4709_v3  ;;  %v5055_v16 = vld [vmem:[#allocation16 + $0xf0] sm:$0xff]  ;;  %v5058_v18 = vld [vmem:[#allocation16 + $0x108] sm:$0xff] }
 0x964   :  { %4489 = vmatmul.mubr.f32.gmra.mrb[44].mxu0 %v14052_v57  ;;  %4596 = vmatmul.mubr.f32.gmra.mrb[60].mxu1 %v14052_v57  ;;  %v14188_v14 = vpack.c.bf16 %v5058_v18, %v5055_v16  ;;  %v5027_v3 = vld [vmem:[#allocation16 + $0x10] sm:$0xff]  ;;  %v5030_v41 = vld [vmem:[#allocation16 + $0x28] sm:$0xff]  ;;  %v5222_v16 = vld [vmem:[#allocation19 + $0x40] sm:$0xff] }
 0x965   :  { %10901 = vmatpush1.bf16.msra.mxu1 %v10900_v32  ;;  %4494 = vmatprep.mubr.f32.mxu0 %v15224_v28  ;;  %v5047_v32 = vld [vmem:[#allocation16 + $0xb0] sm:$0xff]  ;;  %v5225_v18 = vld [vmem:[#allocation19 + $0x58] sm:$0xff] }
 0x966   :  { %4600 = vmatprep.mubr.f32.mxu1 %v15224_v28  ;;  %10965 = vmatpush3.bf16.msra.mxu0 %v10964_v42  ;;  %v10916_v42 = vpack.c.bf16 %v4693_v56, %v4690_v63  ;;  %v14167_v60 = vpack.c.bf16 %v5047_v32, %v5044_v1  ;;  %v4718_v63 = vld [vmem:[#allocation17 + $0x2c0] sm:$0xff]  ;;  %v5062_v56 = vld [vmem:[#allocation16 + $0x128] sm:$0xff]  ;;  %15226 = vst [vmem:[#allocation46_spill] sm:$0xff] %v14188_v14 }
 0x967   :  { %10903 = vmatprep.subr.bf16.mxu1 %v10902_v19  ;;  %10967 = vmatprep.subr.bf16.mxu0 %v10966_v61  ;;  %v4699_v19 = vld [vmem:[#allocation17 + $0x228] sm:$0xff]  ;;  %v10918_v61 = vpack.c.bf16 %v4700_v0, %v4697_v37  ;;  %v4714_v37 = vld [vmem:[#allocation17 + $0x2a0] sm:$0xff]  ;;  %v4717_v0 = vld [vmem:[#allocation17 + $0x2b8] sm:$0xff] }
 0x968   :  { %4495 = vmatmul.mubr.f32.gmra.mrb[46].mxu0 %v14103_v15  ;;  %4601 = vmatmul.mubr.f32.gmra.mrb[62].mxu1 %v14103_v15  ;;  %v10932_v26 = vpack.c.bf16 %v4717_v0, %v4714_v37  ;;  %v5045_v37 = vld [vmem:[#allocation16 + $0xa0] sm:$0xff] }
 0x969   :  { %10905 = vmatpush1.bf16.msra.mxu1 %v10904_v20  ;;  %4807 = vmatprep.mubr.f32.mxu1 %v14109_v48  ;;  %v5053_v20 = vld [vmem:[#allocation16 + $0xe0] sm:$0xff] }
 0x96a   :  { %10969 = vmatpush3.bf16.msra.mxu0 %v10968_v31  ;;  %4920 = vmatprep.mubr.f32.mxu0 %v14109_v48  ;;  %v10912_v48 = vpack.c.bf16 %v4687_v11, %v4684_v25  ;;  %v10920_v31 = vpack.c.bf16 %v4699_v19, %v4696_v8  ;;  %v14175_v23 = vpack.c.bf16 %v5053_v20, %v5050_v46  ;;  %v5059_v25 = vld [vmem:[#allocation16 + $0x110] sm:$0xff]  ;;  %v5064_v8 = vld [vmem:[#allocation16 + $0x138] sm:$0xff]  ;;  %v4723_v20 = vld [vmem:[#allocation17 + $0x2e8] sm:$0xff] }
 0x96b   :  { %10907 = vmatprep.subr.bf16.mxu1 %v10906_v34  ;;  %10971 = vmatprep.subr.bf16.mxu0 %v14142_v24  ;;  %v4705_v34 = vld [vmem:[#allocation17 + $0x258] sm:$0xff]  ;;  %v4720_v46 = vld [vmem:[#allocation17 + $0x2d0] sm:$0xff] }
 0x96c   :  { %v10924_v11 = vpack.c.bf16 %v4705_v34, %v4702_v45  ;;  %v4721_v19 = vld [vmem:[#allocation17 + $0x2d8] sm:$0xff]  ;;  %v14199_v45 = vpack.c.bf16 %v5071_v49, %v5068_v27  ;;  %v5067_v34 = vld [vmem:[#allocation16 + $0x150] sm:$0xff]  ;;  %v5243_v49 = vld [vmem:[#allocation19 + $0xe8] sm:$0xff] }
 0x96d   :  { %10909 = vmatpush1.bf16.msra.mxu1 %v10908_v4  ;;  %4921 = vmatmul.mubr.f32.vlgmr.msra.gmra.mrb[48].mxu0 %v15216_v51  ;;  %v5056_v4 = vld [vmem:[#allocation16 + $0xf8] sm:$0xff]  ;;  %v5240_v27 = vld [vmem:[#allocation19 + $0xd0] sm:$0xff] }
 0x96e   :  { %4925 = vmatprep.mubr.f32.mxu0 %v14092_v62  ;;  %10973 = vmatpush1.bf16.msra.mxu0 %v14148_v58  ;;  %v14183_v6 = vpack.c.bf16 %v5059_v25, %v5056_v4  ;;  %15229 = vst [vmem:[#allocation32_spill] sm:$0xff] %v14199_v45  ;;  %v5216_v4 = vld [vmem:[#allocation19 + $0x10] sm:$0xff]  ;;  %v5219_v25 = vld [vmem:[#allocation19 + $0x28] sm:$0xff] }
 0x96f   :  { %10911 = vmatprep.subr.bf16.mxu1 %v10910_v33  ;;  %10975 = vmatprep.subr.bf16.mxu0 %v14151_v5  ;;  %v14180_v33 = vpack.c.bf16 %v5052_v13, %v5049_v2  ;;  %v10936_v2 = vpack.c.bf16 %v4723_v20, %v4720_v46  ;;  %v14212_v59 = vpack.c.bf16 %v5219_v25, %v5216_v4  ;;  %v5060_v46 = vld [vmem:[#allocation16 + $0x118] sm:$0xff]  ;;  %v5246_v20 = vld [vmem:[#allocation19 + $0x100] sm:$0xff] }
 0x970   :  { %15225 = vst [vmem:[#allocation45_spill] sm:$0xff] %v14183_v6  ;;  %v5072_v4 = vld [vmem:[#allocation16 + $0x178] sm:$0xff]  ;;  %v5258_v25 = vld [vmem:[#allocation19 + $0x160] sm:$0xff] }
 0x971   :  { %10913 = vmatpush1.bf16.msra.mxu1 %v10912_v48  ;;  %4926 = vmatmul.mubr.f32.gmra.mrb[50].mxu0 %v15217_v10  ;;  %v4715_v48 = vld [vmem:[#allocation17 + $0x2a8] sm:$0xff] }
 0x972   :  { %4930 = vmatprep.mubr.f32.mxu0 %v14006_v17  ;;  %10977 = vmatpush1.bf16.msra.mxu0 %v14156_v30  ;;  %v10930_v1 = vpack.c.bf16 %v4718_v63, %v4715_v48  ;;  %v5039_v63 = vld [vmem:[#allocation16 + $0x70] sm:$0xff] }
 0x973   :  { %10915 = vmatprep.subr.bf16.mxu1 %v10914_v22  ;;  %10979 = vmatprep.subr.bf16.mxu0 %v14159_v40  ;;  %v5065_v22 = vld [vmem:[#allocation16 + $0x140] sm:$0xff] }
 0x974   :  { %v14191_v32 = vpack.c.bf16 %v5065_v22, %v5062_v56  ;;  %v14223_v56 = vpack.c.bf16 %v5225_v18, %v5222_v16  ;;  %v5042_v22 = vld [vmem:[#allocation16 + $0x88] sm:$0xff] }
 0x975   :  { %10917 = vmatpush1.bf16.msra.mxu1 %v10916_v42  ;;  %4931 = vmatmul.mubr.f32.gmra.mrb[52].mxu0 %v15218_v39  ;;  %v5061_v42 = vld [vmem:[#allocation16 + $0x120] sm:$0xff] }
 0x976   :  { %4935 = vmatprep.mubr.f32.mxu0 %v13823_v43  ;;  %10981 = vmatpush1.bf16.msra.mxu0 %v14164_v54  ;;  %15227 = vst [vmem:[#allocation29_spill] sm:$0xff] %v14191_v32  ;;  %v14196_v36 = vpack.c.bf16 %v5064_v8, %v5061_v42  ;;  %v5237_v42 = vld [vmem:[#allocation19 + $0xb8] sm:$0xff]  ;;  %v5051_v8 = vld [vmem:[#allocation16 + $0xd0] sm:$0xff] }
 0x977   :  { %10919 = vmatprep.subr.bf16.mxu1 %v10918_v61  ;;  %10983 = vmatprep.subr.bf16.mxu0 %v14167_v60  ;;  %v4724_v61 = vld [vmem:[#allocation17 + $0x2f0] sm:$0xff] }
 0x978   :  { %15228 = vst [vmem:[#allocation36_spill] sm:$0xff] %v14196_v36 }
 0x979   :  { %10921 = vmatpush1.bf16.msra.mxu1 %v10920_v31  ;;  %4936 = vmatmul.mubr.f32.gmra.mrb[54].mxu0 %v15219_v52  ;;  %v10934_v31 = vpack.c.bf16 %v4724_v61, %v4721_v19  ;;  %v5054_v61 = vld [vmem:[#allocation16 + $0xe8] sm:$0xff] }
 0x97a   :  { %4940 = vmatprep.mubr.f32.mxu0 %v15220_v38  ;;  %10985 = vmatpush1.bf16.msra.mxu0 %v14172_v55 }
 0x97b   :  { %10923 = vmatprep.subr.bf16.mxu1 %v10922_v50  ;;  %10987 = vmatprep.subr.bf16.mxu0 %v14175_v23  ;;  %v5070_v50 = vld [vmem:[#allocation16 + $0x168] sm:$0xff] }
 0x97c   :  { %v14204_v13 = vpack.c.bf16 %v5070_v50, %v5067_v34  ;;  %v5066_v50 = vld [vmem:[#allocation16 + $0x148] sm:$0xff] }
 0x97d   :  { %10925 = vmatpush1.bf16.msra.mxu1 %v10924_v11  ;;  %4941 = vmatmul.mubr.f32.gmra.mrb[56].mxu0 %v15221_v53  ;;  %v14210_v11 = vpack.c.bf16 %v5030_v41, %v5027_v3  ;;  %v5255_v3 = vld [vmem:[#allocation19 + $0x148] sm:$0xff] }
 0x97e   :  { %4945 = vmatprep.mubr.f32.mxu0 %v15222_v47  ;;  %10989 = vmatpush1.bf16.msra.mxu0 %v14180_v33  ;;  %15230 = vst [vmem:[#allocation33_spill] sm:$0xff] %v14204_v13 }
 0x97f   :  { %10927 = vmatprep.subr.bf16.mxu1 %v10926_v21  ;;  %10991 = vmatprep.subr.bf16.mxu0 %v14183_v6  ;;  %v5036_v21 = vld [vmem:[#allocation16 + $0x58] sm:$0xff] }
 0x980   :  { %v14220_v48 = vpack.c.bf16 %v5036_v21, %v5033_v12  ;;  %v5261_v12 = vld [vmem:[#allocation19 + $0x178] sm:$0xff] }
 0x981   :  { %10929 = vmatpush1.bf16.msra.mxu1 %v10928_v44  ;;  %4946 = vmatmul.mubr.f32.gmra.mrb[58].mxu0 %v13923_v29  ;;  %v5228_v44 = vld [vmem:[#allocation19 + $0x70] sm:$0xff]  ;;  %v14285_v16 = vpack.c.bf16 %v5261_v12, %v5258_v25  ;;  %v5241_v25 = vld [vmem:[#allocation19 + $0xd8] sm:$0xff] }
 0x982   :  { %4950 = vmatprep.mubr.f32.mxu0 %v15223_v7  ;;  %10993 = vmatpush1.bf16.msra.mxu0 %v14188_v14  ;;  %v5245_v12 = vld [vmem:[#allocation19 + $0xf8] sm:$0xff] }
 0x983   :  { %10931 = vmatprep.subr.bf16.mxu1 %v10930_v1  ;;  %10995 = vmatprep.subr.bf16.mxu0 %v14191_v32  ;;  %v5048_v1 = vld [vmem:[#allocation16 + $0xb8] sm:$0xff] }
 0x985   :  { %10933 = vmatpush1.bf16.msra.mxu1 %v10932_v26  ;;  %4951 = vmatmul.mubr.f32.gmra.mrb[60].mxu0 %v14052_v57  ;;  %v14255_v26 = vpack.c.bf16 %v5243_v49, %v5240_v27  ;;  %v5229_v27 = vld [vmem:[#allocation19 + $0x78] sm:$0xff] }
 0x986   :  { %4955 = vmatprep.mubr.f32.mxu0 %v15224_v28  ;;  %10997 = vmatpush1.bf16.msra.mxu0 %v14196_v36  ;;  %v5233_v49 = vld [vmem:[#allocation19 + $0x98] sm:$0xff] }
 0x987   :  { %10935 = vmatprep.subr.bf16.mxu1 %v10934_v31  ;;  %10999 = vmatprep.subr.bf16.mxu0 %v14199_v45  ;;  %v5249_v31 = vld [vmem:[#allocation19 + $0x118] sm:$0xff] }
 0x988   :  { %v14265_v34 = vpack.c.bf16 %v5249_v31, %v5246_v20  ;;  %v5232_v31 = vld [vmem:[#allocation19 + $0x90] sm:$0xff] }
 0x989   :  { %10937 = vmatpush1.bf16.msra.mxu1 %v10936_v2  ;;  %4956 = vmatmul.mubr.f32.gmra.mrb[62].mxu0 %v14103_v15  ;;  %v5252_v2 = vld [vmem:[#allocation19 + $0x130] sm:$0xff] }
 0x98a   :  { %11001 = vmatpush1.bf16.msra.mxu0 %v14204_v13  ;;  %5137 = vmatprep.mubr.f32.mxu0 %v15182_v9  ;;  %v14275_v41 = vpack.c.bf16 %v5255_v3, %v5252_v2  ;;  %v5242_v2 = vld [vmem:[#allocation19 + $0xe0] sm:$0xff] }
 0x98b   :  { %11002 = vmatprep.subr.bf16.mxu1 %v15181_v35  ;;  %11058 = vmatprep.subr.bf16.mxu0 %v15181_v35 }
 0x98c   :  { %4808 = vmatmul.mubr.f32.vlgmr.msra.gmra.mrb[64].mxu1 %v15216_v51  ;;  %v5231_v51 = vld [vmem:[#allocation19 + $0x88] sm:$0xff] }
 0x98d   :  { %4813 = vmatprep.mubr.f32.mxu1 %v14092_v62  ;;  %5138 = vmatmul.mubr.f32.vlgmr.msra.gmra.mrb[32].mxu0 %v15182_v9  ;;  %v14232_v62 = vpack.c.bf16 %v5042_v22, %v5039_v63  ;;  %v14235_v0 = vpack.c.bf16 %v5231_v51, %v5228_v44  ;;  %v5214_v63 = vld [vmem:[#allocation19] sm:$0xff]  ;;  %v5217_v22 = vld [vmem:[#allocation19 + $0x18] sm:$0xff] }
 0x98e   :  { %11004 = vmatpush3.bf16.msra.mxu1 %v14210_v11  ;;  %11060 = vmatpush3.bf16.msra.mxu0 %v14212_v59  ;;  %v14295_v44 = vpack.c.bf16 %v5217_v22, %v5214_v63  ;;  %v5244_v22 = vld [vmem:[#allocation19 + $0xf0] sm:$0xff] }
 0x98f   :  { %11005 = vmatprep.subr.bf16.mxu1 %v15181_v35  ;;  %11061 = vmatprep.subr.bf16.mxu0 %v15181_v35 }
 0x990   :  { %4814 = vmatmul.mubr.f32.gmra.mrb[66].mxu1 %v15217_v10  ;;  %9261 = vmatprep.mubr.msk.f32.mxu0 %vm12642_vm0, %v15182_v9  ;;  %v5234_v10 = vld [vmem:[#allocation19 + $0xa0] sm:$0xff] }
 0x991   :  { %4819 = vmatprep.mubr.f32.mxu1 %v14006_v17  ;;  %v14242_v17 = vpack.c.bf16 %v5048_v1, %v5045_v37  ;;  %v14245_v19 = vpack.c.bf16 %v5237_v42, %v5234_v10  ;;  %v5220_v37 = vld [vmem:[#allocation19 + $0x30] sm:$0xff]  ;;  %v5223_v1 = vld [vmem:[#allocation19 + $0x48] sm:$0xff]  ;;  %v5230_v10 = vld [vmem:[#allocation19 + $0x80] sm:$0xff] }
 0x992   :  { %11007 = vmatpush3.bf16.msra.mxu1 %v14220_v48  ;;  %11063 = vmatpush3.bf16.msra.mxu0 %v14223_v56  ;;  %v14305_v42 = vpack.c.bf16 %v5223_v1, %v5220_v37  ;;  %v5254_v37 = vld [vmem:[#allocation19 + $0x140] sm:$0xff] }
 0x993   :  { %11008 = vmatprep.subr.bf16.mxu1 %v15181_v35  ;;  %11064 = vmatprep.subr.bf16.mxu0 %v15181_v35 }
 0x994   :  { %4820 = vmatmul.mubr.f32.gmra.mrb[68].mxu1 %v15218_v39  ;;  %v5057_v39 = vld [vmem:[#allocation16 + $0x100] sm:$0xff] }
 0x995   :  { %4825 = vmatprep.mubr.f32.mxu1 %v13823_v43  ;;  %v14252_v43 = vpack.c.bf16 %v5054_v61, %v5051_v8  ;;  %v5226_v61 = vld [vmem:[#allocation19 + $0x60] sm:$0xff] }
 0x996   :  { %11010 = vmatpush3.bf16.msra.mxu1 %v14232_v62  ;;  %11066 = vmatpush3.bf16.msra.mxu0 %v14235_v0 }
 0x997   :  { %11011 = vmatprep.subr.bf16.mxu1 %v15181_v35  ;;  %11067 = vmatprep.subr.bf16.mxu0 %v15181_v35  ;;  %15231 = vst [vmem:[#allocation30_spill] sm:$0xff] %v14252_v43 }
 0x998   :  { %4826 = vmatmul.mubr.f32.gmra.mrb[70].mxu1 %v15219_v52  ;;  %v14262_v52 = vpack.c.bf16 %v5060_v46, %v5057_v39  ;;  %v5236_v39 = vld [vmem:[#allocation19 + $0xb0] sm:$0xff]  ;;  %v14315_v46 = vpack.c.bf16 %v5229_v27, %v5226_v61  ;;  %v5253_v61 = vld [vmem:[#allocation19 + $0x138] sm:$0xff] }
 0x999   :  { %4831 = vmatprep.mubr.f32.mxu1 %v15220_v38  ;;  %v5063_v38 = vld [vmem:[#allocation16 + $0x130] sm:$0xff]  ;;  %v14318_v20 = vpack.c.bf16 %v5236_v39, %v5233_v49  ;;  %v5257_v27 = vld [vmem:[#allocation19 + $0x158] sm:$0xff] }
 0x99a   :  { %11013 = vmatpush3.bf16.msra.mxu1 %v14242_v17  ;;  %11069 = vmatpush3.bf16.msra.mxu0 %v14245_v19  ;;  %15232 = vst [vmem:[#allocation35_spill] sm:$0xff] %v14262_v52  ;;  %v5260_v49 = vld [vmem:[#allocation19 + $0x170] sm:$0xff] }
 0x99b   :  { %11014 = vmatprep.subr.bf16.mxu1 %v15181_v35  ;;  %11070 = vmatprep.subr.bf16.mxu0 %v15181_v35 }
 0x99c   :  { %4832 = vmatmul.mubr.f32.gmra.mrb[72].mxu1 %v15221_v53  ;;  %v14272_v53 = vpack.c.bf16 %v5066_v50, %v5063_v38  ;;  %v5235_v38 = vld [vmem:[#allocation19 + $0xa8] sm:$0xff] }
 0x99d   :  { %4837 = vmatprep.mubr.f32.mxu1 %v15222_v47  ;;  %v5069_v47 = vld [vmem:[#allocation16 + $0x160] sm:$0xff]  ;;  %v5239_v50 = vld [vmem:[#allocation19 + $0xc8] sm:$0xff]  ;;  %v14323_v3 = vpack.c.bf16 %v5235_v38, %v5232_v31  ;;  %v14350_v31 = vpack.c.bf16 %v5260_v49, %v5257_v27  ;;  %v5256_v38 = vld [vmem:[#allocation19 + $0x150] sm:$0xff] }
 0x99e   :  { %11016 = vmatpush3.bf16.msra.mxu1 %v14252_v43  ;;  %11072 = vmatpush3.bf16.msra.mxu0 %v14255_v26  ;;  %15233 = vst [vmem:[#allocation31_spill] sm:$0xff] %v14272_v53  ;;  %v14282_v21 = vpack.c.bf16 %v5072_v4, %v5069_v47  ;;  %v14326_v47 = vpack.c.bf16 %v5242_v2, %v5239_v50  ;;  %v5238_v4 = vld [vmem:[#allocation19 + $0xc0] sm:$0xff]  ;;  %v5259_v50 = vld [vmem:[#allocation19 + $0x168] sm:$0xff] }
 0x99f   :  { %11017 = vmatprep.subr.bf16.mxu1 %v15181_v35  ;;  %11073 = vmatprep.subr.bf16.mxu0 %v15181_v35  ;;  %v14355_v2 = vpack.c.bf16 %v5259_v50, %v5256_v38 }
 0x9a0   :  { %4838 = vmatmul.mubr.f32.gmra.mrb[74].mxu1 %v13923_v29  ;;  %v5215_v29 = vld [vmem:[#allocation19 + $0x8] sm:$0xff]  ;;  %15234 = vst [vmem:[#allocation34_spill] sm:$0xff] %v14282_v21 }
 0x9a1   :  { %4843 = vmatprep.mubr.f32.mxu1 %v15223_v7  ;;  %v5218_v7 = vld [vmem:[#allocation19 + $0x20] sm:$0xff] }
 0x9a2   :  { %11019 = vmatpush3.bf16.msra.mxu1 %v14262_v52  ;;  %11075 = vmatpush3.bf16.msra.mxu0 %v14265_v34  ;;  %v14288_v18 = vpack.c.bf16 %v5218_v7, %v5215_v29  ;;  %v5248_v29 = vld [vmem:[#allocation19 + $0x110] sm:$0xff]  ;;  %v14331_v7 = vpack.c.bf16 %v5241_v25, %v5238_v4 }
 0x9a3   :  { %11020 = vmatprep.subr.bf16.mxu1 %v15181_v35  ;;  %11076 = vmatprep.subr.bf16.mxu0 %v15181_v35  ;;  %v14334_v63 = vpack.c.bf16 %v5248_v29, %v5245_v12  ;;  %v14388_v29 = vld [vmem:[%s15089_s11] sm:$0x7] }
 0x9a4   :  { %4844 = vmatmul.mubr.f32.gmra.mrb[76].mxu1 %v14052_v57  ;;  %15235 = vst [vmem:[#allocation41_spill] sm:$0xff] %v14288_v18  ;;  %v5221_v57 = vld [vmem:[#allocation19 + $0x38] sm:$0xff] }
 0x9a5   :  { %4849 = vmatprep.mubr.f32.mxu1 %v15224_v28  ;;  %v5224_v28 = vld [vmem:[#allocation19 + $0x50] sm:$0xff] }
 0x9a6   :  { %11022 = vmatpush3.bf16.msra.mxu1 %v14272_v53  ;;  %11078 = vmatpush3.bf16.msra.mxu0 %v14275_v41  ;;  %v14299_v51 = vpack.c.bf16 %v5224_v28, %v5221_v57  ;;  %v5247_v57 = vld [vmem:[#allocation19 + $0x108] sm:$0xff] }
 0x9a7   :  { %11023 = vmatprep.subr.bf16.mxu1 %v15181_v35  ;;  %11079 = vmatprep.subr.bf16.mxu0 %v15181_v35  ;;  %v5251_v28 = vld [vmem:[#allocation19 + $0x128] sm:$0xff]  ;;  %v14339_v1 = vpack.c.bf16 %v5247_v57, %v5244_v22 }
 0x9a8   :  { %4850 = vmatmul.mubr.f32.gmra.mrb[78].mxu1 %v14103_v15  ;;  %v5227_v15 = vld [vmem:[#allocation19 + $0x68] sm:$0xff] }
 0x9a9   :  { %9226 = vmatprep.mubr.msk.f32.mxu1 %vm12642_vm0, %v15182_v9  ;;  %v14309_v8 = vpack.c.bf16 %v5230_v10, %v5227_v15  ;;  %v14342_v15 = vpack.c.bf16 %v5254_v37, %v5251_v28  ;;  %v5250_v10 = vld [vmem:[#allocation19 + $0x120] sm:$0xff] }
 0x9aa   :  { %11025 = vmatpush3.bf16.msra.mxu1 %v14282_v21  ;;  %11081 = vmatpush3.bf16.msra.mxu0 %v14285_v16  ;;  %v14347_v39 = vpack.c.bf16 %v5253_v61, %v5250_v10  ;;  %v15236_v28 = vld [vmem:[#allocation27_spill] sm:$0xff] }
 0x9ab   :  { %11027 = vmatprep.subr.bf16.mxu1 %v14288_v18  ;;  %11083 = vmatprep.subr.bf16.mxu0 %v14142_v24  ;;  %v14392_v37 = vrot.slane %v14388_v29, %v15236_v28 }
 0x9ad   :  { %9227 = vmatmul.mubr.f32.vlgmr.msra.gmra.mrb[80].mxu1 %v15182_v9  ;;  %9262 = vmatmul.mubr.f32.vlgmr.msra.gmra.mrb[64].mxu0 %v15182_v9 }
 0x9ae   :  { %11029 = vmatpush1.bf16.msra.mxu1 %v14295_v44  ;;  %5326 = vmatprep.mubr.f32.mxu1 %v15182_v9 }
 0x9af   :  { %11031 = vmatprep.subr.bf16.mxu1 %v14299_v51  ;;  %11085 = vmatpush1.bf16.msra.mxu0 %v14148_v58 }
 0x9b0   :  { %11087 = vmatprep.subr.bf16.mxu0 %v14151_v5  ;;  %5515 = vmatprep.mubr.f32.mxu0 %v15182_v9 }
 0x9b2   :  { %11033 = vmatpush1.bf16.msra.mxu1 %v14305_v42 }
 0x9b3   :  { %11035 = vmatprep.subr.bf16.mxu1 %v14309_v8  ;;  %11089 = vmatpush1.bf16.msra.mxu0 %v14156_v30 }
 0x9b4   :  { %11091 = vmatprep.subr.bf16.mxu0 %v14159_v40 }
 0x9b6   :  { %11037 = vmatpush1.bf16.msra.mxu1 %v14315_v46 }
 0x9b7   :  { %11039 = vmatprep.subr.bf16.mxu1 %v14318_v20  ;;  %11093 = vmatpush1.bf16.msra.mxu0 %v14164_v54 }
 0x9b8   :  { %11095 = vmatprep.subr.bf16.mxu0 %v14167_v60 }
 0x9ba   :  { %11041 = vmatpush1.bf16.msra.mxu1 %v14323_v3 }
 0x9bb   :  { %11043 = vmatprep.subr.bf16.mxu1 %v14326_v47  ;;  %11097 = vmatpush1.bf16.msra.mxu0 %v14172_v55 }
 0x9bc   :  { %11099 = vmatprep.subr.bf16.mxu0 %v14175_v23 }
 0x9be   :  { %11045 = vmatpush1.bf16.msra.mxu1 %v14331_v7 }
 0x9bf   :  { %11047 = vmatprep.subr.bf16.mxu1 %v14334_v63  ;;  %11101 = vmatpush1.bf16.msra.mxu0 %v14180_v33 }
 0x9c0   :  { %11103 = vmatprep.subr.bf16.mxu0 %v14183_v6 }
 0x9c2   :  { %11049 = vmatpush1.bf16.msra.mxu1 %v14339_v1 }
 0x9c3   :  { %11051 = vmatprep.subr.bf16.mxu1 %v14342_v15  ;;  %11105 = vmatpush1.bf16.msra.mxu0 %v14188_v14 }
 0x9c4   :  { %11107 = vmatprep.subr.bf16.mxu0 %v14191_v32 }
 0x9c6   :  { %11053 = vmatpush1.bf16.msra.mxu1 %v14347_v39 }
 0x9c7   :  { %11055 = vmatprep.subr.bf16.mxu1 %v14350_v31  ;;  %11109 = vmatpush1.bf16.msra.mxu0 %v14196_v36 }
 0x9c8   :  { %11111 = vmatprep.subr.bf16.mxu0 %v14199_v45 }
 0x9ca   :  { %11057 = vmatpush1.bf16.msra.mxu1 %v14355_v2 }
 0x9cb   :  { %11114 = vmatprep.subr.bf16.mxu1 %v15181_v35  ;;  %11113 = vmatpush1.bf16.msra.mxu0 %v14204_v13 }
 0x9cc   :  { %11170 = vmatprep.subr.bf16.mxu0 %v15181_v35 }
 0x9cd   :  { %5327 = vmatmul.mubr.f32.vlgmr.msra.gmra.mrb[78].mxu1 %v15182_v9 }
 0x9ce   :  { %11116 = vmatpush3.bf16.msra.mxu1 %v14210_v11  ;;  %9296 = vmatprep.mubr.msk.f32.mxu1 %vm12642_vm0, %v15182_v9 }
 0x9cf   :  { %11117 = vmatprep.subr.bf16.mxu1 %v15181_v35 }
 0x9d2   :  { %11119 = vmatpush3.bf16.msra.mxu1 %v14220_v48 }
 0x9d3   :  { %11120 = vmatprep.subr.bf16.mxu1 %v15181_v35 }
 0x9d6   :  { %11122 = vmatpush3.bf16.msra.mxu1 %v14232_v62 }
 0x9d7   :  { %11123 = vmatprep.subr.bf16.mxu1 %v15181_v35 }
 0x9da   :  { %11125 = vmatpush3.bf16.msra.mxu1 %v14242_v17 }
 0x9db   :  { %11126 = vmatprep.subr.bf16.mxu1 %v15181_v35 }
 0x9de   :  { %11128 = vmatpush3.bf16.msra.mxu1 %v14252_v43 }
 0x9df   :  { %11129 = vmatprep.subr.bf16.mxu1 %v15181_v35 }
 0x9e2   :  { %11131 = vmatpush3.bf16.msra.mxu1 %v14262_v52  ;;  %v15253_v52 = vld [vmem:[#allocation40_spill] sm:$0xff] }
 0x9e3   :  { %11132 = vmatprep.subr.bf16.mxu1 %v15181_v35  ;;  %v4380_v14 = vrot.slane %v14388_v29, %v15253_v52 }
 0x9e6   :  { %11134 = vmatpush3.bf16.msra.mxu1 %v14272_v53 }
 0x9e7   :  { %11135 = vmatprep.subr.bf16.mxu1 %v15181_v35 }
 0x9ea   :  { %11137 = vmatpush3.bf16.msra.mxu1 %v14282_v21 }
 0x9eb   :  { %11139 = vmatprep.subr.bf16.mxu1 %v14288_v18 }
 0xa1f   :  { %v8194_v4 = vpop.f32.mrb[48].mxu1 }
 0xa20   :  { %v8195_v25 = vpop.f32.mrb[49].mxu1 }
 0xa21   :  { %v14383_v12 = vadd.f32 %v8195_v25, %v8194_v4 }
 0xa23   :  { %v8197_v22 = vpop.f32.mrb[50].mxu1 }
 0xa24   :  { %v8198_v57 = vpop.f32.mrb[51].mxu1 }
 0xa25   :  { %v8199_v10 = vadd.f32 %v8198_v57, %v8197_v22 }
 0xa27   :  { %v14395_v61 = vadd.f32 %v8199_v10, %v14392_v37  ;;  %v8200_v27 = vpop.f32.mrb[52].mxu1 }
 0xa28   :  { %v8201_v49 = vpop.f32.mrb[53].mxu1 }
 0xa29   :  { %15237 = vst [vmem:[#allocation43_spill] sm:$0xff] %v14395_v61  ;;  %v8202_v38 = vadd.f32 %v8201_v49, %v8200_v27 }
 0xa2b   :  { %v14398_v50 = vadd.f32 %v8202_v38, %v14392_v37  ;;  %v8203_v4 = vpop.f32.mrb[54].mxu1 }
 0xa2c   :  { %v8204_v25 = vpop.f32.mrb[55].mxu1 }
 0xa2d   :  { %15238 = vst [vmem:[#allocation48_spill] sm:$0xff] %v14398_v50  ;;  %v8205_v18 = vadd.f32 %v8204_v25, %v8203_v4 }
 0xa2f   :  { %v14401_v21 = vadd.f32 %v8205_v18, %v14392_v37  ;;  %v8206_v13 = vpop.f32.mrb[56].mxu1 }
 0xa30   :  { %v8207_v45 = vpop.f32.mrb[57].mxu1 }
 0xa31   :  { %15239 = vst [vmem:[#allocation44_spill] sm:$0xff] %v14401_v21  ;;  %v8208_v53 = vadd.f32 %v8207_v45, %v8206_v13  ;;  %v14415_v45 = vld [vmem:[%s15093_s15] sm:$0x7] }
 0xa33   :  { %v14404_v22 = vadd.f32 %v8208_v53, %v14392_v37  ;;  %v8209_v57 = vpop.f32.mrb[58].mxu1 }
 0xa34   :  { %v8210_v10 = vpop.f32.mrb[59].mxu1 }
 0xa35   :  { %15240 = vst [vmem:[#allocation28_spill] sm:$0xff] %v14404_v22  ;;  %v8211_v61 = vadd.f32 %v8210_v10, %v8209_v57 }
 0xa37   :  { %v14407_v27 = vadd.f32 %v8211_v61, %v14392_v37  ;;  %v8212_v49 = vpop.f32.mrb[60].mxu1  ;;  %v14422_v61 = vrot.slane %v14415_v45, %v15236_v28 }
 0xa38   :  { %v8213_v38 = vpop.f32.mrb[61].mxu1 }
 0xa39   :  { %15241 = vst [vmem:[#allocation38_spill] sm:$0xff] %v14407_v27  ;;  %v8214_v50 = vadd.f32 %v8213_v38, %v8212_v49 }
 0xa3b   :  { %v14410_v4 = vadd.f32 %v8214_v50, %v14392_v37  ;;  %v8215_v18 = vpop.f32.mrb[62].mxu1 }
 0xa3c   :  { %v8216_v25 = vpop.f32.mrb[63].mxu1 }
 0xa3d   :  { %15242 = vst [vmem:[#allocation37_spill] sm:$0xff] %v14410_v4  ;;  %v8217_v21 = vadd.f32 %v8216_v25, %v8215_v18 }
 0xa3f   :  { %v14418_v13 = vadd.f32 %v8217_v21, %v14392_v37 }
 0xa40   :  { %v8250_v53 = vpop.f32.mrb[48].mxu0 }
 0xa41   :  { %15243 = vst [vmem:[#allocation47_spill] sm:$0xff] %v14418_v13  ;;  %v8251_v57 = vpop.f32.mrb[49].mxu0 }
 0xa42   :  { %v8252_v10 = vadd.f32 %v8251_v57, %v8250_v53 }
 0xa44   :  { %v14425_v50 = vadd.f32 %v8252_v10, %v14422_v61  ;;  %v8253_v49 = vpop.f32.mrb[50].mxu0 }
 0xa45   :  { %v8254_v38 = vpop.f32.mrb[51].mxu0 }
 0xa46   :  { %15244 = vst [vmem:[#allocation42_spill] sm:$0xff] %v14425_v50  ;;  %v8255_v18 = vadd.f32 %v8254_v38, %v8253_v49 }
 0xa48   :  { %v14428_v25 = vadd.f32 %v8255_v18, %v14422_v61  ;;  %v8256_v4 = vpop.f32.mrb[52].mxu0 }
 0xa49   :  { %v8257_v27 = vpop.f32.mrb[53].mxu0 }
 0xa4a   :  { %15245 = vst [vmem:[#allocation27_spill] sm:$0xff] %v14428_v25  ;;  %v8258_v21 = vadd.f32 %v8257_v27, %v8256_v4  ;;  %v4985_v27 = vld [vmem:[%s15090_s12] sm:$0x7] }
 0xa4b   :  { %v4994_v6 = vrot.slane %v4985_v27, %v15253_v52 }
 0xa4c   :  { %v14431_v13 = vadd.f32 %v8258_v21, %v14422_v61  ;;  %v8259_v22 = vpop.f32.mrb[54].mxu0 }
 0xa4d   :  { %v8260_v36 = vpop.f32.mrb[55].mxu0 }
 0xa4e   :  { %15246 = vst [vmem:[#allocation49_spill] sm:$0xff] %v14431_v13  ;;  %v8261_v32 = vadd.f32 %v8260_v36, %v8259_v22 }
 0xa50   :  { %v14434_v53 = vadd.f32 %v8261_v32, %v14422_v61  ;;  %v8262_v57 = vpop.f32.mrb[56].mxu0  ;;  %v15250_v32 = vld [vmem:[#allocation39_spill] sm:$0xff] }
 0xa51   :  { %v8263_v10 = vpop.f32.mrb[57].mxu0  ;;  %v4376_v21 = vrot.slane %v14388_v29, %v15250_v32 }
 0xa52   :  { %15247 = vst [vmem:[#allocation50_spill] sm:$0xff] %v14434_v53  ;;  %v8264_v50 = vadd.f32 %v8263_v10, %v8262_v57  ;;  %v4990_v57 = vrot.slane %v4985_v27, %v15250_v32 }
 0xa54   :  { %v14437_v49 = vadd.f32 %v8264_v50, %v14422_v61  ;;  %v8265_v38 = vpop.f32.mrb[58].mxu0 }
 0xa55   :  { %v8266_v18 = vpop.f32.mrb[59].mxu0 }
 0xa56   :  { %15248 = vst [vmem:[#allocation51_spill] sm:$0xff] %v14437_v49  ;;  %v8267_v25 = vadd.f32 %v8266_v18, %v8265_v38  ;;  %v14451_v18 = vadd.f32 %v4990_v57, %v4376_v21 }
 0xa58   :  { %v14443_v4 = vadd.f32 %v8267_v25, %v14422_v61  ;;  %v8268_v36 = vpop.f32.mrb[60].mxu0  ;;  %15252 = vst [vmem:[#allocation53_spill] sm:$0xff] %v14451_v18 }
 0xa59   :  { %v8269_v22 = vpop.f32.mrb[61].mxu0 }
 0xa5a   :  { %15249 = vst [vmem:[#allocation52_spill] sm:$0xff] %v14443_v4  ;;  %v8270_v10 = vadd.f32 %v8269_v22, %v8268_v36  ;;  %v14459_v36 = vadd.f32 %v4994_v6, %v4380_v14 }
 0xa5c   :  { %v14449_v50 = vadd.f32 %v8270_v10, %v14422_v61  ;;  %v8271_v13 = vpop.f32.mrb[62].mxu0  ;;  %15254 = vst [vmem:[#allocation40_spill] sm:$0xff] %v14459_v36 }
 0xa5d   :  { %v8272_v38 = vpop.f32.mrb[63].mxu0 }
 0xa5e   :  { %15251 = vst [vmem:[#allocation39_spill] sm:$0xff] %v14449_v50  ;;  %v14453_v53 = vadd.f32 %v8272_v38, %v8271_v13 }
 0xa60   :  { %v5139_v49 = vpop.f32.mrb[32].mxu0 }
 0xa61   :  { %v11931_v25 = vadd.f32 %v14451_v18, %v5139_v49  ;;  %v5141_v4 = vpop.f32.mrb[33].mxu0  ;;  %v14463_v49 = vrot.slane %v4985_v27, %v15236_v28 }
 0xa62   :  { %v11933_v22 = vadd.f32 %v14459_v36, %v5141_v4  ;;  %v4568_v4 = vadd.f32 %v14383_v12, %v14392_v37  ;;  %v4731_v12 = vrot.slane %v14415_v45, %v15250_v32 }
 0xa63   :  { %v7810_v43 = vmul.f32 -1.442695, %v11931_v25 }
 0xa64   :  { %v7811_v10 = vmul.f32 -1.442695, %v11933_v22 }
 0xa65   :  { %12235 = vpow2.f32 %v7810_v43 }
 0xa66   :  { %12237 = vpow2.f32 %v7811_v10 }
 0xa6f   :  { %v12236_v21 = vpop.eup %12235 }
 0xa70   :  { %v5407_v13 = vadd.f32 1.0, %v12236_v21  ;;  %v12238_v57 = vpop.eup %12237 }
 0xa71   :  { %v5414_v38 = vadd.f32 1.0, %v12238_v57 }
 0xa72   :  { %12239 = vrcp.f32 %v5407_v13 }
 0xa73   :  { %12241 = vrcp.f32 %v5414_v38 }
 0xa7c   :  { %v12240_v43 = vpop.eup %12239 }
 0xa7d   :  { %v12242_v21 = vpop.eup %12241 }
 0xa7e   :  { %v5420_v13 = vsub.f32 1.0, %v12242_v21  ;;  %v5422_v57 = vmul.f32 0.0, %v12242_v21 }
 0xa80   :  { %v5210_v50 = vpop.f32.mrb[80].mxu1  ;;  %v14465_v29 = vpop.f32.mrb[64].mxu0 }
 0xa81   :  { %v5211_v25 = vadd.f32 %v5210_v50, %v14463_v49  ;;  %v9228_v6 = vpop.f32.mrb[81].mxu1  ;;  %v9263_v14 = vpop.f32.mrb[65].mxu0  ;;  %v5002_v50 = vld [vmem:[%s15255_s1] sm:$0x7] }
 0xa82   :  { %v5007_v37 = vrot.slane %v5002_v50, %v15250_v32  ;;  %v5011_v38 = vrot.slane %v5002_v50, %v15253_v52  ;;  %v14525_v21 = vrot.slane %v5002_v50, %v15236_v28  ;;  %v15259_v50 = vld [vmem:[#allocation35_spill] sm:$0xff] }
 0xa83   :  { %v5417_v22 = vmul.f32 %v12240_v43, %v5211_v25 }
 0xa84   :  { %v14494_v25 = vadd.f32 %v5007_v37, %v4731_v12  ;;  %v4958_v37 = vadd.f32 %v14453_v53, %v14422_v61  ;;  %v15256_v61 = vld [vmem:[#allocation30_spill] sm:$0xff]  ;;  %v15257_v53 = vld [vmem:[#allocation45_spill] sm:$0xff] }
 0xa85   :  { %v5418_v10 = vadd.f32 %v5417_v22, %v4568_v4 }
 0xa87   :  { %12243 = vtanh.f32 %v5418_v10 }
 0xa91   :  { %v12244_v27 = vpop.eup %12243 }
 0xa92   :  { %v5421_v36 = vmul.f32 %v12244_v27, %v5420_v13 }
 0xa94   :  { %v14470_v18 = vadd.f32 %v5422_v57, %v5421_v36  ;;  %v4735_v36 = vrot.slane %v14415_v45, %v15253_v52  ;;  %v5400_v57 = vadd.f32 %v14465_v29, %v14525_v21  ;;  %v15258_v29 = vld [vmem:[#allocation46_spill] sm:$0xff] }
 0xa96   :  { %5516 = vmatmul.mubr.f32.vlgmr.msra.gmra.mrb[34].mxu0 %v14470_v18  ;;  %9297 = vmatmul.mubr.f32.vlgmr.msra.gmra.mrb[82].mxu1 %v14470_v18  ;;  %v14498_v6 = vadd.f32 %v5011_v38, %v4735_v36 }
 0xa97   :  { %11141 = vmatpush1.bf16.msra.mxu1 %v14295_v44  ;;  %11172 = vmatpush3.bf16.msra.mxu0 %v14212_v59 }
 0xa98   :  { %11143 = vmatprep.subr.bf16.mxu1 %v14299_v51  ;;  %11173 = vmatprep.subr.bf16.mxu0 %v15181_v35 }
 0xa99   :  { %5656 = vmatprep.mubr.f32.mxu1 %v15182_v9  ;;  %9331 = vmatprep.mubr.msk.f32.mxu0 %vm12642_vm0, %v15182_v9 }
 0xa9b   :  { %11145 = vmatpush1.bf16.msra.mxu1 %v14305_v42  ;;  %11175 = vmatpush3.bf16.msra.mxu0 %v14223_v56 }
 0xa9c   :  { %11147 = vmatprep.subr.bf16.mxu1 %v14309_v8  ;;  %11176 = vmatprep.subr.bf16.mxu0 %v15181_v35 }
 0xa9f   :  { %11149 = vmatpush1.bf16.msra.mxu1 %v14315_v46  ;;  %11178 = vmatpush3.bf16.msra.mxu0 %v14235_v0 }
 0xaa0   :  { %v5328_v32 = vpop.f32.mrb[78].mxu1  ;;  %11151 = vmatprep.subr.bf16.mxu1 %v14318_v20  ;;  %11179 = vmatprep.subr.bf16.mxu0 %v15181_v35 }
 0xaa1   :  { %v11991_v45 = vadd.f32 %v14494_v25, %v5328_v32  ;;  %v5330_v52 = vpop.f32.mrb[79].mxu1 }
 0xaa2   :  { %v11993_v43 = vadd.f32 %v14498_v6, %v5330_v52 }
 0xaa3   :  { %v7812_v14 = vmul.f32 -1.442695, %v11991_v45  ;;  %11153 = vmatpush1.bf16.msra.mxu1 %v14323_v3  ;;  %11181 = vmatpush3.bf16.msra.mxu0 %v14245_v19 }
 0xaa4   :  { %11155 = vmatprep.subr.bf16.mxu1 %v14326_v47  ;;  %11182 = vmatprep.subr.bf16.mxu0 %v15181_v35  ;;  %v7813_v4 = vmul.f32 -1.442695, %v11993_v43 }
 0xaa5   :  { %12245 = vpow2.f32 %v7812_v14 }
 0xaa6   :  { %12247 = vpow2.f32 %v7813_v4  ;;  %v15260_v4 = vld [vmem:[#allocation29_spill] sm:$0xff] }
 0xaa7   :  { %11157 = vmatpush1.bf16.msra.mxu1 %v14331_v7  ;;  %11184 = vmatpush3.bf16.msra.mxu0 %v14255_v26 }
 0xaa8   :  { %11159 = vmatprep.subr.bf16.mxu1 %v14334_v63  ;;  %11185 = vmatprep.subr.bf16.mxu0 %v15181_v35 }
 0xaab   :  { %11161 = vmatpush1.bf16.msra.mxu1 %v14339_v1  ;;  %11187 = vmatpush3.bf16.msra.mxu0 %v14265_v34 }
 0xaac   :  { %11163 = vmatprep.subr.bf16.mxu1 %v14342_v15  ;;  %11188 = vmatprep.subr.bf16.mxu0 %v15181_v35 }
 0xaaf   :  { %v12246_v22 = vpop.eup %12245  ;;  %11165 = vmatpush1.bf16.msra.mxu1 %v14347_v39  ;;  %11190 = vmatpush3.bf16.msra.mxu0 %v14275_v41 }
 0xab0   :  { %v5428_v10 = vadd.f32 1.0, %v12246_v22  ;;  %11167 = vmatprep.subr.bf16.mxu1 %v14350_v31  ;;  %11191 = vmatprep.subr.bf16.mxu0 %v15181_v35  ;;  %v12248_v13 = vpop.eup %12247  ;;  %v15261_v22 = vld [vmem:[#allocation36_spill] sm:$0xff] }
 0xab1   :  { %v5435_v27 = vadd.f32 1.0, %v12248_v13  ;;  %v15263_v13 = vld [vmem:[#allocation32_spill] sm:$0xff] }
 0xab2   :  { %12249 = vrcp.f32 %v5428_v10  ;;  %v15262_v10 = vld [vmem:[#allocation31_spill] sm:$0xff] }
 0xab3   :  { %11169 = vmatpush1.bf16.msra.mxu1 %v14355_v2  ;;  %11193 = vmatpush3.bf16.msra.mxu0 %v14285_v16  ;;  %12251 = vrcp.f32 %v5435_v27  ;;  %v15264_v27 = vld [vmem:[#allocation33_spill] sm:$0xff] }
 0xab4   :  { %11195 = vmatprep.subr.bf16.mxu0 %v14142_v24  ;;  %11226 = vmatprep.subr.bf16.mxu1 %v15181_v35 }
 0xabc   :  { %v12250_v12 = vpop.eup %12249 }
 0xabd   :  { %v5438_v36 = vmul.f32 %v12250_v12, %v5400_v57  ;;  %v12252_v32 = vpop.eup %12251  ;;  %v15265_v57 = vld [vmem:[#allocation34_spill] sm:$0xff]  ;;  %v15266_v12 = vld [vmem:[#allocation41_spill] sm:$0xff] }
 0xabe   :  { %v5441_v45 = vsub.f32 1.0, %v12252_v32  ;;  %v5443_v43 = vmul.f32 0.0, %v12252_v32 }
 0xabf   :  { %v5439_v38 = vadd.f32 %v5438_v36, %v4958_v37 }
 0xac1   :  { %12253 = vtanh.f32 %v5439_v38  ;;  %v15267_v38 = vld [vmem:[#allocation53_spill] sm:$0xff] }
 0xacb   :  { %v12254_v52 = vpop.eup %12253 }
 0xacc   :  { %v5442_v14 = vmul.f32 %v12254_v52, %v5441_v45 }
 0xace   :  { %v14531_v28 = vadd.f32 %v5443_v43, %v5442_v14  ;;  %v15268_v43 = vld [vmem:[#allocation40_spill] sm:$0xff] }
 0xad0   :  { %5657 = vmatmul.mubr.f32.vlgmr.msra.gmra.mrb[76].mxu1 %v14531_v28  ;;  %9332 = vmatmul.mubr.f32.vlgmr.msra.gmra.mrb[66].mxu0 %v14531_v28 }
 0xad1   :  { %11197 = vmatpush1.bf16.msra.mxu0 %v14148_v58  ;;  %11228 = vmatpush3.bf16.msra.mxu1 %v14210_v11 }
 0xad2   :  { %11199 = vmatprep.subr.bf16.mxu0 %v14151_v5  ;;  %11229 = vmatprep.subr.bf16.mxu1 %v15181_v35 }
 0xad3   :  { %5845 = vmatprep.mubr.f32.mxu0 %v15182_v9  ;;  %9366 = vmatprep.mubr.msk.f32.mxu1 %vm12642_vm0, %v15182_v9 }
 0xad5   :  { %11201 = vmatpush1.bf16.msra.mxu0 %v14156_v30  ;;  %11231 = vmatpush3.bf16.msra.mxu1 %v14220_v48 }
 0xad6   :  { %11203 = vmatprep.subr.bf16.mxu0 %v14159_v40  ;;  %11232 = vmatprep.subr.bf16.mxu1 %v15181_v35 }
 0xad9   :  { %11205 = vmatpush1.bf16.msra.mxu0 %v14164_v54  ;;  %11234 = vmatpush3.bf16.msra.mxu1 %v14232_v62 }
 0xada   :  { %11207 = vmatprep.subr.bf16.mxu0 %v14167_v60  ;;  %11235 = vmatprep.subr.bf16.mxu1 %v15181_v35 }
 0xadd   :  { %11209 = vmatpush1.bf16.msra.mxu0 %v14172_v55  ;;  %11237 = vmatpush3.bf16.msra.mxu1 %v14242_v17 }
 0xade   :  { %11211 = vmatprep.subr.bf16.mxu0 %v14175_v23  ;;  %11238 = vmatprep.subr.bf16.mxu1 %v15181_v35 }
 0xae1   :  { %11213 = vmatpush1.bf16.msra.mxu0 %v14180_v33  ;;  %11240 = vmatpush3.bf16.msra.mxu1 %v15256_v61 }
 0xae2   :  { %11215 = vmatprep.subr.bf16.mxu0 %v15257_v53  ;;  %11241 = vmatprep.subr.bf16.mxu1 %v15181_v35  ;;  %v15269_v53 = vld [vmem:[#allocation43_spill] sm:$0xff] }
 0xae5   :  { %11217 = vmatpush1.bf16.msra.mxu0 %v15258_v29  ;;  %11243 = vmatpush3.bf16.msra.mxu1 %v15259_v50 }
 0xae6   :  { %11219 = vmatprep.subr.bf16.mxu0 %v15260_v4  ;;  %11244 = vmatprep.subr.bf16.mxu1 %v15181_v35 }
 0xae9   :  { %11221 = vmatpush1.bf16.msra.mxu0 %v15261_v22  ;;  %11246 = vmatpush3.bf16.msra.mxu1 %v15262_v10 }
 0xaea   :  { %11223 = vmatprep.subr.bf16.mxu0 %v15263_v13  ;;  %11247 = vmatprep.subr.bf16.mxu1 %v15181_v35 }
 0xaed   :  { %11225 = vmatpush1.bf16.msra.mxu0 %v15264_v27  ;;  %11249 = vmatpush3.bf16.msra.mxu1 %v15265_v57 }
 0xaee   :  { %11251 = vmatprep.subr.bf16.mxu1 %v15266_v12  ;;  %11282 = vmatprep.subr.bf16.mxu0 %v15181_v35 }
 0xb69   :  { %v5517_v37 = vpop.f32.mrb[34].mxu0  ;;  %v5588_v36 = vpop.f32.mrb[82].mxu1 }
 0xb6a   :  { %v11935_v32 = vadd.f32 %v15267_v38, %v5517_v37  ;;  %v5519_v45 = vpop.f32.mrb[35].mxu0  ;;  %v9298_v52 = vpop.f32.mrb[83].mxu1  ;;  %v5589_v12 = vadd.f32 %v5588_v36, %v14463_v49 }
 0xb6b   :  { %v11937_v10 = vadd.f32 %v15268_v43, %v5519_v45 }
 0xb6c   :  { %v7814_v14 = vmul.f32 -1.442695, %v11935_v32 }
 0xb6d   :  { %v7815_v13 = vmul.f32 -1.442695, %v11937_v10 }
 0xb6e   :  { %12255 = vpow2.f32 %v7814_v14 }
 0xb6f   :  { %12257 = vpow2.f32 %v7815_v13 }
 0xb78   :  { %v12256_v22 = vpop.eup %12255 }
 0xb79   :  { %v5737_v27 = vadd.f32 1.0, %v12256_v22  ;;  %v12258_v57 = vpop.eup %12257 }
 0xb7a   :  { %v5744_v4 = vadd.f32 1.0, %v12258_v57 }
 0xb7b   :  { %12259 = vrcp.f32 %v5737_v27 }
 0xb7c   :  { %12261 = vrcp.f32 %v5744_v4 }
 0xb85   :  { %v12260_v50 = vpop.eup %12259 }
 0xb86   :  { %v5747_v29 = vmul.f32 %v12260_v50, %v5589_v12  ;;  %v12262_v52 = vpop.eup %12261 }
 0xb87   :  { %v5750_v32 = vsub.f32 1.0, %v12262_v52  ;;  %v5752_v10 = vmul.f32 %v12262_v52, %v14470_v18 }
 0xb88   :  { %v5748_v37 = vadd.f32 %v5747_v29, %v15269_v53 }
 0xb8a   :  { %12263 = vtanh.f32 %v5748_v37 }
 0xb94   :  { %v12264_v38 = vpop.eup %12263 }
 0xb95   :  { %v5751_v45 = vmul.f32 %v12264_v38, %v5750_v32 }
 0xb97   :  { %v14575_v13 = vadd.f32 %v5752_v10, %v5751_v45  ;;  %v15270_v45 = vld [vmem:[#allocation39_spill] sm:$0xff] }
 0xb99   :  { %5846 = vmatmul.mubr.f32.vlgmr.msra.gmra.mrb[36].mxu0 %v14575_v13  ;;  %9367 = vmatmul.mubr.f32.vlgmr.msra.gmra.mrb[84].mxu1 %v14575_v13 }
 0xb9a   :  { %11253 = vmatpush1.bf16.msra.mxu1 %v14295_v44  ;;  %11284 = vmatpush3.bf16.msra.mxu0 %v14212_v59 }
 0xb9b   :  { %11255 = vmatprep.subr.bf16.mxu1 %v14299_v51  ;;  %11285 = vmatprep.subr.bf16.mxu0 %v15181_v35 }
 0xb9c   :  { %5986 = vmatprep.mubr.f32.mxu1 %v15182_v9  ;;  %9401 = vmatprep.mubr.msk.f32.mxu0 %vm12642_vm0, %v15182_v9 }
 0xb9e   :  { %11257 = vmatpush1.bf16.msra.mxu1 %v14305_v42  ;;  %11287 = vmatpush3.bf16.msra.mxu0 %v14223_v56 }
 0xb9f   :  { %11259 = vmatprep.subr.bf16.mxu1 %v14309_v8  ;;  %11288 = vmatprep.subr.bf16.mxu0 %v15181_v35 }
 0xba2   :  { %11261 = vmatpush1.bf16.msra.mxu1 %v14315_v46  ;;  %11290 = vmatpush3.bf16.msra.mxu0 %v14235_v0 }
 0xba3   :  { %v5658_v18 = vpop.f32.mrb[76].mxu1  ;;  %v5729_v53 = vpop.f32.mrb[66].mxu0  ;;  %11263 = vmatprep.subr.bf16.mxu1 %v14318_v20  ;;  %11291 = vmatprep.subr.bf16.mxu0 %v15181_v35 }
 0xba4   :  { %v11987_v29 = vadd.f32 %v14494_v25, %v5658_v18  ;;  %v5660_v50 = vpop.f32.mrb[77].mxu1  ;;  %v9333_v4 = vpop.f32.mrb[67].mxu0  ;;  %v5730_v37 = vadd.f32 %v5729_v53, %v14525_v21  ;;  %v15272_v53 = vld [vmem:[#allocation46_spill] sm:$0xff] }
 0xba5   :  { %v11989_v27 = vadd.f32 %v14498_v6, %v5660_v50 }
 0xba6   :  { %v7816_v22 = vmul.f32 -1.442695, %v11987_v29  ;;  %11265 = vmatpush1.bf16.msra.mxu1 %v14323_v3  ;;  %11293 = vmatpush3.bf16.msra.mxu0 %v14245_v19 }
 0xba7   :  { %11267 = vmatprep.subr.bf16.mxu1 %v14326_v47  ;;  %11294 = vmatprep.subr.bf16.mxu0 %v15181_v35  ;;  %v7817_v57 = vmul.f32 -1.442695, %v11989_v27 }
 0xba8   :  { %12265 = vpow2.f32 %v7816_v22 }
 0xba9   :  { %12267 = vpow2.f32 %v7817_v57  ;;  %v15273_v57 = vld [vmem:[#allocation35_spill] sm:$0xff] }
 0xbaa   :  { %11269 = vmatpush1.bf16.msra.mxu1 %v14331_v7  ;;  %11296 = vmatpush3.bf16.msra.mxu0 %v14255_v26 }
 0xbab   :  { %11271 = vmatprep.subr.bf16.mxu1 %v14334_v63  ;;  %11297 = vmatprep.subr.bf16.mxu0 %v15181_v35 }
 0xbae   :  { %11273 = vmatpush1.bf16.msra.mxu1 %v14339_v1  ;;  %11299 = vmatpush3.bf16.msra.mxu0 %v14265_v34 }
 0xbaf   :  { %11275 = vmatprep.subr.bf16.mxu1 %v14342_v15  ;;  %11300 = vmatprep.subr.bf16.mxu0 %v15181_v35 }
 0xbb2   :  { %v12266_v12 = vpop.eup %12265  ;;  %11277 = vmatpush1.bf16.msra.mxu1 %v14347_v39  ;;  %11302 = vmatpush3.bf16.msra.mxu0 %v14275_v41 }
 0xbb3   :  { %v5758_v36 = vadd.f32 1.0, %v12266_v12  ;;  %11279 = vmatprep.subr.bf16.mxu1 %v14350_v31  ;;  %11303 = vmatprep.subr.bf16.mxu0 %v15181_v35  ;;  %v12268_v38 = vpop.eup %12267  ;;  %v15274_v12 = vld [vmem:[#allocation29_spill] sm:$0xff] }
 0xbb4   :  { %v5765_v14 = vadd.f32 1.0, %v12268_v38  ;;  %v15276_v38 = vld [vmem:[#allocation31_spill] sm:$0xff] }
 0xbb5   :  { %12269 = vrcp.f32 %v5758_v36  ;;  %v15275_v36 = vld [vmem:[#allocation36_spill] sm:$0xff] }
 0xbb6   :  { %11281 = vmatpush1.bf16.msra.mxu1 %v14355_v2  ;;  %11305 = vmatpush3.bf16.msra.mxu0 %v14285_v16  ;;  %12271 = vrcp.f32 %v5765_v14  ;;  %v15277_v14 = vld [vmem:[#allocation32_spill] sm:$0xff] }
 0xbb7   :  { %11307 = vmatprep.subr.bf16.mxu0 %v14142_v24  ;;  %11338 = vmatprep.subr.bf16.mxu1 %v15181_v35 }
 0xbbf   :  { %v12270_v52 = vpop.eup %12269 }
 0xbc0   :  { %v5768_v32 = vmul.f32 %v12270_v52, %v5730_v37  ;;  %v12272_v18 = vpop.eup %12271  ;;  %v15278_v37 = vld [vmem:[#allocation33_spill] sm:$0xff]  ;;  %v15279_v52 = vld [vmem:[#allocation34_spill] sm:$0xff] }
 0xbc1   :  { %v5771_v29 = vsub.f32 1.0, %v12272_v18  ;;  %v5773_v22 = vmul.f32 %v12272_v18, %v14531_v28  ;;  %v15271_v28 = vld [vmem:[#allocation45_spill] sm:$0xff] }
 0xbc2   :  { %v5769_v10 = vadd.f32 %v5768_v32, %v15270_v45  ;;  %v15280_v32 = vld [vmem:[#allocation41_spill] sm:$0xff] }
 0xbc3   :  { %v15281_v18 = vld [vmem:[#allocation53_spill] sm:$0xff] }
 0xbc4   :  { %12273 = vtanh.f32 %v5769_v10 }
 0xbce   :  { %v12274_v50 = vpop.eup %12273 }
 0xbcf   :  { %v5772_v4 = vmul.f32 %v12274_v50, %v5771_v29 }
 0xbd1   :  { %v14619_v27 = vadd.f32 %v5773_v22, %v5772_v4 }
 0xbd3   :  { %5987 = vmatmul.mubr.f32.vlgmr.msra.gmra.mrb[74].mxu1 %v14619_v27  ;;  %9402 = vmatmul.mubr.f32.vlgmr.msra.gmra.mrb[68].mxu0 %v14619_v27 }
 0xbd4   :  { %11309 = vmatpush1.bf16.msra.mxu0 %v14148_v58  ;;  %11340 = vmatpush3.bf16.msra.mxu1 %v14210_v11 }
 0xbd5   :  { %11311 = vmatprep.subr.bf16.mxu0 %v14151_v5  ;;  %11341 = vmatprep.subr.bf16.mxu1 %v15181_v35 }
 0xbd6   :  { %6175 = vmatprep.mubr.f32.mxu0 %v15182_v9  ;;  %9436 = vmatprep.mubr.msk.f32.mxu1 %vm12642_vm0, %v15182_v9 }
 0xbd8   :  { %11313 = vmatpush1.bf16.msra.mxu0 %v14156_v30  ;;  %11343 = vmatpush3.bf16.msra.mxu1 %v14220_v48 }
 0xbd9   :  { %11315 = vmatprep.subr.bf16.mxu0 %v14159_v40  ;;  %11344 = vmatprep.subr.bf16.mxu1 %v15181_v35 }
 0xbdc   :  { %11317 = vmatpush1.bf16.msra.mxu0 %v14164_v54  ;;  %11346 = vmatpush3.bf16.msra.mxu1 %v14232_v62 }
 0xbdd   :  { %11319 = vmatprep.subr.bf16.mxu0 %v14167_v60  ;;  %11347 = vmatprep.subr.bf16.mxu1 %v15181_v35 }
 0xbe0   :  { %11321 = vmatpush1.bf16.msra.mxu0 %v14172_v55  ;;  %11349 = vmatpush3.bf16.msra.mxu1 %v14242_v17 }
 0xbe1   :  { %11323 = vmatprep.subr.bf16.mxu0 %v14175_v23  ;;  %11350 = vmatprep.subr.bf16.mxu1 %v15181_v35 }
 0xbe4   :  { %11325 = vmatpush1.bf16.msra.mxu0 %v14180_v33  ;;  %11352 = vmatpush3.bf16.msra.mxu1 %v15256_v61 }
 0xbe5   :  { %11327 = vmatprep.subr.bf16.mxu0 %v15271_v28  ;;  %11353 = vmatprep.subr.bf16.mxu1 %v15181_v35  ;;  %v15282_v28 = vld [vmem:[#allocation48_spill] sm:$0xff] }
 0xbe8   :  { %11329 = vmatpush1.bf16.msra.mxu0 %v15272_v53  ;;  %11355 = vmatpush3.bf16.msra.mxu1 %v15273_v57 }
 0xbe9   :  { %11331 = vmatprep.subr.bf16.mxu0 %v15274_v12  ;;  %11356 = vmatprep.subr.bf16.mxu1 %v15181_v35 }
 0xbec   :  { %11333 = vmatpush1.bf16.msra.mxu0 %v15275_v36  ;;  %11358 = vmatpush3.bf16.msra.mxu1 %v15276_v38 }
 0xbed   :  { %11335 = vmatprep.subr.bf16.mxu0 %v15277_v14  ;;  %11359 = vmatprep.subr.bf16.mxu1 %v15181_v35 }
 0xbf0   :  { %11337 = vmatpush1.bf16.msra.mxu0 %v15278_v37  ;;  %11361 = vmatpush3.bf16.msra.mxu1 %v15279_v52 }
 0xbf1   :  { %11363 = vmatprep.subr.bf16.mxu1 %v15280_v32  ;;  %11394 = vmatprep.subr.bf16.mxu0 %v15181_v35 }
 0xc6c   :  { %v5847_v45 = vpop.f32.mrb[36].mxu0  ;;  %v5918_v10 = vpop.f32.mrb[84].mxu1 }
 0xc6d   :  { %v11939_v29 = vadd.f32 %v15281_v18, %v5847_v45  ;;  %v5849_v50 = vpop.f32.mrb[37].mxu0  ;;  %v9368_v4 = vpop.f32.mrb[85].mxu1  ;;  %v5919_v32 = vadd.f32 %v5918_v10, %v14463_v49 }
 0xc6e   :  { %v11941_v38 = vadd.f32 %v15268_v43, %v5849_v50 }
 0xc6f   :  { %v7818_v22 = vmul.f32 -1.442695, %v11939_v29 }
 0xc70   :  { %v7819_v14 = vmul.f32 -1.442695, %v11941_v38 }
 0xc71   :  { %12275 = vpow2.f32 %v7818_v22 }
 0xc72   :  { %12277 = vpow2.f32 %v7819_v14 }
 0xc7b   :  { %v12276_v36 = vpop.eup %12275 }
 0xc7c   :  { %v6067_v37 = vadd.f32 1.0, %v12276_v36  ;;  %v12278_v52 = vpop.eup %12277 }
 0xc7d   :  { %v6074_v12 = vadd.f32 1.0, %v12278_v52 }
 0xc7e   :  { %12279 = vrcp.f32 %v6067_v37 }
 0xc7f   :  { %12281 = vrcp.f32 %v6074_v12 }
 0xc88   :  { %v12280_v57 = vpop.eup %12279 }
 0xc89   :  { %v6077_v53 = vmul.f32 %v12280_v57, %v5919_v32  ;;  %v12282_v4 = vpop.eup %12281 }
 0xc8a   :  { %v6080_v29 = vsub.f32 1.0, %v12282_v4  ;;  %v6082_v38 = vmul.f32 %v12282_v4, %v14575_v13 }
 0xc8b   :  { %v6078_v45 = vadd.f32 %v6077_v53, %v15282_v28 }
 0xc8d   :  { %12283 = vtanh.f32 %v6078_v45 }
 0xc97   :  { %v12284_v18 = vpop.eup %12283 }
 0xc98   :  { %v6081_v50 = vmul.f32 %v12284_v18, %v6080_v29 }
 0xc9a   :  { %v14663_v14 = vadd.f32 %v6082_v38, %v6081_v50  ;;  %v15283_v50 = vld [vmem:[#allocation52_spill] sm:$0xff] }
 0xc9c   :  { %6176 = vmatmul.mubr.f32.vlgmr.msra.gmra.mrb[38].mxu0 %v14663_v14  ;;  %9437 = vmatmul.mubr.f32.vlgmr.msra.gmra.mrb[86].mxu1 %v14663_v14 }
 0xc9d   :  { %11365 = vmatpush1.bf16.msra.mxu1 %v14295_v44  ;;  %11396 = vmatpush3.bf16.msra.mxu0 %v14212_v59 }
 0xc9e   :  { %11367 = vmatprep.subr.bf16.mxu1 %v14299_v51  ;;  %11397 = vmatprep.subr.bf16.mxu0 %v15181_v35 }
 0xc9f   :  { %6316 = vmatprep.mubr.f32.mxu1 %v15182_v9  ;;  %9471 = vmatprep.mubr.msk.f32.mxu0 %vm12642_vm0, %v15182_v9 }
 0xca1   :  { %11369 = vmatpush1.bf16.msra.mxu1 %v14305_v42  ;;  %11399 = vmatpush3.bf16.msra.mxu0 %v14223_v56 }
 0xca2   :  { %11371 = vmatprep.subr.bf16.mxu1 %v14309_v8  ;;  %11400 = vmatprep.subr.bf16.mxu0 %v15181_v35 }
 0xca5   :  { %11373 = vmatpush1.bf16.msra.mxu1 %v14315_v46  ;;  %11402 = vmatpush3.bf16.msra.mxu0 %v14235_v0 }
 0xca6   :  { %v5988_v13 = vpop.f32.mrb[74].mxu1  ;;  %v6059_v28 = vpop.f32.mrb[68].mxu0  ;;  %11375 = vmatprep.subr.bf16.mxu1 %v14318_v20  ;;  %11403 = vmatprep.subr.bf16.mxu0 %v15181_v35 }
 0xca7   :  { %v11983_v53 = vadd.f32 %v14494_v25, %v5988_v13  ;;  %v5990_v57 = vpop.f32.mrb[75].mxu1  ;;  %v9403_v12 = vpop.f32.mrb[69].mxu0  ;;  %v6060_v45 = vadd.f32 %v6059_v28, %v14525_v21  ;;  %v15285_v28 = vld [vmem:[#allocation46_spill] sm:$0xff] }
 0xca8   :  { %v11985_v37 = vadd.f32 %v14498_v6, %v5990_v57 }
 0xca9   :  { %v7820_v36 = vmul.f32 -1.442695, %v11983_v53  ;;  %11377 = vmatpush1.bf16.msra.mxu1 %v14323_v3  ;;  %11405 = vmatpush3.bf16.msra.mxu0 %v14245_v19 }
 0xcaa   :  { %11379 = vmatprep.subr.bf16.mxu1 %v14326_v47  ;;  %11406 = vmatprep.subr.bf16.mxu0 %v15181_v35  ;;  %v7821_v52 = vmul.f32 -1.442695, %v11985_v37 }
 0xcab   :  { %12285 = vpow2.f32 %v7820_v36 }
 0xcac   :  { %12287 = vpow2.f32 %v7821_v52  ;;  %v15286_v52 = vld [vmem:[#allocation35_spill] sm:$0xff] }
 0xcad   :  { %11381 = vmatpush1.bf16.msra.mxu1 %v14331_v7  ;;  %11408 = vmatpush3.bf16.msra.mxu0 %v14255_v26 }
 0xcae   :  { %11383 = vmatprep.subr.bf16.mxu1 %v14334_v63  ;;  %11409 = vmatprep.subr.bf16.mxu0 %v15181_v35 }
 0xcb1   :  { %11385 = vmatpush1.bf16.msra.mxu1 %v14339_v1  ;;  %11411 = vmatpush3.bf16.msra.mxu0 %v14265_v34 }
 0xcb2   :  { %11387 = vmatprep.subr.bf16.mxu1 %v14342_v15  ;;  %11412 = vmatprep.subr.bf16.mxu0 %v15181_v35 }
 0xcb5   :  { %v12286_v32 = vpop.eup %12285  ;;  %11389 = vmatpush1.bf16.msra.mxu1 %v14347_v39  ;;  %11414 = vmatpush3.bf16.msra.mxu0 %v14275_v41 }
 0xcb6   :  { %v6088_v10 = vadd.f32 1.0, %v12286_v32  ;;  %11391 = vmatprep.subr.bf16.mxu1 %v14350_v31  ;;  %11415 = vmatprep.subr.bf16.mxu0 %v15181_v35  ;;  %v12288_v18 = vpop.eup %12287  ;;  %v15287_v32 = vld [vmem:[#allocation29_spill] sm:$0xff] }
 0xcb7   :  { %v6095_v22 = vadd.f32 1.0, %v12288_v18  ;;  %v15289_v18 = vld [vmem:[#allocation31_spill] sm:$0xff] }
 0xcb8   :  { %12289 = vrcp.f32 %v6088_v10  ;;  %v15288_v10 = vld [vmem:[#allocation36_spill] sm:$0xff] }
 0xcb9   :  { %11393 = vmatpush1.bf16.msra.mxu1 %v14355_v2  ;;  %11417 = vmatpush3.bf16.msra.mxu0 %v14285_v16  ;;  %12291 = vrcp.f32 %v6095_v22  ;;  %v15290_v22 = vld [vmem:[#allocation32_spill] sm:$0xff] }
 0xcba   :  { %11419 = vmatprep.subr.bf16.mxu0 %v14142_v24  ;;  %11450 = vmatprep.subr.bf16.mxu1 %v15181_v35 }
 0xcc2   :  { %v12290_v4 = vpop.eup %12289 }
 0xcc3   :  { %v6098_v29 = vmul.f32 %v12290_v4, %v6060_v45  ;;  %v12292_v13 = vpop.eup %12291  ;;  %v15291_v45 = vld [vmem:[#allocation33_spill] sm:$0xff]  ;;  %v15292_v4 = vld [vmem:[#allocation34_spill] sm:$0xff] }
 0xcc4   :  { %v6101_v53 = vsub.f32 1.0, %v12292_v13  ;;  %v6103_v36 = vmul.f32 %v12292_v13, %v14619_v27  ;;  %v15284_v27 = vld [vmem:[#allocation45_spill] sm:$0xff] }
 0xcc5   :  { %v6099_v38 = vadd.f32 %v6098_v29, %v15283_v50  ;;  %v15293_v29 = vld [vmem:[#allocation41_spill] sm:$0xff] }
 0xcc6   :  { %v15294_v13 = vld [vmem:[#allocation53_spill] sm:$0xff] }
 0xcc7   :  { %12293 = vtanh.f32 %v6099_v38 }
 0xcd1   :  { %v12294_v57 = vpop.eup %12293 }
 0xcd2   :  { %v6102_v12 = vmul.f32 %v12294_v57, %v6101_v53 }
 0xcd4   :  { %v14707_v37 = vadd.f32 %v6103_v36, %v6102_v12 }
 0xcd6   :  { %6317 = vmatmul.mubr.f32.vlgmr.msra.gmra.mrb[72].mxu1 %v14707_v37  ;;  %9472 = vmatmul.mubr.f32.vlgmr.msra.gmra.mrb[70].mxu0 %v14707_v37 }
 0xcd7   :  { %11421 = vmatpush1.bf16.msra.mxu0 %v14148_v58  ;;  %11452 = vmatpush3.bf16.msra.mxu1 %v14210_v11 }
 0xcd8   :  { %11423 = vmatprep.subr.bf16.mxu0 %v14151_v5  ;;  %11453 = vmatprep.subr.bf16.mxu1 %v15181_v35 }
 0xcd9   :  { %6505 = vmatprep.mubr.f32.mxu0 %v15182_v9  ;;  %9506 = vmatprep.mubr.msk.f32.mxu1 %vm12642_vm0, %v15182_v9 }
 0xcdb   :  { %11425 = vmatpush1.bf16.msra.mxu0 %v14156_v30  ;;  %11455 = vmatpush3.bf16.msra.mxu1 %v14220_v48 }
 0xcdc   :  { %11427 = vmatprep.subr.bf16.mxu0 %v14159_v40  ;;  %11456 = vmatprep.subr.bf16.mxu1 %v15181_v35 }
 0xcdf   :  { %11429 = vmatpush1.bf16.msra.mxu0 %v14164_v54  ;;  %11458 = vmatpush3.bf16.msra.mxu1 %v14232_v62 }
 0xce0   :  { %11431 = vmatprep.subr.bf16.mxu0 %v14167_v60  ;;  %11459 = vmatprep.subr.bf16.mxu1 %v15181_v35 }
 0xce3   :  { %11433 = vmatpush1.bf16.msra.mxu0 %v14172_v55  ;;  %11461 = vmatpush3.bf16.msra.mxu1 %v14242_v17 }
 0xce4   :  { %11435 = vmatprep.subr.bf16.mxu0 %v14175_v23  ;;  %11462 = vmatprep.subr.bf16.mxu1 %v15181_v35 }
 0xce7   :  { %11437 = vmatpush1.bf16.msra.mxu0 %v14180_v33  ;;  %11464 = vmatpush3.bf16.msra.mxu1 %v15256_v61 }
 0xce8   :  { %11439 = vmatprep.subr.bf16.mxu0 %v15284_v27  ;;  %11465 = vmatprep.subr.bf16.mxu1 %v15181_v35  ;;  %v15295_v27 = vld [vmem:[#allocation44_spill] sm:$0xff] }
 0xceb   :  { %11441 = vmatpush1.bf16.msra.mxu0 %v15285_v28  ;;  %11467 = vmatpush3.bf16.msra.mxu1 %v15286_v52 }
 0xcec   :  { %11443 = vmatprep.subr.bf16.mxu0 %v15287_v32  ;;  %11468 = vmatprep.subr.bf16.mxu1 %v15181_v35 }
 0xcef   :  { %11445 = vmatpush1.bf16.msra.mxu0 %v15288_v10  ;;  %11470 = vmatpush3.bf16.msra.mxu1 %v15289_v18 }
 0xcf0   :  { %11447 = vmatprep.subr.bf16.mxu0 %v15290_v22  ;;  %11471 = vmatprep.subr.bf16.mxu1 %v15181_v35 }
 0xcf3   :  { %11449 = vmatpush1.bf16.msra.mxu0 %v15291_v45  ;;  %11473 = vmatpush3.bf16.msra.mxu1 %v15292_v4 }
 0xcf4   :  { %11475 = vmatprep.subr.bf16.mxu1 %v15293_v29  ;;  %11506 = vmatprep.subr.bf16.mxu0 %v15181_v35 }
 0xd6f   :  { %v6177_v50 = vpop.f32.mrb[38].mxu0  ;;  %v6248_v38 = vpop.f32.mrb[86].mxu1 }
 0xd70   :  { %v11943_v53 = vadd.f32 %v15294_v13, %v6177_v50  ;;  %v6179_v57 = vpop.f32.mrb[39].mxu0  ;;  %v9438_v12 = vpop.f32.mrb[87].mxu1  ;;  %v6249_v29 = vadd.f32 %v6248_v38, %v14463_v49 }
 0xd71   :  { %v11945_v18 = vadd.f32 %v15268_v43, %v6179_v57 }
 0xd72   :  { %v7822_v36 = vmul.f32 -1.442695, %v11943_v53 }
 0xd73   :  { %v7823_v22 = vmul.f32 -1.442695, %v11945_v18 }
 0xd74   :  { %12295 = vpow2.f32 %v7822_v36 }
 0xd75   :  { %12297 = vpow2.f32 %v7823_v22 }
 0xd7e   :  { %v12296_v10 = vpop.eup %12295 }
 0xd7f   :  { %v6397_v45 = vadd.f32 1.0, %v12296_v10  ;;  %v12298_v4 = vpop.eup %12297 }
 0xd80   :  { %v6404_v32 = vadd.f32 1.0, %v12298_v4 }
 0xd81   :  { %12299 = vrcp.f32 %v6397_v45 }
 0xd82   :  { %12301 = vrcp.f32 %v6404_v32 }
 0xd8b   :  { %v12300_v52 = vpop.eup %12299 }
 0xd8c   :  { %v6407_v28 = vmul.f32 %v12300_v52, %v6249_v29  ;;  %v12302_v12 = vpop.eup %12301 }
 0xd8d   :  { %v6410_v53 = vsub.f32 1.0, %v12302_v12  ;;  %v6412_v18 = vmul.f32 %v12302_v12, %v14663_v14 }
 0xd8e   :  { %v6408_v50 = vadd.f32 %v6407_v28, %v15295_v27 }
 0xd90   :  { %12303 = vtanh.f32 %v6408_v50 }
 0xd9a   :  { %v12304_v13 = vpop.eup %12303 }
 0xd9b   :  { %v6411_v57 = vmul.f32 %v12304_v13, %v6410_v53 }
 0xd9d   :  { %v14751_v22 = vadd.f32 %v6412_v18, %v6411_v57  ;;  %v15296_v57 = vld [vmem:[#allocation51_spill] sm:$0xff] }
 0xd9f   :  { %6506 = vmatmul.mubr.f32.vlgmr.msra.gmra.mrb[40].mxu0 %v14751_v22  ;;  %9507 = vmatmul.mubr.f32.vlgmr.msra.gmra.mrb[88].mxu1 %v14751_v22 }
 0xda0   :  { %11477 = vmatpush1.bf16.msra.mxu1 %v14295_v44  ;;  %11508 = vmatpush3.bf16.msra.mxu0 %v14212_v59 }
 0xda1   :  { %11479 = vmatprep.subr.bf16.mxu1 %v14299_v51  ;;  %11509 = vmatprep.subr.bf16.mxu0 %v15181_v35 }
 0xda2   :  { %6646 = vmatprep.mubr.f32.mxu1 %v15182_v9  ;;  %9541 = vmatprep.mubr.msk.f32.mxu0 %vm12642_vm0, %v15182_v9 }
 0xda4   :  { %11481 = vmatpush1.bf16.msra.mxu1 %v14305_v42  ;;  %11511 = vmatpush3.bf16.msra.mxu0 %v14223_v56 }
 0xda5   :  { %11483 = vmatprep.subr.bf16.mxu1 %v14309_v8  ;;  %11512 = vmatprep.subr.bf16.mxu0 %v15181_v35 }
 0xda8   :  { %11485 = vmatpush1.bf16.msra.mxu1 %v14315_v46  ;;  %11514 = vmatpush3.bf16.msra.mxu0 %v14235_v0 }
 0xda9   :  { %v6318_v14 = vpop.f32.mrb[72].mxu1  ;;  %v6389_v27 = vpop.f32.mrb[70].mxu0  ;;  %11487 = vmatprep.subr.bf16.mxu1 %v14318_v20  ;;  %11515 = vmatprep.subr.bf16.mxu0 %v15181_v35 }
 0xdaa   :  { %v11979_v28 = vadd.f32 %v14494_v25, %v6318_v14  ;;  %v6320_v52 = vpop.f32.mrb[73].mxu1  ;;  %v9473_v32 = vpop.f32.mrb[71].mxu0  ;;  %v6390_v50 = vadd.f32 %v6389_v27, %v14525_v21  ;;  %v15298_v27 = vld [vmem:[#allocation46_spill] sm:$0xff] }
 0xdab   :  { %v11981_v45 = vadd.f32 %v14498_v6, %v6320_v52 }
 0xdac   :  { %v7824_v10 = vmul.f32 -1.442695, %v11979_v28  ;;  %11489 = vmatpush1.bf16.msra.mxu1 %v14323_v3  ;;  %11517 = vmatpush3.bf16.msra.mxu0 %v14245_v19 }
 0xdad   :  { %11491 = vmatprep.subr.bf16.mxu1 %v14326_v47  ;;  %11518 = vmatprep.subr.bf16.mxu0 %v15181_v35  ;;  %v7825_v4 = vmul.f32 -1.442695, %v11981_v45 }
 0xdae   :  { %12305 = vpow2.f32 %v7824_v10 }
 0xdaf   :  { %12307 = vpow2.f32 %v7825_v4  ;;  %v15299_v4 = vld [vmem:[#allocation35_spill] sm:$0xff] }
 0xdb0   :  { %11493 = vmatpush1.bf16.msra.mxu1 %v14331_v7  ;;  %11520 = vmatpush3.bf16.msra.mxu0 %v14255_v26 }
 0xdb1   :  { %11495 = vmatprep.subr.bf16.mxu1 %v14334_v63  ;;  %11521 = vmatprep.subr.bf16.mxu0 %v15181_v35 }
 0xdb4   :  { %11497 = vmatpush1.bf16.msra.mxu1 %v14339_v1  ;;  %11523 = vmatpush3.bf16.msra.mxu0 %v14265_v34 }
 0xdb5   :  { %11499 = vmatprep.subr.bf16.mxu1 %v14342_v15  ;;  %11524 = vmatprep.subr.bf16.mxu0 %v15181_v35 }
 0xdb8   :  { %v12306_v29 = vpop.eup %12305  ;;  %11501 = vmatpush1.bf16.msra.mxu1 %v14347_v39  ;;  %11526 = vmatpush3.bf16.msra.mxu0 %v14275_v41 }
 0xdb9   :  { %v6418_v38 = vadd.f32 1.0, %v12306_v29  ;;  %11503 = vmatprep.subr.bf16.mxu1 %v14350_v31  ;;  %11527 = vmatprep.subr.bf16.mxu0 %v15181_v35  ;;  %v12308_v13 = vpop.eup %12307  ;;  %v15300_v29 = vld [vmem:[#allocation29_spill] sm:$0xff] }
 0xdba   :  { %v6425_v36 = vadd.f32 1.0, %v12308_v13  ;;  %v15302_v13 = vld [vmem:[#allocation31_spill] sm:$0xff] }
 0xdbb   :  { %12309 = vrcp.f32 %v6418_v38  ;;  %v15301_v38 = vld [vmem:[#allocation36_spill] sm:$0xff] }
 0xdbc   :  { %11505 = vmatpush1.bf16.msra.mxu1 %v14355_v2  ;;  %11529 = vmatpush3.bf16.msra.mxu0 %v14285_v16  ;;  %12311 = vrcp.f32 %v6425_v36  ;;  %v15303_v36 = vld [vmem:[#allocation32_spill] sm:$0xff] }
 0xdbd   :  { %11531 = vmatprep.subr.bf16.mxu0 %v14142_v24  ;;  %11562 = vmatprep.subr.bf16.mxu1 %v15181_v35 }
 0xdc5   :  { %v12310_v12 = vpop.eup %12309 }
 0xdc6   :  { %v6428_v53 = vmul.f32 %v12310_v12, %v6390_v50  ;;  %v12312_v14 = vpop.eup %12311  ;;  %v15304_v50 = vld [vmem:[#allocation33_spill] sm:$0xff]  ;;  %v15305_v12 = vld [vmem:[#allocation34_spill] sm:$0xff] }
 0xdc7   :  { %v6431_v28 = vsub.f32 1.0, %v12312_v14  ;;  %v6433_v10 = vmul.f32 %v12312_v14, %v14707_v37  ;;  %v15297_v37 = vld [vmem:[#allocation45_spill] sm:$0xff] }
 0xdc8   :  { %v6429_v18 = vadd.f32 %v6428_v53, %v15296_v57  ;;  %v15306_v53 = vld [vmem:[#allocation41_spill] sm:$0xff] }
 0xdc9   :  { %v15307_v14 = vld [vmem:[#allocation53_spill] sm:$0xff] }
 0xdca   :  { %12313 = vtanh.f32 %v6429_v18 }
 0xdd4   :  { %v12314_v52 = vpop.eup %12313 }
 0xdd5   :  { %v6432_v32 = vmul.f32 %v12314_v52, %v6431_v28 }
 0xdd7   :  { %v14795_v45 = vadd.f32 %v6433_v10, %v6432_v32 }
 0xdd9   :  { %6647 = vmatmul.mubr.f32.vlgmr.msra.gmra.mrb[70].mxu1 %v14795_v45  ;;  %9542 = vmatmul.mubr.f32.vlgmr.msra.gmra.mrb[72].mxu0 %v14795_v45 }
 0xdda   :  { %11533 = vmatpush1.bf16.msra.mxu0 %v14148_v58  ;;  %11564 = vmatpush3.bf16.msra.mxu1 %v14210_v11 }
 0xddb   :  { %11535 = vmatprep.subr.bf16.mxu0 %v14151_v5  ;;  %11565 = vmatprep.subr.bf16.mxu1 %v15181_v35 }
 0xddc   :  { %6835 = vmatprep.mubr.f32.mxu0 %v15182_v9  ;;  %9576 = vmatprep.mubr.msk.f32.mxu1 %vm12642_vm0, %v15182_v9 }
 0xdde   :  { %11537 = vmatpush1.bf16.msra.mxu0 %v14156_v30  ;;  %11567 = vmatpush3.bf16.msra.mxu1 %v14220_v48 }
 0xddf   :  { %11539 = vmatprep.subr.bf16.mxu0 %v14159_v40  ;;  %11568 = vmatprep.subr.bf16.mxu1 %v15181_v35 }
 0xde2   :  { %11541 = vmatpush1.bf16.msra.mxu0 %v14164_v54  ;;  %11570 = vmatpush3.bf16.msra.mxu1 %v14232_v62 }
 0xde3   :  { %11543 = vmatprep.subr.bf16.mxu0 %v14167_v60  ;;  %11571 = vmatprep.subr.bf16.mxu1 %v15181_v35 }
 0xde6   :  { %11545 = vmatpush1.bf16.msra.mxu0 %v14172_v55  ;;  %11573 = vmatpush3.bf16.msra.mxu1 %v14242_v17 }
 0xde7   :  { %11547 = vmatprep.subr.bf16.mxu0 %v14175_v23  ;;  %11574 = vmatprep.subr.bf16.mxu1 %v15181_v35 }
 0xdea   :  { %11549 = vmatpush1.bf16.msra.mxu0 %v14180_v33  ;;  %11576 = vmatpush3.bf16.msra.mxu1 %v15256_v61 }
 0xdeb   :  { %11551 = vmatprep.subr.bf16.mxu0 %v15297_v37  ;;  %11577 = vmatprep.subr.bf16.mxu1 %v15181_v35  ;;  %v15308_v37 = vld [vmem:[#allocation28_spill] sm:$0xff] }
 0xdee   :  { %11553 = vmatpush1.bf16.msra.mxu0 %v15298_v27  ;;  %11579 = vmatpush3.bf16.msra.mxu1 %v15299_v4 }
 0xdef   :  { %11555 = vmatprep.subr.bf16.mxu0 %v15300_v29  ;;  %11580 = vmatprep.subr.bf16.mxu1 %v15181_v35 }
 0xdf2   :  { %11557 = vmatpush1.bf16.msra.mxu0 %v15301_v38  ;;  %11582 = vmatpush3.bf16.msra.mxu1 %v15302_v13 }
 0xdf3   :  { %11559 = vmatprep.subr.bf16.mxu0 %v15303_v36  ;;  %11583 = vmatprep.subr.bf16.mxu1 %v15181_v35 }
 0xdf6   :  { %11561 = vmatpush1.bf16.msra.mxu0 %v15304_v50  ;;  %11585 = vmatpush3.bf16.msra.mxu1 %v15305_v12 }
 0xdf7   :  { %11587 = vmatprep.subr.bf16.mxu1 %v15306_v53  ;;  %11618 = vmatprep.subr.bf16.mxu0 %v15181_v35 }
 0xe72   :  { %v6507_v57 = vpop.f32.mrb[40].mxu0  ;;  %v6578_v18 = vpop.f32.mrb[88].mxu1 }
 0xe73   :  { %v11947_v28 = vadd.f32 %v15307_v14, %v6507_v57  ;;  %v6509_v52 = vpop.f32.mrb[41].mxu0  ;;  %v9508_v32 = vpop.f32.mrb[89].mxu1  ;;  %v6579_v53 = vadd.f32 %v6578_v18, %v14463_v49 }
 0xe74   :  { %v11949_v13 = vadd.f32 %v15268_v43, %v6509_v52 }
 0xe75   :  { %v7826_v10 = vmul.f32 -1.442695, %v11947_v28 }
 0xe76   :  { %v7827_v36 = vmul.f32 -1.442695, %v11949_v13 }
 0xe77   :  { %12315 = vpow2.f32 %v7826_v10 }
 0xe78   :  { %12317 = vpow2.f32 %v7827_v36 }
 0xe81   :  { %v12316_v38 = vpop.eup %12315 }
 0xe82   :  { %v6727_v50 = vadd.f32 1.0, %v12316_v38  ;;  %v12318_v12 = vpop.eup %12317 }
 0xe83   :  { %v6734_v29 = vadd.f32 1.0, %v12318_v12 }
 0xe84   :  { %12319 = vrcp.f32 %v6727_v50 }
 0xe85   :  { %12321 = vrcp.f32 %v6734_v29 }
 0xe8e   :  { %v12320_v4 = vpop.eup %12319 }
 0xe8f   :  { %v6737_v27 = vmul.f32 %v12320_v4, %v6579_v53  ;;  %v12322_v32 = vpop.eup %12321 }
 0xe90   :  { %v6740_v28 = vsub.f32 1.0, %v12322_v32  ;;  %v6742_v13 = vmul.f32 %v12322_v32, %v14751_v22 }
 0xe91   :  { %v6738_v57 = vadd.f32 %v6737_v27, %v15308_v37 }
 0xe93   :  { %12323 = vtanh.f32 %v6738_v57 }
 0xe9d   :  { %v12324_v14 = vpop.eup %12323 }
 0xe9e   :  { %v6741_v52 = vmul.f32 %v12324_v14, %v6740_v28 }
 0xea0   :  { %v14839_v36 = vadd.f32 %v6742_v13, %v6741_v52  ;;  %v15309_v52 = vld [vmem:[#allocation50_spill] sm:$0xff] }
 0xea2   :  { %6836 = vmatmul.mubr.f32.vlgmr.msra.gmra.mrb[42].mxu0 %v14839_v36  ;;  %9577 = vmatmul.mubr.f32.vlgmr.msra.gmra.mrb[90].mxu1 %v14839_v36 }
 0xea3   :  { %11589 = vmatpush1.bf16.msra.mxu1 %v14295_v44  ;;  %11620 = vmatpush3.bf16.msra.mxu0 %v14212_v59 }
 0xea4   :  { %11591 = vmatprep.subr.bf16.mxu1 %v14299_v51  ;;  %11621 = vmatprep.subr.bf16.mxu0 %v15181_v35 }
 0xea5   :  { %6976 = vmatprep.mubr.f32.mxu1 %v15182_v9  ;;  %9611 = vmatprep.mubr.msk.f32.mxu0 %vm12642_vm0, %v15182_v9 }
 0xea7   :  { %11593 = vmatpush1.bf16.msra.mxu1 %v14305_v42  ;;  %11623 = vmatpush3.bf16.msra.mxu0 %v14223_v56 }
 0xea8   :  { %11595 = vmatprep.subr.bf16.mxu1 %v14309_v8  ;;  %11624 = vmatprep.subr.bf16.mxu0 %v15181_v35 }
 0xeab   :  { %11597 = vmatpush1.bf16.msra.mxu1 %v14315_v46  ;;  %11626 = vmatpush3.bf16.msra.mxu0 %v14235_v0 }
 0xeac   :  { %v6648_v22 = vpop.f32.mrb[70].mxu1  ;;  %v6719_v37 = vpop.f32.mrb[72].mxu0  ;;  %11599 = vmatprep.subr.bf16.mxu1 %v14318_v20  ;;  %11627 = vmatprep.subr.bf16.mxu0 %v15181_v35 }
 0xead   :  { %v11975_v27 = vadd.f32 %v14494_v25, %v6648_v22  ;;  %v6650_v4 = vpop.f32.mrb[71].mxu1  ;;  %v9543_v29 = vpop.f32.mrb[73].mxu0  ;;  %v6720_v57 = vadd.f32 %v6719_v37, %v14525_v21  ;;  %v15311_v37 = vld [vmem:[#allocation46_spill] sm:$0xff] }
 0xeae   :  { %v11977_v50 = vadd.f32 %v14498_v6, %v6650_v4 }
 0xeaf   :  { %v7828_v38 = vmul.f32 -1.442695, %v11975_v27  ;;  %11601 = vmatpush1.bf16.msra.mxu1 %v14323_v3  ;;  %11629 = vmatpush3.bf16.msra.mxu0 %v14245_v19 }
 0xeb0   :  { %11603 = vmatprep.subr.bf16.mxu1 %v14326_v47  ;;  %11630 = vmatprep.subr.bf16.mxu0 %v15181_v35  ;;  %v7829_v12 = vmul.f32 -1.442695, %v11977_v50 }
 0xeb1   :  { %12325 = vpow2.f32 %v7828_v38 }
 0xeb2   :  { %12327 = vpow2.f32 %v7829_v12  ;;  %v15312_v12 = vld [vmem:[#allocation35_spill] sm:$0xff] }
 0xeb3   :  { %11605 = vmatpush1.bf16.msra.mxu1 %v14331_v7  ;;  %11632 = vmatpush3.bf16.msra.mxu0 %v14255_v26 }
 0xeb4   :  { %11607 = vmatprep.subr.bf16.mxu1 %v14334_v63  ;;  %11633 = vmatprep.subr.bf16.mxu0 %v15181_v35 }
 0xeb7   :  { %11609 = vmatpush1.bf16.msra.mxu1 %v14339_v1  ;;  %11635 = vmatpush3.bf16.msra.mxu0 %v14265_v34 }
 0xeb8   :  { %11611 = vmatprep.subr.bf16.mxu1 %v14342_v15  ;;  %11636 = vmatprep.subr.bf16.mxu0 %v15181_v35 }
 0xebb   :  { %v12326_v53 = vpop.eup %12325  ;;  %11613 = vmatpush1.bf16.msra.mxu1 %v14347_v39  ;;  %11638 = vmatpush3.bf16.msra.mxu0 %v14275_v41 }
 0xebc   :  { %v6748_v18 = vadd.f32 1.0, %v12326_v53  ;;  %11615 = vmatprep.subr.bf16.mxu1 %v14350_v31  ;;  %11639 = vmatprep.subr.bf16.mxu0 %v15181_v35  ;;  %v12328_v14 = vpop.eup %12327  ;;  %v15313_v53 = vld [vmem:[#allocation29_spill] sm:$0xff] }
 0xebd   :  { %v6755_v10 = vadd.f32 1.0, %v12328_v14  ;;  %v15315_v14 = vld [vmem:[#allocation31_spill] sm:$0xff] }
 0xebe   :  { %12329 = vrcp.f32 %v6748_v18  ;;  %v15314_v18 = vld [vmem:[#allocation36_spill] sm:$0xff] }
 0xebf   :  { %11617 = vmatpush1.bf16.msra.mxu1 %v14355_v2  ;;  %11641 = vmatpush3.bf16.msra.mxu0 %v14285_v16  ;;  %12331 = vrcp.f32 %v6755_v10  ;;  %v15316_v10 = vld [vmem:[#allocation32_spill] sm:$0xff] }
 0xec0   :  { %11643 = vmatprep.subr.bf16.mxu0 %v14142_v24  ;;  %11674 = vmatprep.subr.bf16.mxu1 %v15181_v35 }
 0xec8   :  { %v12330_v32 = vpop.eup %12329 }
 0xec9   :  { %v6758_v28 = vmul.f32 %v12330_v32, %v6720_v57  ;;  %v12332_v22 = vpop.eup %12331  ;;  %v15317_v57 = vld [vmem:[#allocation33_spill] sm:$0xff]  ;;  %v15318_v32 = vld [vmem:[#allocation34_spill] sm:$0xff] }
 0xeca   :  { %v6761_v27 = vsub.f32 1.0, %v12332_v22  ;;  %v6763_v38 = vmul.f32 %v12332_v22, %v14795_v45  ;;  %v15310_v45 = vld [vmem:[#allocation45_spill] sm:$0xff] }
 0xecb   :  { %v6759_v13 = vadd.f32 %v6758_v28, %v15309_v52  ;;  %v15319_v28 = vld [vmem:[#allocation41_spill] sm:$0xff] }
 0xecc   :  { %v15320_v22 = vld [vmem:[#allocation53_spill] sm:$0xff] }
 0xecd   :  { %12333 = vtanh.f32 %v6759_v13 }
 0xed7   :  { %v12334_v4 = vpop.eup %12333 }
 0xed8   :  { %v6762_v29 = vmul.f32 %v12334_v4, %v6761_v27 }
 0xeda   :  { %v14883_v50 = vadd.f32 %v6763_v38, %v6762_v29 }
 0xedc   :  { %6977 = vmatmul.mubr.f32.vlgmr.msra.gmra.mrb[68].mxu1 %v14883_v50  ;;  %9612 = vmatmul.mubr.f32.vlgmr.msra.gmra.mrb[74].mxu0 %v14883_v50 }
 0xedd   :  { %11645 = vmatpush1.bf16.msra.mxu0 %v14148_v58  ;;  %11676 = vmatpush3.bf16.msra.mxu1 %v14210_v11 }
 0xede   :  { %11647 = vmatprep.subr.bf16.mxu0 %v14151_v5  ;;  %11677 = vmatprep.subr.bf16.mxu1 %v15181_v35 }
 0xedf   :  { %7165 = vmatprep.mubr.f32.mxu0 %v15182_v9  ;;  %9646 = vmatprep.mubr.msk.f32.mxu1 %vm12642_vm0, %v15182_v9 }
 0xee1   :  { %11649 = vmatpush1.bf16.msra.mxu0 %v14156_v30  ;;  %11679 = vmatpush3.bf16.msra.mxu1 %v14220_v48 }
 0xee2   :  { %11651 = vmatprep.subr.bf16.mxu0 %v14159_v40  ;;  %11680 = vmatprep.subr.bf16.mxu1 %v15181_v35 }
 0xee5   :  { %11653 = vmatpush1.bf16.msra.mxu0 %v14164_v54  ;;  %11682 = vmatpush3.bf16.msra.mxu1 %v14232_v62 }
 0xee6   :  { %11655 = vmatprep.subr.bf16.mxu0 %v14167_v60  ;;  %11683 = vmatprep.subr.bf16.mxu1 %v15181_v35 }
 0xee9   :  { %11657 = vmatpush1.bf16.msra.mxu0 %v14172_v55  ;;  %11685 = vmatpush3.bf16.msra.mxu1 %v14242_v17 }
 0xeea   :  { %11659 = vmatprep.subr.bf16.mxu0 %v14175_v23  ;;  %11686 = vmatprep.subr.bf16.mxu1 %v15181_v35 }
 0xeed   :  { %11661 = vmatpush1.bf16.msra.mxu0 %v14180_v33  ;;  %11688 = vmatpush3.bf16.msra.mxu1 %v15256_v61 }
 0xeee   :  { %11663 = vmatprep.subr.bf16.mxu0 %v15310_v45  ;;  %11689 = vmatprep.subr.bf16.mxu1 %v15181_v35  ;;  %v15321_v45 = vld [vmem:[#allocation38_spill] sm:$0xff] }
 0xef1   :  { %11665 = vmatpush1.bf16.msra.mxu0 %v15311_v37  ;;  %11691 = vmatpush3.bf16.msra.mxu1 %v15312_v12 }
 0xef2   :  { %11667 = vmatprep.subr.bf16.mxu0 %v15313_v53  ;;  %11692 = vmatprep.subr.bf16.mxu1 %v15181_v35 }
 0xef5   :  { %11669 = vmatpush1.bf16.msra.mxu0 %v15314_v18  ;;  %11694 = vmatpush3.bf16.msra.mxu1 %v15315_v14 }
 0xef6   :  { %11671 = vmatprep.subr.bf16.mxu0 %v15316_v10  ;;  %11695 = vmatprep.subr.bf16.mxu1 %v15181_v35 }
 0xef9   :  { %11673 = vmatpush1.bf16.msra.mxu0 %v15317_v57  ;;  %11697 = vmatpush3.bf16.msra.mxu1 %v15318_v32 }
 0xefa   :  { %11699 = vmatprep.subr.bf16.mxu1 %v15319_v28  ;;  %11730 = vmatprep.subr.bf16.mxu0 %v15181_v35 }
 0xf75   :  { %v6837_v52 = vpop.f32.mrb[42].mxu0  ;;  %v6908_v13 = vpop.f32.mrb[90].mxu1 }
 0xf76   :  { %v11951_v27 = vadd.f32 %v15320_v22, %v6837_v52  ;;  %v6839_v4 = vpop.f32.mrb[43].mxu0  ;;  %v9578_v29 = vpop.f32.mrb[91].mxu1  ;;  %v6909_v28 = vadd.f32 %v6908_v13, %v14463_v49 }
 0xf77   :  { %v11953_v14 = vadd.f32 %v15268_v43, %v6839_v4 }
 0xf78   :  { %v7830_v38 = vmul.f32 -1.442695, %v11951_v27 }
 0xf79   :  { %v7831_v10 = vmul.f32 -1.442695, %v11953_v14 }
 0xf7a   :  { %12335 = vpow2.f32 %v7830_v38 }
 0xf7b   :  { %12337 = vpow2.f32 %v7831_v10 }
 0xf84   :  { %v12336_v18 = vpop.eup %12335 }
 0xf85   :  { %v7057_v57 = vadd.f32 1.0, %v12336_v18  ;;  %v12338_v32 = vpop.eup %12337 }
 0xf86   :  { %v7064_v53 = vadd.f32 1.0, %v12338_v32 }
 0xf87   :  { %12339 = vrcp.f32 %v7057_v57 }
 0xf88   :  { %12341 = vrcp.f32 %v7064_v53 }
 0xf91   :  { %v12340_v12 = vpop.eup %12339 }
 0xf92   :  { %v7067_v37 = vmul.f32 %v12340_v12, %v6909_v28  ;;  %v12342_v29 = vpop.eup %12341 }
 0xf93   :  { %v7070_v27 = vsub.f32 1.0, %v12342_v29  ;;  %v7072_v14 = vmul.f32 %v12342_v29, %v14839_v36 }
 0xf94   :  { %v7068_v52 = vadd.f32 %v7067_v37, %v15321_v45 }
 0xf96   :  { %12343 = vtanh.f32 %v7068_v52 }
 0xfa0   :  { %v12344_v22 = vpop.eup %12343 }
 0xfa1   :  { %v7071_v4 = vmul.f32 %v12344_v22, %v7070_v27 }
 0xfa3   :  { %v14927_v10 = vadd.f32 %v7072_v14, %v7071_v4  ;;  %v15322_v4 = vld [vmem:[#allocation49_spill] sm:$0xff] }
 0xfa5   :  { %7166 = vmatmul.mubr.f32.vlgmr.msra.gmra.mrb[44].mxu0 %v14927_v10  ;;  %9647 = vmatmul.mubr.f32.vlgmr.msra.gmra.mrb[92].mxu1 %v14927_v10 }
 0xfa6   :  { %11701 = vmatpush1.bf16.msra.mxu1 %v14295_v44  ;;  %11732 = vmatpush3.bf16.msra.mxu0 %v14212_v59 }
 0xfa7   :  { %11703 = vmatprep.subr.bf16.mxu1 %v14299_v51  ;;  %11733 = vmatprep.subr.bf16.mxu0 %v15181_v35 }
 0xfa8   :  { %7306 = vmatprep.mubr.f32.mxu1 %v15182_v9  ;;  %9681 = vmatprep.mubr.msk.f32.mxu0 %vm12642_vm0, %v15182_v9 }
 0xfaa   :  { %11705 = vmatpush1.bf16.msra.mxu1 %v14305_v42  ;;  %11735 = vmatpush3.bf16.msra.mxu0 %v14223_v56 }
 0xfab   :  { %11707 = vmatprep.subr.bf16.mxu1 %v14309_v8  ;;  %11736 = vmatprep.subr.bf16.mxu0 %v15181_v35 }
 0xfae   :  { %11709 = vmatpush1.bf16.msra.mxu1 %v14315_v46  ;;  %11738 = vmatpush3.bf16.msra.mxu0 %v14235_v0 }
 0xfaf   :  { %v6978_v36 = vpop.f32.mrb[68].mxu1  ;;  %v7049_v45 = vpop.f32.mrb[74].mxu0  ;;  %11711 = vmatprep.subr.bf16.mxu1 %v14318_v20  ;;  %11739 = vmatprep.subr.bf16.mxu0 %v15181_v35 }
 0xfb0   :  { %v11971_v37 = vadd.f32 %v14494_v25, %v6978_v36  ;;  %v6980_v12 = vpop.f32.mrb[69].mxu1  ;;  %v9613_v53 = vpop.f32.mrb[75].mxu0  ;;  %v7050_v52 = vadd.f32 %v7049_v45, %v14525_v21 }
 0xfb1   :  { %v11973_v57 = vadd.f32 %v14498_v6, %v6980_v12 }
 0xfb2   :  { %v7832_v18 = vmul.f32 -1.442695, %v11971_v37  ;;  %11713 = vmatpush1.bf16.msra.mxu1 %v14323_v3  ;;  %11741 = vmatpush3.bf16.msra.mxu0 %v14245_v19 }
 0xfb3   :  { %11715 = vmatprep.subr.bf16.mxu1 %v14326_v47  ;;  %11742 = vmatprep.subr.bf16.mxu0 %v15181_v35  ;;  %v7833_v32 = vmul.f32 -1.442695, %v11973_v57 }
 0xfb4   :  { %12345 = vpow2.f32 %v7832_v18 }
 0xfb5   :  { %12347 = vpow2.f32 %v7833_v32 }
 0xfb6   :  { %11717 = vmatpush1.bf16.msra.mxu1 %v14331_v7  ;;  %11744 = vmatpush3.bf16.msra.mxu0 %v14255_v26 }
 0xfb7   :  { %11719 = vmatprep.subr.bf16.mxu1 %v14334_v63  ;;  %11745 = vmatprep.subr.bf16.mxu0 %v15181_v35 }
 0xfba   :  { %11721 = vmatpush1.bf16.msra.mxu1 %v14339_v1  ;;  %11747 = vmatpush3.bf16.msra.mxu0 %v14265_v34 }
 0xfbb   :  { %11723 = vmatprep.subr.bf16.mxu1 %v14342_v15  ;;  %11748 = vmatprep.subr.bf16.mxu0 %v15181_v35 }
 0xfbe   :  { %v12346_v28 = vpop.eup %12345  ;;  %11725 = vmatpush1.bf16.msra.mxu1 %v14347_v39  ;;  %11750 = vmatpush3.bf16.msra.mxu0 %v14275_v41 }
 0xfbf   :  { %v7078_v13 = vadd.f32 1.0, %v12346_v28  ;;  %11727 = vmatprep.subr.bf16.mxu1 %v14350_v31  ;;  %11751 = vmatprep.subr.bf16.mxu0 %v15181_v35  ;;  %v12348_v22 = vpop.eup %12347 }
 0xfc0   :  { %v7085_v38 = vadd.f32 1.0, %v12348_v22 }
 0xfc1   :  { %12349 = vrcp.f32 %v7078_v13 }
 0xfc2   :  { %11729 = vmatpush1.bf16.msra.mxu1 %v14355_v2  ;;  %11753 = vmatpush3.bf16.msra.mxu0 %v14285_v16  ;;  %12351 = vrcp.f32 %v7085_v38 }
 0xfc3   :  { %11755 = vmatprep.subr.bf16.mxu0 %v14142_v24  ;;  %11786 = vmatprep.subr.bf16.mxu1 %v15181_v35  ;;  %v15323_v24 = vld [vmem:[#allocation45_spill] sm:$0xff] }
 0xfcb   :  { %v12350_v29 = vpop.eup %12349 }
 0xfcc   :  { %v7088_v27 = vmul.f32 %v12350_v29, %v7050_v52  ;;  %v12352_v36 = vpop.eup %12351 }
 0xfcd   :  { %v7091_v37 = vsub.f32 1.0, %v12352_v36  ;;  %v7093_v18 = vmul.f32 %v12352_v36, %v14883_v50 }
 0xfce   :  { %v7089_v14 = vadd.f32 %v7088_v27, %v15322_v4 }
 0xfd0   :  { %12353 = vtanh.f32 %v7089_v14  ;;  %v15334_v14 = vld [vmem:[#allocation37_spill] sm:$0xff] }
 0xfda   :  { %v12354_v12 = vpop.eup %12353 }
 0xfdb   :  { %v7092_v53 = vmul.f32 %v12354_v12, %v7091_v37 }
 0xfdd   :  { %v14971_v57 = vadd.f32 %v7093_v18, %v7092_v53 }
 0xfdf   :  { %7307 = vmatmul.mubr.f32.vlgmr.msra.gmra.mrb[66].mxu1 %v14971_v57  ;;  %9682 = vmatmul.mubr.f32.vlgmr.msra.gmra.mrb[76].mxu0 %v14971_v57 }
 0xfe0   :  { %11757 = vmatpush1.bf16.msra.mxu0 %v14148_v58  ;;  %11788 = vmatpush3.bf16.msra.mxu1 %v14210_v11  ;;  %v15324_v58 = vld [vmem:[#allocation46_spill] sm:$0xff] }
 0xfe1   :  { %11759 = vmatprep.subr.bf16.mxu0 %v14151_v5  ;;  %11789 = vmatprep.subr.bf16.mxu1 %v15181_v35  ;;  %v15325_v5 = vld [vmem:[#allocation35_spill] sm:$0xff] }
 0xfe2   :  { %7495 = vmatprep.mubr.f32.mxu0 %v15182_v9  ;;  %9716 = vmatprep.mubr.msk.f32.mxu1 %vm12642_vm0, %v15182_v9 }
 0xfe4   :  { %11761 = vmatpush1.bf16.msra.mxu0 %v14156_v30  ;;  %11791 = vmatpush3.bf16.msra.mxu1 %v14220_v48  ;;  %v15326_v30 = vld [vmem:[#allocation29_spill] sm:$0xff] }
 0xfe5   :  { %11763 = vmatprep.subr.bf16.mxu0 %v14159_v40  ;;  %11792 = vmatprep.subr.bf16.mxu1 %v15181_v35  ;;  %v15327_v40 = vld [vmem:[#allocation36_spill] sm:$0xff] }
 0xfe8   :  { %11765 = vmatpush1.bf16.msra.mxu0 %v14164_v54  ;;  %11794 = vmatpush3.bf16.msra.mxu1 %v14232_v62  ;;  %v15328_v54 = vld [vmem:[#allocation31_spill] sm:$0xff]  ;;  %v15333_v62 = vld [vmem:[#allocation53_spill] sm:$0xff] }
 0xfe9   :  { %11767 = vmatprep.subr.bf16.mxu0 %v14167_v60  ;;  %11795 = vmatprep.subr.bf16.mxu1 %v15181_v35  ;;  %v15329_v60 = vld [vmem:[#allocation32_spill] sm:$0xff] }
 0xfec   :  { %11769 = vmatpush1.bf16.msra.mxu0 %v14172_v55  ;;  %11797 = vmatpush3.bf16.msra.mxu1 %v14242_v17  ;;  %v15330_v55 = vld [vmem:[#allocation33_spill] sm:$0xff] }
 0xfed   :  { %11771 = vmatprep.subr.bf16.mxu0 %v14175_v23  ;;  %11798 = vmatprep.subr.bf16.mxu1 %v15181_v35  ;;  %v15331_v23 = vld [vmem:[#allocation34_spill] sm:$0xff] }
 0xff0   :  { %11773 = vmatpush1.bf16.msra.mxu0 %v14180_v33  ;;  %11800 = vmatpush3.bf16.msra.mxu1 %v15256_v61  ;;  %v15332_v33 = vld [vmem:[#allocation41_spill] sm:$0xff] }
 0xff1   :  { %11775 = vmatprep.subr.bf16.mxu0 %v15323_v24  ;;  %11801 = vmatprep.subr.bf16.mxu1 %v15181_v35 }
 0xff4   :  { %11777 = vmatpush1.bf16.msra.mxu0 %v15324_v58  ;;  %11803 = vmatpush3.bf16.msra.mxu1 %v15325_v5 }
 0xff5   :  { %11779 = vmatprep.subr.bf16.mxu0 %v15326_v30  ;;  %11804 = vmatprep.subr.bf16.mxu1 %v15181_v35 }
 0xff8   :  { %11781 = vmatpush1.bf16.msra.mxu0 %v15327_v40  ;;  %11806 = vmatpush3.bf16.msra.mxu1 %v15328_v54 }
 0xff9   :  { %11783 = vmatprep.subr.bf16.mxu0 %v15329_v60  ;;  %11807 = vmatprep.subr.bf16.mxu1 %v15181_v35 }
 0xffc   :  { %11785 = vmatpush1.bf16.msra.mxu0 %v15330_v55  ;;  %11809 = vmatpush3.bf16.msra.mxu1 %v15331_v23 }
 0xffd   :  { %11811 = vmatprep.subr.bf16.mxu1 %v15332_v33  ;;  %11842 = vmatprep.subr.bf16.mxu0 %v15181_v35 }
0x1078   :  { %v7167_v11 = vpop.f32.mrb[44].mxu0  ;;  %v7238_v48 = vpop.f32.mrb[92].mxu1 }
0x1079   :  { %v11955_v17 = vadd.f32 %v15333_v62, %v7167_v11  ;;  %v7169_v61 = vpop.f32.mrb[45].mxu0  ;;  %v9648_v50 = vpop.f32.mrb[93].mxu1  ;;  %v7239_v29 = vadd.f32 %v7238_v48, %v14463_v49 }
0x107a   :  { %v11957_v32 = vadd.f32 %v15268_v43, %v7169_v61  ;;  %v15336_v61 = vld [vmem:[#allocation47_spill] sm:$0xff] }
0x107b   :  { %v7834_v45 = vmul.f32 -1.442695, %v11955_v17 }
0x107c   :  { %v7835_v28 = vmul.f32 -1.442695, %v11957_v32 }
0x107d   :  { %12355 = vpow2.f32 %v7834_v45 }
0x107e   :  { %12357 = vpow2.f32 %v7835_v28 }
0x1087   :  { %v12356_v13 = vpop.eup %12355 }
0x1088   :  { %v7387_v22 = vadd.f32 1.0, %v12356_v13  ;;  %v12358_v38 = vpop.eup %12357 }
0x1089   :  { %v7394_v52 = vadd.f32 1.0, %v12358_v38 }
0x108a   :  { %12359 = vrcp.f32 %v7387_v22 }
0x108b   :  { %12361 = vrcp.f32 %v7394_v52 }
0x1094   :  { %v12360_v27 = vpop.eup %12359 }
0x1095   :  { %v7397_v4 = vmul.f32 %v12360_v27, %v7239_v29  ;;  %v12362_v37 = vpop.eup %12361 }
0x1096   :  { %v7400_v12 = vsub.f32 1.0, %v12362_v37  ;;  %v7402_v24 = vmul.f32 %v12362_v37, %v14927_v10 }
0x1097   :  { %v7398_v36 = vadd.f32 %v7397_v4, %v15334_v14 }
0x1099   :  { %12363 = vtanh.f32 %v7398_v36 }
0x10a3   :  { %v12364_v53 = vpop.eup %12363 }
0x10a4   :  { %v7401_v18 = vmul.f32 %v12364_v53, %v7400_v12 }
0x10a6   :  { %v15015_v58 = vadd.f32 %v7402_v24, %v7401_v18 }
0x10a8   :  { %7496 = vmatmul.mubr.f32.vlgmr.msra.gmra.mrb[46].mxu0 %v15015_v58  ;;  %9717 = vmatmul.mubr.f32.vlgmr.msra.gmra.mrb[94].mxu1 %v15015_v58 }
0x10a9   :  { %11813 = vmatpush1.bf16.msra.mxu1 %v14295_v44  ;;  %11844 = vmatpush3.bf16.msra.mxu0 %v14212_v59 }
0x10aa   :  { %11815 = vmatprep.subr.bf16.mxu1 %v14299_v51  ;;  %11845 = vmatprep.subr.bf16.mxu0 %v15181_v35 }
0x10ab   :  { %7636 = vmatprep.mubr.f32.mxu1 %v15182_v9  ;;  %9751 = vmatprep.mubr.msk.f32.mxu0 %vm12642_vm0, %v15182_v9 }
0x10ad   :  { %11817 = vmatpush1.bf16.msra.mxu1 %v14305_v42  ;;  %11847 = vmatpush3.bf16.msra.mxu0 %v14223_v56 }
0x10ae   :  { %11819 = vmatprep.subr.bf16.mxu1 %v14309_v8  ;;  %11848 = vmatprep.subr.bf16.mxu0 %v15181_v35 }
0x10b1   :  { %11821 = vmatpush1.bf16.msra.mxu1 %v14315_v46  ;;  %11850 = vmatpush3.bf16.msra.mxu0 %v14235_v0 }
0x10b2   :  { %v7308_v59 = vpop.f32.mrb[66].mxu1  ;;  %v7379_v44 = vpop.f32.mrb[76].mxu0  ;;  %11823 = vmatprep.subr.bf16.mxu1 %v14318_v20  ;;  %11851 = vmatprep.subr.bf16.mxu0 %v15181_v35 }
0x10b3   :  { %v11967_v9 = vadd.f32 %v14494_v25, %v7308_v59  ;;  %v7310_v51 = vpop.f32.mrb[67].mxu1  ;;  %v9683_v42 = vpop.f32.mrb[77].mxu0  ;;  %v7380_v46 = vadd.f32 %v7379_v44, %v14525_v21  ;;  %v15337_v59 = vld [vmem:[#allocation42_spill] sm:$0xff] }
0x10b4   :  { %v11969_v56 = vadd.f32 %v14498_v6, %v7310_v51 }
0x10b5   :  { %v7836_v10 = vmul.f32 -1.442695, %v11967_v9  ;;  %11825 = vmatpush1.bf16.msra.mxu1 %v14323_v3  ;;  %11853 = vmatpush3.bf16.msra.mxu0 %v14245_v19 }
0x10b6   :  { %11827 = vmatprep.subr.bf16.mxu1 %v14326_v47  ;;  %11854 = vmatprep.subr.bf16.mxu0 %v15181_v35  ;;  %v7837_v0 = vmul.f32 -1.442695, %v11969_v56  ;;  %v15335_v47 = vld [vmem:[#allocation27_spill] sm:$0xff] }
0x10b7   :  { %12365 = vpow2.f32 %v7836_v10 }
0x10b8   :  { %12367 = vpow2.f32 %v7837_v0 }
0x10b9   :  { %11829 = vmatpush1.bf16.msra.mxu1 %v14331_v7  ;;  %11856 = vmatpush3.bf16.msra.mxu0 %v14255_v26 }
0x10ba   :  { %11831 = vmatprep.subr.bf16.mxu1 %v14334_v63  ;;  %11857 = vmatprep.subr.bf16.mxu0 %v15181_v35 }
0x10bd   :  { %11833 = vmatpush1.bf16.msra.mxu1 %v14339_v1  ;;  %11859 = vmatpush3.bf16.msra.mxu0 %v14265_v34 }
0x10be   :  { %11835 = vmatprep.subr.bf16.mxu1 %v14342_v15  ;;  %11860 = vmatprep.subr.bf16.mxu0 %v15181_v35 }
0x10c1   :  { %v12366_v19 = vpop.eup %12365  ;;  %11837 = vmatpush1.bf16.msra.mxu1 %v14347_v39  ;;  %11862 = vmatpush3.bf16.msra.mxu0 %v14275_v41 }
0x10c2   :  { %v7408_v26 = vadd.f32 1.0, %v12366_v19  ;;  %11839 = vmatprep.subr.bf16.mxu1 %v14350_v31  ;;  %11863 = vmatprep.subr.bf16.mxu0 %v15181_v35  ;;  %v12368_v34 = vpop.eup %12367 }
0x10c3   :  { %v7415_v8 = vadd.f32 1.0, %v12368_v34 }
0x10c4   :  { %12369 = vrcp.f32 %v7408_v26 }
0x10c5   :  { %11841 = vmatpush1.bf16.msra.mxu1 %v14355_v2  ;;  %11865 = vmatpush3.bf16.msra.mxu0 %v14285_v16  ;;  %12371 = vrcp.f32 %v7415_v8 }
0x10ce   :  { %v12370_v20 = vpop.eup %12369 }
0x10cf   :  { %v7418_v3 = vmul.f32 %v12370_v20, %v7380_v46  ;;  %v12372_v41 = vpop.eup %12371 }
0x10d0   :  { %v7421_v63 = vsub.f32 1.0, %v12372_v41  ;;  %v7423_v35 = vmul.f32 %v12372_v41, %v14971_v57 }
0x10d1   :  { %v7419_v7 = vadd.f32 %v7418_v3, %v15335_v47 }
0x10d3   :  { %12373 = vtanh.f32 %v7419_v7 }
0x10dd   :  { %v12374_v1 = vpop.eup %12373 }
0x10de   :  { %v7422_v15 = vmul.f32 %v12374_v1, %v7421_v63 }
0x10e0   :  { %v7424_v39 = vadd.f32 %v7423_v35, %v7422_v15 }
0x10e2   :  { %7637 = vmatmul.mubr.f32.vlgmr.msra.gmra.mrb[64].mxu1 %v7424_v39  ;;  %9752 = vmatmul.mubr.f32.vlgmr.msra.gmra.mrb[78].mxu0 %v7424_v39 }
0x117b   :  { %v7497_v16 = vpop.f32.mrb[46].mxu0  ;;  %v7568_v31 = vpop.f32.mrb[94].mxu1 }
0x117c   :  { %v11959_v2 = vadd.f32 %v15333_v62, %v7497_v16  ;;  %v7499_v5 = vpop.f32.mrb[47].mxu0  ;;  %v9718_v30 = vpop.f32.mrb[95].mxu1  ;;  %v7569_v11 = vadd.f32 %v7568_v31, %v14463_v49 }
0x117d   :  { %v11961_v54 = vadd.f32 %v15268_v43, %v7499_v5 }
0x117e   :  { %v7838_v40 = vmul.f32 -1.442695, %v11959_v2 }
0x117f   :  { %v7839_v60 = vmul.f32 -1.442695, %v11961_v54 }
0x1180   :  { %12375 = vpow2.f32 %v7838_v40 }
0x1181   :  { %12377 = vpow2.f32 %v7839_v60 }
0x118a   :  { %v12376_v55 = vpop.eup %12375 }
0x118b   :  { %v7717_v23 = vadd.f32 1.0, %v12376_v55  ;;  %v12378_v33 = vpop.eup %12377 }
0x118c   :  { %v7724_v57 = vadd.f32 1.0, %v12378_v33 }
0x118d   :  { %12379 = vrcp.f32 %v7717_v23 }
0x118e   :  { %12381 = vrcp.f32 %v7724_v57 }
0x1197   :  { %v12380_v48 = vpop.eup %12379 }
0x1198   :  { %v7727_v17 = vmul.f32 %v12380_v48, %v7569_v11  ;;  %v12382_v50 = vpop.eup %12381 }
0x1199   :  { %v7730_v45 = vsub.f32 1.0, %v12382_v50  ;;  %v7732_v28 = vmul.f32 %v12382_v50, %v15015_v58 }
0x119a   :  { %v7728_v62 = vadd.f32 %v7727_v17, %v15336_v61 }
0x119c   :  { %12383 = vtanh.f32 %v7728_v62 }
0x11a6   :  { %v12384_v32 = vpop.eup %12383 }
0x11a7   :  { %v7731_v43 = vmul.f32 %v12384_v32, %v7730_v45 }
0x11a9   :  { %v7733_v13 = vadd.f32 %v7732_v28, %v7731_v43 }
0x11ab   :  { %7757 = vst [vmem:[#allocation20 + $0x10] sm:$0xff] %v7733_v13 }
0x11b5   :  { %v7638_v22 = vpop.f32.mrb[64].mxu1  ;;  %v7709_v38 = vpop.f32.mrb[78].mxu0 }
0x11b6   :  { %v11963_v52 = vadd.f32 %v14494_v25, %v7638_v22  ;;  %v7640_v29 = vpop.f32.mrb[65].mxu1  ;;  %v9753_v49 = vpop.f32.mrb[79].mxu0  ;;  %v7710_v18 = vadd.f32 %v7709_v38, %v14525_v21 }
0x11b7   :  { %v11965_v4 = vadd.f32 %v14498_v6, %v7640_v29 }
0x11b8   :  { %v7840_v27 = vmul.f32 -1.442695, %v11963_v52 }
0x11b9   :  { %v7841_v14 = vmul.f32 -1.442695, %v11965_v4 }
0x11ba   :  { %12385 = vpow2.f32 %v7840_v27 }
0x11bb   :  { %12387 = vpow2.f32 %v7841_v14 }
0x11c4   :  { %v12386_v36 = vpop.eup %12385 }
0x11c5   :  { %v7738_v37 = vadd.f32 1.0, %v12386_v36  ;;  %v12388_v12 = vpop.eup %12387 }
0x11c6   :  { %v7745_v53 = vadd.f32 1.0, %v12388_v12 }
0x11c7   :  { %12389 = vrcp.f32 %v7738_v37 }
0x11c8   :  { %12391 = vrcp.f32 %v7745_v53 }
0x11d1   :  { %v12390_v24 = vpop.eup %12389 }
0x11d2   :  { %v7748_v58 = vmul.f32 %v12390_v24, %v7710_v18  ;;  %v12392_v44 = vpop.eup %12391 }
0x11d3   :  { %v7751_v9 = vsub.f32 1.0, %v12392_v44  ;;  %v7753_v42 = vmul.f32 %v12392_v44, %v7424_v39 }
0x11d4   :  { %v7749_v25 = vadd.f32 %v7748_v58, %v15337_v59 }
0x11d6   :  { %12393 = vtanh.f32 %v7749_v25 }
0x11e0   :  { %v12394_v51 = vpop.eup %12393 }
0x11e1   :  { %v7752_v6 = vmul.f32 %v12394_v51, %v7751_v9 }
0x11e3   :  { %v7754_v10 = vadd.f32 %v7753_v42, %v7752_v6 }
0x11e5   :  { %7758 = vst [vmem:[#allocation20 + $0x18] sm:$0xff] %v7754_v10 }
0x11e6   :  { %12604 = shalt.err (!%p12601_p6)
}
0x11e7   :  { %s15338_s29 = sld [smem:[#allocation57_spill]] }
0x11ed   :  { %s12605_s18 = scalar_lea.hbm %s15338_s29, 512 }
0x11ee   :  { %p12606_p7 = scmp.ne.s32.totalorder %s15338_s29, %s12605_s18  ;;  %p12609_p8 = scmp.lt.u32.totalorder %s12605_s18, %s15338_s29 }
0x11f0   :  { %p12611_p9 = pnand %p12609_p8, %p12606_p7 }
0x11f2   :  { %12614 = shalt.err (!%p12611_p9)
}
0x11f3   :  { %7768 = dma.vmem_to_hbm [thread:$0]  %s7766_s6, 512, %s15338_s29, [#allocation7]  }
0x11f4   :  { %12625 = dma.done.wait [#allocation7], 512  }
0x11f5   :  { %12626 = vsyncadd [#allocation7], 4294966784 }
0x11f6   :  { %7772 = vsyncpa [#allocation6], 1 }
0x11f7   :  { %7773 = vsyncpa [#allocation9], 1 }
0x11f8   :  { %7774 = vsyncpa [#allocation12], 1 }
0x11f9   :  { %7775 = vsyncpa [#allocation15], 1 }
0x11fa   :  { %7776 = vsyncpa [#allocation18], 1 }
0x11fb   :  { %7777 = vsyncpa [#allocation7], 1 }

</bundles_post_ra>
